<compile_context>
chip_gen: v6e
topology: v6e:2x2x1
jax: 0.10.0
libtpu: 0.0.40
codegen_flags: <defaults>
</compile_context>

<pallas_src>
import functools

import numpy as np
import jax
import jax.numpy as jnp
from jax import lax
from jax.experimental import pallas as pl
from jax.experimental.pallas import tpu as pltpu

EMB_SIZE = 16
HEADS = 4
HEAD_DIM = EMB_SIZE // HEADS
SRC_VOC = 16
TGT_VOC = 16
ENC_STACKS = 2
DEC_STACKS = 2
LN_EPS = 1e-5


# ---------------------------- fused Pallas kernel ----------------------------

def fused_transformer_kernel(
    x_ref, y_ref,                                   # (N*Tx, E), (N*Ty, E)
    ewk_ref, ewq_ref, ewv_ref,                      # encoder QKV, each (E, E)
    dwk_ref, dwq_ref, dwv_ref,                      # decoder QKV, each (E, E)
    ewa_ref, eba_ref, ewb_ref, ebb_ref,             # encoder FFN (S,E,E)/(S,1,E)
    dwa_ref, dba_ref, dwb_ref, dbb_ref,             # decoder FFN (S,E,E)/(S,1,E)
    g_ref, b_ref,                                   # LayerNorm gamma/beta (1, E)
    lw_ref, lb_ref,                                 # final affine (E, V), (1, V)
    o_ref,                                          # output (N*Ty, V)
    res_x_ref, res_y_ref,                           # VMEM scratch (N*Tx,E)/(N*Ty,E)
    *, N, Tx, Ty,
):
    E = EMB_SIZE
    H = HEADS
    hd = HEAD_DIM
    scale = 1.0 / float(np.sqrt(E / H))

    # Hoisted once: shared LayerNorm affine params.
    gamma = g_ref[...]                               # (1, E)
    beta = b_ref[...]                                # (1, E)

    def layer_norm(z):                               # z: (rows, E)
        mean = jnp.mean(z, axis=-1, keepdims=True)
        cz = z - mean
        var = jnp.mean(cz * cz, axis=-1, keepdims=True)
        return cz * lax.rsqrt(var + LN_EPS) * gamma + beta

    def softmax_last(s):
        m = jnp.max(s, axis=-1, keepdims=True)
        e = jnp.exp(s - m)
        return e / jnp.sum(e, axis=-1, keepdims=True)

    def mha(af, bf, cf, wl, wr, wv, Ta, Tb, res_ref):
        """Multi-head attention on flattened (N*T, E) activations.

        similarity = (a @ wl) @ (b @ wr)^T per (batch item, head), softmax over
        the key axis scaled by 1/sqrt(E/H), values from c @ wv, heads
        concatenated on the embedding axis.  Matches the reference ordering:
          self-attention : a=b=c=X, wl=WK, wr=WQ  (torch.bmm(XK, XQ^T))
          cross-attention: a=Y, b=c=H, wl=WQ, wr=WK (torch.bmm(YQ, HK^T))
        """
        # Lane-dense projections: one (N*T,16)@(16,16) dot per matrix instead of
        # N*H separate 4-wide matmuls.
        L = jnp.dot(af, wl, preferred_element_type=jnp.float32)      # (N*Ta, E)
        R = jnp.dot(bf, wr, preferred_element_type=jnp.float32)      # (N*Tb, E)
        V = jnp.dot(cf, wv, preferred_element_type=jnp.float32)      # (N*Tb, E)
        for n in range(N):
            Ln = L[n * Ta:(n + 1) * Ta]
            Rn = R[n * Tb:(n + 1) * Tb]
            Vn = V[n * Tb:(n + 1) * Tb]
            heads = []
            for h in range(H):
                c0 = h * hd
                sim = lax.dot_general(
                    Ln[:, c0:c0 + hd], Rn[:, c0:c0 + hd],
                    (((1,), (1,)), ((), ())),
                    preferred_element_type=jnp.float32) * scale      # (Ta, Tb)
                alpha = softmax_last(sim)
                heads.append(jnp.dot(alpha, Vn[:, c0:c0 + hd],
                                     preferred_element_type=jnp.float32))
            res_ref[n * Ta:(n + 1) * Ta, :] = jnp.concatenate(heads, axis=-1)
        return res_ref[...]

    ewk = ewk_ref[...]; ewq = ewq_ref[...]; ewv = ewv_ref[...]
    dwk = dwk_ref[...]; dwq = dwq_ref[...]; dwv = dwv_ref[...]

    # -------- Encoder stacks (dropout p=0.1 is eval-mode identity) -----------
    Xf = x_ref[...]                                                  # (N*Tx, E)
    for s in range(ENC_STACKS):
        res = mha(Xf, Xf, Xf, ewk, ewq, ewv, Tx, Tx, res_x_ref)
        Xf = layer_norm(Xf + res)
        h1 = jnp.maximum(
            jnp.dot(Xf, ewa_ref[s], preferred_element_type=jnp.float32)
            + eba_ref[s], 0.0)
        ffn = jnp.dot(h1, ewb_ref[s], preferred_element_type=jnp.float32) + ebb_ref[s]
        Xf = layer_norm(Xf + ffn)
    Hf = Xf                                                          # encoder output

    # -------- Decoder stacks ---------------------------------------------------
    Yf = y_ref[...]                                                  # (N*Ty, E)
    for s in range(DEC_STACKS):
        # TODO(synk): reference passes module='decoder' (lowercase) which would
        # crash on torch.cat([]); we run the intended decoder self-attention
        # (its all-False mask is a no-op anyway).
        res = mha(Yf, Yf, Yf, dwk, dwq, dwv, Ty, Ty, res_y_ref)
        Yf = layer_norm(Yf + res)
        # cross-attention: query from Y, key/value from encoder output H
        res = mha(Yf, Hf, Hf, dwq, dwk, dwv, Ty, Tx, res_y_ref)
        Yf = layer_norm(Yf + res)
        h1 = jnp.maximum(
            jnp.dot(Yf, dwa_ref[s], preferred_element_type=jnp.float32)
            + dba_ref[s], 0.0)
        ffn = jnp.dot(h1, dwb_ref[s], preferred_element_type=jnp.float32) + dbb_ref[s]
        Yf = layer_norm(Yf + ffn)

    # -------- final projection + legacy softmax over the batch axis ----------
    logits = jnp.dot(Yf, lw_ref[...], preferred_element_type=jnp.float32) + lb_ref[...]
    # F.softmax(output) with no dim on a 3-D tensor -> torch legacy implicit dim 0.
    blocks = [logits[n * Ty:(n + 1) * Ty] for n in range(N)]         # each (Ty, V)
    m = blocks[0]
    for blk in blocks[1:]:
        m = jnp.maximum(m, blk)
    exps = [jnp.exp(blk - m) for blk in blocks]
    denom = exps[0]
    for e in exps[1:]:
        denom = denom + e
    for n in range(N):
        o_ref[n * Ty:(n + 1) * Ty, :] = exps[n] / denom


# ---------------------------- wrapper ----------------------------

def transformer_forward(params, src_ids, tgt_ids):
    N, Tx = src_ids.shape
    _, Ty = tgt_ids.shape
    E, V = EMB_SIZE, TGT_VOC

    # Embedding gather stays in plain XLA (cheap, no clean tiny-Pallas gather);
    # activations are flattened to lane-dense (N*T, E) slabs before the kernel.
    Xf = jnp.take(params["src_emb"], src_ids.reshape(-1), axis=0)    # (N*Tx, E)
    Yf = jnp.take(params["tgt_emb"], tgt_ids.reshape(-1), axis=0)    # (N*Ty, E)

    vmem = pl.BlockSpec(memory_space=pltpu.MemorySpace.VMEM)
    args = (
        Xf, Yf,
        params["enc_WK"], params["enc_WQ"], params["enc_WV"],
        params["dec_WK"], params["dec_WQ"], params["dec_WV"],
        params["en_Wa"], params["en_ba"], params["en_Wb"], params["en_bb"],
        params["de_Wa"], params["de_ba"], params["de_Wb"], params["de_bb"],
        params["ln_gamma"], params["ln_beta"],
        params["last_W"], params["last_b"],
    )
    out2d = pl.pallas_call(
        functools.partial(fused_transformer_kernel, N=N, Tx=Tx, Ty=Ty),
        out_shape=jax.ShapeDtypeStruct((N * Ty, V), jnp.float32),
        in_specs=[vmem] * len(args),
        out_specs=vmem,
        scratch_shapes=[
            pltpu.VMEM((N * Tx, E), jnp.float32),   # encoder self-attn residual
            pltpu.VMEM((N * Ty, E), jnp.float32),   # decoder self/cross-attn residual
        ],
    )(*args)
    return out2d.reshape(N, Ty, V)


# ---------------------------- parameters ----------------------------

def init_params(key):
    keys = iter(jax.random.split(key, 64))

    def linear(din, dout, bias=True):
        s = 1.0 / np.sqrt(din)
        w = jax.random.uniform(next(keys), (din, dout), jnp.float32, -s, s)
        if not bias:
            return w
        b = jax.random.uniform(next(keys), (1, dout), jnp.float32, -s, s)
        return w, b

    def embedding(voc, emb):
        e = jax.random.normal(next(keys), (voc, emb), jnp.float32)
        return e.at[0].set(0.0)                      # padding_idx=0

    def qkv_concat():
        # per-head (E, hd) projections concatenated on the output axis ->
        # (E, H*hd) = (E, E); head h occupies columns [h*hd, (h+1)*hd).
        return jnp.concatenate(
            [linear(EMB_SIZE, HEAD_DIM, bias=False) for _ in range(HEADS)], axis=1)

    def ffn_stack(n):
        ws, bs = zip(*[linear(EMB_SIZE, EMB_SIZE) for _ in range(n)])
        return jnp.stack(ws, axis=0), jnp.stack(bs, axis=0)   # (n,E,E), (n,1,E)

    params = {
        "src_emb": embedding(SRC_VOC, EMB_SIZE),
        "tgt_emb": embedding(TGT_VOC, EMB_SIZE),
        # QKV matrices SHARED across all stacks (as in the reference __init__)
        "enc_WK": qkv_concat(), "enc_WQ": qkv_concat(), "enc_WV": qkv_concat(),
        "dec_WK": qkv_concat(), "dec_WQ": qkv_concat(), "dec_WV": qkv_concat(),
        # single shared LayerNorm (torch default init: gamma=1, beta=0)
        "ln_gamma": jnp.ones((1, EMB_SIZE), jnp.float32),
        "ln_beta": jnp.zeros((1, EMB_SIZE), jnp.float32),
    }
    params["en_Wa"], params["en_ba"] = ffn_stack(ENC_STACKS)
    params["en_Wb"], params["en_bb"] = ffn_stack(ENC_STACKS)
    params["de_Wa"], params["de_ba"] = ffn_stack(DEC_STACKS)
    params["de_Wb"], params["de_bb"] = ffn_stack(DEC_STACKS)
    params["last_W"], params["last_b"] = linear(EMB_SIZE, TGT_VOC)
    return params


if __name__ == "__main__":
    params = init_params(jax.random.PRNGKey(0))
    src_sentence_batch = jnp.array([[1, 2, 8], [4, 3, 2]], dtype=jnp.int32)            # (2, 3)
    tgt_sentence_batch = jnp.array([[14, 3, 9, 10], [4, 13, 12, 6]], dtype=jnp.int32)  # (2, 4)

    out = jax.jit(transformer_forward)(params, src_sentence_batch, tgt_sentence_batch)
    out = jax.block_until_ready(out)

    assert out.shape == (2, 4, TGT_VOC), out.shape
    assert bool(jnp.all(jnp.isfinite(out)))
    # softmax over axis 0 (legacy torch implicit dim for 3-D input) -> columns sum to 1 over batch
    assert bool(jnp.allclose(jnp.sum(out, axis=0), 1.0, atol=1e-4))
    print("KERNEL_OK")
</pallas_src>

<mosaic_0001>
module attributes {stable_mosaic.version = 11 : i64} {
  func.func @fused_transformer_kernel(%arg0: memref<6x16xf32, #tpu.memory_space<vmem>>, %arg1: memref<8x16xf32, #tpu.memory_space<vmem>>, %arg2: memref<16x16xf32, #tpu.memory_space<vmem>>, %arg3: memref<16x16xf32, #tpu.memory_space<vmem>>, %arg4: memref<16x16xf32, #tpu.memory_space<vmem>>, %arg5: memref<16x16xf32, #tpu.memory_space<vmem>>, %arg6: memref<16x16xf32, #tpu.memory_space<vmem>>, %arg7: memref<16x16xf32, #tpu.memory_space<vmem>>, %arg8: memref<2x16x16xf32, #tpu.memory_space<vmem>>, %arg9: memref<2x1x16xf32, #tpu.memory_space<vmem>>, %arg10: memref<2x16x16xf32, #tpu.memory_space<vmem>>, %arg11: memref<2x1x16xf32, #tpu.memory_space<vmem>>, %arg12: memref<2x16x16xf32, #tpu.memory_space<vmem>>, %arg13: memref<2x1x16xf32, #tpu.memory_space<vmem>>, %arg14: memref<2x16x16xf32, #tpu.memory_space<vmem>>, %arg15: memref<2x1x16xf32, #tpu.memory_space<vmem>>, %arg16: memref<1x16xf32, #tpu.memory_space<vmem>>, %arg17: memref<1x16xf32, #tpu.memory_space<vmem>>, %arg18: memref<16x16xf32, #tpu.memory_space<vmem>>, %arg19: memref<1x16xf32, #tpu.memory_space<vmem>>, %arg20: memref<8x16xf32, #tpu.memory_space<vmem>>, %arg21: memref<6x16xf32, #tpu.memory_space<vmem>>, %arg22: memref<8x16xf32, #tpu.memory_space<vmem>>) attributes {dimension_semantics = [], scalar_prefetch = 0 : i64, scratch_operands = 2 : i64, tpu.core_type = #tpu.core_type<tc>} {
    %c0 = arith.constant 0 : index
    %c0_0 = arith.constant 0 : index
    %0 = vector.load %arg16[%c0, %c0_0] : memref<1x16xf32, #tpu.memory_space<vmem>>, vector<1x16xf32>
    %c0_1 = arith.constant 0 : index
    %c0_2 = arith.constant 0 : index
    %1 = vector.load %arg17[%c0_1, %c0_2] : memref<1x16xf32, #tpu.memory_space<vmem>>, vector<1x16xf32>
    %c0_3 = arith.constant 0 : index
    %c0_4 = arith.constant 0 : index
    %2 = vector.load %arg2[%c0_3, %c0_4] : memref<16x16xf32, #tpu.memory_space<vmem>>, vector<16x16xf32>
    %c0_5 = arith.constant 0 : index
    %c0_6 = arith.constant 0 : index
    %3 = vector.load %arg3[%c0_5, %c0_6] : memref<16x16xf32, #tpu.memory_space<vmem>>, vector<16x16xf32>
    %c0_7 = arith.constant 0 : index
    %c0_8 = arith.constant 0 : index
    %4 = vector.load %arg4[%c0_7, %c0_8] : memref<16x16xf32, #tpu.memory_space<vmem>>, vector<16x16xf32>
    %c0_9 = arith.constant 0 : index
    %c0_10 = arith.constant 0 : index
    %5 = vector.load %arg5[%c0_9, %c0_10] : memref<16x16xf32, #tpu.memory_space<vmem>>, vector<16x16xf32>
    %c0_11 = arith.constant 0 : index
    %c0_12 = arith.constant 0 : index
    %6 = vector.load %arg6[%c0_11, %c0_12] : memref<16x16xf32, #tpu.memory_space<vmem>>, vector<16x16xf32>
    %c0_13 = arith.constant 0 : index
    %c0_14 = arith.constant 0 : index
    %7 = vector.load %arg7[%c0_13, %c0_14] : memref<16x16xf32, #tpu.memory_space<vmem>>, vector<16x16xf32>
    %c0_15 = arith.constant 0 : index
    %c0_16 = arith.constant 0 : index
    %8 = vector.load %arg0[%c0_15, %c0_16] : memref<6x16xf32, #tpu.memory_space<vmem>>, vector<6x16xf32>
    %cst = arith.constant dense<0.000000e+00> : vector<6x16xf32>
    %9 = tpu.matmul %8, %2, %cst {dimension_numbers = #tpu.dot_dimension_numbers<[1], [0], [0], [1], [0, 0, 1, 1], [], []>} : vector<6x16xf32>, vector<16x16xf32>, vector<6x16xf32> -> vector<6x16xf32>
    %cst_17 = arith.constant dense<0.000000e+00> : vector<6x16xf32>
    %10 = tpu.matmul %8, %3, %cst_17 {dimension_numbers = #tpu.dot_dimension_numbers<[1], [0], [0], [1], [0, 0, 1, 1], [], []>} : vector<6x16xf32>, vector<16x16xf32>, vector<6x16xf32> -> vector<6x16xf32>
    %cst_18 = arith.constant dense<0.000000e+00> : vector<6x16xf32>
    %11 = tpu.matmul %8, %4, %cst_18 {dimension_numbers = #tpu.dot_dimension_numbers<[1], [0], [0], [1], [0, 0, 1, 1], [], []>} : vector<6x16xf32>, vector<16x16xf32>, vector<6x16xf32> -> vector<6x16xf32>
    %12 = vector.extract_strided_slice %9 {offsets = [0, 0], sizes = [3, 16], strides = [1, 1]} : vector<6x16xf32> to vector<3x16xf32>
    %13 = vector.extract_strided_slice %10 {offsets = [0, 0], sizes = [3, 16], strides = [1, 1]} : vector<6x16xf32> to vector<3x16xf32>
    %14 = vector.extract_strided_slice %11 {offsets = [0, 0], sizes = [3, 16], strides = [1, 1]} : vector<6x16xf32> to vector<3x16xf32>
    %15 = vector.extract_strided_slice %12 {offsets = [0, 0], sizes = [3, 4], strides = [1, 1]} : vector<3x16xf32> to vector<3x4xf32>
    %16 = vector.extract_strided_slice %13 {offsets = [0, 0], sizes = [3, 4], strides = [1, 1]} : vector<3x16xf32> to vector<3x4xf32>
    %cst_19 = arith.constant dense<0.000000e+00> : vector<3x3xf32>
    %17 = tpu.matmul %15, %16, %cst_19 {dimension_numbers = #tpu.dot_dimension_numbers<[1], [1], [0], [0], [0, 0, 1, 0], [], []>} : vector<3x4xf32>, vector<3x4xf32>, vector<3x3xf32> -> vector<3x3xf32>
    %cst_20 = arith.constant 5.000000e-01 : f32
    %18 = vector.broadcast %cst_20 : f32 to vector<3x3xf32>
    %19 = arith.mulf %17, %18 : vector<3x3xf32>
    %cst_21 = arith.constant dense<0xFF800000> : vector<3xf32>
    %20 = vector.multi_reduction <maximumf>, %19, %cst_21 [1] : vector<3x3xf32> to vector<3xf32>
    %21 = vector.shape_cast %20 : vector<3xf32> to vector<3x1xf32>
    %22 = vector.broadcast %21 : vector<3x1xf32> to vector<3x3xf32>
    %23 = arith.subf %19, %22 : vector<3x3xf32>
    %24 = math.exp %23 : vector<3x3xf32>
    %cst_22 = arith.constant dense<0.000000e+00> : vector<3xf32>
    %25 = vector.multi_reduction <add>, %24, %cst_22 [1] : vector<3x3xf32> to vector<3xf32>
    %26 = vector.shape_cast %25 : vector<3xf32> to vector<3x1xf32>
    %27 = vector.broadcast %26 : vector<3x1xf32> to vector<3x3xf32>
    %28 = arith.divf %24, %27 : vector<3x3xf32>
    %29 = vector.extract_strided_slice %14 {offsets = [0, 0], sizes = [3, 4], strides = [1, 1]} : vector<3x16xf32> to vector<3x4xf32>
    %cst_23 = arith.constant dense<0.000000e+00> : vector<3x4xf32>
    %30 = tpu.matmul %28, %29, %cst_23 {dimension_numbers = #tpu.dot_dimension_numbers<[1], [0], [0], [1], [0, 0, 1, 1], [], []>} : vector<3x3xf32>, vector<3x4xf32>, vector<3x4xf32> -> vector<3x4xf32>
    %31 = vector.extract_strided_slice %12 {offsets = [0, 4], sizes = [3, 4], strides = [1, 1]} : vector<3x16xf32> to vector<3x4xf32>
    %32 = vector.extract_strided_slice %13 {offsets = [0, 4], sizes = [3, 4], strides = [1, 1]} : vector<3x16xf32> to vector<3x4xf32>
    %cst_24 = arith.constant dense<0.000000e+00> : vector<3x3xf32>
    %33 = tpu.matmul %31, %32, %cst_24 {dimension_numbers = #tpu.dot_dimension_numbers<[1], [1], [0], [0], [0, 0, 1, 0], [], []>} : vector<3x4xf32>, vector<3x4xf32>, vector<3x3xf32> -> vector<3x3xf32>
    %cst_25 = arith.constant 5.000000e-01 : f32
    %34 = vector.broadcast %cst_25 : f32 to vector<3x3xf32>
    %35 = arith.mulf %33, %34 : vector<3x3xf32>
    %cst_26 = arith.constant dense<0xFF800000> : vector<3xf32>
    %36 = vector.multi_reduction <maximumf>, %35, %cst_26 [1] : vector<3x3xf32> to vector<3xf32>
    %37 = vector.shape_cast %36 : vector<3xf32> to vector<3x1xf32>
    %38 = vector.broadcast %37 : vector<3x1xf32> to vector<3x3xf32>
    %39 = arith.subf %35, %38 : vector<3x3xf32>
    %40 = math.exp %39 : vector<3x3xf32>
    %cst_27 = arith.constant dense<0.000000e+00> : vector<3xf32>
    %41 = vector.multi_reduction <add>, %40, %cst_27 [1] : vector<3x3xf32> to vector<3xf32>
    %42 = vector.shape_cast %41 : vector<3xf32> to vector<3x1xf32>
    %43 = vector.broadcast %42 : vector<3x1xf32> to vector<3x3xf32>
    %44 = arith.divf %40, %43 : vector<3x3xf32>
    %45 = vector.extract_strided_slice %14 {offsets = [0, 4], sizes = [3, 4], strides = [1, 1]} : vector<3x16xf32> to vector<3x4xf32>
    %cst_28 = arith.constant dense<0.000000e+00> : vector<3x4xf32>
    %46 = tpu.matmul %44, %45, %cst_28 {dimension_numbers = #tpu.dot_dimension_numbers<[1], [0], [0], [1], [0, 0, 1, 1], [], []>} : vector<3x3xf32>, vector<3x4xf32>, vector<3x4xf32> -> vector<3x4xf32>
    %47 = vector.extract_strided_slice %12 {offsets = [0, 8], sizes = [3, 4], strides = [1, 1]} : vector<3x16xf32> to vector<3x4xf32>
    %48 = vector.extract_strided_slice %13 {offsets = [0, 8], sizes = [3, 4], strides = [1, 1]} : vector<3x16xf32> to vector<3x4xf32>
    %cst_29 = arith.constant dense<0.000000e+00> : vector<3x3xf32>
    %49 = tpu.matmul %47, %48, %cst_29 {dimension_numbers = #tpu.dot_dimension_numbers<[1], [1], [0], [0], [0, 0, 1, 0], [], []>} : vector<3x4xf32>, vector<3x4xf32>, vector<3x3xf32> -> vector<3x3xf32>
    %cst_30 = arith.constant 5.000000e-01 : f32
    %50 = vector.broadcast %cst_30 : f32 to vector<3x3xf32>
    %51 = arith.mulf %49, %50 : vector<3x3xf32>
    %cst_31 = arith.constant dense<0xFF800000> : vector<3xf32>
    %52 = vector.multi_reduction <maximumf>, %51, %cst_31 [1] : vector<3x3xf32> to vector<3xf32>
    %53 = vector.shape_cast %52 : vector<3xf32> to vector<3x1xf32>
    %54 = vector.broadcast %53 : vector<3x1xf32> to vector<3x3xf32>
    %55 = arith.subf %51, %54 : vector<3x3xf32>
    %56 = math.exp %55 : vector<3x3xf32>
    %cst_32 = arith.constant dense<0.000000e+00> : vector<3xf32>
    %57 = vector.multi_reduction <add>, %56, %cst_32 [1] : vector<3x3xf32> to vector<3xf32>
    %58 = vector.shape_cast %57 : vector<3xf32> to vector<3x1xf32>
    %59 = vector.broadcast %58 : vector<3x1xf32> to vector<3x3xf32>
    %60 = arith.divf %56, %59 : vector<3x3xf32>
    %61 = vector.extract_strided_slice %14 {offsets = [0, 8], sizes = [3, 4], strides = [1, 1]} : vector<3x16xf32> to vector<3x4xf32>
    %cst_33 = arith.constant dense<0.000000e+00> : vector<3x4xf32>
    %62 = tpu.matmul %60, %61, %cst_33 {dimension_numbers = #tpu.dot_dimension_numbers<[1], [0], [0], [1], [0, 0, 1, 1], [], []>} : vector<3x3xf32>, vector<3x4xf32>, vector<3x4xf32> -> vector<3x4xf32>
    %63 = vector.extract_strided_slice %12 {offsets = [0, 12], sizes = [3, 4], strides = [1, 1]} : vector<3x16xf32> to vector<3x4xf32>
    %64 = vector.extract_strided_slice %13 {offsets = [0, 12], sizes = [3, 4], strides = [1, 1]} : vector<3x16xf32> to vector<3x4xf32>
    %cst_34 = arith.constant dense<0.000000e+00> : vector<3x3xf32>
    %65 = tpu.matmul %63, %64, %cst_34 {dimension_numbers = #tpu.dot_dimension_numbers<[1], [1], [0], [0], [0, 0, 1, 0], [], []>} : vector<3x4xf32>, vector<3x4xf32>, vector<3x3xf32> -> vector<3x3xf32>
    %cst_35 = arith.constant 5.000000e-01 : f32
    %66 = vector.broadcast %cst_35 : f32 to vector<3x3xf32>
    %67 = arith.mulf %65, %66 : vector<3x3xf32>
    %cst_36 = arith.constant dense<0xFF800000> : vector<3xf32>
    %68 = vector.multi_reduction <maximumf>, %67, %cst_36 [1] : vector<3x3xf32> to vector<3xf32>
    %69 = vector.shape_cast %68 : vector<3xf32> to vector<3x1xf32>
    %70 = vector.broadcast %69 : vector<3x1xf32> to vector<3x3xf32>
    %71 = arith.subf %67, %70 : vector<3x3xf32>
    %72 = math.exp %71 : vector<3x3xf32>
    %cst_37 = arith.constant dense<0.000000e+00> : vector<3xf32>
    %73 = vector.multi_reduction <add>, %72, %cst_37 [1] : vector<3x3xf32> to vector<3xf32>
    %74 = vector.shape_cast %73 : vector<3xf32> to vector<3x1xf32>
    %75 = vector.broadcast %74 : vector<3x1xf32> to vector<3x3xf32>
    %76 = arith.divf %72, %75 : vector<3x3xf32>
    %77 = vector.extract_strided_slice %14 {offsets = [0, 12], sizes = [3, 4], strides = [1, 1]} : vector<3x16xf32> to vector<3x4xf32>
    %cst_38 = arith.constant dense<0.000000e+00> : vector<3x4xf32>
    %78 = tpu.matmul %76, %77, %cst_38 {dimension_numbers = #tpu.dot_dimension_numbers<[1], [0], [0], [1], [0, 0, 1, 1], [], []>} : vector<3x3xf32>, vector<3x4xf32>, vector<3x4xf32> -> vector<3x4xf32>
    %79 = tpu.concatenate %30, %46, %62, %78 in 1 : vector<3x4xf32>, vector<3x4xf32>, vector<3x4xf32>, vector<3x4xf32> -> vector<3x16xf32>
    %c0_39 = arith.constant 0 : index
    %c0_40 = arith.constant 0 : index
    %80 = vector.load %arg21[%c0_39, %c0_40] : memref<6x16xf32, #tpu.memory_space<vmem>>, vector<3x16xf32>
    tpu.vector_store %arg21[%c0_39, %c0_40], %79 {strides = array<i32>} : memref<6x16xf32, #tpu.memory_space<vmem>>, vector<3x16xf32>,
    %81 = vector.extract_strided_slice %9 {offsets = [3, 0], sizes = [3, 16], strides = [1, 1]} : vector<6x16xf32> to vector<3x16xf32>
    %82 = vector.extract_strided_slice %10 {offsets = [3, 0], sizes = [3, 16], strides = [1, 1]} : vector<6x16xf32> to vector<3x16xf32>
    %83 = vector.extract_strided_slice %11 {offsets = [3, 0], sizes = [3, 16], strides = [1, 1]} : vector<6x16xf32> to vector<3x16xf32>
    %84 = vector.extract_strided_slice %81 {offsets = [0, 0], sizes = [3, 4], strides = [1, 1]} : vector<3x16xf32> to vector<3x4xf32>
    %85 = vector.extract_strided_slice %82 {offsets = [0, 0], sizes = [3, 4], strides = [1, 1]} : vector<3x16xf32> to vector<3x4xf32>
    %cst_41 = arith.constant dense<0.000000e+00> : vector<3x3xf32>
    %86 = tpu.matmul %84, %85, %cst_41 {dimension_numbers = #tpu.dot_dimension_numbers<[1], [1], [0], [0], [0, 0, 1, 0], [], []>} : vector<3x4xf32>, vector<3x4xf32>, vector<3x3xf32> -> vector<3x3xf32>
    %cst_42 = arith.constant 5.000000e-01 : f32
    %87 = vector.broadcast %cst_42 : f32 to vector<3x3xf32>
    %88 = arith.mulf %86, %87 : vector<3x3xf32>
    %cst_43 = arith.constant dense<0xFF800000> : vector<3xf32>
    %89 = vector.multi_reduction <maximumf>, %88, %cst_43 [1] : vector<3x3xf32> to vector<3xf32>
    %90 = vector.shape_cast %89 : vector<3xf32> to vector<3x1xf32>
    %91 = vector.broadcast %90 : vector<3x1xf32> to vector<3x3xf32>
    %92 = arith.subf %88, %91 : vector<3x3xf32>
    %93 = math.exp %92 : vector<3x3xf32>
    %cst_44 = arith.constant dense<0.000000e+00> : vector<3xf32>
    %94 = vector.multi_reduction <add>, %93, %cst_44 [1] : vector<3x3xf32> to vector<3xf32>
    %95 = vector.shape_cast %94 : vector<3xf32> to vector<3x1xf32>
    %96 = vector.broadcast %95 : vector<3x1xf32> to vector<3x3xf32>
    %97 = arith.divf %93, %96 : vector<3x3xf32>
    %98 = vector.extract_strided_slice %83 {offsets = [0, 0], sizes = [3, 4], strides = [1, 1]} : vector<3x16xf32> to vector<3x4xf32>
    %cst_45 = arith.constant dense<0.000000e+00> : vector<3x4xf32>
    %99 = tpu.matmul %97, %98, %cst_45 {dimension_numbers = #tpu.dot_dimension_numbers<[1], [0], [0], [1], [0, 0, 1, 1], [], []>} : vector<3x3xf32>, vector<3x4xf32>, vector<3x4xf32> -> vector<3x4xf32>
    %100 = vector.extract_strided_slice %81 {offsets = [0, 4], sizes = [3, 4], strides = [1, 1]} : vector<3x16xf32> to vector<3x4xf32>
    %101 = vector.extract_strided_slice %82 {offsets = [0, 4], sizes = [3, 4], strides = [1, 1]} : vector<3x16xf32> to vector<3x4xf32>
    %cst_46 = arith.constant dense<0.000000e+00> : vector<3x3xf32>
    %102 = tpu.matmul %100, %101, %cst_46 {dimension_numbers = #tpu.dot_dimension_numbers<[1], [1], [0], [0], [0, 0, 1, 0], [], []>} : vector<3x4xf32>, vector<3x4xf32>, vector<3x3xf32> -> vector<3x3xf32>
    %cst_47 = arith.constant 5.000000e-01 : f32
    %103 = vector.broadcast %cst_47 : f32 to vector<3x3xf32>
    %104 = arith.mulf %102, %103 : vector<3x3xf32>
    %cst_48 = arith.constant dense<0xFF800000> : vector<3xf32>
    %105 = vector.multi_reduction <maximumf>, %104, %cst_48 [1] : vector<3x3xf32> to vector<3xf32>
    %106 = vector.shape_cast %105 : vector<3xf32> to vector<3x1xf32>
    %107 = vector.broadcast %106 : vector<3x1xf32> to vector<3x3xf32>
    %108 = arith.subf %104, %107 : vector<3x3xf32>
    %109 = math.exp %108 : vector<3x3xf32>
    %cst_49 = arith.constant dense<0.000000e+00> : vector<3xf32>
    %110 = vector.multi_reduction <add>, %109, %cst_49 [1] : vector<3x3xf32> to vector<3xf32>
    %111 = vector.shape_cast %110 : vector<3xf32> to vector<3x1xf32>
    %112 = vector.broadcast %111 : vector<3x1xf32> to vector<3x3xf32>
    %113 = arith.divf %109, %112 : vector<3x3xf32>
    %114 = vector.extract_strided_slice %83 {offsets = [0, 4], sizes = [3, 4], strides = [1, 1]} : vector<3x16xf32> to vector<3x4xf32>
    %cst_50 = arith.constant dense<0.000000e+00> : vector<3x4xf32>
    %115 = tpu.matmul %113, %114, %cst_50 {dimension_numbers = #tpu.dot_dimension_numbers<[1], [0], [0], [1], [0, 0, 1, 1], [], []>} : vector<3x3xf32>, vector<3x4xf32>, vector<3x4xf32> -> vector<3x4xf32>
    %116 = vector.extract_strided_slice %81 {offsets = [0, 8], sizes = [3, 4], strides = [1, 1]} : vector<3x16xf32> to vector<3x4xf32>
    %117 = vector.extract_strided_slice %82 {offsets = [0, 8], sizes = [3, 4], strides = [1, 1]} : vector<3x16xf32> to vector<3x4xf32>
    %cst_51 = arith.constant dense<0.000000e+00> : vector<3x3xf32>
    %118 = tpu.matmul %116, %117, %cst_51 {dimension_numbers = #tpu.dot_dimension_numbers<[1], [1], [0], [0], [0, 0, 1, 0], [], []>} : vector<3x4xf32>, vector<3x4xf32>, vector<3x3xf32> -> vector<3x3xf32>
    %cst_52 = arith.constant 5.000000e-01 : f32
    %119 = vector.broadcast %cst_52 : f32 to vector<3x3xf32>
    %120 = arith.mulf %118, %119 : vector<3x3xf32>
    %cst_53 = arith.constant dense<0xFF800000> : vector<3xf32>
    %121 = vector.multi_reduction <maximumf>, %120, %cst_53 [1] : vector<3x3xf32> to vector<3xf32>
    %122 = vector.shape_cast %121 : vector<3xf32> to vector<3x1xf32>
    %123 = vector.broadcast %122 : vector<3x1xf32> to vector<3x3xf32>
    %124 = arith.subf %120, %123 : vector<3x3xf32>
    %125 = math.exp %124 : vector<3x3xf32>
    %cst_54 = arith.constant dense<0.000000e+00> : vector<3xf32>
    %126 = vector.multi_reduction <add>, %125, %cst_54 [1] : vector<3x3xf32> to vector<3xf32>
    %127 = vector.shape_cast %126 : vector<3xf32> to vector<3x1xf32>
    %128 = vector.broadcast %127 : vector<3x1xf32> to vector<3x3xf32>
    %129 = arith.divf %125, %128 : vector<3x3xf32>
    %130 = vector.extract_strided_slice %83 {offsets = [0, 8], sizes = [3, 4], strides = [1, 1]} : vector<3x16xf32> to vector<3x4xf32>
    %cst_55 = arith.constant dense<0.000000e+00> : vector<3x4xf32>
    %131 = tpu.matmul %129, %130, %cst_55 {dimension_numbers = #tpu.dot_dimension_numbers<[1], [0], [0], [1], [0, 0, 1, 1], [], []>} : vector<3x3xf32>, vector<3x4xf32>, vector<3x4xf32> -> vector<3x4xf32>
    %132 = vector.extract_strided_slice %81 {offsets = [0, 12], sizes = [3, 4], strides = [1, 1]} : vector<3x16xf32> to vector<3x4xf32>
    %133 = vector.extract_strided_slice %82 {offsets = [0, 12], sizes = [3, 4], strides = [1, 1]} : vector<3x16xf32> to vector<3x4xf32>
    %cst_56 = arith.constant dense<0.000000e+00> : vector<3x3xf32>
    %134 = tpu.matmul %132, %133, %cst_56 {dimension_numbers = #tpu.dot_dimension_numbers<[1], [1], [0], [0], [0, 0, 1, 0], [], []>} : vector<3x4xf32>, vector<3x4xf32>, vector<3x3xf32> -> vector<3x3xf32>
    %cst_57 = arith.constant 5.000000e-01 : f32
    %135 = vector.broadcast %cst_57 : f32 to vector<3x3xf32>
    %136 = arith.mulf %134, %135 : vector<3x3xf32>
    %cst_58 = arith.constant dense<0xFF800000> : vector<3xf32>
    %137 = vector.multi_reduction <maximumf>, %136, %cst_58 [1] : vector<3x3xf32> to vector<3xf32>
    %138 = vector.shape_cast %137 : vector<3xf32> to vector<3x1xf32>
    %139 = vector.broadcast %138 : vector<3x1xf32> to vector<3x3xf32>
    %140 = arith.subf %136, %139 : vector<3x3xf32>
    %141 = math.exp %140 : vector<3x3xf32>
    %cst_59 = arith.constant dense<0.000000e+00> : vector<3xf32>
    %142 = vector.multi_reduction <add>, %141, %cst_59 [1] : vector<3x3xf32> to vector<3xf32>
    %143 = vector.shape_cast %142 : vector<3xf32> to vector<3x1xf32>
    %144 = vector.broadcast %143 : vector<3x1xf32> to vector<3x3xf32>
    %145 = arith.divf %141, %144 : vector<3x3xf32>
    %146 = vector.extract_strided_slice %83 {offsets = [0, 12], sizes = [3, 4], strides = [1, 1]} : vector<3x16xf32> to vector<3x4xf32>
    %cst_60 = arith.constant dense<0.000000e+00> : vector<3x4xf32>
    %147 = tpu.matmul %145, %146, %cst_60 {dimension_numbers = #tpu.dot_dimension_numbers<[1], [0], [0], [1], [0, 0, 1, 1], [], []>} : vector<3x3xf32>, vector<3x4xf32>, vector<3x4xf32> -> vector<3x4xf32>
    %148 = tpu.concatenate %99, %115, %131, %147 in 1 : vector<3x4xf32>, vector<3x4xf32>, vector<3x4xf32>, vector<3x4xf32> -> vector<3x16xf32>
    %c3 = arith.constant 3 : index
    %c0_61 = arith.constant 0 : index
    %149 = vector.load %arg21[%c3, %c0_61] : memref<6x16xf32, #tpu.memory_space<vmem>>, vector<3x16xf32>
    tpu.vector_store %arg21[%c3, %c0_61], %148 {strides = array<i32>} : memref<6x16xf32, #tpu.memory_space<vmem>>, vector<3x16xf32>,
    %c0_62 = arith.constant 0 : index
    %c0_63 = arith.constant 0 : index
    %150 = vector.load %arg21[%c0_62, %c0_63] : memref<6x16xf32, #tpu.memory_space<vmem>>, vector<6x16xf32>
    %151 = arith.addf %8, %150 : vector<6x16xf32>
    %cst_64 = arith.constant dense<0.000000e+00> : vector<6xf32>
    %152 = vector.multi_reduction <add>, %151, %cst_64 [1] : vector<6x16xf32> to vector<6xf32>
    %153 = vector.shape_cast %152 : vector<6xf32> to vector<6x1xf32>
    %cst_65 = arith.constant 1.600000e+01 : f32
    %154 = vector.broadcast %cst_65 : f32 to vector<6x1xf32>
    %155 = arith.divf %153, %154 : vector<6x1xf32>
    %156 = vector.broadcast %155 : vector<6x1xf32> to vector<6x16xf32>
    %157 = arith.subf %151, %156 : vector<6x16xf32>
    %158 = arith.mulf %157, %157 : vector<6x16xf32>
    %cst_66 = arith.constant dense<0.000000e+00> : vector<6xf32>
    %159 = vector.multi_reduction <add>, %158, %cst_66 [1] : vector<6x16xf32> to vector<6xf32>
    %160 = vector.shape_cast %159 : vector<6xf32> to vector<6x1xf32>
    %cst_67 = arith.constant 1.600000e+01 : f32
    %161 = vector.broadcast %cst_67 : f32 to vector<6x1xf32>
    %162 = arith.divf %160, %161 : vector<6x1xf32>
    %cst_68 = arith.constant 9.99999974E-6 : f32
    %163 = vector.broadcast %cst_68 : f32 to vector<6x1xf32>
    %164 = arith.addf %162, %163 : vector<6x1xf32>
    %165 = math.rsqrt %164 : vector<6x1xf32>
    %166 = vector.broadcast %165 : vector<6x1xf32> to vector<6x16xf32>
    %167 = arith.mulf %157, %166 : vector<6x16xf32>
    %168 = vector.broadcast %0 : vector<1x16xf32> to vector<6x16xf32>
    %169 = arith.mulf %167, %168 : vector<6x16xf32>
    %170 = vector.broadcast %1 : vector<1x16xf32> to vector<6x16xf32>
    %171 = arith.addf %169, %170 : vector<6x16xf32>
    %c0_69 = arith.constant 0 : index
    %c0_70 = arith.constant 0 : index
    %c0_71 = arith.constant 0 : index
    %172 = vector.load %arg8[%c0_69, %c0_70, %c0_71] : memref<2x16x16xf32, #tpu.memory_space<vmem>>, vector<1x16x16xf32>
    %173 = vector.shape_cast %172 : vector<1x16x16xf32> to vector<16x16xf32>
    %cst_72 = arith.constant dense<0.000000e+00> : vector<6x16xf32>
    %174 = tpu.matmul %171, %173, %cst_72 {dimension_numbers = #tpu.dot_dimension_numbers<[1], [0], [0], [1], [0, 0, 1, 1], [], []>} : vector<6x16xf32>, vector<16x16xf32>, vector<6x16xf32> -> vector<6x16xf32>
    %c0_73 = arith.constant 0 : index
    %c0_74 = arith.constant 0 : index
    %c0_75 = arith.constant 0 : index
    %175 = vector.load %arg9[%c0_73, %c0_74, %c0_75] : memref<2x1x16xf32, #tpu.memory_space<vmem>>, vector<1x1x16xf32>
    %176 = vector.shape_cast %175 : vector<1x1x16xf32> to vector<1x16xf32>
    %177 = vector.broadcast %176 : vector<1x16xf32> to vector<6x16xf32>
    %178 = arith.addf %174, %177 : vector<6x16xf32>
    %cst_76 = arith.constant 0.000000e+00 : f32
    %179 = vector.broadcast %cst_76 : f32 to vector<6x16xf32>
    %180 = arith.maximumf %178, %179 : vector<6x16xf32>
    %c0_77 = arith.constant 0 : index
    %c0_78 = arith.constant 0 : index
    %c0_79 = arith.constant 0 : index
    %181 = vector.load %arg10[%c0_77, %c0_78, %c0_79] : memref<2x16x16xf32, #tpu.memory_space<vmem>>, vector<1x16x16xf32>
    %182 = vector.shape_cast %181 : vector<1x16x16xf32> to vector<16x16xf32>
    %cst_80 = arith.constant dense<0.000000e+00> : vector<6x16xf32>
    %183 = tpu.matmul %180, %182, %cst_80 {dimension_numbers = #tpu.dot_dimension_numbers<[1], [0], [0], [1], [0, 0, 1, 1], [], []>} : vector<6x16xf32>, vector<16x16xf32>, vector<6x16xf32> -> vector<6x16xf32>
    %c0_81 = arith.constant 0 : index
    %c0_82 = arith.constant 0 : index
    %c0_83 = arith.constant 0 : index
    %184 = vector.load %arg11[%c0_81, %c0_82, %c0_83] : memref<2x1x16xf32, #tpu.memory_space<vmem>>, vector<1x1x16xf32>
    %185 = vector.shape_cast %184 : vector<1x1x16xf32> to vector<1x16xf32>
    %186 = vector.broadcast %185 : vector<1x16xf32> to vector<6x16xf32>
    %187 = arith.addf %183, %186 : vector<6x16xf32>
    %188 = arith.addf %171, %187 : vector<6x16xf32>
    %cst_84 = arith.constant dense<0.000000e+00> : vector<6xf32>
    %189 = vector.multi_reduction <add>, %188, %cst_84 [1] : vector<6x16xf32> to vector<6xf32>
    %190 = vector.shape_cast %189 : vector<6xf32> to vector<6x1xf32>
    %cst_85 = arith.constant 1.600000e+01 : f32
    %191 = vector.broadcast %cst_85 : f32 to vector<6x1xf32>
    %192 = arith.divf %190, %191 : vector<6x1xf32>
    %193 = vector.broadcast %192 : vector<6x1xf32> to vector<6x16xf32>
    %194 = arith.subf %188, %193 : vector<6x16xf32>
    %195 = arith.mulf %194, %194 : vector<6x16xf32>
    %cst_86 = arith.constant dense<0.000000e+00> : vector<6xf32>
    %196 = vector.multi_reduction <add>, %195, %cst_86 [1] : vector<6x16xf32> to vector<6xf32>
    %197 = vector.shape_cast %196 : vector<6xf32> to vector<6x1xf32>
    %cst_87 = arith.constant 1.600000e+01 : f32
    %198 = vector.broadcast %cst_87 : f32 to vector<6x1xf32>
    %199 = arith.divf %197, %198 : vector<6x1xf32>
    %cst_88 = arith.constant 9.99999974E-6 : f32
    %200 = vector.broadcast %cst_88 : f32 to vector<6x1xf32>
    %201 = arith.addf %199, %200 : vector<6x1xf32>
    %202 = math.rsqrt %201 : vector<6x1xf32>
    %203 = vector.broadcast %202 : vector<6x1xf32> to vector<6x16xf32>
    %204 = arith.mulf %194, %203 : vector<6x16xf32>
    %205 = vector.broadcast %0 : vector<1x16xf32> to vector<6x16xf32>
    %206 = arith.mulf %204, %205 : vector<6x16xf32>
    %207 = vector.broadcast %1 : vector<1x16xf32> to vector<6x16xf32>
    %208 = arith.addf %206, %207 : vector<6x16xf32>
    %cst_89 = arith.constant dense<0.000000e+00> : vector<6x16xf32>
    %209 = tpu.matmul %208, %2, %cst_89 {dimension_numbers = #tpu.dot_dimension_numbers<[1], [0], [0], [1], [0, 0, 1, 1], [], []>} : vector<6x16xf32>, vector<16x16xf32>, vector<6x16xf32> -> vector<6x16xf32>
    %cst_90 = arith.constant dense<0.000000e+00> : vector<6x16xf32>
    %210 = tpu.matmul %208, %3, %cst_90 {dimension_numbers = #tpu.dot_dimension_numbers<[1], [0], [0], [1], [0, 0, 1, 1], [], []>} : vector<6x16xf32>, vector<16x16xf32>, vector<6x16xf32> -> vector<6x16xf32>
    %cst_91 = arith.constant dense<0.000000e+00> : vector<6x16xf32>
    %211 = tpu.matmul %208, %4, %cst_91 {dimension_numbers = #tpu.dot_dimension_numbers<[1], [0], [0], [1], [0, 0, 1, 1], [], []>} : vector<6x16xf32>, vector<16x16xf32>, vector<6x16xf32> -> vector<6x16xf32>
    %212 = vector.extract_strided_slice %209 {offsets = [0, 0], sizes = [3, 16], strides = [1, 1]} : vector<6x16xf32> to vector<3x16xf32>
    %213 = vector.extract_strided_slice %210 {offsets = [0, 0], sizes = [3, 16], strides = [1, 1]} : vector<6x16xf32> to vector<3x16xf32>
    %214 = vector.extract_strided_slice %211 {offsets = [0, 0], sizes = [3, 16], strides = [1, 1]} : vector<6x16xf32> to vector<3x16xf32>
    %215 = vector.extract_strided_slice %212 {offsets = [0, 0], sizes = [3, 4], strides = [1, 1]} : vector<3x16xf32> to vector<3x4xf32>
    %216 = vector.extract_strided_slice %213 {offsets = [0, 0], sizes = [3, 4], strides = [1, 1]} : vector<3x16xf32> to vector<3x4xf32>
    %cst_92 = arith.constant dense<0.000000e+00> : vector<3x3xf32>
    %217 = tpu.matmul %215, %216, %cst_92 {dimension_numbers = #tpu.dot_dimension_numbers<[1], [1], [0], [0], [0, 0, 1, 0], [], []>} : vector<3x4xf32>, vector<3x4xf32>, vector<3x3xf32> -> vector<3x3xf32>
    %cst_93 = arith.constant 5.000000e-01 : f32
    %218 = vector.broadcast %cst_93 : f32 to vector<3x3xf32>
    %219 = arith.mulf %217, %218 : vector<3x3xf32>
    %cst_94 = arith.constant dense<0xFF800000> : vector<3xf32>
    %220 = vector.multi_reduction <maximumf>, %219, %cst_94 [1] : vector<3x3xf32> to vector<3xf32>
    %221 = vector.shape_cast %220 : vector<3xf32> to vector<3x1xf32>
    %222 = vector.broadcast %221 : vector<3x1xf32> to vector<3x3xf32>
    %223 = arith.subf %219, %222 : vector<3x3xf32>
    %224 = math.exp %223 : vector<3x3xf32>
    %cst_95 = arith.constant dense<0.000000e+00> : vector<3xf32>
    %225 = vector.multi_reduction <add>, %224, %cst_95 [1] : vector<3x3xf32> to vector<3xf32>
    %226 = vector.shape_cast %225 : vector<3xf32> to vector<3x1xf32>
    %227 = vector.broadcast %226 : vector<3x1xf32> to vector<3x3xf32>
    %228 = arith.divf %224, %227 : vector<3x3xf32>
    %229 = vector.extract_strided_slice %214 {offsets = [0, 0], sizes = [3, 4], strides = [1, 1]} : vector<3x16xf32> to vector<3x4xf32>
    %cst_96 = arith.constant dense<0.000000e+00> : vector<3x4xf32>
    %230 = tpu.matmul %228, %229, %cst_96 {dimension_numbers = #tpu.dot_dimension_numbers<[1], [0], [0], [1], [0, 0, 1, 1], [], []>} : vector<3x3xf32>, vector<3x4xf32>, vector<3x4xf32> -> vector<3x4xf32>
    %231 = vector.extract_strided_slice %212 {offsets = [0, 4], sizes = [3, 4], strides = [1, 1]} : vector<3x16xf32> to vector<3x4xf32>
    %232 = vector.extract_strided_slice %213 {offsets = [0, 4], sizes = [3, 4], strides = [1, 1]} : vector<3x16xf32> to vector<3x4xf32>
    %cst_97 = arith.constant dense<0.000000e+00> : vector<3x3xf32>
    %233 = tpu.matmul %231, %232, %cst_97 {dimension_numbers = #tpu.dot_dimension_numbers<[1], [1], [0], [0], [0, 0, 1, 0], [], []>} : vector<3x4xf32>, vector<3x4xf32>, vector<3x3xf32> -> vector<3x3xf32>
    %cst_98 = arith.constant 5.000000e-01 : f32
    %234 = vector.broadcast %cst_98 : f32 to vector<3x3xf32>
    %235 = arith.mulf %233, %234 : vector<3x3xf32>
    %cst_99 = arith.constant dense<0xFF800000> : vector<3xf32>
    %236 = vector.multi_reduction <maximumf>, %235, %cst_99 [1] : vector<3x3xf32> to vector<3xf32>
    %237 = vector.shape_cast %236 : vector<3xf32> to vector<3x1xf32>
    %238 = vector.broadcast %237 : vector<3x1xf32> to vector<3x3xf32>
    %239 = arith.subf %235, %238 : vector<3x3xf32>
    %240 = math.exp %239 : vector<3x3xf32>
    %cst_100 = arith.constant dense<0.000000e+00> : vector<3xf32>
    %241 = vector.multi_reduction <add>, %240, %cst_100 [1] : vector<3x3xf32> to vector<3xf32>
    %242 = vector.shape_cast %241 : vector<3xf32> to vector<3x1xf32>
    %243 = vector.broadcast %242 : vector<3x1xf32> to vector<3x3xf32>
    %244 = arith.divf %240, %243 : vector<3x3xf32>
    %245 = vector.extract_strided_slice %214 {offsets = [0, 4], sizes = [3, 4], strides = [1, 1]} : vector<3x16xf32> to vector<3x4xf32>
    %cst_101 = arith.constant dense<0.000000e+00> : vector<3x4xf32>
    %246 = tpu.matmul %244, %245, %cst_101 {dimension_numbers = #tpu.dot_dimension_numbers<[1], [0], [0], [1], [0, 0, 1, 1], [], []>} : vector<3x3xf32>, vector<3x4xf32>, vector<3x4xf32> -> vector<3x4xf32>
    %247 = vector.extract_strided_slice %212 {offsets = [0, 8], sizes = [3, 4], strides = [1, 1]} : vector<3x16xf32> to vector<3x4xf32>
    %248 = vector.extract_strided_slice %213 {offsets = [0, 8], sizes = [3, 4], strides = [1, 1]} : vector<3x16xf32> to vector<3x4xf32>
    %cst_102 = arith.constant dense<0.000000e+00> : vector<3x3xf32>
    %249 = tpu.matmul %247, %248, %cst_102 {dimension_numbers = #tpu.dot_dimension_numbers<[1], [1], [0], [0], [0, 0, 1, 0], [], []>} : vector<3x4xf32>, vector<3x4xf32>, vector<3x3xf32> -> vector<3x3xf32>
    %cst_103 = arith.constant 5.000000e-01 : f32
    %250 = vector.broadcast %cst_103 : f32 to vector<3x3xf32>
    %251 = arith.mulf %249, %250 : vector<3x3xf32>
    %cst_104 = arith.constant dense<0xFF800000> : vector<3xf32>
    %252 = vector.multi_reduction <maximumf>, %251, %cst_104 [1] : vector<3x3xf32> to vector<3xf32>
    %253 = vector.shape_cast %252 : vector<3xf32> to vector<3x1xf32>
    %254 = vector.broadcast %253 : vector<3x1xf32> to vector<3x3xf32>
    %255 = arith.subf %251, %254 : vector<3x3xf32>
    %256 = math.exp %255 : vector<3x3xf32>
    %cst_105 = arith.constant dense<0.000000e+00> : vector<3xf32>
    %257 = vector.multi_reduction <add>, %256, %cst_105 [1] : vector<3x3xf32> to vector<3xf32>
    %258 = vector.shape_cast %257 : vector<3xf32> to vector<3x1xf32>
    %259 = vector.broadcast %258 : vector<3x1xf32> to vector<3x3xf32>
    %260 = arith.divf %256, %259 : vector<3x3xf32>
    %261 = vector.extract_strided_slice %214 {offsets = [0, 8], sizes = [3, 4], strides = [1, 1]} : vector<3x16xf32> to vector<3x4xf32>
    %cst_106 = arith.constant dense<0.000000e+00> : vector<3x4xf32>
    %262 = tpu.matmul %260, %261, %cst_106 {dimension_numbers = #tpu.dot_dimension_numbers<[1], [0], [0], [1], [0, 0, 1, 1], [], []>} : vector<3x3xf32>, vector<3x4xf32>, vector<3x4xf32> -> vector<3x4xf32>
    %263 = vector.extract_strided_slice %212 {offsets = [0, 12], sizes = [3, 4], strides = [1, 1]} : vector<3x16xf32> to vector<3x4xf32>
    %264 = vector.extract_strided_slice %213 {offsets = [0, 12], sizes = [3, 4], strides = [1, 1]} : vector<3x16xf32> to vector<3x4xf32>
    %cst_107 = arith.constant dense<0.000000e+00> : vector<3x3xf32>
    %265 = tpu.matmul %263, %264, %cst_107 {dimension_numbers = #tpu.dot_dimension_numbers<[1], [1], [0], [0], [0, 0, 1, 0], [], []>} : vector<3x4xf32>, vector<3x4xf32>, vector<3x3xf32> -> vector<3x3xf32>
    %cst_108 = arith.constant 5.000000e-01 : f32
    %266 = vector.broadcast %cst_108 : f32 to vector<3x3xf32>
    %267 = arith.mulf %265, %266 : vector<3x3xf32>
    %cst_109 = arith.constant dense<0xFF800000> : vector<3xf32>
    %268 = vector.multi_reduction <maximumf>, %267, %cst_109 [1] : vector<3x3xf32> to vector<3xf32>
    %269 = vector.shape_cast %268 : vector<3xf32> to vector<3x1xf32>
    %270 = vector.broadcast %269 : vector<3x1xf32> to vector<3x3xf32>
    %271 = arith.subf %267, %270 : vector<3x3xf32>
    %272 = math.exp %271 : vector<3x3xf32>
    %cst_110 = arith.constant dense<0.000000e+00> : vector<3xf32>
    %273 = vector.multi_reduction <add>, %272, %cst_110 [1] : vector<3x3xf32> to vector<3xf32>
    %274 = vector.shape_cast %273 : vector<3xf32> to vector<3x1xf32>
    %275 = vector.broadcast %274 : vector<3x1xf32> to vector<3x3xf32>
    %276 = arith.divf %272, %275 : vector<3x3xf32>
    %277 = vector.extract_strided_slice %214 {offsets = [0, 12], sizes = [3, 4], strides = [1, 1]} : vector<3x16xf32> to vector<3x4xf32>
    %cst_111 = arith.constant dense<0.000000e+00> : vector<3x4xf32>
    %278 = tpu.matmul %276, %277, %cst_111 {dimension_numbers = #tpu.dot_dimension_numbers<[1], [0], [0], [1], [0, 0, 1, 1], [], []>} : vector<3x3xf32>, vector<3x4xf32>, vector<3x4xf32> -> vector<3x4xf32>
    %279 = tpu.concatenate %230, %246, %262, %278 in 1 : vector<3x4xf32>, vector<3x4xf32>, vector<3x4xf32>, vector<3x4xf32> -> vector<3x16xf32>
    %c0_112 = arith.constant 0 : index
    %c0_113 = arith.constant 0 : index
    %280 = vector.load %arg21[%c0_112, %c0_113] : memref<6x16xf32, #tpu.memory_space<vmem>>, vector<3x16xf32>
    tpu.vector_store %arg21[%c0_112, %c0_113], %279 {strides = array<i32>} : memref<6x16xf32, #tpu.memory_space<vmem>>, vector<3x16xf32>,
    %281 = vector.extract_strided_slice %209 {offsets = [3, 0], sizes = [3, 16], strides = [1, 1]} : vector<6x16xf32> to vector<3x16xf32>
    %282 = vector.extract_strided_slice %210 {offsets = [3, 0], sizes = [3, 16], strides = [1, 1]} : vector<6x16xf32> to vector<3x16xf32>
    %283 = vector.extract_strided_slice %211 {offsets = [3, 0], sizes = [3, 16], strides = [1, 1]} : vector<6x16xf32> to vector<3x16xf32>
    %284 = vector.extract_strided_slice %281 {offsets = [0, 0], sizes = [3, 4], strides = [1, 1]} : vector<3x16xf32> to vector<3x4xf32>
    %285 = vector.extract_strided_slice %282 {offsets = [0, 0], sizes = [3, 4], strides = [1, 1]} : vector<3x16xf32> to vector<3x4xf32>
    %cst_114 = arith.constant dense<0.000000e+00> : vector<3x3xf32>
    %286 = tpu.matmul %284, %285, %cst_114 {dimension_numbers = #tpu.dot_dimension_numbers<[1], [1], [0], [0], [0, 0, 1, 0], [], []>} : vector<3x4xf32>, vector<3x4xf32>, vector<3x3xf32> -> vector<3x3xf32>
    %cst_115 = arith.constant 5.000000e-01 : f32
    %287 = vector.broadcast %cst_115 : f32 to vector<3x3xf32>
    %288 = arith.mulf %286, %287 : vector<3x3xf32>
    %cst_116 = arith.constant dense<0xFF800000> : vector<3xf32>
    %289 = vector.multi_reduction <maximumf>, %288, %cst_116 [1] : vector<3x3xf32> to vector<3xf32>
    %290 = vector.shape_cast %289 : vector<3xf32> to vector<3x1xf32>
    %291 = vector.broadcast %290 : vector<3x1xf32> to vector<3x3xf32>
    %292 = arith.subf %288, %291 : vector<3x3xf32>
    %293 = math.exp %292 : vector<3x3xf32>
    %cst_117 = arith.constant dense<0.000000e+00> : vector<3xf32>
    %294 = vector.multi_reduction <add>, %293, %cst_117 [1] : vector<3x3xf32> to vector<3xf32>
    %295 = vector.shape_cast %294 : vector<3xf32> to vector<3x1xf32>
    %296 = vector.broadcast %295 : vector<3x1xf32> to vector<3x3xf32>
    %297 = arith.divf %293, %296 : vector<3x3xf32>
    %298 = vector.extract_strided_slice %283 {offsets = [0, 0], sizes = [3, 4], strides = [1, 1]} : vector<3x16xf32> to vector<3x4xf32>
    %cst_118 = arith.constant dense<0.000000e+00> : vector<3x4xf32>
    %299 = tpu.matmul %297, %298, %cst_118 {dimension_numbers = #tpu.dot_dimension_numbers<[1], [0], [0], [1], [0, 0, 1, 1], [], []>} : vector<3x3xf32>, vector<3x4xf32>, vector<3x4xf32> -> vector<3x4xf32>
    %300 = vector.extract_strided_slice %281 {offsets = [0, 4], sizes = [3, 4], strides = [1, 1]} : vector<3x16xf32> to vector<3x4xf32>
    %301 = vector.extract_strided_slice %282 {offsets = [0, 4], sizes = [3, 4], strides = [1, 1]} : vector<3x16xf32> to vector<3x4xf32>
    %cst_119 = arith.constant dense<0.000000e+00> : vector<3x3xf32>
    %302 = tpu.matmul %300, %301, %cst_119 {dimension_numbers = #tpu.dot_dimension_numbers<[1], [1], [0], [0], [0, 0, 1, 0], [], []>} : vector<3x4xf32>, vector<3x4xf32>, vector<3x3xf32> -> vector<3x3xf32>
    %cst_120 = arith.constant 5.000000e-01 : f32
    %303 = vector.broadcast %cst_120 : f32 to vector<3x3xf32>
    %304 = arith.mulf %302, %303 : vector<3x3xf32>
    %cst_121 = arith.constant dense<0xFF800000> : vector<3xf32>
    %305 = vector.multi_reduction <maximumf>, %304, %cst_121 [1] : vector<3x3xf32> to vector<3xf32>
    %306 = vector.shape_cast %305 : vector<3xf32> to vector<3x1xf32>
    %307 = vector.broadcast %306 : vector<3x1xf32> to vector<3x3xf32>
    %308 = arith.subf %304, %307 : vector<3x3xf32>
    %309 = math.exp %308 : vector<3x3xf32>
    %cst_122 = arith.constant dense<0.000000e+00> : vector<3xf32>
    %310 = vector.multi_reduction <add>, %309, %cst_122 [1] : vector<3x3xf32> to vector<3xf32>
    %311 = vector.shape_cast %310 : vector<3xf32> to vector<3x1xf32>
    %312 = vector.broadcast %311 : vector<3x1xf32> to vector<3x3xf32>
    %313 = arith.divf %309, %312 : vector<3x3xf32>
    %314 = vector.extract_strided_slice %283 {offsets = [0, 4], sizes = [3, 4], strides = [1, 1]} : vector<3x16xf32> to vector<3x4xf32>
    %cst_123 = arith.constant dense<0.000000e+00> : vector<3x4xf32>
    %315 = tpu.matmul %313, %314, %cst_123 {dimension_numbers = #tpu.dot_dimension_numbers<[1], [0], [0], [1], [0, 0, 1, 1], [], []>} : vector<3x3xf32>, vector<3x4xf32>, vector<3x4xf32> -> vector<3x4xf32>
    %316 = vector.extract_strided_slice %281 {offsets = [0, 8], sizes = [3, 4], strides = [1, 1]} : vector<3x16xf32> to vector<3x4xf32>
    %317 = vector.extract_strided_slice %282 {offsets = [0, 8], sizes = [3, 4], strides = [1, 1]} : vector<3x16xf32> to vector<3x4xf32>
    %cst_124 = arith.constant dense<0.000000e+00> : vector<3x3xf32>
    %318 = tpu.matmul %316, %317, %cst_124 {dimension_numbers = #tpu.dot_dimension_numbers<[1], [1], [0], [0], [0, 0, 1, 0], [], []>} : vector<3x4xf32>, vector<3x4xf32>, vector<3x3xf32> -> vector<3x3xf32>
    %cst_125 = arith.constant 5.000000e-01 : f32
    %319 = vector.broadcast %cst_125 : f32 to vector<3x3xf32>
    %320 = arith.mulf %318, %319 : vector<3x3xf32>
    %cst_126 = arith.constant dense<0xFF800000> : vector<3xf32>
    %321 = vector.multi_reduction <maximumf>, %320, %cst_126 [1] : vector<3x3xf32> to vector<3xf32>
    %322 = vector.shape_cast %321 : vector<3xf32> to vector<3x1xf32>
    %323 = vector.broadcast %322 : vector<3x1xf32> to vector<3x3xf32>
    %324 = arith.subf %320, %323 : vector<3x3xf32>
    %325 = math.exp %324 : vector<3x3xf32>
    %cst_127 = arith.constant dense<0.000000e+00> : vector<3xf32>
    %326 = vector.multi_reduction <add>, %325, %cst_127 [1] : vector<3x3xf32> to vector<3xf32>
    %327 = vector.shape_cast %326 : vector<3xf32> to vector<3x1xf32>
    %328 = vector.broadcast %327 : vector<3x1xf32> to vector<3x3xf32>
    %329 = arith.divf %325, %328 : vector<3x3xf32>
    %330 = vector.extract_strided_slice %283 {offsets = [0, 8], sizes = [3, 4], strides = [1, 1]} : vector<3x16xf32> to vector<3x4xf32>
    %cst_128 = arith.constant dense<0.000000e+00> : vector<3x4xf32>
    %331 = tpu.matmul %329, %330, %cst_128 {dimension_numbers = #tpu.dot_dimension_numbers<[1], [0], [0], [1], [0, 0, 1, 1], [], []>} : vector<3x3xf32>, vector<3x4xf32>, vector<3x4xf32> -> vector<3x4xf32>
    %332 = vector.extract_strided_slice %281 {offsets = [0, 12], sizes = [3, 4], strides = [1, 1]} : vector<3x16xf32> to vector<3x4xf32>
    %333 = vector.extract_strided_slice %282 {offsets = [0, 12], sizes = [3, 4], strides = [1, 1]} : vector<3x16xf32> to vector<3x4xf32>
    %cst_129 = arith.constant dense<0.000000e+00> : vector<3x3xf32>
    %334 = tpu.matmul %332, %333, %cst_129 {dimension_numbers = #tpu.dot_dimension_numbers<[1], [1], [0], [0], [0, 0, 1, 0], [], []>} : vector<3x4xf32>, vector<3x4xf32>, vector<3x3xf32> -> vector<3x3xf32>
    %cst_130 = arith.constant 5.000000e-01 : f32
    %335 = vector.broadcast %cst_130 : f32 to vector<3x3xf32>
    %336 = arith.mulf %334, %335 : vector<3x3xf32>
    %cst_131 = arith.constant dense<0xFF800000> : vector<3xf32>
    %337 = vector.multi_reduction <maximumf>, %336, %cst_131 [1] : vector<3x3xf32> to vector<3xf32>
    %338 = vector.shape_cast %337 : vector<3xf32> to vector<3x1xf32>
    %339 = vector.broadcast %338 : vector<3x1xf32> to vector<3x3xf32>
    %340 = arith.subf %336, %339 : vector<3x3xf32>
    %341 = math.exp %340 : vector<3x3xf32>
    %cst_132 = arith.constant dense<0.000000e+00> : vector<3xf32>
    %342 = vector.multi_reduction <add>, %341, %cst_132 [1] : vector<3x3xf32> to vector<3xf32>
    %343 = vector.shape_cast %342 : vector<3xf32> to vector<3x1xf32>
    %344 = vector.broadcast %343 : vector<3x1xf32> to vector<3x3xf32>
    %345 = arith.divf %341, %344 : vector<3x3xf32>
    %346 = vector.extract_strided_slice %283 {offsets = [0, 12], sizes = [3, 4], strides = [1, 1]} : vector<3x16xf32> to vector<3x4xf32>
    %cst_133 = arith.constant dense<0.000000e+00> : vector<3x4xf32>
    %347 = tpu.matmul %345, %346, %cst_133 {dimension_numbers = #tpu.dot_dimension_numbers<[1], [0], [0], [1], [0, 0, 1, 1], [], []>} : vector<3x3xf32>, vector<3x4xf32>, vector<3x4xf32> -> vector<3x4xf32>
    %348 = tpu.concatenate %299, %315, %331, %347 in 1 : vector<3x4xf32>, vector<3x4xf32>, vector<3x4xf32>, vector<3x4xf32> -> vector<3x16xf32>
    %c3_134 = arith.constant 3 : index
    %c0_135 = arith.constant 0 : index
    %349 = vector.load %arg21[%c3_134, %c0_135] : memref<6x16xf32, #tpu.memory_space<vmem>>, vector<3x16xf32>
    tpu.vector_store %arg21[%c3_134, %c0_135], %348 {strides = array<i32>} : memref<6x16xf32, #tpu.memory_space<vmem>>, vector<3x16xf32>,
    %c0_136 = arith.constant 0 : index
    %c0_137 = arith.constant 0 : index
    %350 = vector.load %arg21[%c0_136, %c0_137] : memref<6x16xf32, #tpu.memory_space<vmem>>, vector<6x16xf32>
    %351 = arith.addf %208, %350 : vector<6x16xf32>
    %cst_138 = arith.constant dense<0.000000e+00> : vector<6xf32>
    %352 = vector.multi_reduction <add>, %351, %cst_138 [1] : vector<6x16xf32> to vector<6xf32>
    %353 = vector.shape_cast %352 : vector<6xf32> to vector<6x1xf32>
    %cst_139 = arith.constant 1.600000e+01 : f32
    %354 = vector.broadcast %cst_139 : f32 to vector<6x1xf32>
    %355 = arith.divf %353, %354 : vector<6x1xf32>
    %356 = vector.broadcast %355 : vector<6x1xf32> to vector<6x16xf32>
    %357 = arith.subf %351, %356 : vector<6x16xf32>
    %358 = arith.mulf %357, %357 : vector<6x16xf32>
    %cst_140 = arith.constant dense<0.000000e+00> : vector<6xf32>
    %359 = vector.multi_reduction <add>, %358, %cst_140 [1] : vector<6x16xf32> to vector<6xf32>
    %360 = vector.shape_cast %359 : vector<6xf32> to vector<6x1xf32>
    %cst_141 = arith.constant 1.600000e+01 : f32
    %361 = vector.broadcast %cst_141 : f32 to vector<6x1xf32>
    %362 = arith.divf %360, %361 : vector<6x1xf32>
    %cst_142 = arith.constant 9.99999974E-6 : f32
    %363 = vector.broadcast %cst_142 : f32 to vector<6x1xf32>
    %364 = arith.addf %362, %363 : vector<6x1xf32>
    %365 = math.rsqrt %364 : vector<6x1xf32>
    %366 = vector.broadcast %365 : vector<6x1xf32> to vector<6x16xf32>
    %367 = arith.mulf %357, %366 : vector<6x16xf32>
    %368 = vector.broadcast %0 : vector<1x16xf32> to vector<6x16xf32>
    %369 = arith.mulf %367, %368 : vector<6x16xf32>
    %370 = vector.broadcast %1 : vector<1x16xf32> to vector<6x16xf32>
    %371 = arith.addf %369, %370 : vector<6x16xf32>
    %c1 = arith.constant 1 : index
    %c0_143 = arith.constant 0 : index
    %c0_144 = arith.constant 0 : index
    %372 = vector.load %arg8[%c1, %c0_143, %c0_144] : memref<2x16x16xf32, #tpu.memory_space<vmem>>, vector<1x16x16xf32>
    %373 = vector.shape_cast %372 : vector<1x16x16xf32> to vector<16x16xf32>
    %cst_145 = arith.constant dense<0.000000e+00> : vector<6x16xf32>
    %374 = tpu.matmul %371, %373, %cst_145 {dimension_numbers = #tpu.dot_dimension_numbers<[1], [0], [0], [1], [0, 0, 1, 1], [], []>} : vector<6x16xf32>, vector<16x16xf32>, vector<6x16xf32> -> vector<6x16xf32>
    %c1_146 = arith.constant 1 : index
    %c0_147 = arith.constant 0 : index
    %c0_148 = arith.constant 0 : index
    %375 = vector.load %arg9[%c1_146, %c0_147, %c0_148] : memref<2x1x16xf32, #tpu.memory_space<vmem>>, vector<1x1x16xf32>
    %376 = vector.shape_cast %375 : vector<1x1x16xf32> to vector<1x16xf32>
    %377 = vector.broadcast %376 : vector<1x16xf32> to vector<6x16xf32>
    %378 = arith.addf %374, %377 : vector<6x16xf32>
    %cst_149 = arith.constant 0.000000e+00 : f32
    %379 = vector.broadcast %cst_149 : f32 to vector<6x16xf32>
    %380 = arith.maximumf %378, %379 : vector<6x16xf32>
    %c1_150 = arith.constant 1 : index
    %c0_151 = arith.constant 0 : index
    %c0_152 = arith.constant 0 : index
    %381 = vector.load %arg10[%c1_150, %c0_151, %c0_152] : memref<2x16x16xf32, #tpu.memory_space<vmem>>, vector<1x16x16xf32>
    %382 = vector.shape_cast %381 : vector<1x16x16xf32> to vector<16x16xf32>
    %cst_153 = arith.constant dense<0.000000e+00> : vector<6x16xf32>
    %383 = tpu.matmul %380, %382, %cst_153 {dimension_numbers = #tpu.dot_dimension_numbers<[1], [0], [0], [1], [0, 0, 1, 1], [], []>} : vector<6x16xf32>, vector<16x16xf32>, vector<6x16xf32> -> vector<6x16xf32>
    %c1_154 = arith.constant 1 : index
    %c0_155 = arith.constant 0 : index
    %c0_156 = arith.constant 0 : index
    %384 = vector.load %arg11[%c1_154, %c0_155, %c0_156] : memref<2x1x16xf32, #tpu.memory_space<vmem>>, vector<1x1x16xf32>
    %385 = vector.shape_cast %384 : vector<1x1x16xf32> to vector<1x16xf32>
    %386 = vector.broadcast %385 : vector<1x16xf32> to vector<6x16xf32>
    %387 = arith.addf %383, %386 : vector<6x16xf32>
    %388 = arith.addf %371, %387 : vector<6x16xf32>
    %cst_157 = arith.constant dense<0.000000e+00> : vector<6xf32>
    %389 = vector.multi_reduction <add>, %388, %cst_157 [1] : vector<6x16xf32> to vector<6xf32>
    %390 = vector.shape_cast %389 : vector<6xf32> to vector<6x1xf32>
    %cst_158 = arith.constant 1.600000e+01 : f32
    %391 = vector.broadcast %cst_158 : f32 to vector<6x1xf32>
    %392 = arith.divf %390, %391 : vector<6x1xf32>
    %393 = vector.broadcast %392 : vector<6x1xf32> to vector<6x16xf32>
    %394 = arith.subf %388, %393 : vector<6x16xf32>
    %395 = arith.mulf %394, %394 : vector<6x16xf32>
    %cst_159 = arith.constant dense<0.000000e+00> : vector<6xf32>
    %396 = vector.multi_reduction <add>, %395, %cst_159 [1] : vector<6x16xf32> to vector<6xf32>
    %397 = vector.shape_cast %396 : vector<6xf32> to vector<6x1xf32>
    %cst_160 = arith.constant 1.600000e+01 : f32
    %398 = vector.broadcast %cst_160 : f32 to vector<6x1xf32>
    %399 = arith.divf %397, %398 : vector<6x1xf32>
    %cst_161 = arith.constant 9.99999974E-6 : f32
    %400 = vector.broadcast %cst_161 : f32 to vector<6x1xf32>
    %401 = arith.addf %399, %400 : vector<6x1xf32>
    %402 = math.rsqrt %401 : vector<6x1xf32>
    %403 = vector.broadcast %402 : vector<6x1xf32> to vector<6x16xf32>
    %404 = arith.mulf %394, %403 : vector<6x16xf32>
    %405 = vector.broadcast %0 : vector<1x16xf32> to vector<6x16xf32>
    %406 = arith.mulf %404, %405 : vector<6x16xf32>
    %407 = vector.broadcast %1 : vector<1x16xf32> to vector<6x16xf32>
    %408 = arith.addf %406, %407 : vector<6x16xf32>
    %c0_162 = arith.constant 0 : index
    %c0_163 = arith.constant 0 : index
    %409 = vector.load %arg1[%c0_162, %c0_163] : memref<8x16xf32, #tpu.memory_space<vmem>>, vector<8x16xf32>
    %cst_164 = arith.constant dense<0.000000e+00> : vector<8x16xf32>
    %410 = tpu.matmul %409, %5, %cst_164 {dimension_numbers = #tpu.dot_dimension_numbers<[1], [0], [0], [1], [0, 0, 1, 1], [], []>} : vector<8x16xf32>, vector<16x16xf32>, vector<8x16xf32> -> vector<8x16xf32>
    %cst_165 = arith.constant dense<0.000000e+00> : vector<8x16xf32>
    %411 = tpu.matmul %409, %6, %cst_165 {dimension_numbers = #tpu.dot_dimension_numbers<[1], [0], [0], [1], [0, 0, 1, 1], [], []>} : vector<8x16xf32>, vector<16x16xf32>, vector<8x16xf32> -> vector<8x16xf32>
    %cst_166 = arith.constant dense<0.000000e+00> : vector<8x16xf32>
    %412 = tpu.matmul %409, %7, %cst_166 {dimension_numbers = #tpu.dot_dimension_numbers<[1], [0], [0], [1], [0, 0, 1, 1], [], []>} : vector<8x16xf32>, vector<16x16xf32>, vector<8x16xf32> -> vector<8x16xf32>
    %413 = vector.extract_strided_slice %410 {offsets = [0, 0], sizes = [4, 16], strides = [1, 1]} : vector<8x16xf32> to vector<4x16xf32>
    %414 = vector.extract_strided_slice %411 {offsets = [0, 0], sizes = [4, 16], strides = [1, 1]} : vector<8x16xf32> to vector<4x16xf32>
    %415 = vector.extract_strided_slice %412 {offsets = [0, 0], sizes = [4, 16], strides = [1, 1]} : vector<8x16xf32> to vector<4x16xf32>
    %416 = vector.extract_strided_slice %413 {offsets = [0, 0], sizes = [4, 4], strides = [1, 1]} : vector<4x16xf32> to vector<4x4xf32>
    %417 = vector.extract_strided_slice %414 {offsets = [0, 0], sizes = [4, 4], strides = [1, 1]} : vector<4x16xf32> to vector<4x4xf32>
    %cst_167 = arith.constant dense<0.000000e+00> : vector<4x4xf32>
    %418 = tpu.matmul %416, %417, %cst_167 {dimension_numbers = #tpu.dot_dimension_numbers<[1], [1], [0], [0], [0, 0, 1, 0], [], []>} : vector<4x4xf32>, vector<4x4xf32>, vector<4x4xf32> -> vector<4x4xf32>
    %cst_168 = arith.constant 5.000000e-01 : f32
    %419 = vector.broadcast %cst_168 : f32 to vector<4x4xf32>
    %420 = arith.mulf %418, %419 : vector<4x4xf32>
    %cst_169 = arith.constant dense<0xFF800000> : vector<4xf32>
    %421 = vector.multi_reduction <maximumf>, %420, %cst_169 [1] : vector<4x4xf32> to vector<4xf32>
    %422 = vector.shape_cast %421 : vector<4xf32> to vector<4x1xf32>
    %423 = vector.broadcast %422 : vector<4x1xf32> to vector<4x4xf32>
    %424 = arith.subf %420, %423 : vector<4x4xf32>
    %425 = math.exp %424 : vector<4x4xf32>
    %cst_170 = arith.constant dense<0.000000e+00> : vector<4xf32>
    %426 = vector.multi_reduction <add>, %425, %cst_170 [1] : vector<4x4xf32> to vector<4xf32>
    %427 = vector.shape_cast %426 : vector<4xf32> to vector<4x1xf32>
    %428 = vector.broadcast %427 : vector<4x1xf32> to vector<4x4xf32>
    %429 = arith.divf %425, %428 : vector<4x4xf32>
    %430 = vector.extract_strided_slice %415 {offsets = [0, 0], sizes = [4, 4], strides = [1, 1]} : vector<4x16xf32> to vector<4x4xf32>
    %cst_171 = arith.constant dense<0.000000e+00> : vector<4x4xf32>
    %431 = tpu.matmul %429, %430, %cst_171 {dimension_numbers = #tpu.dot_dimension_numbers<[1], [0], [0], [1], [0, 0, 1, 1], [], []>} : vector<4x4xf32>, vector<4x4xf32>, vector<4x4xf32> -> vector<4x4xf32>
    %432 = vector.extract_strided_slice %413 {offsets = [0, 4], sizes = [4, 4], strides = [1, 1]} : vector<4x16xf32> to vector<4x4xf32>
    %433 = vector.extract_strided_slice %414 {offsets = [0, 4], sizes = [4, 4], strides = [1, 1]} : vector<4x16xf32> to vector<4x4xf32>
    %cst_172 = arith.constant dense<0.000000e+00> : vector<4x4xf32>
    %434 = tpu.matmul %432, %433, %cst_172 {dimension_numbers = #tpu.dot_dimension_numbers<[1], [1], [0], [0], [0, 0, 1, 0], [], []>} : vector<4x4xf32>, vector<4x4xf32>, vector<4x4xf32> -> vector<4x4xf32>
    %cst_173 = arith.constant 5.000000e-01 : f32
    %435 = vector.broadcast %cst_173 : f32 to vector<4x4xf32>
    %436 = arith.mulf %434, %435 : vector<4x4xf32>
    %cst_174 = arith.constant dense<0xFF800000> : vector<4xf32>
    %437 = vector.multi_reduction <maximumf>, %436, %cst_174 [1] : vector<4x4xf32> to vector<4xf32>
    %438 = vector.shape_cast %437 : vector<4xf32> to vector<4x1xf32>
    %439 = vector.broadcast %438 : vector<4x1xf32> to vector<4x4xf32>
    %440 = arith.subf %436, %439 : vector<4x4xf32>
    %441 = math.exp %440 : vector<4x4xf32>
    %cst_175 = arith.constant dense<0.000000e+00> : vector<4xf32>
    %442 = vector.multi_reduction <add>, %441, %cst_175 [1] : vector<4x4xf32> to vector<4xf32>
    %443 = vector.shape_cast %442 : vector<4xf32> to vector<4x1xf32>
    %444 = vector.broadcast %443 : vector<4x1xf32> to vector<4x4xf32>
    %445 = arith.divf %441, %444 : vector<4x4xf32>
    %446 = vector.extract_strided_slice %415 {offsets = [0, 4], sizes = [4, 4], strides = [1, 1]} : vector<4x16xf32> to vector<4x4xf32>
    %cst_176 = arith.constant dense<0.000000e+00> : vector<4x4xf32>
    %447 = tpu.matmul %445, %446, %cst_176 {dimension_numbers = #tpu.dot_dimension_numbers<[1], [0], [0], [1], [0, 0, 1, 1], [], []>} : vector<4x4xf32>, vector<4x4xf32>, vector<4x4xf32> -> vector<4x4xf32>
    %448 = vector.extract_strided_slice %413 {offsets = [0, 8], sizes = [4, 4], strides = [1, 1]} : vector<4x16xf32> to vector<4x4xf32>
    %449 = vector.extract_strided_slice %414 {offsets = [0, 8], sizes = [4, 4], strides = [1, 1]} : vector<4x16xf32> to vector<4x4xf32>
    %cst_177 = arith.constant dense<0.000000e+00> : vector<4x4xf32>
    %450 = tpu.matmul %448, %449, %cst_177 {dimension_numbers = #tpu.dot_dimension_numbers<[1], [1], [0], [0], [0, 0, 1, 0], [], []>} : vector<4x4xf32>, vector<4x4xf32>, vector<4x4xf32> -> vector<4x4xf32>
    %cst_178 = arith.constant 5.000000e-01 : f32
    %451 = vector.broadcast %cst_178 : f32 to vector<4x4xf32>
    %452 = arith.mulf %450, %451 : vector<4x4xf32>
    %cst_179 = arith.constant dense<0xFF800000> : vector<4xf32>
    %453 = vector.multi_reduction <maximumf>, %452, %cst_179 [1] : vector<4x4xf32> to vector<4xf32>
    %454 = vector.shape_cast %453 : vector<4xf32> to vector<4x1xf32>
    %455 = vector.broadcast %454 : vector<4x1xf32> to vector<4x4xf32>
    %456 = arith.subf %452, %455 : vector<4x4xf32>
    %457 = math.exp %456 : vector<4x4xf32>
    %cst_180 = arith.constant dense<0.000000e+00> : vector<4xf32>
    %458 = vector.multi_reduction <add>, %457, %cst_180 [1] : vector<4x4xf32> to vector<4xf32>
    %459 = vector.shape_cast %458 : vector<4xf32> to vector<4x1xf32>
    %460 = vector.broadcast %459 : vector<4x1xf32> to vector<4x4xf32>
    %461 = arith.divf %457, %460 : vector<4x4xf32>
    %462 = vector.extract_strided_slice %415 {offsets = [0, 8], sizes = [4, 4], strides = [1, 1]} : vector<4x16xf32> to vector<4x4xf32>
    %cst_181 = arith.constant dense<0.000000e+00> : vector<4x4xf32>
    %463 = tpu.matmul %461, %462, %cst_181 {dimension_numbers = #tpu.dot_dimension_numbers<[1], [0], [0], [1], [0, 0, 1, 1], [], []>} : vector<4x4xf32>, vector<4x4xf32>, vector<4x4xf32> -> vector<4x4xf32>
    %464 = vector.extract_strided_slice %413 {offsets = [0, 12], sizes = [4, 4], strides = [1, 1]} : vector<4x16xf32> to vector<4x4xf32>
    %465 = vector.extract_strided_slice %414 {offsets = [0, 12], sizes = [4, 4], strides = [1, 1]} : vector<4x16xf32> to vector<4x4xf32>
    %cst_182 = arith.constant dense<0.000000e+00> : vector<4x4xf32>
    %466 = tpu.matmul %464, %465, %cst_182 {dimension_numbers = #tpu.dot_dimension_numbers<[1], [1], [0], [0], [0, 0, 1, 0], [], []>} : vector<4x4xf32>, vector<4x4xf32>, vector<4x4xf32> -> vector<4x4xf32>
    %cst_183 = arith.constant 5.000000e-01 : f32
    %467 = vector.broadcast %cst_183 : f32 to vector<4x4xf32>
    %468 = arith.mulf %466, %467 : vector<4x4xf32>
    %cst_184 = arith.constant dense<0xFF800000> : vector<4xf32>
    %469 = vector.multi_reduction <maximumf>, %468, %cst_184 [1] : vector<4x4xf32> to vector<4xf32>
    %470 = vector.shape_cast %469 : vector<4xf32> to vector<4x1xf32>
    %471 = vector.broadcast %470 : vector<4x1xf32> to vector<4x4xf32>
    %472 = arith.subf %468, %471 : vector<4x4xf32>
    %473 = math.exp %472 : vector<4x4xf32>
    %cst_185 = arith.constant dense<0.000000e+00> : vector<4xf32>
    %474 = vector.multi_reduction <add>, %473, %cst_185 [1] : vector<4x4xf32> to vector<4xf32>
    %475 = vector.shape_cast %474 : vector<4xf32> to vector<4x1xf32>
    %476 = vector.broadcast %475 : vector<4x1xf32> to vector<4x4xf32>
    %477 = arith.divf %473, %476 : vector<4x4xf32>
    %478 = vector.extract_strided_slice %415 {offsets = [0, 12], sizes = [4, 4], strides = [1, 1]} : vector<4x16xf32> to vector<4x4xf32>
    %cst_186 = arith.constant dense<0.000000e+00> : vector<4x4xf32>
    %479 = tpu.matmul %477, %478, %cst_186 {dimension_numbers = #tpu.dot_dimension_numbers<[1], [0], [0], [1], [0, 0, 1, 1], [], []>} : vector<4x4xf32>, vector<4x4xf32>, vector<4x4xf32> -> vector<4x4xf32>
    %480 = tpu.concatenate %431, %447, %463, %479 in 1 : vector<4x4xf32>, vector<4x4xf32>, vector<4x4xf32>, vector<4x4xf32> -> vector<4x16xf32>
    %c0_187 = arith.constant 0 : index
    %c0_188 = arith.constant 0 : index
    %481 = vector.load %arg22[%c0_187, %c0_188] : memref<8x16xf32, #tpu.memory_space<vmem>>, vector<4x16xf32>
    tpu.vector_store %arg22[%c0_187, %c0_188], %480 {strides = array<i32>} : memref<8x16xf32, #tpu.memory_space<vmem>>, vector<4x16xf32>,
    %482 = vector.extract_strided_slice %410 {offsets = [4, 0], sizes = [4, 16], strides = [1, 1]} : vector<8x16xf32> to vector<4x16xf32>
    %483 = vector.extract_strided_slice %411 {offsets = [4, 0], sizes = [4, 16], strides = [1, 1]} : vector<8x16xf32> to vector<4x16xf32>
    %484 = vector.extract_strided_slice %412 {offsets = [4, 0], sizes = [4, 16], strides = [1, 1]} : vector<8x16xf32> to vector<4x16xf32>
    %485 = vector.extract_strided_slice %482 {offsets = [0, 0], sizes = [4, 4], strides = [1, 1]} : vector<4x16xf32> to vector<4x4xf32>
    %486 = vector.extract_strided_slice %483 {offsets = [0, 0], sizes = [4, 4], strides = [1, 1]} : vector<4x16xf32> to vector<4x4xf32>
    %cst_189 = arith.constant dense<0.000000e+00> : vector<4x4xf32>
    %487 = tpu.matmul %485, %486, %cst_189 {dimension_numbers = #tpu.dot_dimension_numbers<[1], [1], [0], [0], [0, 0, 1, 0], [], []>} : vector<4x4xf32>, vector<4x4xf32>, vector<4x4xf32> -> vector<4x4xf32>
    %cst_190 = arith.constant 5.000000e-01 : f32
    %488 = vector.broadcast %cst_190 : f32 to vector<4x4xf32>
    %489 = arith.mulf %487, %488 : vector<4x4xf32>
    %cst_191 = arith.constant dense<0xFF800000> : vector<4xf32>
    %490 = vector.multi_reduction <maximumf>, %489, %cst_191 [1] : vector<4x4xf32> to vector<4xf32>
    %491 = vector.shape_cast %490 : vector<4xf32> to vector<4x1xf32>
    %492 = vector.broadcast %491 : vector<4x1xf32> to vector<4x4xf32>
    %493 = arith.subf %489, %492 : vector<4x4xf32>
    %494 = math.exp %493 : vector<4x4xf32>
    %cst_192 = arith.constant dense<0.000000e+00> : vector<4xf32>
    %495 = vector.multi_reduction <add>, %494, %cst_192 [1] : vector<4x4xf32> to vector<4xf32>
    %496 = vector.shape_cast %495 : vector<4xf32> to vector<4x1xf32>
    %497 = vector.broadcast %496 : vector<4x1xf32> to vector<4x4xf32>
    %498 = arith.divf %494, %497 : vector<4x4xf32>
    %499 = vector.extract_strided_slice %484 {offsets = [0, 0], sizes = [4, 4], strides = [1, 1]} : vector<4x16xf32> to vector<4x4xf32>
    %cst_193 = arith.constant dense<0.000000e+00> : vector<4x4xf32>
    %500 = tpu.matmul %498, %499, %cst_193 {dimension_numbers = #tpu.dot_dimension_numbers<[1], [0], [0], [1], [0, 0, 1, 1], [], []>} : vector<4x4xf32>, vector<4x4xf32>, vector<4x4xf32> -> vector<4x4xf32>
    %501 = vector.extract_strided_slice %482 {offsets = [0, 4], sizes = [4, 4], strides = [1, 1]} : vector<4x16xf32> to vector<4x4xf32>
    %502 = vector.extract_strided_slice %483 {offsets = [0, 4], sizes = [4, 4], strides = [1, 1]} : vector<4x16xf32> to vector<4x4xf32>
    %cst_194 = arith.constant dense<0.000000e+00> : vector<4x4xf32>
    %503 = tpu.matmul %501, %502, %cst_194 {dimension_numbers = #tpu.dot_dimension_numbers<[1], [1], [0], [0], [0, 0, 1, 0], [], []>} : vector<4x4xf32>, vector<4x4xf32>, vector<4x4xf32> -> vector<4x4xf32>
    %cst_195 = arith.constant 5.000000e-01 : f32
    %504 = vector.broadcast %cst_195 : f32 to vector<4x4xf32>
    %505 = arith.mulf %503, %504 : vector<4x4xf32>
    %cst_196 = arith.constant dense<0xFF800000> : vector<4xf32>
    %506 = vector.multi_reduction <maximumf>, %505, %cst_196 [1] : vector<4x4xf32> to vector<4xf32>
    %507 = vector.shape_cast %506 : vector<4xf32> to vector<4x1xf32>
    %508 = vector.broadcast %507 : vector<4x1xf32> to vector<4x4xf32>
    %509 = arith.subf %505, %508 : vector<4x4xf32>
    %510 = math.exp %509 : vector<4x4xf32>
    %cst_197 = arith.constant dense<0.000000e+00> : vector<4xf32>
    %511 = vector.multi_reduction <add>, %510, %cst_197 [1] : vector<4x4xf32> to vector<4xf32>
    %512 = vector.shape_cast %511 : vector<4xf32> to vector<4x1xf32>
    %513 = vector.broadcast %512 : vector<4x1xf32> to vector<4x4xf32>
    %514 = arith.divf %510, %513 : vector<4x4xf32>
    %515 = vector.extract_strided_slice %484 {offsets = [0, 4], sizes = [4, 4], strides = [1, 1]} : vector<4x16xf32> to vector<4x4xf32>
    %cst_198 = arith.constant dense<0.000000e+00> : vector<4x4xf32>
    %516 = tpu.matmul %514, %515, %cst_198 {dimension_numbers = #tpu.dot_dimension_numbers<[1], [0], [0], [1], [0, 0, 1, 1], [], []>} : vector<4x4xf32>, vector<4x4xf32>, vector<4x4xf32> -> vector<4x4xf32>
    %517 = vector.extract_strided_slice %482 {offsets = [0, 8], sizes = [4, 4], strides = [1, 1]} : vector<4x16xf32> to vector<4x4xf32>
    %518 = vector.extract_strided_slice %483 {offsets = [0, 8], sizes = [4, 4], strides = [1, 1]} : vector<4x16xf32> to vector<4x4xf32>
    %cst_199 = arith.constant dense<0.000000e+00> : vector<4x4xf32>
    %519 = tpu.matmul %517, %518, %cst_199 {dimension_numbers = #tpu.dot_dimension_numbers<[1], [1], [0], [0], [0, 0, 1, 0], [], []>} : vector<4x4xf32>, vector<4x4xf32>, vector<4x4xf32> -> vector<4x4xf32>
    %cst_200 = arith.constant 5.000000e-01 : f32
    %520 = vector.broadcast %cst_200 : f32 to vector<4x4xf32>
    %521 = arith.mulf %519, %520 : vector<4x4xf32>
    %cst_201 = arith.constant dense<0xFF800000> : vector<4xf32>
    %522 = vector.multi_reduction <maximumf>, %521, %cst_201 [1] : vector<4x4xf32> to vector<4xf32>
    %523 = vector.shape_cast %522 : vector<4xf32> to vector<4x1xf32>
    %524 = vector.broadcast %523 : vector<4x1xf32> to vector<4x4xf32>
    %525 = arith.subf %521, %524 : vector<4x4xf32>
    %526 = math.exp %525 : vector<4x4xf32>
    %cst_202 = arith.constant dense<0.000000e+00> : vector<4xf32>
    %527 = vector.multi_reduction <add>, %526, %cst_202 [1] : vector<4x4xf32> to vector<4xf32>
    %528 = vector.shape_cast %527 : vector<4xf32> to vector<4x1xf32>
    %529 = vector.broadcast %528 : vector<4x1xf32> to vector<4x4xf32>
    %530 = arith.divf %526, %529 : vector<4x4xf32>
    %531 = vector.extract_strided_slice %484 {offsets = [0, 8], sizes = [4, 4], strides = [1, 1]} : vector<4x16xf32> to vector<4x4xf32>
    %cst_203 = arith.constant dense<0.000000e+00> : vector<4x4xf32>
    %532 = tpu.matmul %530, %531, %cst_203 {dimension_numbers = #tpu.dot_dimension_numbers<[1], [0], [0], [1], [0, 0, 1, 1], [], []>} : vector<4x4xf32>, vector<4x4xf32>, vector<4x4xf32> -> vector<4x4xf32>
    %533 = vector.extract_strided_slice %482 {offsets = [0, 12], sizes = [4, 4], strides = [1, 1]} : vector<4x16xf32> to vector<4x4xf32>
    %534 = vector.extract_strided_slice %483 {offsets = [0, 12], sizes = [4, 4], strides = [1, 1]} : vector<4x16xf32> to vector<4x4xf32>
    %cst_204 = arith.constant dense<0.000000e+00> : vector<4x4xf32>
    %535 = tpu.matmul %533, %534, %cst_204 {dimension_numbers = #tpu.dot_dimension_numbers<[1], [1], [0], [0], [0, 0, 1, 0], [], []>} : vector<4x4xf32>, vector<4x4xf32>, vector<4x4xf32> -> vector<4x4xf32>
    %cst_205 = arith.constant 5.000000e-01 : f32
    %536 = vector.broadcast %cst_205 : f32 to vector<4x4xf32>
    %537 = arith.mulf %535, %536 : vector<4x4xf32>
    %cst_206 = arith.constant dense<0xFF800000> : vector<4xf32>
    %538 = vector.multi_reduction <maximumf>, %537, %cst_206 [1] : vector<4x4xf32> to vector<4xf32>
    %539 = vector.shape_cast %538 : vector<4xf32> to vector<4x1xf32>
    %540 = vector.broadcast %539 : vector<4x1xf32> to vector<4x4xf32>
    %541 = arith.subf %537, %540 : vector<4x4xf32>
    %542 = math.exp %541 : vector<4x4xf32>
    %cst_207 = arith.constant dense<0.000000e+00> : vector<4xf32>
    %543 = vector.multi_reduction <add>, %542, %cst_207 [1] : vector<4x4xf32> to vector<4xf32>
    %544 = vector.shape_cast %543 : vector<4xf32> to vector<4x1xf32>
    %545 = vector.broadcast %544 : vector<4x1xf32> to vector<4x4xf32>
    %546 = arith.divf %542, %545 : vector<4x4xf32>
    %547 = vector.extract_strided_slice %484 {offsets = [0, 12], sizes = [4, 4], strides = [1, 1]} : vector<4x16xf32> to vector<4x4xf32>
    %cst_208 = arith.constant dense<0.000000e+00> : vector<4x4xf32>
    %548 = tpu.matmul %546, %547, %cst_208 {dimension_numbers = #tpu.dot_dimension_numbers<[1], [0], [0], [1], [0, 0, 1, 1], [], []>} : vector<4x4xf32>, vector<4x4xf32>, vector<4x4xf32> -> vector<4x4xf32>
    %549 = tpu.concatenate %500, %516, %532, %548 in 1 : vector<4x4xf32>, vector<4x4xf32>, vector<4x4xf32>, vector<4x4xf32> -> vector<4x16xf32>
    %c4 = arith.constant 4 : index
    %c0_209 = arith.constant 0 : index
    %550 = vector.load %arg22[%c4, %c0_209] : memref<8x16xf32, #tpu.memory_space<vmem>>, vector<4x16xf32>
    tpu.vector_store %arg22[%c4, %c0_209], %549 {strides = array<i32>} : memref<8x16xf32, #tpu.memory_space<vmem>>, vector<4x16xf32>,
    %c0_210 = arith.constant 0 : index
    %c0_211 = arith.constant 0 : index
    %551 = vector.load %arg22[%c0_210, %c0_211] : memref<8x16xf32, #tpu.memory_space<vmem>>, vector<8x16xf32>
    %552 = arith.addf %409, %551 : vector<8x16xf32>
    %cst_212 = arith.constant dense<0.000000e+00> : vector<8xf32>
    %553 = vector.multi_reduction <add>, %552, %cst_212 [1] : vector<8x16xf32> to vector<8xf32>
    %554 = vector.shape_cast %553 : vector<8xf32> to vector<8x1xf32>
    %cst_213 = arith.constant 1.600000e+01 : f32
    %555 = vector.broadcast %cst_213 : f32 to vector<8x1xf32>
    %556 = arith.divf %554, %555 : vector<8x1xf32>
    %557 = vector.broadcast %556 : vector<8x1xf32> to vector<8x16xf32>
    %558 = arith.subf %552, %557 : vector<8x16xf32>
    %559 = arith.mulf %558, %558 : vector<8x16xf32>
    %cst_214 = arith.constant dense<0.000000e+00> : vector<8xf32>
    %560 = vector.multi_reduction <add>, %559, %cst_214 [1] : vector<8x16xf32> to vector<8xf32>
    %561 = vector.shape_cast %560 : vector<8xf32> to vector<8x1xf32>
    %cst_215 = arith.constant 1.600000e+01 : f32
    %562 = vector.broadcast %cst_215 : f32 to vector<8x1xf32>
    %563 = arith.divf %561, %562 : vector<8x1xf32>
    %cst_216 = arith.constant 9.99999974E-6 : f32
    %564 = vector.broadcast %cst_216 : f32 to vector<8x1xf32>
    %565 = arith.addf %563, %564 : vector<8x1xf32>
    %566 = math.rsqrt %565 : vector<8x1xf32>
    %567 = vector.broadcast %566 : vector<8x1xf32> to vector<8x16xf32>
    %568 = arith.mulf %558, %567 : vector<8x16xf32>
    %569 = vector.broadcast %0 : vector<1x16xf32> to vector<8x16xf32>
    %570 = arith.mulf %568, %569 : vector<8x16xf32>
    %571 = vector.broadcast %1 : vector<1x16xf32> to vector<8x16xf32>
    %572 = arith.addf %570, %571 : vector<8x16xf32>
    %cst_217 = arith.constant dense<0.000000e+00> : vector<8x16xf32>
    %573 = tpu.matmul %572, %6, %cst_217 {dimension_numbers = #tpu.dot_dimension_numbers<[1], [0], [0], [1], [0, 0, 1, 1], [], []>} : vector<8x16xf32>, vector<16x16xf32>, vector<8x16xf32> -> vector<8x16xf32>
    %cst_218 = arith.constant dense<0.000000e+00> : vector<6x16xf32>
    %574 = tpu.matmul %408, %5, %cst_218 {dimension_numbers = #tpu.dot_dimension_numbers<[1], [0], [0], [1], [0, 0, 1, 1], [], []>} : vector<6x16xf32>, vector<16x16xf32>, vector<6x16xf32> -> vector<6x16xf32>
    %cst_219 = arith.constant dense<0.000000e+00> : vector<6x16xf32>
    %575 = tpu.matmul %408, %7, %cst_219 {dimension_numbers = #tpu.dot_dimension_numbers<[1], [0], [0], [1], [0, 0, 1, 1], [], []>} : vector<6x16xf32>, vector<16x16xf32>, vector<6x16xf32> -> vector<6x16xf32>
    %576 = vector.extract_strided_slice %573 {offsets = [0, 0], sizes = [4, 16], strides = [1, 1]} : vector<8x16xf32> to vector<4x16xf32>
    %577 = vector.extract_strided_slice %574 {offsets = [0, 0], sizes = [3, 16], strides = [1, 1]} : vector<6x16xf32> to vector<3x16xf32>
    %578 = vector.extract_strided_slice %575 {offsets = [0, 0], sizes = [3, 16], strides = [1, 1]} : vector<6x16xf32> to vector<3x16xf32>
    %579 = vector.extract_strided_slice %576 {offsets = [0, 0], sizes = [4, 4], strides = [1, 1]} : vector<4x16xf32> to vector<4x4xf32>
    %580 = vector.extract_strided_slice %577 {offsets = [0, 0], sizes = [3, 4], strides = [1, 1]} : vector<3x16xf32> to vector<3x4xf32>
    %cst_220 = arith.constant dense<0.000000e+00> : vector<4x3xf32>
    %581 = tpu.matmul %579, %580, %cst_220 {dimension_numbers = #tpu.dot_dimension_numbers<[1], [1], [0], [0], [0, 0, 1, 0], [], []>} : vector<4x4xf32>, vector<3x4xf32>, vector<4x3xf32> -> vector<4x3xf32>
    %cst_221 = arith.constant 5.000000e-01 : f32
    %582 = vector.broadcast %cst_221 : f32 to vector<4x3xf32>
    %583 = arith.mulf %581, %582 : vector<4x3xf32>
    %cst_222 = arith.constant dense<0xFF800000> : vector<4xf32>
    %584 = vector.multi_reduction <maximumf>, %583, %cst_222 [1] : vector<4x3xf32> to vector<4xf32>
    %585 = vector.shape_cast %584 : vector<4xf32> to vector<4x1xf32>
    %586 = vector.broadcast %585 : vector<4x1xf32> to vector<4x3xf32>
    %587 = arith.subf %583, %586 : vector<4x3xf32>
    %588 = math.exp %587 : vector<4x3xf32>
    %cst_223 = arith.constant dense<0.000000e+00> : vector<4xf32>
    %589 = vector.multi_reduction <add>, %588, %cst_223 [1] : vector<4x3xf32> to vector<4xf32>
    %590 = vector.shape_cast %589 : vector<4xf32> to vector<4x1xf32>
    %591 = vector.broadcast %590 : vector<4x1xf32> to vector<4x3xf32>
    %592 = arith.divf %588, %591 : vector<4x3xf32>
    %593 = vector.extract_strided_slice %578 {offsets = [0, 0], sizes = [3, 4], strides = [1, 1]} : vector<3x16xf32> to vector<3x4xf32>
    %cst_224 = arith.constant dense<0.000000e+00> : vector<4x4xf32>
    %594 = tpu.matmul %592, %593, %cst_224 {dimension_numbers = #tpu.dot_dimension_numbers<[1], [0], [0], [1], [0, 0, 1, 1], [], []>} : vector<4x3xf32>, vector<3x4xf32>, vector<4x4xf32> -> vector<4x4xf32>
    %595 = vector.extract_strided_slice %576 {offsets = [0, 4], sizes = [4, 4], strides = [1, 1]} : vector<4x16xf32> to vector<4x4xf32>
    %596 = vector.extract_strided_slice %577 {offsets = [0, 4], sizes = [3, 4], strides = [1, 1]} : vector<3x16xf32> to vector<3x4xf32>
    %cst_225 = arith.constant dense<0.000000e+00> : vector<4x3xf32>
    %597 = tpu.matmul %595, %596, %cst_225 {dimension_numbers = #tpu.dot_dimension_numbers<[1], [1], [0], [0], [0, 0, 1, 0], [], []>} : vector<4x4xf32>, vector<3x4xf32>, vector<4x3xf32> -> vector<4x3xf32>
    %cst_226 = arith.constant 5.000000e-01 : f32
    %598 = vector.broadcast %cst_226 : f32 to vector<4x3xf32>
    %599 = arith.mulf %597, %598 : vector<4x3xf32>
    %cst_227 = arith.constant dense<0xFF800000> : vector<4xf32>
    %600 = vector.multi_reduction <maximumf>, %599, %cst_227 [1] : vector<4x3xf32> to vector<4xf32>
    %601 = vector.shape_cast %600 : vector<4xf32> to vector<4x1xf32>
    %602 = vector.broadcast %601 : vector<4x1xf32> to vector<4x3xf32>
    %603 = arith.subf %599, %602 : vector<4x3xf32>
    %604 = math.exp %603 : vector<4x3xf32>
    %cst_228 = arith.constant dense<0.000000e+00> : vector<4xf32>
    %605 = vector.multi_reduction <add>, %604, %cst_228 [1] : vector<4x3xf32> to vector<4xf32>
    %606 = vector.shape_cast %605 : vector<4xf32> to vector<4x1xf32>
    %607 = vector.broadcast %606 : vector<4x1xf32> to vector<4x3xf32>
    %608 = arith.divf %604, %607 : vector<4x3xf32>
    %609 = vector.extract_strided_slice %578 {offsets = [0, 4], sizes = [3, 4], strides = [1, 1]} : vector<3x16xf32> to vector<3x4xf32>
    %cst_229 = arith.constant dense<0.000000e+00> : vector<4x4xf32>
    %610 = tpu.matmul %608, %609, %cst_229 {dimension_numbers = #tpu.dot_dimension_numbers<[1], [0], [0], [1], [0, 0, 1, 1], [], []>} : vector<4x3xf32>, vector<3x4xf32>, vector<4x4xf32> -> vector<4x4xf32>
    %611 = vector.extract_strided_slice %576 {offsets = [0, 8], sizes = [4, 4], strides = [1, 1]} : vector<4x16xf32> to vector<4x4xf32>
    %612 = vector.extract_strided_slice %577 {offsets = [0, 8], sizes = [3, 4], strides = [1, 1]} : vector<3x16xf32> to vector<3x4xf32>
    %cst_230 = arith.constant dense<0.000000e+00> : vector<4x3xf32>
    %613 = tpu.matmul %611, %612, %cst_230 {dimension_numbers = #tpu.dot_dimension_numbers<[1], [1], [0], [0], [0, 0, 1, 0], [], []>} : vector<4x4xf32>, vector<3x4xf32>, vector<4x3xf32> -> vector<4x3xf32>
    %cst_231 = arith.constant 5.000000e-01 : f32
    %614 = vector.broadcast %cst_231 : f32 to vector<4x3xf32>
    %615 = arith.mulf %613, %614 : vector<4x3xf32>
    %cst_232 = arith.constant dense<0xFF800000> : vector<4xf32>
    %616 = vector.multi_reduction <maximumf>, %615, %cst_232 [1] : vector<4x3xf32> to vector<4xf32>
    %617 = vector.shape_cast %616 : vector<4xf32> to vector<4x1xf32>
    %618 = vector.broadcast %617 : vector<4x1xf32> to vector<4x3xf32>
    %619 = arith.subf %615, %618 : vector<4x3xf32>
    %620 = math.exp %619 : vector<4x3xf32>
    %cst_233 = arith.constant dense<0.000000e+00> : vector<4xf32>
    %621 = vector.multi_reduction <add>, %620, %cst_233 [1] : vector<4x3xf32> to vector<4xf32>
    %622 = vector.shape_cast %621 : vector<4xf32> to vector<4x1xf32>
    %623 = vector.broadcast %622 : vector<4x1xf32> to vector<4x3xf32>
    %624 = arith.divf %620, %623 : vector<4x3xf32>
    %625 = vector.extract_strided_slice %578 {offsets = [0, 8], sizes = [3, 4], strides = [1, 1]} : vector<3x16xf32> to vector<3x4xf32>
    %cst_234 = arith.constant dense<0.000000e+00> : vector<4x4xf32>
    %626 = tpu.matmul %624, %625, %cst_234 {dimension_numbers = #tpu.dot_dimension_numbers<[1], [0], [0], [1], [0, 0, 1, 1], [], []>} : vector<4x3xf32>, vector<3x4xf32>, vector<4x4xf32> -> vector<4x4xf32>
    %627 = vector.extract_strided_slice %576 {offsets = [0, 12], sizes = [4, 4], strides = [1, 1]} : vector<4x16xf32> to vector<4x4xf32>
    %628 = vector.extract_strided_slice %577 {offsets = [0, 12], sizes = [3, 4], strides = [1, 1]} : vector<3x16xf32> to vector<3x4xf32>
    %cst_235 = arith.constant dense<0.000000e+00> : vector<4x3xf32>
    %629 = tpu.matmul %627, %628, %cst_235 {dimension_numbers = #tpu.dot_dimension_numbers<[1], [1], [0], [0], [0, 0, 1, 0], [], []>} : vector<4x4xf32>, vector<3x4xf32>, vector<4x3xf32> -> vector<4x3xf32>
    %cst_236 = arith.constant 5.000000e-01 : f32
    %630 = vector.broadcast %cst_236 : f32 to vector<4x3xf32>
    %631 = arith.mulf %629, %630 : vector<4x3xf32>
    %cst_237 = arith.constant dense<0xFF800000> : vector<4xf32>
    %632 = vector.multi_reduction <maximumf>, %631, %cst_237 [1] : vector<4x3xf32> to vector<4xf32>
    %633 = vector.shape_cast %632 : vector<4xf32> to vector<4x1xf32>
    %634 = vector.broadcast %633 : vector<4x1xf32> to vector<4x3xf32>
    %635 = arith.subf %631, %634 : vector<4x3xf32>
    %636 = math.exp %635 : vector<4x3xf32>
    %cst_238 = arith.constant dense<0.000000e+00> : vector<4xf32>
    %637 = vector.multi_reduction <add>, %636, %cst_238 [1] : vector<4x3xf32> to vector<4xf32>
    %638 = vector.shape_cast %637 : vector<4xf32> to vector<4x1xf32>
    %639 = vector.broadcast %638 : vector<4x1xf32> to vector<4x3xf32>
    %640 = arith.divf %636, %639 : vector<4x3xf32>
    %641 = vector.extract_strided_slice %578 {offsets = [0, 12], sizes = [3, 4], strides = [1, 1]} : vector<3x16xf32> to vector<3x4xf32>
    %cst_239 = arith.constant dense<0.000000e+00> : vector<4x4xf32>
    %642 = tpu.matmul %640, %641, %cst_239 {dimension_numbers = #tpu.dot_dimension_numbers<[1], [0], [0], [1], [0, 0, 1, 1], [], []>} : vector<4x3xf32>, vector<3x4xf32>, vector<4x4xf32> -> vector<4x4xf32>
    %643 = tpu.concatenate %594, %610, %626, %642 in 1 : vector<4x4xf32>, vector<4x4xf32>, vector<4x4xf32>, vector<4x4xf32> -> vector<4x16xf32>
    %c0_240 = arith.constant 0 : index
    %c0_241 = arith.constant 0 : index
    %644 = vector.load %arg22[%c0_240, %c0_241] : memref<8x16xf32, #tpu.memory_space<vmem>>, vector<4x16xf32>
    tpu.vector_store %arg22[%c0_240, %c0_241], %643 {strides = array<i32>} : memref<8x16xf32, #tpu.memory_space<vmem>>, vector<4x16xf32>,
    %645 = vector.extract_strided_slice %573 {offsets = [4, 0], sizes = [4, 16], strides = [1, 1]} : vector<8x16xf32> to vector<4x16xf32>
    %646 = vector.extract_strided_slice %574 {offsets = [3, 0], sizes = [3, 16], strides = [1, 1]} : vector<6x16xf32> to vector<3x16xf32>
    %647 = vector.extract_strided_slice %575 {offsets = [3, 0], sizes = [3, 16], strides = [1, 1]} : vector<6x16xf32> to vector<3x16xf32>
    %648 = vector.extract_strided_slice %645 {offsets = [0, 0], sizes = [4, 4], strides = [1, 1]} : vector<4x16xf32> to vector<4x4xf32>
    %649 = vector.extract_strided_slice %646 {offsets = [0, 0], sizes = [3, 4], strides = [1, 1]} : vector<3x16xf32> to vector<3x4xf32>
    %cst_242 = arith.constant dense<0.000000e+00> : vector<4x3xf32>
    %650 = tpu.matmul %648, %649, %cst_242 {dimension_numbers = #tpu.dot_dimension_numbers<[1], [1], [0], [0], [0, 0, 1, 0], [], []>} : vector<4x4xf32>, vector<3x4xf32>, vector<4x3xf32> -> vector<4x3xf32>
    %cst_243 = arith.constant 5.000000e-01 : f32
    %651 = vector.broadcast %cst_243 : f32 to vector<4x3xf32>
    %652 = arith.mulf %650, %651 : vector<4x3xf32>
    %cst_244 = arith.constant dense<0xFF800000> : vector<4xf32>
    %653 = vector.multi_reduction <maximumf>, %652, %cst_244 [1] : vector<4x3xf32> to vector<4xf32>
    %654 = vector.shape_cast %653 : vector<4xf32> to vector<4x1xf32>
    %655 = vector.broadcast %654 : vector<4x1xf32> to vector<4x3xf32>
    %656 = arith.subf %652, %655 : vector<4x3xf32>
    %657 = math.exp %656 : vector<4x3xf32>
    %cst_245 = arith.constant dense<0.000000e+00> : vector<4xf32>
    %658 = vector.multi_reduction <add>, %657, %cst_245 [1] : vector<4x3xf32> to vector<4xf32>
    %659 = vector.shape_cast %658 : vector<4xf32> to vector<4x1xf32>
    %660 = vector.broadcast %659 : vector<4x1xf32> to vector<4x3xf32>
    %661 = arith.divf %657, %660 : vector<4x3xf32>
    %662 = vector.extract_strided_slice %647 {offsets = [0, 0], sizes = [3, 4], strides = [1, 1]} : vector<3x16xf32> to vector<3x4xf32>
    %cst_246 = arith.constant dense<0.000000e+00> : vector<4x4xf32>
    %663 = tpu.matmul %661, %662, %cst_246 {dimension_numbers = #tpu.dot_dimension_numbers<[1], [0], [0], [1], [0, 0, 1, 1], [], []>} : vector<4x3xf32>, vector<3x4xf32>, vector<4x4xf32> -> vector<4x4xf32>
    %664 = vector.extract_strided_slice %645 {offsets = [0, 4], sizes = [4, 4], strides = [1, 1]} : vector<4x16xf32> to vector<4x4xf32>
    %665 = vector.extract_strided_slice %646 {offsets = [0, 4], sizes = [3, 4], strides = [1, 1]} : vector<3x16xf32> to vector<3x4xf32>
    %cst_247 = arith.constant dense<0.000000e+00> : vector<4x3xf32>
    %666 = tpu.matmul %664, %665, %cst_247 {dimension_numbers = #tpu.dot_dimension_numbers<[1], [1], [0], [0], [0, 0, 1, 0], [], []>} : vector<4x4xf32>, vector<3x4xf32>, vector<4x3xf32> -> vector<4x3xf32>
    %cst_248 = arith.constant 5.000000e-01 : f32
    %667 = vector.broadcast %cst_248 : f32 to vector<4x3xf32>
    %668 = arith.mulf %666, %667 : vector<4x3xf32>
    %cst_249 = arith.constant dense<0xFF800000> : vector<4xf32>
    %669 = vector.multi_reduction <maximumf>, %668, %cst_249 [1] : vector<4x3xf32> to vector<4xf32>
    %670 = vector.shape_cast %669 : vector<4xf32> to vector<4x1xf32>
    %671 = vector.broadcast %670 : vector<4x1xf32> to vector<4x3xf32>
    %672 = arith.subf %668, %671 : vector<4x3xf32>
    %673 = math.exp %672 : vector<4x3xf32>
    %cst_250 = arith.constant dense<0.000000e+00> : vector<4xf32>
    %674 = vector.multi_reduction <add>, %673, %cst_250 [1] : vector<4x3xf32> to vector<4xf32>
    %675 = vector.shape_cast %674 : vector<4xf32> to vector<4x1xf32>
    %676 = vector.broadcast %675 : vector<4x1xf32> to vector<4x3xf32>
    %677 = arith.divf %673, %676 : vector<4x3xf32>
    %678 = vector.extract_strided_slice %647 {offsets = [0, 4], sizes = [3, 4], strides = [1, 1]} : vector<3x16xf32> to vector<3x4xf32>
    %cst_251 = arith.constant dense<0.000000e+00> : vector<4x4xf32>
    %679 = tpu.matmul %677, %678, %cst_251 {dimension_numbers = #tpu.dot_dimension_numbers<[1], [0], [0], [1], [0, 0, 1, 1], [], []>} : vector<4x3xf32>, vector<3x4xf32>, vector<4x4xf32> -> vector<4x4xf32>
    %680 = vector.extract_strided_slice %645 {offsets = [0, 8], sizes = [4, 4], strides = [1, 1]} : vector<4x16xf32> to vector<4x4xf32>
    %681 = vector.extract_strided_slice %646 {offsets = [0, 8], sizes = [3, 4], strides = [1, 1]} : vector<3x16xf32> to vector<3x4xf32>
    %cst_252 = arith.constant dense<0.000000e+00> : vector<4x3xf32>
    %682 = tpu.matmul %680, %681, %cst_252 {dimension_numbers = #tpu.dot_dimension_numbers<[1], [1], [0], [0], [0, 0, 1, 0], [], []>} : vector<4x4xf32>, vector<3x4xf32>, vector<4x3xf32> -> vector<4x3xf32>
    %cst_253 = arith.constant 5.000000e-01 : f32
    %683 = vector.broadcast %cst_253 : f32 to vector<4x3xf32>
    %684 = arith.mulf %682, %683 : vector<4x3xf32>
    %cst_254 = arith.constant dense<0xFF800000> : vector<4xf32>
    %685 = vector.multi_reduction <maximumf>, %684, %cst_254 [1] : vector<4x3xf32> to vector<4xf32>
    %686 = vector.shape_cast %685 : vector<4xf32> to vector<4x1xf32>
    %687 = vector.broadcast %686 : vector<4x1xf32> to vector<4x3xf32>
    %688 = arith.subf %684, %687 : vector<4x3xf32>
    %689 = math.exp %688 : vector<4x3xf32>
    %cst_255 = arith.constant dense<0.000000e+00> : vector<4xf32>
    %690 = vector.multi_reduction <add>, %689, %cst_255 [1] : vector<4x3xf32> to vector<4xf32>
    %691 = vector.shape_cast %690 : vector<4xf32> to vector<4x1xf32>
    %692 = vector.broadcast %691 : vector<4x1xf32> to vector<4x3xf32>
    %693 = arith.divf %689, %692 : vector<4x3xf32>
    %694 = vector.extract_strided_slice %647 {offsets = [0, 8], sizes = [3, 4], strides = [1, 1]} : vector<3x16xf32> to vector<3x4xf32>
    %cst_256 = arith.constant dense<0.000000e+00> : vector<4x4xf32>
    %695 = tpu.matmul %693, %694, %cst_256 {dimension_numbers = #tpu.dot_dimension_numbers<[1], [0], [0], [1], [0, 0, 1, 1], [], []>} : vector<4x3xf32>, vector<3x4xf32>, vector<4x4xf32> -> vector<4x4xf32>
    %696 = vector.extract_strided_slice %645 {offsets = [0, 12], sizes = [4, 4], strides = [1, 1]} : vector<4x16xf32> to vector<4x4xf32>
    %697 = vector.extract_strided_slice %646 {offsets = [0, 12], sizes = [3, 4], strides = [1, 1]} : vector<3x16xf32> to vector<3x4xf32>
    %cst_257 = arith.constant dense<0.000000e+00> : vector<4x3xf32>
    %698 = tpu.matmul %696, %697, %cst_257 {dimension_numbers = #tpu.dot_dimension_numbers<[1], [1], [0], [0], [0, 0, 1, 0], [], []>} : vector<4x4xf32>, vector<3x4xf32>, vector<4x3xf32> -> vector<4x3xf32>
    %cst_258 = arith.constant 5.000000e-01 : f32
    %699 = vector.broadcast %cst_258 : f32 to vector<4x3xf32>
    %700 = arith.mulf %698, %699 : vector<4x3xf32>
    %cst_259 = arith.constant dense<0xFF800000> : vector<4xf32>
    %701 = vector.multi_reduction <maximumf>, %700, %cst_259 [1] : vector<4x3xf32> to vector<4xf32>
    %702 = vector.shape_cast %701 : vector<4xf32> to vector<4x1xf32>
    %703 = vector.broadcast %702 : vector<4x1xf32> to vector<4x3xf32>
    %704 = arith.subf %700, %703 : vector<4x3xf32>
    %705 = math.exp %704 : vector<4x3xf32>
    %cst_260 = arith.constant dense<0.000000e+00> : vector<4xf32>
    %706 = vector.multi_reduction <add>, %705, %cst_260 [1] : vector<4x3xf32> to vector<4xf32>
    %707 = vector.shape_cast %706 : vector<4xf32> to vector<4x1xf32>
    %708 = vector.broadcast %707 : vector<4x1xf32> to vector<4x3xf32>
    %709 = arith.divf %705, %708 : vector<4x3xf32>
    %710 = vector.extract_strided_slice %647 {offsets = [0, 12], sizes = [3, 4], strides = [1, 1]} : vector<3x16xf32> to vector<3x4xf32>
    %cst_261 = arith.constant dense<0.000000e+00> : vector<4x4xf32>
    %711 = tpu.matmul %709, %710, %cst_261 {dimension_numbers = #tpu.dot_dimension_numbers<[1], [0], [0], [1], [0, 0, 1, 1], [], []>} : vector<4x3xf32>, vector<3x4xf32>, vector<4x4xf32> -> vector<4x4xf32>
    %712 = tpu.concatenate %663, %679, %695, %711 in 1 : vector<4x4xf32>, vector<4x4xf32>, vector<4x4xf32>, vector<4x4xf32> -> vector<4x16xf32>
    %c4_262 = arith.constant 4 : index
    %c0_263 = arith.constant 0 : index
    %713 = vector.load %arg22[%c4_262, %c0_263] : memref<8x16xf32, #tpu.memory_space<vmem>>, vector<4x16xf32>
    tpu.vector_store %arg22[%c4_262, %c0_263], %712 {strides = array<i32>} : memref<8x16xf32, #tpu.memory_space<vmem>>, vector<4x16xf32>,
    %c0_264 = arith.constant 0 : index
    %c0_265 = arith.constant 0 : index
    %714 = vector.load %arg22[%c0_264, %c0_265] : memref<8x16xf32, #tpu.memory_space<vmem>>, vector<8x16xf32>
    %715 = arith.addf %572, %714 : vector<8x16xf32>
    %cst_266 = arith.constant dense<0.000000e+00> : vector<8xf32>
    %716 = vector.multi_reduction <add>, %715, %cst_266 [1] : vector<8x16xf32> to vector<8xf32>
    %717 = vector.shape_cast %716 : vector<8xf32> to vector<8x1xf32>
    %cst_267 = arith.constant 1.600000e+01 : f32
    %718 = vector.broadcast %cst_267 : f32 to vector<8x1xf32>
    %719 = arith.divf %717, %718 : vector<8x1xf32>
    %720 = vector.broadcast %719 : vector<8x1xf32> to vector<8x16xf32>
    %721 = arith.subf %715, %720 : vector<8x16xf32>
    %722 = arith.mulf %721, %721 : vector<8x16xf32>
    %cst_268 = arith.constant dense<0.000000e+00> : vector<8xf32>
    %723 = vector.multi_reduction <add>, %722, %cst_268 [1] : vector<8x16xf32> to vector<8xf32>
    %724 = vector.shape_cast %723 : vector<8xf32> to vector<8x1xf32>
    %cst_269 = arith.constant 1.600000e+01 : f32
    %725 = vector.broadcast %cst_269 : f32 to vector<8x1xf32>
    %726 = arith.divf %724, %725 : vector<8x1xf32>
    %cst_270 = arith.constant 9.99999974E-6 : f32
    %727 = vector.broadcast %cst_270 : f32 to vector<8x1xf32>
    %728 = arith.addf %726, %727 : vector<8x1xf32>
    %729 = math.rsqrt %728 : vector<8x1xf32>
    %730 = vector.broadcast %729 : vector<8x1xf32> to vector<8x16xf32>
    %731 = arith.mulf %721, %730 : vector<8x16xf32>
    %732 = vector.broadcast %0 : vector<1x16xf32> to vector<8x16xf32>
    %733 = arith.mulf %731, %732 : vector<8x16xf32>
    %734 = vector.broadcast %1 : vector<1x16xf32> to vector<8x16xf32>
    %735 = arith.addf %733, %734 : vector<8x16xf32>
    %c0_271 = arith.constant 0 : index
    %c0_272 = arith.constant 0 : index
    %c0_273 = arith.constant 0 : index
    %736 = vector.load %arg12[%c0_271, %c0_272, %c0_273] : memref<2x16x16xf32, #tpu.memory_space<vmem>>, vector<1x16x16xf32>
    %737 = vector.shape_cast %736 : vector<1x16x16xf32> to vector<16x16xf32>
    %cst_274 = arith.constant dense<0.000000e+00> : vector<8x16xf32>
    %738 = tpu.matmul %735, %737, %cst_274 {dimension_numbers = #tpu.dot_dimension_numbers<[1], [0], [0], [1], [0, 0, 1, 1], [], []>} : vector<8x16xf32>, vector<16x16xf32>, vector<8x16xf32> -> vector<8x16xf32>
    %c0_275 = arith.constant 0 : index
    %c0_276 = arith.constant 0 : index
    %c0_277 = arith.constant 0 : index
    %739 = vector.load %arg13[%c0_275, %c0_276, %c0_277] : memref<2x1x16xf32, #tpu.memory_space<vmem>>, vector<1x1x16xf32>
    %740 = vector.shape_cast %739 : vector<1x1x16xf32> to vector<1x16xf32>
    %741 = vector.broadcast %740 : vector<1x16xf32> to vector<8x16xf32>
    %742 = arith.addf %738, %741 : vector<8x16xf32>
    %cst_278 = arith.constant 0.000000e+00 : f32
    %743 = vector.broadcast %cst_278 : f32 to vector<8x16xf32>
    %744 = arith.maximumf %742, %743 : vector<8x16xf32>
    %c0_279 = arith.constant 0 : index
    %c0_280 = arith.constant 0 : index
    %c0_281 = arith.constant 0 : index
    %745 = vector.load %arg14[%c0_279, %c0_280, %c0_281] : memref<2x16x16xf32, #tpu.memory_space<vmem>>, vector<1x16x16xf32>
    %746 = vector.shape_cast %745 : vector<1x16x16xf32> to vector<16x16xf32>
    %cst_282 = arith.constant dense<0.000000e+00> : vector<8x16xf32>
    %747 = tpu.matmul %744, %746, %cst_282 {dimension_numbers = #tpu.dot_dimension_numbers<[1], [0], [0], [1], [0, 0, 1, 1], [], []>} : vector<8x16xf32>, vector<16x16xf32>, vector<8x16xf32> -> vector<8x16xf32>
    %c0_283 = arith.constant 0 : index
    %c0_284 = arith.constant 0 : index
    %c0_285 = arith.constant 0 : index
    %748 = vector.load %arg15[%c0_283, %c0_284, %c0_285] : memref<2x1x16xf32, #tpu.memory_space<vmem>>, vector<1x1x16xf32>
    %749 = vector.shape_cast %748 : vector<1x1x16xf32> to vector<1x16xf32>
    %750 = vector.broadcast %749 : vector<1x16xf32> to vector<8x16xf32>
    %751 = arith.addf %747, %750 : vector<8x16xf32>
    %752 = arith.addf %735, %751 : vector<8x16xf32>
    %cst_286 = arith.constant dense<0.000000e+00> : vector<8xf32>
    %753 = vector.multi_reduction <add>, %752, %cst_286 [1] : vector<8x16xf32> to vector<8xf32>
    %754 = vector.shape_cast %753 : vector<8xf32> to vector<8x1xf32>
    %cst_287 = arith.constant 1.600000e+01 : f32
    %755 = vector.broadcast %cst_287 : f32 to vector<8x1xf32>
    %756 = arith.divf %754, %755 : vector<8x1xf32>
    %757 = vector.broadcast %756 : vector<8x1xf32> to vector<8x16xf32>
    %758 = arith.subf %752, %757 : vector<8x16xf32>
    %759 = arith.mulf %758, %758 : vector<8x16xf32>
    %cst_288 = arith.constant dense<0.000000e+00> : vector<8xf32>
    %760 = vector.multi_reduction <add>, %759, %cst_288 [1] : vector<8x16xf32> to vector<8xf32>
    %761 = vector.shape_cast %760 : vector<8xf32> to vector<8x1xf32>
    %cst_289 = arith.constant 1.600000e+01 : f32
    %762 = vector.broadcast %cst_289 : f32 to vector<8x1xf32>
    %763 = arith.divf %761, %762 : vector<8x1xf32>
    %cst_290 = arith.constant 9.99999974E-6 : f32
    %764 = vector.broadcast %cst_290 : f32 to vector<8x1xf32>
    %765 = arith.addf %763, %764 : vector<8x1xf32>
    %766 = math.rsqrt %765 : vector<8x1xf32>
    %767 = vector.broadcast %766 : vector<8x1xf32> to vector<8x16xf32>
    %768 = arith.mulf %758, %767 : vector<8x16xf32>
    %769 = vector.broadcast %0 : vector<1x16xf32> to vector<8x16xf32>
    %770 = arith.mulf %768, %769 : vector<8x16xf32>
    %771 = vector.broadcast %1 : vector<1x16xf32> to vector<8x16xf32>
    %772 = arith.addf %770, %771 : vector<8x16xf32>
    %cst_291 = arith.constant dense<0.000000e+00> : vector<8x16xf32>
    %773 = tpu.matmul %772, %5, %cst_291 {dimension_numbers = #tpu.dot_dimension_numbers<[1], [0], [0], [1], [0, 0, 1, 1], [], []>} : vector<8x16xf32>, vector<16x16xf32>, vector<8x16xf32> -> vector<8x16xf32>
    %cst_292 = arith.constant dense<0.000000e+00> : vector<8x16xf32>
    %774 = tpu.matmul %772, %6, %cst_292 {dimension_numbers = #tpu.dot_dimension_numbers<[1], [0], [0], [1], [0, 0, 1, 1], [], []>} : vector<8x16xf32>, vector<16x16xf32>, vector<8x16xf32> -> vector<8x16xf32>
    %cst_293 = arith.constant dense<0.000000e+00> : vector<8x16xf32>
    %775 = tpu.matmul %772, %7, %cst_293 {dimension_numbers = #tpu.dot_dimension_numbers<[1], [0], [0], [1], [0, 0, 1, 1], [], []>} : vector<8x16xf32>, vector<16x16xf32>, vector<8x16xf32> -> vector<8x16xf32>
    %776 = vector.extract_strided_slice %773 {offsets = [0, 0], sizes = [4, 16], strides = [1, 1]} : vector<8x16xf32> to vector<4x16xf32>
    %777 = vector.extract_strided_slice %774 {offsets = [0, 0], sizes = [4, 16], strides = [1, 1]} : vector<8x16xf32> to vector<4x16xf32>
    %778 = vector.extract_strided_slice %775 {offsets = [0, 0], sizes = [4, 16], strides = [1, 1]} : vector<8x16xf32> to vector<4x16xf32>
    %779 = vector.extract_strided_slice %776 {offsets = [0, 0], sizes = [4, 4], strides = [1, 1]} : vector<4x16xf32> to vector<4x4xf32>
    %780 = vector.extract_strided_slice %777 {offsets = [0, 0], sizes = [4, 4], strides = [1, 1]} : vector<4x16xf32> to vector<4x4xf32>
    %cst_294 = arith.constant dense<0.000000e+00> : vector<4x4xf32>
    %781 = tpu.matmul %779, %780, %cst_294 {dimension_numbers = #tpu.dot_dimension_numbers<[1], [1], [0], [0], [0, 0, 1, 0], [], []>} : vector<4x4xf32>, vector<4x4xf32>, vector<4x4xf32> -> vector<4x4xf32>
    %cst_295 = arith.constant 5.000000e-01 : f32
    %782 = vector.broadcast %cst_295 : f32 to vector<4x4xf32>
    %783 = arith.mulf %781, %782 : vector<4x4xf32>
    %cst_296 = arith.constant dense<0xFF800000> : vector<4xf32>
    %784 = vector.multi_reduction <maximumf>, %783, %cst_296 [1] : vector<4x4xf32> to vector<4xf32>
    %785 = vector.shape_cast %784 : vector<4xf32> to vector<4x1xf32>
    %786 = vector.broadcast %785 : vector<4x1xf32> to vector<4x4xf32>
    %787 = arith.subf %783, %786 : vector<4x4xf32>
    %788 = math.exp %787 : vector<4x4xf32>
    %cst_297 = arith.constant dense<0.000000e+00> : vector<4xf32>
    %789 = vector.multi_reduction <add>, %788, %cst_297 [1] : vector<4x4xf32> to vector<4xf32>
    %790 = vector.shape_cast %789 : vector<4xf32> to vector<4x1xf32>
    %791 = vector.broadcast %790 : vector<4x1xf32> to vector<4x4xf32>
    %792 = arith.divf %788, %791 : vector<4x4xf32>
    %793 = vector.extract_strided_slice %778 {offsets = [0, 0], sizes = [4, 4], strides = [1, 1]} : vector<4x16xf32> to vector<4x4xf32>
    %cst_298 = arith.constant dense<0.000000e+00> : vector<4x4xf32>
    %794 = tpu.matmul %792, %793, %cst_298 {dimension_numbers = #tpu.dot_dimension_numbers<[1], [0], [0], [1], [0, 0, 1, 1], [], []>} : vector<4x4xf32>, vector<4x4xf32>, vector<4x4xf32> -> vector<4x4xf32>
    %795 = vector.extract_strided_slice %776 {offsets = [0, 4], sizes = [4, 4], strides = [1, 1]} : vector<4x16xf32> to vector<4x4xf32>
    %796 = vector.extract_strided_slice %777 {offsets = [0, 4], sizes = [4, 4], strides = [1, 1]} : vector<4x16xf32> to vector<4x4xf32>
    %cst_299 = arith.constant dense<0.000000e+00> : vector<4x4xf32>
    %797 = tpu.matmul %795, %796, %cst_299 {dimension_numbers = #tpu.dot_dimension_numbers<[1], [1], [0], [0], [0, 0, 1, 0], [], []>} : vector<4x4xf32>, vector<4x4xf32>, vector<4x4xf32> -> vector<4x4xf32>
    %cst_300 = arith.constant 5.000000e-01 : f32
    %798 = vector.broadcast %cst_300 : f32 to vector<4x4xf32>
    %799 = arith.mulf %797, %798 : vector<4x4xf32>
    %cst_301 = arith.constant dense<0xFF800000> : vector<4xf32>
    %800 = vector.multi_reduction <maximumf>, %799, %cst_301 [1] : vector<4x4xf32> to vector<4xf32>
    %801 = vector.shape_cast %800 : vector<4xf32> to vector<4x1xf32>
    %802 = vector.broadcast %801 : vector<4x1xf32> to vector<4x4xf32>
    %803 = arith.subf %799, %802 : vector<4x4xf32>
    %804 = math.exp %803 : vector<4x4xf32>
    %cst_302 = arith.constant dense<0.000000e+00> : vector<4xf32>
    %805 = vector.multi_reduction <add>, %804, %cst_302 [1] : vector<4x4xf32> to vector<4xf32>
    %806 = vector.shape_cast %805 : vector<4xf32> to vector<4x1xf32>
    %807 = vector.broadcast %806 : vector<4x1xf32> to vector<4x4xf32>
    %808 = arith.divf %804, %807 : vector<4x4xf32>
    %809 = vector.extract_strided_slice %778 {offsets = [0, 4], sizes = [4, 4], strides = [1, 1]} : vector<4x16xf32> to vector<4x4xf32>
    %cst_303 = arith.constant dense<0.000000e+00> : vector<4x4xf32>
    %810 = tpu.matmul %808, %809, %cst_303 {dimension_numbers = #tpu.dot_dimension_numbers<[1], [0], [0], [1], [0, 0, 1, 1], [], []>} : vector<4x4xf32>, vector<4x4xf32>, vector<4x4xf32> -> vector<4x4xf32>
    %811 = vector.extract_strided_slice %776 {offsets = [0, 8], sizes = [4, 4], strides = [1, 1]} : vector<4x16xf32> to vector<4x4xf32>
    %812 = vector.extract_strided_slice %777 {offsets = [0, 8], sizes = [4, 4], strides = [1, 1]} : vector<4x16xf32> to vector<4x4xf32>
    %cst_304 = arith.constant dense<0.000000e+00> : vector<4x4xf32>
    %813 = tpu.matmul %811, %812, %cst_304 {dimension_numbers = #tpu.dot_dimension_numbers<[1], [1], [0], [0], [0, 0, 1, 0], [], []>} : vector<4x4xf32>, vector<4x4xf32>, vector<4x4xf32> -> vector<4x4xf32>
    %cst_305 = arith.constant 5.000000e-01 : f32
    %814 = vector.broadcast %cst_305 : f32 to vector<4x4xf32>
    %815 = arith.mulf %813, %814 : vector<4x4xf32>
    %cst_306 = arith.constant dense<0xFF800000> : vector<4xf32>
    %816 = vector.multi_reduction <maximumf>, %815, %cst_306 [1] : vector<4x4xf32> to vector<4xf32>
    %817 = vector.shape_cast %816 : vector<4xf32> to vector<4x1xf32>
    %818 = vector.broadcast %817 : vector<4x1xf32> to vector<4x4xf32>
    %819 = arith.subf %815, %818 : vector<4x4xf32>
    %820 = math.exp %819 : vector<4x4xf32>
    %cst_307 = arith.constant dense<0.000000e+00> : vector<4xf32>
    %821 = vector.multi_reduction <add>, %820, %cst_307 [1] : vector<4x4xf32> to vector<4xf32>
    %822 = vector.shape_cast %821 : vector<4xf32> to vector<4x1xf32>
    %823 = vector.broadcast %822 : vector<4x1xf32> to vector<4x4xf32>
    %824 = arith.divf %820, %823 : vector<4x4xf32>
    %825 = vector.extract_strided_slice %778 {offsets = [0, 8], sizes = [4, 4], strides = [1, 1]} : vector<4x16xf32> to vector<4x4xf32>
    %cst_308 = arith.constant dense<0.000000e+00> : vector<4x4xf32>
    %826 = tpu.matmul %824, %825, %cst_308 {dimension_numbers = #tpu.dot_dimension_numbers<[1], [0], [0], [1], [0, 0, 1, 1], [], []>} : vector<4x4xf32>, vector<4x4xf32>, vector<4x4xf32> -> vector<4x4xf32>
    %827 = vector.extract_strided_slice %776 {offsets = [0, 12], sizes = [4, 4], strides = [1, 1]} : vector<4x16xf32> to vector<4x4xf32>
    %828 = vector.extract_strided_slice %777 {offsets = [0, 12], sizes = [4, 4], strides = [1, 1]} : vector<4x16xf32> to vector<4x4xf32>
    %cst_309 = arith.constant dense<0.000000e+00> : vector<4x4xf32>
    %829 = tpu.matmul %827, %828, %cst_309 {dimension_numbers = #tpu.dot_dimension_numbers<[1], [1], [0], [0], [0, 0, 1, 0], [], []>} : vector<4x4xf32>, vector<4x4xf32>, vector<4x4xf32> -> vector<4x4xf32>
    %cst_310 = arith.constant 5.000000e-01 : f32
    %830 = vector.broadcast %cst_310 : f32 to vector<4x4xf32>
    %831 = arith.mulf %829, %830 : vector<4x4xf32>
    %cst_311 = arith.constant dense<0xFF800000> : vector<4xf32>
    %832 = vector.multi_reduction <maximumf>, %831, %cst_311 [1] : vector<4x4xf32> to vector<4xf32>
    %833 = vector.shape_cast %832 : vector<4xf32> to vector<4x1xf32>
    %834 = vector.broadcast %833 : vector<4x1xf32> to vector<4x4xf32>
    %835 = arith.subf %831, %834 : vector<4x4xf32>
    %836 = math.exp %835 : vector<4x4xf32>
    %cst_312 = arith.constant dense<0.000000e+00> : vector<4xf32>
    %837 = vector.multi_reduction <add>, %836, %cst_312 [1] : vector<4x4xf32> to vector<4xf32>
    %838 = vector.shape_cast %837 : vector<4xf32> to vector<4x1xf32>
    %839 = vector.broadcast %838 : vector<4x1xf32> to vector<4x4xf32>
    %840 = arith.divf %836, %839 : vector<4x4xf32>
    %841 = vector.extract_strided_slice %778 {offsets = [0, 12], sizes = [4, 4], strides = [1, 1]} : vector<4x16xf32> to vector<4x4xf32>
    %cst_313 = arith.constant dense<0.000000e+00> : vector<4x4xf32>
    %842 = tpu.matmul %840, %841, %cst_313 {dimension_numbers = #tpu.dot_dimension_numbers<[1], [0], [0], [1], [0, 0, 1, 1], [], []>} : vector<4x4xf32>, vector<4x4xf32>, vector<4x4xf32> -> vector<4x4xf32>
    %843 = tpu.concatenate %794, %810, %826, %842 in 1 : vector<4x4xf32>, vector<4x4xf32>, vector<4x4xf32>, vector<4x4xf32> -> vector<4x16xf32>
    %c0_314 = arith.constant 0 : index
    %c0_315 = arith.constant 0 : index
    %844 = vector.load %arg22[%c0_314, %c0_315] : memref<8x16xf32, #tpu.memory_space<vmem>>, vector<4x16xf32>
    tpu.vector_store %arg22[%c0_314, %c0_315], %843 {strides = array<i32>} : memref<8x16xf32, #tpu.memory_space<vmem>>, vector<4x16xf32>,
    %845 = vector.extract_strided_slice %773 {offsets = [4, 0], sizes = [4, 16], strides = [1, 1]} : vector<8x16xf32> to vector<4x16xf32>
    %846 = vector.extract_strided_slice %774 {offsets = [4, 0], sizes = [4, 16], strides = [1, 1]} : vector<8x16xf32> to vector<4x16xf32>
    %847 = vector.extract_strided_slice %775 {offsets = [4, 0], sizes = [4, 16], strides = [1, 1]} : vector<8x16xf32> to vector<4x16xf32>
    %848 = vector.extract_strided_slice %845 {offsets = [0, 0], sizes = [4, 4], strides = [1, 1]} : vector<4x16xf32> to vector<4x4xf32>
    %849 = vector.extract_strided_slice %846 {offsets = [0, 0], sizes = [4, 4], strides = [1, 1]} : vector<4x16xf32> to vector<4x4xf32>
    %cst_316 = arith.constant dense<0.000000e+00> : vector<4x4xf32>
    %850 = tpu.matmul %848, %849, %cst_316 {dimension_numbers = #tpu.dot_dimension_numbers<[1], [1], [0], [0], [0, 0, 1, 0], [], []>} : vector<4x4xf32>, vector<4x4xf32>, vector<4x4xf32> -> vector<4x4xf32>
    %cst_317 = arith.constant 5.000000e-01 : f32
    %851 = vector.broadcast %cst_317 : f32 to vector<4x4xf32>
    %852 = arith.mulf %850, %851 : vector<4x4xf32>
    %cst_318 = arith.constant dense<0xFF800000> : vector<4xf32>
    %853 = vector.multi_reduction <maximumf>, %852, %cst_318 [1] : vector<4x4xf32> to vector<4xf32>
    %854 = vector.shape_cast %853 : vector<4xf32> to vector<4x1xf32>
    %855 = vector.broadcast %854 : vector<4x1xf32> to vector<4x4xf32>
    %856 = arith.subf %852, %855 : vector<4x4xf32>
    %857 = math.exp %856 : vector<4x4xf32>
    %cst_319 = arith.constant dense<0.000000e+00> : vector<4xf32>
    %858 = vector.multi_reduction <add>, %857, %cst_319 [1] : vector<4x4xf32> to vector<4xf32>
    %859 = vector.shape_cast %858 : vector<4xf32> to vector<4x1xf32>
    %860 = vector.broadcast %859 : vector<4x1xf32> to vector<4x4xf32>
    %861 = arith.divf %857, %860 : vector<4x4xf32>
    %862 = vector.extract_strided_slice %847 {offsets = [0, 0], sizes = [4, 4], strides = [1, 1]} : vector<4x16xf32> to vector<4x4xf32>
    %cst_320 = arith.constant dense<0.000000e+00> : vector<4x4xf32>
    %863 = tpu.matmul %861, %862, %cst_320 {dimension_numbers = #tpu.dot_dimension_numbers<[1], [0], [0], [1], [0, 0, 1, 1], [], []>} : vector<4x4xf32>, vector<4x4xf32>, vector<4x4xf32> -> vector<4x4xf32>
    %864 = vector.extract_strided_slice %845 {offsets = [0, 4], sizes = [4, 4], strides = [1, 1]} : vector<4x16xf32> to vector<4x4xf32>
    %865 = vector.extract_strided_slice %846 {offsets = [0, 4], sizes = [4, 4], strides = [1, 1]} : vector<4x16xf32> to vector<4x4xf32>
    %cst_321 = arith.constant dense<0.000000e+00> : vector<4x4xf32>
    %866 = tpu.matmul %864, %865, %cst_321 {dimension_numbers = #tpu.dot_dimension_numbers<[1], [1], [0], [0], [0, 0, 1, 0], [], []>} : vector<4x4xf32>, vector<4x4xf32>, vector<4x4xf32> -> vector<4x4xf32>
    %cst_322 = arith.constant 5.000000e-01 : f32
    %867 = vector.broadcast %cst_322 : f32 to vector<4x4xf32>
    %868 = arith.mulf %866, %867 : vector<4x4xf32>
    %cst_323 = arith.constant dense<0xFF800000> : vector<4xf32>
    %869 = vector.multi_reduction <maximumf>, %868, %cst_323 [1] : vector<4x4xf32> to vector<4xf32>
    %870 = vector.shape_cast %869 : vector<4xf32> to vector<4x1xf32>
    %871 = vector.broadcast %870 : vector<4x1xf32> to vector<4x4xf32>
    %872 = arith.subf %868, %871 : vector<4x4xf32>
    %873 = math.exp %872 : vector<4x4xf32>
    %cst_324 = arith.constant dense<0.000000e+00> : vector<4xf32>
    %874 = vector.multi_reduction <add>, %873, %cst_324 [1] : vector<4x4xf32> to vector<4xf32>
    %875 = vector.shape_cast %874 : vector<4xf32> to vector<4x1xf32>
    %876 = vector.broadcast %875 : vector<4x1xf32> to vector<4x4xf32>
    %877 = arith.divf %873, %876 : vector<4x4xf32>
    %878 = vector.extract_strided_slice %847 {offsets = [0, 4], sizes = [4, 4], strides = [1, 1]} : vector<4x16xf32> to vector<4x4xf32>
    %cst_325 = arith.constant dense<0.000000e+00> : vector<4x4xf32>
    %879 = tpu.matmul %877, %878, %cst_325 {dimension_numbers = #tpu.dot_dimension_numbers<[1], [0], [0], [1], [0, 0, 1, 1], [], []>} : vector<4x4xf32>, vector<4x4xf32>, vector<4x4xf32> -> vector<4x4xf32>
    %880 = vector.extract_strided_slice %845 {offsets = [0, 8], sizes = [4, 4], strides = [1, 1]} : vector<4x16xf32> to vector<4x4xf32>
    %881 = vector.extract_strided_slice %846 {offsets = [0, 8], sizes = [4, 4], strides = [1, 1]} : vector<4x16xf32> to vector<4x4xf32>
    %cst_326 = arith.constant dense<0.000000e+00> : vector<4x4xf32>
    %882 = tpu.matmul %880, %881, %cst_326 {dimension_numbers = #tpu.dot_dimension_numbers<[1], [1], [0], [0], [0, 0, 1, 0], [], []>} : vector<4x4xf32>, vector<4x4xf32>, vector<4x4xf32> -> vector<4x4xf32>
    %cst_327 = arith.constant 5.000000e-01 : f32
    %883 = vector.broadcast %cst_327 : f32 to vector<4x4xf32>
    %884 = arith.mulf %882, %883 : vector<4x4xf32>
    %cst_328 = arith.constant dense<0xFF800000> : vector<4xf32>
    %885 = vector.multi_reduction <maximumf>, %884, %cst_328 [1] : vector<4x4xf32> to vector<4xf32>
    %886 = vector.shape_cast %885 : vector<4xf32> to vector<4x1xf32>
    %887 = vector.broadcast %886 : vector<4x1xf32> to vector<4x4xf32>
    %888 = arith.subf %884, %887 : vector<4x4xf32>
    %889 = math.exp %888 : vector<4x4xf32>
    %cst_329 = arith.constant dense<0.000000e+00> : vector<4xf32>
    %890 = vector.multi_reduction <add>, %889, %cst_329 [1] : vector<4x4xf32> to vector<4xf32>
    %891 = vector.shape_cast %890 : vector<4xf32> to vector<4x1xf32>
    %892 = vector.broadcast %891 : vector<4x1xf32> to vector<4x4xf32>
    %893 = arith.divf %889, %892 : vector<4x4xf32>
    %894 = vector.extract_strided_slice %847 {offsets = [0, 8], sizes = [4, 4], strides = [1, 1]} : vector<4x16xf32> to vector<4x4xf32>
    %cst_330 = arith.constant dense<0.000000e+00> : vector<4x4xf32>
    %895 = tpu.matmul %893, %894, %cst_330 {dimension_numbers = #tpu.dot_dimension_numbers<[1], [0], [0], [1], [0, 0, 1, 1], [], []>} : vector<4x4xf32>, vector<4x4xf32>, vector<4x4xf32> -> vector<4x4xf32>
    %896 = vector.extract_strided_slice %845 {offsets = [0, 12], sizes = [4, 4], strides = [1, 1]} : vector<4x16xf32> to vector<4x4xf32>
    %897 = vector.extract_strided_slice %846 {offsets = [0, 12], sizes = [4, 4], strides = [1, 1]} : vector<4x16xf32> to vector<4x4xf32>
    %cst_331 = arith.constant dense<0.000000e+00> : vector<4x4xf32>
    %898 = tpu.matmul %896, %897, %cst_331 {dimension_numbers = #tpu.dot_dimension_numbers<[1], [1], [0], [0], [0, 0, 1, 0], [], []>} : vector<4x4xf32>, vector<4x4xf32>, vector<4x4xf32> -> vector<4x4xf32>
    %cst_332 = arith.constant 5.000000e-01 : f32
    %899 = vector.broadcast %cst_332 : f32 to vector<4x4xf32>
    %900 = arith.mulf %898, %899 : vector<4x4xf32>
    %cst_333 = arith.constant dense<0xFF800000> : vector<4xf32>
    %901 = vector.multi_reduction <maximumf>, %900, %cst_333 [1] : vector<4x4xf32> to vector<4xf32>
    %902 = vector.shape_cast %901 : vector<4xf32> to vector<4x1xf32>
    %903 = vector.broadcast %902 : vector<4x1xf32> to vector<4x4xf32>
    %904 = arith.subf %900, %903 : vector<4x4xf32>
    %905 = math.exp %904 : vector<4x4xf32>
    %cst_334 = arith.constant dense<0.000000e+00> : vector<4xf32>
    %906 = vector.multi_reduction <add>, %905, %cst_334 [1] : vector<4x4xf32> to vector<4xf32>
    %907 = vector.shape_cast %906 : vector<4xf32> to vector<4x1xf32>
    %908 = vector.broadcast %907 : vector<4x1xf32> to vector<4x4xf32>
    %909 = arith.divf %905, %908 : vector<4x4xf32>
    %910 = vector.extract_strided_slice %847 {offsets = [0, 12], sizes = [4, 4], strides = [1, 1]} : vector<4x16xf32> to vector<4x4xf32>
    %cst_335 = arith.constant dense<0.000000e+00> : vector<4x4xf32>
    %911 = tpu.matmul %909, %910, %cst_335 {dimension_numbers = #tpu.dot_dimension_numbers<[1], [0], [0], [1], [0, 0, 1, 1], [], []>} : vector<4x4xf32>, vector<4x4xf32>, vector<4x4xf32> -> vector<4x4xf32>
    %912 = tpu.concatenate %863, %879, %895, %911 in 1 : vector<4x4xf32>, vector<4x4xf32>, vector<4x4xf32>, vector<4x4xf32> -> vector<4x16xf32>
    %c4_336 = arith.constant 4 : index
    %c0_337 = arith.constant 0 : index
    %913 = vector.load %arg22[%c4_336, %c0_337] : memref<8x16xf32, #tpu.memory_space<vmem>>, vector<4x16xf32>
    tpu.vector_store %arg22[%c4_336, %c0_337], %912 {strides = array<i32>} : memref<8x16xf32, #tpu.memory_space<vmem>>, vector<4x16xf32>,
    %c0_338 = arith.constant 0 : index
    %c0_339 = arith.constant 0 : index
    %914 = vector.load %arg22[%c0_338, %c0_339] : memref<8x16xf32, #tpu.memory_space<vmem>>, vector<8x16xf32>
    %915 = arith.addf %772, %914 : vector<8x16xf32>
    %cst_340 = arith.constant dense<0.000000e+00> : vector<8xf32>
    %916 = vector.multi_reduction <add>, %915, %cst_340 [1] : vector<8x16xf32> to vector<8xf32>
    %917 = vector.shape_cast %916 : vector<8xf32> to vector<8x1xf32>
    %cst_341 = arith.constant 1.600000e+01 : f32
    %918 = vector.broadcast %cst_341 : f32 to vector<8x1xf32>
    %919 = arith.divf %917, %918 : vector<8x1xf32>
    %920 = vector.broadcast %919 : vector<8x1xf32> to vector<8x16xf32>
    %921 = arith.subf %915, %920 : vector<8x16xf32>
    %922 = arith.mulf %921, %921 : vector<8x16xf32>
    %cst_342 = arith.constant dense<0.000000e+00> : vector<8xf32>
    %923 = vector.multi_reduction <add>, %922, %cst_342 [1] : vector<8x16xf32> to vector<8xf32>
    %924 = vector.shape_cast %923 : vector<8xf32> to vector<8x1xf32>
    %cst_343 = arith.constant 1.600000e+01 : f32
    %925 = vector.broadcast %cst_343 : f32 to vector<8x1xf32>
    %926 = arith.divf %924, %925 : vector<8x1xf32>
    %cst_344 = arith.constant 9.99999974E-6 : f32
    %927 = vector.broadcast %cst_344 : f32 to vector<8x1xf32>
    %928 = arith.addf %926, %927 : vector<8x1xf32>
    %929 = math.rsqrt %928 : vector<8x1xf32>
    %930 = vector.broadcast %929 : vector<8x1xf32> to vector<8x16xf32>
    %931 = arith.mulf %921, %930 : vector<8x16xf32>
    %932 = vector.broadcast %0 : vector<1x16xf32> to vector<8x16xf32>
    %933 = arith.mulf %931, %932 : vector<8x16xf32>
    %934 = vector.broadcast %1 : vector<1x16xf32> to vector<8x16xf32>
    %935 = arith.addf %933, %934 : vector<8x16xf32>
    %cst_345 = arith.constant dense<0.000000e+00> : vector<8x16xf32>
    %936 = tpu.matmul %935, %6, %cst_345 {dimension_numbers = #tpu.dot_dimension_numbers<[1], [0], [0], [1], [0, 0, 1, 1], [], []>} : vector<8x16xf32>, vector<16x16xf32>, vector<8x16xf32> -> vector<8x16xf32>
    %cst_346 = arith.constant dense<0.000000e+00> : vector<6x16xf32>
    %937 = tpu.matmul %408, %5, %cst_346 {dimension_numbers = #tpu.dot_dimension_numbers<[1], [0], [0], [1], [0, 0, 1, 1], [], []>} : vector<6x16xf32>, vector<16x16xf32>, vector<6x16xf32> -> vector<6x16xf32>
    %cst_347 = arith.constant dense<0.000000e+00> : vector<6x16xf32>
    %938 = tpu.matmul %408, %7, %cst_347 {dimension_numbers = #tpu.dot_dimension_numbers<[1], [0], [0], [1], [0, 0, 1, 1], [], []>} : vector<6x16xf32>, vector<16x16xf32>, vector<6x16xf32> -> vector<6x16xf32>
    %939 = vector.extract_strided_slice %936 {offsets = [0, 0], sizes = [4, 16], strides = [1, 1]} : vector<8x16xf32> to vector<4x16xf32>
    %940 = vector.extract_strided_slice %937 {offsets = [0, 0], sizes = [3, 16], strides = [1, 1]} : vector<6x16xf32> to vector<3x16xf32>
    %941 = vector.extract_strided_slice %938 {offsets = [0, 0], sizes = [3, 16], strides = [1, 1]} : vector<6x16xf32> to vector<3x16xf32>
    %942 = vector.extract_strided_slice %939 {offsets = [0, 0], sizes = [4, 4], strides = [1, 1]} : vector<4x16xf32> to vector<4x4xf32>
    %943 = vector.extract_strided_slice %940 {offsets = [0, 0], sizes = [3, 4], strides = [1, 1]} : vector<3x16xf32> to vector<3x4xf32>
    %cst_348 = arith.constant dense<0.000000e+00> : vector<4x3xf32>
    %944 = tpu.matmul %942, %943, %cst_348 {dimension_numbers = #tpu.dot_dimension_numbers<[1], [1], [0], [0], [0, 0, 1, 0], [], []>} : vector<4x4xf32>, vector<3x4xf32>, vector<4x3xf32> -> vector<4x3xf32>
    %cst_349 = arith.constant 5.000000e-01 : f32
    %945 = vector.broadcast %cst_349 : f32 to vector<4x3xf32>
    %946 = arith.mulf %944, %945 : vector<4x3xf32>
    %cst_350 = arith.constant dense<0xFF800000> : vector<4xf32>
    %947 = vector.multi_reduction <maximumf>, %946, %cst_350 [1] : vector<4x3xf32> to vector<4xf32>
    %948 = vector.shape_cast %947 : vector<4xf32> to vector<4x1xf32>
    %949 = vector.broadcast %948 : vector<4x1xf32> to vector<4x3xf32>
    %950 = arith.subf %946, %949 : vector<4x3xf32>
    %951 = math.exp %950 : vector<4x3xf32>
    %cst_351 = arith.constant dense<0.000000e+00> : vector<4xf32>
    %952 = vector.multi_reduction <add>, %951, %cst_351 [1] : vector<4x3xf32> to vector<4xf32>
    %953 = vector.shape_cast %952 : vector<4xf32> to vector<4x1xf32>
    %954 = vector.broadcast %953 : vector<4x1xf32> to vector<4x3xf32>
    %955 = arith.divf %951, %954 : vector<4x3xf32>
    %956 = vector.extract_strided_slice %941 {offsets = [0, 0], sizes = [3, 4], strides = [1, 1]} : vector<3x16xf32> to vector<3x4xf32>
    %cst_352 = arith.constant dense<0.000000e+00> : vector<4x4xf32>
    %957 = tpu.matmul %955, %956, %cst_352 {dimension_numbers = #tpu.dot_dimension_numbers<[1], [0], [0], [1], [0, 0, 1, 1], [], []>} : vector<4x3xf32>, vector<3x4xf32>, vector<4x4xf32> -> vector<4x4xf32>
    %958 = vector.extract_strided_slice %939 {offsets = [0, 4], sizes = [4, 4], strides = [1, 1]} : vector<4x16xf32> to vector<4x4xf32>
    %959 = vector.extract_strided_slice %940 {offsets = [0, 4], sizes = [3, 4], strides = [1, 1]} : vector<3x16xf32> to vector<3x4xf32>
    %cst_353 = arith.constant dense<0.000000e+00> : vector<4x3xf32>
    %960 = tpu.matmul %958, %959, %cst_353 {dimension_numbers = #tpu.dot_dimension_numbers<[1], [1], [0], [0], [0, 0, 1, 0], [], []>} : vector<4x4xf32>, vector<3x4xf32>, vector<4x3xf32> -> vector<4x3xf32>
    %cst_354 = arith.constant 5.000000e-01 : f32
    %961 = vector.broadcast %cst_354 : f32 to vector<4x3xf32>
    %962 = arith.mulf %960, %961 : vector<4x3xf32>
    %cst_355 = arith.constant dense<0xFF800000> : vector<4xf32>
    %963 = vector.multi_reduction <maximumf>, %962, %cst_355 [1] : vector<4x3xf32> to vector<4xf32>
    %964 = vector.shape_cast %963 : vector<4xf32> to vector<4x1xf32>
    %965 = vector.broadcast %964 : vector<4x1xf32> to vector<4x3xf32>
    %966 = arith.subf %962, %965 : vector<4x3xf32>
    %967 = math.exp %966 : vector<4x3xf32>
    %cst_356 = arith.constant dense<0.000000e+00> : vector<4xf32>
    %968 = vector.multi_reduction <add>, %967, %cst_356 [1] : vector<4x3xf32> to vector<4xf32>
    %969 = vector.shape_cast %968 : vector<4xf32> to vector<4x1xf32>
    %970 = vector.broadcast %969 : vector<4x1xf32> to vector<4x3xf32>
    %971 = arith.divf %967, %970 : vector<4x3xf32>
    %972 = vector.extract_strided_slice %941 {offsets = [0, 4], sizes = [3, 4], strides = [1, 1]} : vector<3x16xf32> to vector<3x4xf32>
    %cst_357 = arith.constant dense<0.000000e+00> : vector<4x4xf32>
    %973 = tpu.matmul %971, %972, %cst_357 {dimension_numbers = #tpu.dot_dimension_numbers<[1], [0], [0], [1], [0, 0, 1, 1], [], []>} : vector<4x3xf32>, vector<3x4xf32>, vector<4x4xf32> -> vector<4x4xf32>
    %974 = vector.extract_strided_slice %939 {offsets = [0, 8], sizes = [4, 4], strides = [1, 1]} : vector<4x16xf32> to vector<4x4xf32>
    %975 = vector.extract_strided_slice %940 {offsets = [0, 8], sizes = [3, 4], strides = [1, 1]} : vector<3x16xf32> to vector<3x4xf32>
    %cst_358 = arith.constant dense<0.000000e+00> : vector<4x3xf32>
    %976 = tpu.matmul %974, %975, %cst_358 {dimension_numbers = #tpu.dot_dimension_numbers<[1], [1], [0], [0], [0, 0, 1, 0], [], []>} : vector<4x4xf32>, vector<3x4xf32>, vector<4x3xf32> -> vector<4x3xf32>
    %cst_359 = arith.constant 5.000000e-01 : f32
    %977 = vector.broadcast %cst_359 : f32 to vector<4x3xf32>
    %978 = arith.mulf %976, %977 : vector<4x3xf32>
    %cst_360 = arith.constant dense<0xFF800000> : vector<4xf32>
    %979 = vector.multi_reduction <maximumf>, %978, %cst_360 [1] : vector<4x3xf32> to vector<4xf32>
    %980 = vector.shape_cast %979 : vector<4xf32> to vector<4x1xf32>
    %981 = vector.broadcast %980 : vector<4x1xf32> to vector<4x3xf32>
    %982 = arith.subf %978, %981 : vector<4x3xf32>
    %983 = math.exp %982 : vector<4x3xf32>
    %cst_361 = arith.constant dense<0.000000e+00> : vector<4xf32>
    %984 = vector.multi_reduction <add>, %983, %cst_361 [1] : vector<4x3xf32> to vector<4xf32>
    %985 = vector.shape_cast %984 : vector<4xf32> to vector<4x1xf32>
    %986 = vector.broadcast %985 : vector<4x1xf32> to vector<4x3xf32>
    %987 = arith.divf %983, %986 : vector<4x3xf32>
    %988 = vector.extract_strided_slice %941 {offsets = [0, 8], sizes = [3, 4], strides = [1, 1]} : vector<3x16xf32> to vector<3x4xf32>
    %cst_362 = arith.constant dense<0.000000e+00> : vector<4x4xf32>
    %989 = tpu.matmul %987, %988, %cst_362 {dimension_numbers = #tpu.dot_dimension_numbers<[1], [0], [0], [1], [0, 0, 1, 1], [], []>} : vector<4x3xf32>, vector<3x4xf32>, vector<4x4xf32> -> vector<4x4xf32>
    %990 = vector.extract_strided_slice %939 {offsets = [0, 12], sizes = [4, 4], strides = [1, 1]} : vector<4x16xf32> to vector<4x4xf32>
    %991 = vector.extract_strided_slice %940 {offsets = [0, 12], sizes = [3, 4], strides = [1, 1]} : vector<3x16xf32> to vector<3x4xf32>
    %cst_363 = arith.constant dense<0.000000e+00> : vector<4x3xf32>
    %992 = tpu.matmul %990, %991, %cst_363 {dimension_numbers = #tpu.dot_dimension_numbers<[1], [1], [0], [0], [0, 0, 1, 0], [], []>} : vector<4x4xf32>, vector<3x4xf32>, vector<4x3xf32> -> vector<4x3xf32>
    %cst_364 = arith.constant 5.000000e-01 : f32
    %993 = vector.broadcast %cst_364 : f32 to vector<4x3xf32>
    %994 = arith.mulf %992, %993 : vector<4x3xf32>
    %cst_365 = arith.constant dense<0xFF800000> : vector<4xf32>
    %995 = vector.multi_reduction <maximumf>, %994, %cst_365 [1] : vector<4x3xf32> to vector<4xf32>
    %996 = vector.shape_cast %995 : vector<4xf32> to vector<4x1xf32>
    %997 = vector.broadcast %996 : vector<4x1xf32> to vector<4x3xf32>
    %998 = arith.subf %994, %997 : vector<4x3xf32>
    %999 = math.exp %998 : vector<4x3xf32>
    %cst_366 = arith.constant dense<0.000000e+00> : vector<4xf32>
    %1000 = vector.multi_reduction <add>, %999, %cst_366 [1] : vector<4x3xf32> to vector<4xf32>
    %1001 = vector.shape_cast %1000 : vector<4xf32> to vector<4x1xf32>
    %1002 = vector.broadcast %1001 : vector<4x1xf32> to vector<4x3xf32>
    %1003 = arith.divf %999, %1002 : vector<4x3xf32>
    %1004 = vector.extract_strided_slice %941 {offsets = [0, 12], sizes = [3, 4], strides = [1, 1]} : vector<3x16xf32> to vector<3x4xf32>
    %cst_367 = arith.constant dense<0.000000e+00> : vector<4x4xf32>
    %1005 = tpu.matmul %1003, %1004, %cst_367 {dimension_numbers = #tpu.dot_dimension_numbers<[1], [0], [0], [1], [0, 0, 1, 1], [], []>} : vector<4x3xf32>, vector<3x4xf32>, vector<4x4xf32> -> vector<4x4xf32>
    %1006 = tpu.concatenate %957, %973, %989, %1005 in 1 : vector<4x4xf32>, vector<4x4xf32>, vector<4x4xf32>, vector<4x4xf32> -> vector<4x16xf32>
    %c0_368 = arith.constant 0 : index
    %c0_369 = arith.constant 0 : index
    %1007 = vector.load %arg22[%c0_368, %c0_369] : memref<8x16xf32, #tpu.memory_space<vmem>>, vector<4x16xf32>
    tpu.vector_store %arg22[%c0_368, %c0_369], %1006 {strides = array<i32>} : memref<8x16xf32, #tpu.memory_space<vmem>>, vector<4x16xf32>,
    %1008 = vector.extract_strided_slice %936 {offsets = [4, 0], sizes = [4, 16], strides = [1, 1]} : vector<8x16xf32> to vector<4x16xf32>
    %1009 = vector.extract_strided_slice %937 {offsets = [3, 0], sizes = [3, 16], strides = [1, 1]} : vector<6x16xf32> to vector<3x16xf32>
    %1010 = vector.extract_strided_slice %938 {offsets = [3, 0], sizes = [3, 16], strides = [1, 1]} : vector<6x16xf32> to vector<3x16xf32>
    %1011 = vector.extract_strided_slice %1008 {offsets = [0, 0], sizes = [4, 4], strides = [1, 1]} : vector<4x16xf32> to vector<4x4xf32>
    %1012 = vector.extract_strided_slice %1009 {offsets = [0, 0], sizes = [3, 4], strides = [1, 1]} : vector<3x16xf32> to vector<3x4xf32>
    %cst_370 = arith.constant dense<0.000000e+00> : vector<4x3xf32>
    %1013 = tpu.matmul %1011, %1012, %cst_370 {dimension_numbers = #tpu.dot_dimension_numbers<[1], [1], [0], [0], [0, 0, 1, 0], [], []>} : vector<4x4xf32>, vector<3x4xf32>, vector<4x3xf32> -> vector<4x3xf32>
    %cst_371 = arith.constant 5.000000e-01 : f32
    %1014 = vector.broadcast %cst_371 : f32 to vector<4x3xf32>
    %1015 = arith.mulf %1013, %1014 : vector<4x3xf32>
    %cst_372 = arith.constant dense<0xFF800000> : vector<4xf32>
    %1016 = vector.multi_reduction <maximumf>, %1015, %cst_372 [1] : vector<4x3xf32> to vector<4xf32>
    %1017 = vector.shape_cast %1016 : vector<4xf32> to vector<4x1xf32>
    %1018 = vector.broadcast %1017 : vector<4x1xf32> to vector<4x3xf32>
    %1019 = arith.subf %1015, %1018 : vector<4x3xf32>
    %1020 = math.exp %1019 : vector<4x3xf32>
    %cst_373 = arith.constant dense<0.000000e+00> : vector<4xf32>
    %1021 = vector.multi_reduction <add>, %1020, %cst_373 [1] : vector<4x3xf32> to vector<4xf32>
    %1022 = vector.shape_cast %1021 : vector<4xf32> to vector<4x1xf32>
    %1023 = vector.broadcast %1022 : vector<4x1xf32> to vector<4x3xf32>
    %1024 = arith.divf %1020, %1023 : vector<4x3xf32>
    %1025 = vector.extract_strided_slice %1010 {offsets = [0, 0], sizes = [3, 4], strides = [1, 1]} : vector<3x16xf32> to vector<3x4xf32>
    %cst_374 = arith.constant dense<0.000000e+00> : vector<4x4xf32>
    %1026 = tpu.matmul %1024, %1025, %cst_374 {dimension_numbers = #tpu.dot_dimension_numbers<[1], [0], [0], [1], [0, 0, 1, 1], [], []>} : vector<4x3xf32>, vector<3x4xf32>, vector<4x4xf32> -> vector<4x4xf32>
    %1027 = vector.extract_strided_slice %1008 {offsets = [0, 4], sizes = [4, 4], strides = [1, 1]} : vector<4x16xf32> to vector<4x4xf32>
    %1028 = vector.extract_strided_slice %1009 {offsets = [0, 4], sizes = [3, 4], strides = [1, 1]} : vector<3x16xf32> to vector<3x4xf32>
    %cst_375 = arith.constant dense<0.000000e+00> : vector<4x3xf32>
    %1029 = tpu.matmul %1027, %1028, %cst_375 {dimension_numbers = #tpu.dot_dimension_numbers<[1], [1], [0], [0], [0, 0, 1, 0], [], []>} : vector<4x4xf32>, vector<3x4xf32>, vector<4x3xf32> -> vector<4x3xf32>
    %cst_376 = arith.constant 5.000000e-01 : f32
    %1030 = vector.broadcast %cst_376 : f32 to vector<4x3xf32>
    %1031 = arith.mulf %1029, %1030 : vector<4x3xf32>
    %cst_377 = arith.constant dense<0xFF800000> : vector<4xf32>
    %1032 = vector.multi_reduction <maximumf>, %1031, %cst_377 [1] : vector<4x3xf32> to vector<4xf32>
    %1033 = vector.shape_cast %1032 : vector<4xf32> to vector<4x1xf32>
    %1034 = vector.broadcast %1033 : vector<4x1xf32> to vector<4x3xf32>
    %1035 = arith.subf %1031, %1034 : vector<4x3xf32>
    %1036 = math.exp %1035 : vector<4x3xf32>
    %cst_378 = arith.constant dense<0.000000e+00> : vector<4xf32>
    %1037 = vector.multi_reduction <add>, %1036, %cst_378 [1] : vector<4x3xf32> to vector<4xf32>
    %1038 = vector.shape_cast %1037 : vector<4xf32> to vector<4x1xf32>
    %1039 = vector.broadcast %1038 : vector<4x1xf32> to vector<4x3xf32>
    %1040 = arith.divf %1036, %1039 : vector<4x3xf32>
    %1041 = vector.extract_strided_slice %1010 {offsets = [0, 4], sizes = [3, 4], strides = [1, 1]} : vector<3x16xf32> to vector<3x4xf32>
    %cst_379 = arith.constant dense<0.000000e+00> : vector<4x4xf32>
    %1042 = tpu.matmul %1040, %1041, %cst_379 {dimension_numbers = #tpu.dot_dimension_numbers<[1], [0], [0], [1], [0, 0, 1, 1], [], []>} : vector<4x3xf32>, vector<3x4xf32>, vector<4x4xf32> -> vector<4x4xf32>
    %1043 = vector.extract_strided_slice %1008 {offsets = [0, 8], sizes = [4, 4], strides = [1, 1]} : vector<4x16xf32> to vector<4x4xf32>
    %1044 = vector.extract_strided_slice %1009 {offsets = [0, 8], sizes = [3, 4], strides = [1, 1]} : vector<3x16xf32> to vector<3x4xf32>
    %cst_380 = arith.constant dense<0.000000e+00> : vector<4x3xf32>
    %1045 = tpu.matmul %1043, %1044, %cst_380 {dimension_numbers = #tpu.dot_dimension_numbers<[1], [1], [0], [0], [0, 0, 1, 0], [], []>} : vector<4x4xf32>, vector<3x4xf32>, vector<4x3xf32> -> vector<4x3xf32>
    %cst_381 = arith.constant 5.000000e-01 : f32
    %1046 = vector.broadcast %cst_381 : f32 to vector<4x3xf32>
    %1047 = arith.mulf %1045, %1046 : vector<4x3xf32>
    %cst_382 = arith.constant dense<0xFF800000> : vector<4xf32>
    %1048 = vector.multi_reduction <maximumf>, %1047, %cst_382 [1] : vector<4x3xf32> to vector<4xf32>
    %1049 = vector.shape_cast %1048 : vector<4xf32> to vector<4x1xf32>
    %1050 = vector.broadcast %1049 : vector<4x1xf32> to vector<4x3xf32>
    %1051 = arith.subf %1047, %1050 : vector<4x3xf32>
    %1052 = math.exp %1051 : vector<4x3xf32>
    %cst_383 = arith.constant dense<0.000000e+00> : vector<4xf32>
    %1053 = vector.multi_reduction <add>, %1052, %cst_383 [1] : vector<4x3xf32> to vector<4xf32>
    %1054 = vector.shape_cast %1053 : vector<4xf32> to vector<4x1xf32>
    %1055 = vector.broadcast %1054 : vector<4x1xf32> to vector<4x3xf32>
    %1056 = arith.divf %1052, %1055 : vector<4x3xf32>
    %1057 = vector.extract_strided_slice %1010 {offsets = [0, 8], sizes = [3, 4], strides = [1, 1]} : vector<3x16xf32> to vector<3x4xf32>
    %cst_384 = arith.constant dense<0.000000e+00> : vector<4x4xf32>
    %1058 = tpu.matmul %1056, %1057, %cst_384 {dimension_numbers = #tpu.dot_dimension_numbers<[1], [0], [0], [1], [0, 0, 1, 1], [], []>} : vector<4x3xf32>, vector<3x4xf32>, vector<4x4xf32> -> vector<4x4xf32>
    %1059 = vector.extract_strided_slice %1008 {offsets = [0, 12], sizes = [4, 4], strides = [1, 1]} : vector<4x16xf32> to vector<4x4xf32>
    %1060 = vector.extract_strided_slice %1009 {offsets = [0, 12], sizes = [3, 4], strides = [1, 1]} : vector<3x16xf32> to vector<3x4xf32>
    %cst_385 = arith.constant dense<0.000000e+00> : vector<4x3xf32>
    %1061 = tpu.matmul %1059, %1060, %cst_385 {dimension_numbers = #tpu.dot_dimension_numbers<[1], [1], [0], [0], [0, 0, 1, 0], [], []>} : vector<4x4xf32>, vector<3x4xf32>, vector<4x3xf32> -> vector<4x3xf32>
    %cst_386 = arith.constant 5.000000e-01 : f32
    %1062 = vector.broadcast %cst_386 : f32 to vector<4x3xf32>
    %1063 = arith.mulf %1061, %1062 : vector<4x3xf32>
    %cst_387 = arith.constant dense<0xFF800000> : vector<4xf32>
    %1064 = vector.multi_reduction <maximumf>, %1063, %cst_387 [1] : vector<4x3xf32> to vector<4xf32>
    %1065 = vector.shape_cast %1064 : vector<4xf32> to vector<4x1xf32>
    %1066 = vector.broadcast %1065 : vector<4x1xf32> to vector<4x3xf32>
    %1067 = arith.subf %1063, %1066 : vector<4x3xf32>
    %1068 = math.exp %1067 : vector<4x3xf32>
    %cst_388 = arith.constant dense<0.000000e+00> : vector<4xf32>
    %1069 = vector.multi_reduction <add>, %1068, %cst_388 [1] : vector<4x3xf32> to vector<4xf32>
    %1070 = vector.shape_cast %1069 : vector<4xf32> to vector<4x1xf32>
    %1071 = vector.broadcast %1070 : vector<4x1xf32> to vector<4x3xf32>
    %1072 = arith.divf %1068, %1071 : vector<4x3xf32>
    %1073 = vector.extract_strided_slice %1010 {offsets = [0, 12], sizes = [3, 4], strides = [1, 1]} : vector<3x16xf32> to vector<3x4xf32>
    %cst_389 = arith.constant dense<0.000000e+00> : vector<4x4xf32>
    %1074 = tpu.matmul %1072, %1073, %cst_389 {dimension_numbers = #tpu.dot_dimension_numbers<[1], [0], [0], [1], [0, 0, 1, 1], [], []>} : vector<4x3xf32>, vector<3x4xf32>, vector<4x4xf32> -> vector<4x4xf32>
    %1075 = tpu.concatenate %1026, %1042, %1058, %1074 in 1 : vector<4x4xf32>, vector<4x4xf32>, vector<4x4xf32>, vector<4x4xf32> -> vector<4x16xf32>
    %c4_390 = arith.constant 4 : index
    %c0_391 = arith.constant 0 : index
    %1076 = vector.load %arg22[%c4_390, %c0_391] : memref<8x16xf32, #tpu.memory_space<vmem>>, vector<4x16xf32>
    tpu.vector_store %arg22[%c4_390, %c0_391], %1075 {strides = array<i32>} : memref<8x16xf32, #tpu.memory_space<vmem>>, vector<4x16xf32>,
    %c0_392 = arith.constant 0 : index
    %c0_393 = arith.constant 0 : index
    %1077 = vector.load %arg22[%c0_392, %c0_393] : memref<8x16xf32, #tpu.memory_space<vmem>>, vector<8x16xf32>
    %1078 = arith.addf %935, %1077 : vector<8x16xf32>
    %cst_394 = arith.constant dense<0.000000e+00> : vector<8xf32>
    %1079 = vector.multi_reduction <add>, %1078, %cst_394 [1] : vector<8x16xf32> to vector<8xf32>
    %1080 = vector.shape_cast %1079 : vector<8xf32> to vector<8x1xf32>
    %cst_395 = arith.constant 1.600000e+01 : f32
    %1081 = vector.broadcast %cst_395 : f32 to vector<8x1xf32>
    %1082 = arith.divf %1080, %1081 : vector<8x1xf32>
    %1083 = vector.broadcast %1082 : vector<8x1xf32> to vector<8x16xf32>
    %1084 = arith.subf %1078, %1083 : vector<8x16xf32>
    %1085 = arith.mulf %1084, %1084 : vector<8x16xf32>
    %cst_396 = arith.constant dense<0.000000e+00> : vector<8xf32>
    %1086 = vector.multi_reduction <add>, %1085, %cst_396 [1] : vector<8x16xf32> to vector<8xf32>
    %1087 = vector.shape_cast %1086 : vector<8xf32> to vector<8x1xf32>
    %cst_397 = arith.constant 1.600000e+01 : f32
    %1088 = vector.broadcast %cst_397 : f32 to vector<8x1xf32>
    %1089 = arith.divf %1087, %1088 : vector<8x1xf32>
    %cst_398 = arith.constant 9.99999974E-6 : f32
    %1090 = vector.broadcast %cst_398 : f32 to vector<8x1xf32>
    %1091 = arith.addf %1089, %1090 : vector<8x1xf32>
    %1092 = math.rsqrt %1091 : vector<8x1xf32>
    %1093 = vector.broadcast %1092 : vector<8x1xf32> to vector<8x16xf32>
    %1094 = arith.mulf %1084, %1093 : vector<8x16xf32>
    %1095 = vector.broadcast %0 : vector<1x16xf32> to vector<8x16xf32>
    %1096 = arith.mulf %1094, %1095 : vector<8x16xf32>
    %1097 = vector.broadcast %1 : vector<1x16xf32> to vector<8x16xf32>
    %1098 = arith.addf %1096, %1097 : vector<8x16xf32>
    %c1_399 = arith.constant 1 : index
    %c0_400 = arith.constant 0 : index
    %c0_401 = arith.constant 0 : index
    %1099 = vector.load %arg12[%c1_399, %c0_400, %c0_401] : memref<2x16x16xf32, #tpu.memory_space<vmem>>, vector<1x16x16xf32>
    %1100 = vector.shape_cast %1099 : vector<1x16x16xf32> to vector<16x16xf32>
    %cst_402 = arith.constant dense<0.000000e+00> : vector<8x16xf32>
    %1101 = tpu.matmul %1098, %1100, %cst_402 {dimension_numbers = #tpu.dot_dimension_numbers<[1], [0], [0], [1], [0, 0, 1, 1], [], []>} : vector<8x16xf32>, vector<16x16xf32>, vector<8x16xf32> -> vector<8x16xf32>
    %c1_403 = arith.constant 1 : index
    %c0_404 = arith.constant 0 : index
    %c0_405 = arith.constant 0 : index
    %1102 = vector.load %arg13[%c1_403, %c0_404, %c0_405] : memref<2x1x16xf32, #tpu.memory_space<vmem>>, vector<1x1x16xf32>
    %1103 = vector.shape_cast %1102 : vector<1x1x16xf32> to vector<1x16xf32>
    %1104 = vector.broadcast %1103 : vector<1x16xf32> to vector<8x16xf32>
    %1105 = arith.addf %1101, %1104 : vector<8x16xf32>
    %cst_406 = arith.constant 0.000000e+00 : f32
    %1106 = vector.broadcast %cst_406 : f32 to vector<8x16xf32>
    %1107 = arith.maximumf %1105, %1106 : vector<8x16xf32>
    %c1_407 = arith.constant 1 : index
    %c0_408 = arith.constant 0 : index
    %c0_409 = arith.constant 0 : index
    %1108 = vector.load %arg14[%c1_407, %c0_408, %c0_409] : memref<2x16x16xf32, #tpu.memory_space<vmem>>, vector<1x16x16xf32>
    %1109 = vector.shape_cast %1108 : vector<1x16x16xf32> to vector<16x16xf32>
    %cst_410 = arith.constant dense<0.000000e+00> : vector<8x16xf32>
    %1110 = tpu.matmul %1107, %1109, %cst_410 {dimension_numbers = #tpu.dot_dimension_numbers<[1], [0], [0], [1], [0, 0, 1, 1], [], []>} : vector<8x16xf32>, vector<16x16xf32>, vector<8x16xf32> -> vector<8x16xf32>
    %c1_411 = arith.constant 1 : index
    %c0_412 = arith.constant 0 : index
    %c0_413 = arith.constant 0 : index
    %1111 = vector.load %arg15[%c1_411, %c0_412, %c0_413] : memref<2x1x16xf32, #tpu.memory_space<vmem>>, vector<1x1x16xf32>
    %1112 = vector.shape_cast %1111 : vector<1x1x16xf32> to vector<1x16xf32>
    %1113 = vector.broadcast %1112 : vector<1x16xf32> to vector<8x16xf32>
    %1114 = arith.addf %1110, %1113 : vector<8x16xf32>
    %1115 = arith.addf %1098, %1114 : vector<8x16xf32>
    %cst_414 = arith.constant dense<0.000000e+00> : vector<8xf32>
    %1116 = vector.multi_reduction <add>, %1115, %cst_414 [1] : vector<8x16xf32> to vector<8xf32>
    %1117 = vector.shape_cast %1116 : vector<8xf32> to vector<8x1xf32>
    %cst_415 = arith.constant 1.600000e+01 : f32
    %1118 = vector.broadcast %cst_415 : f32 to vector<8x1xf32>
    %1119 = arith.divf %1117, %1118 : vector<8x1xf32>
    %1120 = vector.broadcast %1119 : vector<8x1xf32> to vector<8x16xf32>
    %1121 = arith.subf %1115, %1120 : vector<8x16xf32>
    %1122 = arith.mulf %1121, %1121 : vector<8x16xf32>
    %cst_416 = arith.constant dense<0.000000e+00> : vector<8xf32>
    %1123 = vector.multi_reduction <add>, %1122, %cst_416 [1] : vector<8x16xf32> to vector<8xf32>
    %1124 = vector.shape_cast %1123 : vector<8xf32> to vector<8x1xf32>
    %cst_417 = arith.constant 1.600000e+01 : f32
    %1125 = vector.broadcast %cst_417 : f32 to vector<8x1xf32>
    %1126 = arith.divf %1124, %1125 : vector<8x1xf32>
    %cst_418 = arith.constant 9.99999974E-6 : f32
    %1127 = vector.broadcast %cst_418 : f32 to vector<8x1xf32>
    %1128 = arith.addf %1126, %1127 : vector<8x1xf32>
    %1129 = math.rsqrt %1128 : vector<8x1xf32>
    %1130 = vector.broadcast %1129 : vector<8x1xf32> to vector<8x16xf32>
    %1131 = arith.mulf %1121, %1130 : vector<8x16xf32>
    %1132 = vector.broadcast %0 : vector<1x16xf32> to vector<8x16xf32>
    %1133 = arith.mulf %1131, %1132 : vector<8x16xf32>
    %1134 = vector.broadcast %1 : vector<1x16xf32> to vector<8x16xf32>
    %1135 = arith.addf %1133, %1134 : vector<8x16xf32>
    %c0_419 = arith.constant 0 : index
    %c0_420 = arith.constant 0 : index
    %1136 = vector.load %arg18[%c0_419, %c0_420] : memref<16x16xf32, #tpu.memory_space<vmem>>, vector<16x16xf32>
    %cst_421 = arith.constant dense<0.000000e+00> : vector<8x16xf32>
    %1137 = tpu.matmul %1135, %1136, %cst_421 {dimension_numbers = #tpu.dot_dimension_numbers<[1], [0], [0], [1], [0, 0, 1, 1], [], []>} : vector<8x16xf32>, vector<16x16xf32>, vector<8x16xf32> -> vector<8x16xf32>
    %c0_422 = arith.constant 0 : index
    %c0_423 = arith.constant 0 : index
    %1138 = vector.load %arg19[%c0_422, %c0_423] : memref<1x16xf32, #tpu.memory_space<vmem>>, vector<1x16xf32>
    %1139 = vector.broadcast %1138 : vector<1x16xf32> to vector<8x16xf32>
    %1140 = arith.addf %1137, %1139 : vector<8x16xf32>
    %1141 = vector.extract_strided_slice %1140 {offsets = [0, 0], sizes = [4, 16], strides = [1, 1]} : vector<8x16xf32> to vector<4x16xf32>
    %1142 = vector.extract_strided_slice %1140 {offsets = [4, 0], sizes = [4, 16], strides = [1, 1]} : vector<8x16xf32> to vector<4x16xf32>
    %1143 = arith.maximumf %1141, %1142 : vector<4x16xf32>
    %1144 = arith.subf %1141, %1143 : vector<4x16xf32>
    %1145 = math.exp %1144 : vector<4x16xf32>
    %1146 = arith.subf %1142, %1143 : vector<4x16xf32>
    %1147 = math.exp %1146 : vector<4x16xf32>
    %1148 = arith.addf %1145, %1147 : vector<4x16xf32>
    %1149 = arith.divf %1145, %1148 : vector<4x16xf32>
    %c0_424 = arith.constant 0 : index
    %c0_425 = arith.constant 0 : index
    %1150 = vector.load %arg20[%c0_424, %c0_425] : memref<8x16xf32, #tpu.memory_space<vmem>>, vector<4x16xf32>
    tpu.vector_store %arg20[%c0_424, %c0_425], %1149 {strides = array<i32>} : memref<8x16xf32, #tpu.memory_space<vmem>>, vector<4x16xf32>,
    %1151 = arith.divf %1147, %1148 : vector<4x16xf32>
    %c4_426 = arith.constant 4 : index
    %c0_427 = arith.constant 0 : index
    %1152 = vector.load %arg20[%c4_426, %c0_427] : memref<8x16xf32, #tpu.memory_space<vmem>>, vector<4x16xf32>
    tpu.vector_store %arg20[%c4_426, %c0_427], %1151 {strides = array<i32>} : memref<8x16xf32, #tpu.memory_space<vmem>>, vector<4x16xf32>,
    return
  }
}

</mosaic_0001>

<bundles_post_ra>
// kernel: transformer_forward.1
= control target key start
LH: loop header
LB: loop body
LE: loop exit
PB: predicated region body
PF: predicated region fallthrough
CT: control target
= control target key end

     0   :  { %s13456_s0 = inlined_call_operand.vmem [shape: f32[6,16], index: 0, kind: input, shape index: {}]   ;;  %s13457_s1 = inlined_call_operand.vmem [shape: f32[8,16], index: 1, kind: input, shape index: {}]   ;;  %s13458_s2 = inlined_call_operand.vmem [shape: f32[16,16], index: 2, kind: input, shape index: {}]   ;;  %s13459_s3 = inlined_call_operand.vmem [shape: f32[16,16], index: 3, kind: input, shape index: {}]   ;;  %s13460_s4 = inlined_call_operand.vmem [shape: f32[16,16], index: 4, kind: input, shape index: {}]   ;;  %s13461_s5 = inlined_call_operand.vmem [shape: f32[16,16], index: 5, kind: input, shape index: {}]   ;;  %s13462_s6 = inlined_call_operand.vmem [shape: f32[16,16], index: 6, kind: input, shape index: {}]   ;;  %s13463_s7 = inlined_call_operand.hbm [shape: f32[16,16], index: 7, kind: input, shape index: {}]   ;;  %s13464_s8 = inlined_call_operand.vmem [shape: f32[2,16,16], index: 8, kind: input, shape index: {}]   ;;  %s13465_s9 = inlined_call_operand.vmem [shape: f32[2,1,16], index: 9, kind: input, shape index: {}]   ;;  %s13466_s10 = inlined_call_operand.vmem [shape: f32[2,16,16], index: 10, kind: input, shape index: {}]   ;;  %s13467_s11 = inlined_call_operand.hbm [shape: f32[2,1,16], index: 11, kind: input, shape index: {}]   ;;  %s13468_s12 = inlined_call_operand.vmem [shape: f32[2,16,16], index: 12, kind: input, shape index: {}]   ;;  %s13469_s13 = inlined_call_operand.vmem [shape: f32[2,1,16], index: 13, kind: input, shape index: {}]   ;;  %s13470_s14 = inlined_call_operand.vmem [shape: f32[2,16,16], index: 14, kind: input, shape index: {}]   ;;  %s13471_s15 = inlined_call_operand.vmem [shape: f32[2,1,16], index: 15, kind: input, shape index: {}]   ;;  %s13472_s16 = inlined_call_operand.hbm [shape: f32[1,16], index: 16, kind: input, shape index: {}]   ;;  %s13473_s17 = inlined_call_operand.hbm [shape: f32[1,16], index: 17, kind: input, shape index: {}]   ;;  %s13474_s18 = inlined_call_operand.hbm [shape: f32[16,16], index: 18, kind: input, shape index: {}]   ;;  %s13475_s19 = inlined_call_operand.hbm [shape: f32[1,16], index: 19, kind: input, shape index: {}]   ;;  %s13476_s20 = inlined_call_operand.hbm [shape: f32[8,16], index: 20, kind: output, shape index: {}]  }
   0x1   :  { %13480 = sst [smem:[#allocation21_spill]] %s13456_s0 }
   0x2   :  { %13481 = sst [smem:[#allocation22_spill]] %s13457_s1 }
   0x3   :  { %13482 = sst [smem:[#allocation23_spill]] %s13458_s2 }
   0x4   :  { %13483 = sst [smem:[#allocation24_spill]] %s13459_s3 }
   0x5   :  { %13484 = sst [smem:[#allocation25_spill]] %s13460_s4 }
   0x6   :  { %25 = vsyncpa [#allocation5], 0 }
   0x7   :  { %26 = vsyncpa [#allocation8], 0 }
   0x8   :  { %27 = vsyncpa [#allocation11], 0 }
   0x9   :  { %28 = vsyncpa [#allocation14], 0 }
   0xa   :  { %29 = vsyncpa [#allocation6], 0  ;;  %s11957_s1 = smov [#allocation7]  }
   0xb   :  { %s67_s22 = sshll.u32 %s11957_s1, 4  ;;  %s68_s22 = int_to_ptr.vmem [resolvable:$true] %s67_s22 }
   0xc   :  { %s11815_s23 = scalar_lea.vmem %s68_s22, 32  ;;  %p11820_p1 = scmp.lt.s32.totalorder %s68_s22, %s68_s22 }
   0xd   :  { %p11816_p0 = scmp.ne.s32.totalorder %s68_s22, %s11815_s23  ;;  %p11821_p2 = scmp.lt.s32.totalorder %s11815_s23, %s11815_s23 }
   0xf   :  { %p11822_p3 = por %p11821_p2, %p11820_p1 }
  0x11   :  { %p11823_p4 = pnand %p11822_p3, %p11816_p0 }
  0x13   :  { %11826 = shalt.err (!%p11823_p4)
}
  0x14   :  { %s11958_s24 = smov 16   ;;  %s11959_s2 = smov 1  }
  0x15   :  { %73 = dma.hbm_to_vmem [thread:$0]  %s13467_s11, 32, %s68_s22, [#allocation8], %s11958_s24, %s11958_s24, %s11959_s2  }
  0x16   :  { %s11960_s26 = smov [#allocation10]   ;;  %s11961_s28 = smov [#allocation4]  }
  0x17   :  { %s98_s27 = sshll.u32 %s11960_s26, 4  ;;  %s49_s4 = sshll.u32 %s11961_s28, 4  ;;  %s99_s27 = int_to_ptr.vmem [resolvable:$true] %s98_s27  ;;  %s50_s4 = int_to_ptr.vmem [resolvable:$true] %s49_s4 }
  0x18   :  { %s11835_s29 = scalar_lea.vmem %s99_s27, 16  ;;  %s11839_s30 = scalar_lea.vmem %s99_s27, 32 }
  0x19   :  { %p11836_p5 = scmp.ne.s32.totalorder %s99_s27, %s11835_s29  ;;  %p11840_p6 = scmp.lt.s32.totalorder %s99_s27, %s99_s27 }
  0x1a   :  { %p11841_p7 = scmp.lt.s32.totalorder %s11839_s30, %s11835_s29 }
  0x1c   :  { %p11842_p8 = por %p11841_p7, %p11840_p6 }
  0x1e   :  { %p11843_p9 = pnand %p11842_p8, %p11836_p5 }
  0x20   :  { %11846 = shalt.err (!%p11843_p9)
}
  0x21   :  { %101 = dma.hbm_to_vmem [thread:$0]  %s13473_s17, 16, %s99_s27, [#allocation11]  }
  0x22   :  { %s11855_s1 = scalar_lea.vmem %s50_s4, 256  ;;  %p11860_p11 = scmp.lt.s32.totalorder %s50_s4, %s50_s4 }
  0x23   :  { %p11856_p10 = scmp.ne.s32.totalorder %s50_s4, %s11855_s1  ;;  %p11861_p12 = scmp.lt.s32.totalorder %s11855_s1, %s11855_s1 }
  0x25   :  { %p11862_p13 = por %p11861_p12, %p11860_p11 }
  0x27   :  { %p11863_p0 = pnand %p11862_p13, %p11856_p10 }
  0x29   :  { %11866 = shalt.err (!%p11863_p0)
}
  0x2a   :  { %s11962_s11 = smov 128   ;;  %s11963_s22 = smov 8  }
  0x2b   :  { %55 = dma.hbm_to_vmem [thread:$0]  %s13463_s7, 256, %s50_s4, [#allocation5], %s11962_s11, %s11962_s11, %s11963_s22  }
  0x2c   :  { %s11964_s2 = smov [#allocation9]   ;;  %s11965_s3 = smov [#allocation12]  }
  0x2d   :  { %s88_s25 = sshll.u32 %s11964_s2, 4  ;;  %s107_s17 = sshll.u32 %s11965_s3, 4  ;;  %s89_s25 = int_to_ptr.vmem [resolvable:$true] %s88_s25  ;;  %s108_s17 = int_to_ptr.vmem [resolvable:$true] %s107_s17 }
  0x2e   :  { %s11875_s26 = scalar_lea.vmem %s89_s25, 16  ;;  %s11879_s27 = scalar_lea.vmem %s89_s25, 32 }
  0x2f   :  { %p11876_p1 = scmp.ne.s32.totalorder %s89_s25, %s11875_s26  ;;  %p11880_p2 = scmp.lt.s32.totalorder %s89_s25, %s89_s25 }
  0x30   :  { %p11881_p3 = scmp.lt.s32.totalorder %s11879_s27, %s11875_s26 }
  0x32   :  { %p11882_p4 = por %p11881_p3, %p11880_p2 }
  0x34   :  { %p11883_p5 = pnand %p11882_p4, %p11876_p1 }
  0x36   :  { %11886 = shalt.err (!%p11883_p5)
}
  0x37   :  { %91 = dma.hbm_to_vmem [thread:$0]  %s13472_s16, 16, %s89_s25, [#allocation8]  }
  0x38   :  { %s11895_s30 = scalar_lea.vmem %s108_s17, 256  ;;  %p11900_p7 = scmp.lt.s32.totalorder %s108_s17, %s108_s17 }
  0x39   :  { %p11896_p6 = scmp.ne.s32.totalorder %s108_s17, %s11895_s30  ;;  %p11901_p8 = scmp.lt.s32.totalorder %s11895_s30, %s11895_s30 }
  0x3b   :  { %p11902_p9 = por %p11901_p8, %p11900_p7 }
  0x3d   :  { %p11903_p10 = pnand %p11902_p9, %p11896_p6 }
  0x3f   :  { %11906 = shalt.err (!%p11903_p10)
}
  0x40   :  { %113 = dma.hbm_to_vmem [thread:$0]  %s13474_s18, 256, %s108_s17, [#allocation11], %s11962_s11, %s11962_s11, %s11963_s22  }
  0x41   :  { %s11966_s0 = smov [#allocation13]  }
  0x42   :  { %s120_s21 = sshll.u32 %s11966_s0, 4  ;;  %s121_s21 = int_to_ptr.vmem [resolvable:$true] %s120_s21 }
  0x43   :  { %s11915_s1 = scalar_lea.vmem %s121_s21, 16  ;;  %s11919_s23 = scalar_lea.vmem %s121_s21, 32 }
  0x44   :  { %p11916_p11 = scmp.ne.s32.totalorder %s121_s21, %s11915_s1  ;;  %p11920_p12 = scmp.lt.s32.totalorder %s121_s21, %s121_s21 }
  0x45   :  { %p11921_p13 = scmp.lt.s32.totalorder %s11919_s23, %s11915_s1 }
  0x47   :  { %p11922_p0 = por %p11921_p13, %p11920_p12 }
  0x49   :  { %p11923_p1 = pnand %p11922_p0, %p11916_p11 }
  0x4b   :  { %11926 = shalt.err (!%p11923_p1)
}
  0x4c   :  { %123 = dma.hbm_to_vmem [thread:$0]  %s13475_s19, 16, %s121_s21, [#allocation14]  }
  0x4d   :  { %11947 = dma.done.wait [#allocation5], 256  }
  0x4e   :  { %11948 = vsyncadd [#allocation5], 4294967040 }
  0x4f   :  { %11949 = dma.done.wait [#allocation8], 48  }
  0x50   :  { %11950 = vsyncadd [#allocation8], 4294967248 }
  0x51   :  { %11951 = dma.done.wait [#allocation11], 272  }
  0x52   :  { %11952 = vsyncadd [#allocation11], 4294967024 }
  0x53   :  { %11953 = dma.done.wait [#allocation14], 16  }
  0x54   :  { %11954 = vsyncadd [#allocation14], 4294967280  ;;  %v11967_v0 = vmov 0.0   ;;  %vm11968_vm0 = vmmov 0   ;;  %s13485_s11 = sld [smem:[#allocation24_spill]]  ;;  %vm157_vm1 = vcmask 130048  }
  0x55   :  { %10911 = vmatprep.subr.mxu1 %v11967_v0  ;;  %10904 = vmatprep.subr.mxu0 %v11967_v0  ;;  %s13486_s3 = sld [smem:[#allocation23_spill]]  ;;  %vm371_vm2 = vcmask 31744   ;;  %s11969_s4 = smov 120   ;;  %vm449_vm3 = vcmask 18432   ;;  %vm465_vm4 = vcmask 1042432   ;;  %vm461_vm5 = vcmask 23552  }
  0x56   :  { %10915 = vmatprep.mubr.msk.f32.mxu1 %vm11968_vm0, %v11967_v0  ;;  %10908 = vmatprep.mubr.msk.f32.mxu0 %vm11968_vm0, %v11967_v0  ;;  %s13487_s29 = sld [smem:[#allocation21_spill]]  ;;  %s11970_s0 = smov 124   ;;  %vm1053_vm6 = vcmask 64512   ;;  %vm1055_vm7 = vcmask 97280   ;;  %vm1057_vm8 = vcmask 124928   ;;  %vm1742_vm9 = vcmask 128000  }
  0x57   :  { %s11971_s21 = smov 116   ;;  %s13488_s16 = sld [smem:[#allocation25_spill]]  ;;  %vm4020_vm10 = vcmask 27648   ;;  %vm4035_vm11 = vcmask 1043456   ;;  %vm4625_vm12 = vcmask 125952   ;;  %vm5618_vm13 = vcmask 19456  }
  0x58   :  { %s11972_s19 = smov 4   ;;  %s13489_s26 = sld [smem:[#allocation22_spill]]  ;;  %vm10378_vm14 = vcmask 130052  }
  0x5a   :  { %v12109_v1 = vld [vmem:[%s13485_s11 + $0x8] sm:$0xff]  ;;  %v12119_v3 = vld [vmem:[%s13485_s11] sm:$0xff]  ;;  %s11973_s11 = smov 12  }
  0x5b   :  { %v12114_v2 = vld [vmem:[%s13486_s3 + $0x8] sm:$0xff]  ;;  %10912 = vmatpush3.msra.mxu1 %v12109_v1  ;;  %v12131_v5 = vld [vmem:[%s13486_s3] sm:$0xff] }
  0x5c   :  { %10905 = vmatpush3.msra.mxu0 %v12114_v2  ;;  %v12126_v4 = vld [vmem:[%s13487_s29] sm:$0x3f]  ;;  %10913 = vmatprep.subr.mxu1 %v11967_v0 }
  0x5d   :  { %10906 = vmatprep.subr.mxu0 %v11967_v0  ;;  %10914 = vmatpush3.msra.mxu1 %v12119_v3  ;;  %v12164_v12 = vld [vmem:[%s13488_s16 + $0x8] sm:$0xff]  ;;  %v12169_v13 = vld [vmem:[%s13488_s16] sm:$0xff] }
  0x5e   :  { %10907 = vmatpush3.msra.mxu0 %v12131_v5  ;;  %10916 = vmatmul.mubr.msk.f32.vlgmr.msra.gmra.mxu1 %vm157_vm1, %v12126_v4 }
  0x5f   :  { %10909 = vmatmul.mubr.msk.f32.vlgmr.msra.gmra.mxu0 %vm157_vm1, %v12126_v4  ;;  %10925 = vmatprep.subr.mxu1 %v11967_v0 }
  0x60   :  { %10927 = vmatprep.mubr.msk.f32.mxu1 %vm11968_vm0, %v11967_v0  ;;  %10918 = vmatprep.subr.mxu0 %v11967_v0 }
  0x61   :  { %10922 = vmatprep.mubr.msk.f32.mxu0 %vm11968_vm0, %v11967_v0  ;;  %10919 = vmatpush3.msra.mxu0 %v12164_v12 }
  0x62   :  { %10920 = vmatprep.subr.mxu0 %v11967_v0 }
  0x63   :  { %10921 = vmatpush3.msra.mxu0 %v12169_v13 }
  0x64   :  { %10923 = vmatmul.mubr.msk.f32.vlgmr.msra.gmra.mxu0 %vm157_vm1, %v12126_v4  ;;  %10930 = vmatprep.subr.mxu0 %v11967_v0 }
  0x65   :  { %10932 = vmatprep.mubr.msk.f32.mxu0 %vm11968_vm0, %v11967_v0 }
 0x11e   :  { %v297_v6 = vpop.f32.mrf.mxu1 }
 0x11f   :  { %v227_v7 = vpop.f32.mrf.mxu0  ;;  %708 = vrot.lane.b32.xlu1 %v297_v6, %s11969_s4  ;;  %541 = vrot.lane.b32.xlu0 %v297_v6, %s11970_s0  ;;  %v1060_v11 = vrot.slane %v297_v6, 3 }
 0x120   :  { %10926 = vmatpush3.xpose.msk.msra.mxu1 %vm371_vm2, %v297_v6  ;;  %v10917_v8 = vpop.f32.mrf.mxu1  ;;  %v1059_v10 = vrot.slane %v227_v7, 3 }
 0x121   :  { %v10910_v9 = vpop.f32.mrf.mxu0  ;;  %10935 = vmatprep.subr.mxu1 %v11967_v0 }
 0x123   :  { %10928 = vmatmul.mubr.msk.f32.vlgmr.msra.gmra.mxu1 %vm371_vm2, %v227_v7  ;;  %706 = vrot.lane.b32.xlu1 %v227_v7, %s11969_s4 }
 0x124   :  { %539 = vrot.lane.b32.xlu0 %v227_v7, %s11970_s0  ;;  %10937 = vmatprep.mubr.msk.f32.mxu1 %vm11968_vm0, %v11967_v0  ;;  %v12218_v30 = vpop.f32.mrf.mxu0 }
 0x125   :  { %10931 = vmatpush3.msk.msra.mxu0 %vm465_vm4, %v12218_v30 }
 0x126   :  { %v10924_v31 = vpop.f32.mrf.mxu0  ;;  %10940 = vmatprep.subr.mxu0 %v11967_v0 }
 0x127   :  { %873 = vrot.lane.b32.xlu1 %v227_v7, %s11971_s21 }
 0x128   :  { %875 = vrot.lane.b32.xlu0 %v297_v6, %s11971_s21 }
 0x12b   :  { %1223 = vrot.lane.b32.xlu1 %v1059_v10, %s11970_s0 }
 0x12c   :  { %1225 = vrot.lane.b32.xlu0 %v1060_v11, %s11970_s0 }
 0x12f   :  { %1390 = vrot.lane.b32.xlu1 %v1059_v10, %s11969_s4 }
 0x130   :  { %1392 = vrot.lane.b32.xlu0 %v1060_v11, %s11969_s4 }
 0x133   :  { %1557 = vrot.lane.b32.xlu1 %v1059_v10, %s11971_s21 }
 0x134   :  { %1559 = vrot.lane.b32.xlu0 %v1060_v11, %s11971_s21 }
 0x191   :  { %v709_v14 = vpop.permute.xlu1 %708  ;;  %v542_v15 = vpop.permute.xlu0 %541 }
 0x192   :  { %10936 = vmatpush3.xpose.msk.msra.mxu1 %vm371_vm2, %v542_v15 }
 0x193   :  { %10945 = vmatprep.subr.mxu1 %v11967_v0 }
 0x195   :  { %v707_v16 = vpop.permute.xlu1 %706 }
 0x196   :  { %v540_v17 = vpop.permute.xlu0 %539 }
 0x197   :  { %10938 = vmatmul.mubr.msk.f32.vlgmr.msra.gmra.mxu1 %vm371_vm2, %v540_v17 }
 0x198   :  { %10946 = vmatpush3.xpose.msk.msra.mxu1 %vm371_vm2, %v709_v14  ;;  %10947 = vmatprep.mubr.msk.f32.mxu1 %vm11968_vm0, %v11967_v0 }
 0x199   :  { %10955 = vmatprep.subr.mxu1 %v11967_v0  ;;  %v874_v19 = vpop.permute.xlu1 %873 }
 0x19a   :  { %v876_v18 = vpop.permute.xlu0 %875 }
 0x19b   :  { %10948 = vmatmul.mubr.msk.f32.vlgmr.msra.gmra.mxu1 %vm371_vm2, %v707_v16 }
 0x19c   :  { %10956 = vmatpush3.xpose.msk.msra.mxu1 %vm371_vm2, %v876_v18  ;;  %10957 = vmatprep.mubr.msk.f32.mxu1 %vm11968_vm0, %v11967_v0 }
 0x19d   :  { %10965 = vmatprep.subr.mxu1 %v11967_v0  ;;  %v1224_v21 = vpop.permute.xlu1 %1223 }
 0x19e   :  { %v1226_v20 = vpop.permute.xlu0 %1225 }
 0x19f   :  { %10958 = vmatmul.mubr.msk.f32.vlgmr.msra.gmra.mxu1 %vm371_vm2, %v874_v19  ;;  %v12241_v19 = vrot.slane %v12218_v30, 3 }
 0x1a0   :  { %10966 = vmatpush3.xpose.msk.msra.mxu1 %vm371_vm2, %v1060_v11  ;;  %10967 = vmatprep.mubr.msk.f32.mxu1 %vm11968_vm0, %v11967_v0 }
 0x1a1   :  { %10975 = vmatprep.subr.mxu1 %v11967_v0  ;;  %v1391_v23 = vpop.permute.xlu1 %1390 }
 0x1a2   :  { %v1393_v22 = vpop.permute.xlu0 %1392 }
 0x1a3   :  { %10968 = vmatmul.mubr.msk.f32.vlgmr.msra.gmra.mxu1 %vm371_vm2, %v1059_v10 }
 0x1a4   :  { %10976 = vmatpush3.xpose.msk.msra.mxu1 %vm371_vm2, %v1226_v20  ;;  %10977 = vmatprep.mubr.msk.f32.mxu1 %vm11968_vm0, %v11967_v0 }
 0x1a5   :  { %10985 = vmatprep.subr.mxu1 %v11967_v0  ;;  %v1558_v25 = vpop.permute.xlu1 %1557 }
 0x1a6   :  { %v1560_v24 = vpop.permute.xlu0 %1559 }
 0x1a7   :  { %10978 = vmatmul.mubr.msk.f32.vlgmr.msra.gmra.mxu1 %vm371_vm2, %v1224_v21 }
 0x1a8   :  { %10986 = vmatpush3.xpose.msk.msra.mxu1 %vm371_vm2, %v1393_v22  ;;  %10987 = vmatprep.mubr.msk.f32.mxu1 %vm11968_vm0, %v11967_v0 }
 0x1a9   :  { %10995 = vmatprep.subr.mxu1 %v11967_v0 }
 0x1ab   :  { %10988 = vmatmul.mubr.msk.f32.vlgmr.msra.gmra.mxu1 %vm371_vm2, %v1391_v23 }
 0x1ac   :  { %10996 = vmatpush3.xpose.msk.msra.mxu1 %vm371_vm2, %v1560_v24  ;;  %10997 = vmatprep.mubr.msk.f32.mxu1 %vm11968_vm0, %v11967_v0 }
 0x1ad   :  { %11005 = vmatprep.subr.mxu1 %v11967_v0 }
 0x1af   :  { %10998 = vmatmul.mubr.msk.f32.vlgmr.msra.gmra.mxu1 %vm371_vm2, %v1558_v25 }
 0x1b0   :  { %11009 = vmatprep.mubr.msk.f32.mxu1 %vm11968_vm0, %v11967_v0 }
 0x1e3   :  { %v444_v26 = vpop.f32.mrf.mxu1 }
 0x1e4   :  { %v448_v27 = vmul.f32 0.5, %v444_v26 }
 0x1e5   :  { %v10929_v28 = vpop.f32.mrf.mxu1 }
 0x1e6   :  { %v450_v29 = vsel %vm449_vm3, %v448_v27, -inf }
 0x1e7   :  { %451 = vmax.xlane.f32.xlu0 %v450_v29 }
 0x257   :  { %v613_v32 = vpop.f32.mrf.mxu1 }
 0x258   :  { %v617_v33 = vmul.f32 0.5, %v613_v32 }
 0x259   :  { %v10939_v34 = vpop.f32.mrf.mxu1 }
 0x25a   :  { %v618_v35 = vsel %vm449_vm3, %v617_v33, -inf }
 0x25b   :  { %619 = vmax.xlane.f32.xlu1 %v618_v35  ;;  %v780_v36 = vpop.f32.mrf.mxu1 }
 0x25c   :  { %v784_v37 = vmul.f32 0.5, %v780_v36 }
 0x25d   :  { %v10949_v38 = vpop.f32.mrf.mxu1 }
 0x25e   :  { %v785_v39 = vsel %vm449_vm3, %v784_v37, -inf }
 0x25f   :  { %786 = vmax.xlane.f32.xlu0 %v785_v39  ;;  %v947_v40 = vpop.f32.mrf.mxu1 }
 0x260   :  { %v951_v41 = vmul.f32 0.5, %v947_v40 }
 0x261   :  { %v10959_v42 = vpop.f32.mrf.mxu1 }
 0x262   :  { %v952_v43 = vsel %vm449_vm3, %v951_v41, -inf }
 0x263   :  { %953 = vmax.xlane.f32.xlu0 %v952_v43  ;;  %v1131_v44 = vpop.f32.mrf.mxu1 }
 0x264   :  { %v1135_v45 = vmul.f32 0.5, %v1131_v44 }
 0x265   :  { %v10969_v46 = vpop.f32.mrf.mxu1 }
 0x266   :  { %v1136_v47 = vsel %vm449_vm3, %v1135_v45, -inf }
 0x267   :  { %1137 = vmax.xlane.f32.xlu1 %v1136_v47  ;;  %v1297_v48 = vpop.f32.mrf.mxu1 }
 0x268   :  { %v1301_v49 = vmul.f32 0.5, %v1297_v48 }
 0x269   :  { %v10979_v50 = vpop.f32.mrf.mxu1 }
 0x26a   :  { %v1302_v51 = vsel %vm449_vm3, %v1301_v49, -inf }
 0x26b   :  { %1303 = vmax.xlane.f32.xlu0 %v1302_v51  ;;  %v1464_v52 = vpop.f32.mrf.mxu1 }
 0x26c   :  { %v1468_v53 = vmul.f32 0.5, %v1464_v52 }
 0x26d   :  { %v10989_v54 = vpop.f32.mrf.mxu1 }
 0x26e   :  { %v1469_v55 = vsel %vm449_vm3, %v1468_v53, -inf }
 0x26f   :  { %1470 = vmax.xlane.f32.xlu1 %v1469_v55  ;;  %v1631_v56 = vpop.f32.mrf.mxu1 }
 0x270   :  { %v1635_v57 = vmul.f32 0.5, %v1631_v56  ;;  %v452_v60 = vpop.xlane.xlu0 %451 }
 0x271   :  { %v10999_v58 = vpop.f32.mrf.mxu1  ;;  %v453_v61 = vsub.f32 %v448_v27, %v452_v60 }
 0x272   :  { %v1636_v59 = vsel %vm449_vm3, %v1635_v57, -inf }
 0x273   :  { %1637 = vmax.xlane.f32.xlu0 %v1636_v59  ;;  %v454_v62 = vmul.f32 1.442695, %v453_v61 }
 0x275   :  { %11577 = vpow2.f32 %v454_v62 }
 0x280   :  { %629 = vrot.lane.b32.xlu1 %v12218_v30, %s11970_s0 }
 0x282   :  { %v11578_v63 = vpop.eup %11577 }
 0x283   :  { %v456_v6 = vsel %vm449_vm3, %v11578_v63, 0.0 }
 0x2a4   :  { %457 = vadd.xlane.f32.xlu1 %v456_v6 }
 0x2b5   :  { %963 = vrot.lane.b32.xlu1 %v12218_v30, %s11971_s21 }
 0x2e4   :  { %v620_v7 = vpop.xlane.xlu1 %619 }
 0x2e5   :  { %v621_v8 = vsub.f32 %v617_v33, %v620_v7 }
 0x2e7   :  { %v622_v9 = vmul.f32 1.442695, %v621_v8 }
 0x2e8   :  { %v787_v10 = vpop.xlane.xlu0 %786 }
 0x2e9   :  { %11579 = vpow2.f32 %v622_v9  ;;  %v788_v11 = vsub.f32 %v784_v37, %v787_v10 }
 0x2eb   :  { %v789_v14 = vmul.f32 1.442695, %v788_v11 }
 0x2ec   :  { %v954_v20 = vpop.xlane.xlu0 %953 }
 0x2ed   :  { %11581 = vpow2.f32 %v789_v14  ;;  %v955_v21 = vsub.f32 %v951_v41, %v954_v20 }
 0x2ef   :  { %v956_v25 = vmul.f32 1.442695, %v955_v21 }
 0x2f0   :  { %v1138_v22 = vpop.xlane.xlu1 %1137 }
 0x2f1   :  { %v1139_v24 = vsub.f32 %v1135_v45, %v1138_v22  ;;  %11583 = vpow2.f32 %v956_v25 }
 0x2f3   :  { %v1140_v29 = vmul.f32 1.442695, %v1139_v24 }
 0x2f4   :  { %v1304_v23 = vpop.xlane.xlu0 %1303 }
 0x2f5   :  { %v1305_v26 = vsub.f32 %v1301_v49, %v1304_v23  ;;  %11585 = vpow2.f32 %v1140_v29 }
 0x2f6   :  { %v11580_v15 = vpop.eup %11579 }
 0x2f7   :  { %v624_v16 = vsel %vm449_vm3, %v11580_v15, 0.0  ;;  %v1306_v32 = vmul.f32 1.442695, %v1305_v26 }
 0x2f8   :  { %625 = vadd.xlane.f32.xlu0 %v624_v16  ;;  %v1471_v27 = vpop.xlane.xlu1 %1470 }
 0x2f9   :  { %v1472_v31 = vsub.f32 %v1468_v53, %v1471_v27  ;;  %11587 = vpow2.f32 %v1306_v32 }
 0x2fa   :  { %v12236_v17 = vpop.eup %11581 }
 0x2fb   :  { %v791_v18 = vsel %vm449_vm3, %v12236_v17, 0.0  ;;  %v1473_v34 = vmul.f32 1.442695, %v1472_v31 }
 0x2fc   :  { %792 = vadd.xlane.f32.xlu1 %v791_v18  ;;  %v1638_v28 = vpop.xlane.xlu0 %1637  ;;  %v630_v36 = vpop.permute.xlu1 %629 }
 0x2fd   :  { %v1639_v33 = vsub.f32 %v1635_v57, %v1638_v28  ;;  %11589 = vpow2.f32 %v1473_v34 }
 0x2ff   :  { %v1640_v35 = vmul.f32 1.442695, %v1639_v33 }
 0x301   :  { %11591 = vpow2.f32 %v1640_v35 }
 0x30d   :  { %1313 = vrot.lane.b32.xlu1 %v12241_v19, %s11970_s0 }
 0x30e   :  { %796 = vrot.lane.b32.xlu0 %v12218_v30, %s11969_s4  ;;  %v11584_v30 = vpop.eup %11583 }
 0x30f   :  { %v11586_v37 = vpop.eup %11585  ;;  %v958_v38 = vsel %vm449_vm3, %v11584_v30, 0.0 }
 0x310   :  { %v12248_v39 = vpop.eup %11587  ;;  %v1142_v43 = vsel %vm449_vm3, %v11586_v37, 0.0 }
 0x311   :  { %v12250_v41 = vpop.eup %11589  ;;  %v1308_v42 = vsel %vm449_vm3, %v12248_v39, 0.0 }
 0x312   :  { %v12255_v44 = vpop.eup %11591  ;;  %v1475_v46 = vsel %vm449_vm3, %v12250_v41, 0.0 }
 0x313   :  { %v1642_v45 = vsel %vm449_vm3, %v12255_v44, 0.0 }
 0x32d   :  { %959 = vadd.xlane.f32.xlu0 %v958_v38  ;;  %v458_v40 = vpop.xlane.xlu1 %457 }
 0x32e   :  { %11593 = vrcp.f32 %v458_v40 }
 0x331   :  { %1309 = vadd.xlane.f32.xlu0 %v1308_v42  ;;  %1143 = vadd.xlane.f32.xlu1 %v1142_v43  ;;  %v964_v49 = vpop.permute.xlu1 %963 }
 0x335   :  { %1643 = vadd.xlane.f32.xlu0 %v1642_v45  ;;  %1476 = vadd.xlane.f32.xlu1 %v1475_v46 }
 0x33b   :  { %v11594_v47 = vpop.eup %11593 }
 0x33c   :  { %v460_v48 = vmul.f32 %v11594_v47, %v11578_v63 }
 0x33e   :  { %10933 = vmatmul.mubr.msk.f32.vlgmr.msra.gmra.mxu0 %vm461_vm5, %v460_v48 }
 0x33f   :  { %10941 = vmatpush3.msk.msra.mxu0 %vm465_vm4, %v630_v36  ;;  %10942 = vmatprep.mubr.msk.f32.mxu0 %vm11968_vm0, %v11967_v0 }
 0x340   :  { %10950 = vmatprep.subr.mxu0 %v11967_v0 }
 0x346   :  { %1647 = vrot.lane.b32.xlu1 %v12241_v19, %s11971_s21 }
 0x34b   :  { %1480 = vrot.lane.b32.xlu0 %v12241_v19, %s11969_s4 }
 0x381   :  { %v626_v50 = vpop.xlane.xlu0 %625 }
 0x382   :  { %11595 = vrcp.f32 %v626_v50 }
 0x385   :  { %v793_v51 = vpop.xlane.xlu1 %792  ;;  %v797_v54 = vpop.permute.xlu0 %796 }
 0x386   :  { %11597 = vrcp.f32 %v793_v51 }
 0x389   :  { %v1314_v57 = vpop.permute.xlu1 %1313 }
 0x38f   :  { %v11596_v52 = vpop.eup %11595 }
 0x390   :  { %v628_v53 = vmul.f32 %v11596_v52, %v11580_v15 }
 0x392   :  { %10943 = vmatmul.mubr.msk.f32.vlgmr.msra.gmra.mxu0 %vm461_vm5, %v628_v53 }
 0x393   :  { %v11598_v55 = vpop.eup %11597  ;;  %10951 = vmatpush3.msk.msra.mxu0 %vm465_vm4, %v797_v54  ;;  %10952 = vmatprep.mubr.msk.f32.mxu0 %vm11968_vm0, %v11967_v0 }
 0x394   :  { %10960 = vmatprep.subr.mxu0 %v11967_v0  ;;  %v795_v56 = vmul.f32 %v11598_v55, %v12236_v17  ;;  %v1772_v55 = vld [vmem:[%s13464_s8 + $0x8] sm:$0xff] }
 0x395   :  { %11006 = vmatpush3.msra.mxu1 %v1772_v55 }
 0x396   :  { %10953 = vmatmul.mubr.msk.f32.vlgmr.msra.gmra.mxu0 %vm461_vm5, %v795_v56  ;;  %v1771_v56 = vld [vmem:[%s13464_s8] sm:$0xff]  ;;  %11007 = vmatprep.subr.mxu1 %v11967_v0 }
 0x397   :  { %10961 = vmatpush3.msk.msra.mxu0 %vm465_vm4, %v964_v49  ;;  %10962 = vmatprep.mubr.msk.f32.mxu0 %vm11968_vm0, %v11967_v0 }
 0x398   :  { %10970 = vmatprep.subr.mxu0 %v11967_v0  ;;  %11008 = vmatpush3.msra.mxu1 %v1771_v56 }
 0x399   :  { %11019 = vmatprep.subr.mxu1 %v11967_v0 }
 0x3b6   :  { %v960_v58 = vpop.xlane.xlu0 %959 }
 0x3b7   :  { %11599 = vrcp.f32 %v960_v58 }
 0x3ba   :  { %v1144_v59 = vpop.xlane.xlu1 %1143  ;;  %v1310_v60 = vpop.xlane.xlu0 %1309 }
 0x3bb   :  { %11601 = vrcp.f32 %v1144_v59 }
 0x3bc   :  { %11603 = vrcp.f32 %v1310_v60  ;;  %v12333_v60 = vld [vmem:[#allocation9] ss:$0 sm:$0xff] }
 0x3be   :  { %v1477_v61 = vpop.xlane.xlu1 %1476  ;;  %v1644_v62 = vpop.xlane.xlu0 %1643 }
 0x3bf   :  { %11605 = vrcp.f32 %v1477_v61 }
 0x3c0   :  { %11607 = vrcp.f32 %v1644_v62  ;;  %v12335_v62 = vld [vmem:[#allocation10] ss:$0 sm:$0xff] }
 0x3c2   :  { %v1481_v14 = vpop.permute.xlu0 %1480  ;;  %v1648_v17 = vpop.permute.xlu1 %1647 }
 0x3c4   :  { %v11600_v63 = vpop.eup %11599 }
 0x3c5   :  { %v962_v6 = vmul.f32 %v11600_v63, %v11584_v30 }
 0x3c7   :  { %10963 = vmatmul.mubr.msk.f32.vlgmr.msra.gmra.mxu0 %vm461_vm5, %v962_v6 }
 0x3c8   :  { %10971 = vmatpush3.msk.msra.mxu0 %vm465_vm4, %v12241_v19  ;;  %10972 = vmatprep.mubr.msk.f32.mxu0 %vm11968_vm0, %v11967_v0  ;;  %v11602_v7 = vpop.eup %11601 }
 0x3c9   :  { %10980 = vmatprep.subr.mxu0 %v11967_v0  ;;  %v1146_v8 = vmul.f32 %v11602_v7, %v11586_v37  ;;  %v11604_v9 = vpop.eup %11603  ;;  %v1855_v7 = vld [vmem:[%s13466_s10 + $0x8] sm:$0xff] }
 0x3ca   :  { %v1312_v10 = vmul.f32 %v11604_v9, %v12248_v39 }
 0x3cb   :  { %10973 = vmatmul.mubr.msk.f32.vlgmr.msra.gmra.mxu0 %vm461_vm5, %v1146_v8  ;;  %v1854_v8 = vld [vmem:[%s13466_s10] sm:$0xff] }
 0x3cc   :  { %10981 = vmatpush3.msk.msra.mxu0 %vm465_vm4, %v1314_v57  ;;  %10982 = vmatprep.mubr.msk.f32.mxu0 %vm11968_vm0, %v11967_v0  ;;  %v11606_v11 = vpop.eup %11605 }
 0x3cd   :  { %10990 = vmatprep.subr.mxu0 %v11967_v0  ;;  %v1479_v15 = vmul.f32 %v11606_v11, %v12250_v41  ;;  %v11608_v16 = vpop.eup %11607 }
 0x3ce   :  { %v1646_v18 = vmul.f32 %v11608_v16, %v12255_v44 }
 0x3cf   :  { %10983 = vmatmul.mubr.msk.f32.vlgmr.msra.gmra.mxu0 %vm461_vm5, %v1312_v10 }
 0x3d0   :  { %10991 = vmatpush3.msk.msra.mxu0 %vm465_vm4, %v1481_v14  ;;  %10992 = vmatprep.mubr.msk.f32.mxu0 %vm11968_vm0, %v11967_v0  ;;  %v10437_v14 = vld [vmem:[#allocation7] ss:$0 sm:$0xff] }
 0x3d1   :  { %11000 = vmatprep.subr.mxu0 %v11967_v0 }
 0x3d3   :  { %10993 = vmatmul.mubr.msk.f32.vlgmr.msra.gmra.mxu0 %vm461_vm5, %v1479_v15 }
 0x3d4   :  { %11001 = vmatpush3.msk.msra.mxu0 %vm465_vm4, %v1648_v17  ;;  %11002 = vmatprep.mubr.msk.f32.mxu0 %vm11968_vm0, %v11967_v0 }
 0x3d5   :  { %11012 = vmatprep.subr.mxu0 %v11967_v0 }
 0x3d7   :  { %11003 = vmatmul.mubr.msk.f32.vlgmr.msra.gmra.mxu0 %vm461_vm5, %v1646_v18 }
 0x3d8   :  { %11016 = vmatprep.mubr.msk.f32.mxu0 %vm11968_vm0, %v11967_v0  ;;  %11013 = vmatpush3.msra.mxu0 %v1855_v7 }
 0x3d9   :  { %11014 = vmatprep.subr.mxu0 %v11967_v0 }
 0x3da   :  { %11015 = vmatpush3.msra.mxu0 %v1854_v8 }
 0x3db   :  { %11026 = vmatprep.subr.mxu0 %v11967_v0 }
 0x3fe   :  { %v535_v19 = vpop.f32.mrf.mxu0 }
 0x400   :  { %v10934_v20 = vpop.f32.mrf.mxu0 }
 0x452   :  { %v702_v21 = vpop.f32.mrf.mxu0 }
 0x453   :  { %1041 = vrot.lane.b32.xlu0 %v702_v21, %s11972_s19 }
 0x454   :  { %v10944_v22 = vpop.f32.mrf.mxu0 }
 0x456   :  { %v869_v23 = vpop.f32.mrf.mxu0 }
 0x457   :  { %1045 = vrot.lane.b32.xlu0 %v869_v23, %s11963_s22 }
 0x458   :  { %v10954_v24 = vpop.f32.mrf.mxu0 }
 0x487   :  { %v1036_v25 = vpop.f32.mrf.mxu0 }
 0x488   :  { %1049 = vrot.lane.b32.xlu0 %v1036_v25, %s11973_s11 }
 0x489   :  { %v10964_v26 = vpop.f32.mrf.mxu0 }
 0x48b   :  { %v1219_v27 = vpop.f32.mrf.mxu0 }
 0x48d   :  { %v10974_v28 = vpop.f32.mrf.mxu0 }
 0x48f   :  { %v1386_v29 = vpop.f32.mrf.mxu0 }
 0x490   :  { %1725 = vrot.lane.b32.xlu1 %v1386_v29, %s11972_s19 }
 0x491   :  { %v10984_v31 = vpop.f32.mrf.mxu0 }
 0x493   :  { %v1553_v32 = vpop.f32.mrf.mxu0 }
 0x494   :  { %1729 = vrot.lane.b32.xlu1 %v1553_v32, %s11963_s22 }
 0x495   :  { %v10994_v33 = vpop.f32.mrf.mxu0 }
 0x497   :  { %v1720_v34 = vpop.f32.mrf.mxu0 }
 0x498   :  { %1733 = vrot.lane.b32.xlu1 %v1720_v34, %s11973_s11 }
 0x499   :  { %v11004_v35 = vpop.f32.mrf.mxu0 }
 0x4c5   :  { %v1042_v30 = vpop.permute.xlu0 %1041 }
 0x4c6   :  { %v1052_v37 = vsel %vm371_vm2, %v535_v19, %v1042_v30 }
 0x4c9   :  { %v1046_v36 = vpop.permute.xlu0 %1045 }
 0x4ca   :  { %v1054_v38 = vsel %vm1053_vm6, %v1052_v37, %v1046_v36 }
 0x4fa   :  { %v1050_v39 = vpop.permute.xlu0 %1049 }
 0x4fb   :  { %v1056_v40 = vsel %vm1055_vm7, %v1054_v38, %v1050_v39 }
 0x4fc   :  { %1058 = vst.msk [vmem:[#allocation2] sm:$0x7] %vm1057_vm8, %v1056_v40 }
 0x502   :  { %v1726_v41 = vpop.permute.xlu1 %1725 }
 0x503   :  { %v1736_v43 = vsel %vm371_vm2, %v1219_v27, %v1726_v41 }
 0x506   :  { %v1730_v42 = vpop.permute.xlu1 %1729 }
 0x507   :  { %v1737_v44 = vsel %vm1053_vm6, %v1736_v43, %v1730_v42 }
 0x50a   :  { %v1734_v45 = vpop.permute.xlu1 %1733 }
 0x50b   :  { %v1738_v46 = vsel %vm1055_vm7, %v1737_v44, %v1734_v45 }
 0x50c   :  { %1739 = vst.msk [vmem:[#allocation2 + $0x3] sm:$0x7] %vm1057_vm8, %v1738_v46 }
 0x513   :  { %v1740_v47 = vld [vmem:[#allocation2] sm:$0x3f] }
 0x514   :  { %v1741_v48 = vadd.f32 %v1740_v47, %v12126_v4 }
 0x516   :  { %v1743_v49 = vsel %vm1742_vm9, %v1741_v48, 0.0 }
 0x517   :  { %1744 = vadd.xlane.f32.xlu0 %v1743_v49 }
 0x5a0   :  { %v1745_v50 = vpop.xlane.xlu0 %1744 }
 0x5a1   :  { %v1747_v51 = vmul.f32 0.0625, %v1745_v50 }
 0x5a3   :  { %v1748_v52 = vsub.f32 %v1741_v48, %v1747_v51 }
 0x5a5   :  { %v1749_v53 = vmul.f32 %v1748_v52, %v1748_v52 }
 0x5a7   :  { %v1750_v54 = vsel %vm1742_vm9, %v1749_v53, 0.0 }
 0x5a8   :  { %1751 = vadd.xlane.f32.xlu1 %v1750_v54 }
 0x631   :  { %v1752_v4 = vpop.xlane.xlu1 %1751 }
 0x632   :  { %v1753_v57 = vmul.f32 0.0625, %v1752_v4 }
 0x634   :  { %v1754_v58 = vadd.f32 1e-05, %v1753_v57 }
 0x636   :  { %11609 = vrsqrt.f32 %v1754_v58 }
 0x643   :  { %v11610_v59 = vpop.eup %11609 }
 0x644   :  { %v1756_v61 = vmul.f32 %v11610_v59, %v1748_v52 }
 0x646   :  { %v1763_v63 = vmul.f32 %v12333_v60, %v1756_v61 }
 0x648   :  { %v1770_v6 = vadd.f32 %v12335_v62, %v1763_v63 }
 0x64a   :  { %11010 = vmatmul.mubr.msk.f32.vlgmr.msra.gmra.mxu1 %vm157_vm1, %v1770_v6 }
 0x64b   :  { %11020 = vmatpush3.msra.mxu1 %v12114_v2  ;;  %11023 = vmatprep.mubr.msk.f32.mxu1 %vm11968_vm0, %v11967_v0  ;;  %v10435_v2 = vld [vmem:[%s13465_s9] ss:$0 sm:$0xff] }
 0x64c   :  { %11021 = vmatprep.subr.mxu1 %v11967_v0 }
 0x64d   :  { %11022 = vmatpush3.msra.mxu1 %v12131_v5 }
 0x64e   :  { %11033 = vmatprep.subr.mxu1 %v11967_v0 }
 0x70a   :  { %v1849_v5 = vpop.f32.mrf.mxu1 }
 0x70b   :  { %v1850_v9 = vadd.f32 %v10435_v2, %v1849_v5 }
 0x70c   :  { %v11011_v10 = vpop.f32.mrf.mxu1 }
 0x70d   :  { %v1853_v11 = vmax.f32 %v1850_v9, 0.0 }
 0x70f   :  { %11017 = vmatmul.mubr.msk.f32.vlgmr.msra.gmra.mxu0 %vm157_vm1, %v1853_v11 }
 0x710   :  { %11027 = vmatpush3.msra.mxu0 %v12109_v1  ;;  %11030 = vmatprep.mubr.msk.f32.mxu0 %vm11968_vm0, %v11967_v0 }
 0x711   :  { %11028 = vmatprep.subr.mxu0 %v11967_v0 }
 0x712   :  { %11029 = vmatpush3.msra.mxu0 %v12119_v3 }
 0x713   :  { %11040 = vmatprep.subr.mxu0 %v11967_v0 }
 0x7cf   :  { %v1932_v15 = vpop.f32.mrf.mxu0 }
 0x7d0   :  { %v1933_v16 = vadd.f32 %v10437_v14, %v1932_v15 }
 0x7d1   :  { %v11018_v17 = vpop.f32.mrf.mxu0 }
 0x7d2   :  { %v1936_v18 = vadd.f32 %v1933_v16, %v1770_v6 }
 0x7d4   :  { %v1937_v19 = vsel %vm1742_vm9, %v1936_v18, 0.0 }
 0x7d5   :  { %1938 = vadd.xlane.f32.xlu0 %v1937_v19 }
 0x85e   :  { %v1939_v20 = vpop.xlane.xlu0 %1938 }
 0x85f   :  { %v1940_v21 = vmul.f32 0.0625, %v1939_v20 }
 0x861   :  { %v1941_v1 = vsub.f32 %v1936_v18, %v1940_v21 }
 0x863   :  { %v1942_v22 = vmul.f32 %v1941_v1, %v1941_v1 }
 0x865   :  { %v1943_v23 = vsel %vm1742_vm9, %v1942_v22, 0.0 }
 0x866   :  { %1944 = vadd.xlane.f32.xlu0 %v1943_v23 }
 0x8ef   :  { %v1945_v24 = vpop.xlane.xlu0 %1944 }
 0x8f0   :  { %v1946_v25 = vmul.f32 0.0625, %v1945_v24 }
 0x8f2   :  { %v1947_v3 = vadd.f32 1e-05, %v1946_v25 }
 0x8f4   :  { %11611 = vrsqrt.f32 %v1947_v3 }
 0x901   :  { %v11612_v26 = vpop.eup %11611 }
 0x902   :  { %v1949_v27 = vmul.f32 %v11612_v26, %v1941_v1 }
 0x904   :  { %v1950_v28 = vmul.f32 %v12333_v60, %v1949_v27 }
 0x906   :  { %v12368_v29 = vadd.f32 %v12335_v62, %v1950_v28 }
 0x908   :  { %11024 = vmatmul.mubr.msk.f32.vlgmr.msra.gmra.mxu1 %vm157_vm1, %v12368_v29  ;;  %11031 = vmatmul.mubr.msk.f32.vlgmr.msra.gmra.mxu0 %vm157_vm1, %v12368_v29 }
 0x909   :  { %11034 = vmatpush3.msra.mxu1 %v12164_v12  ;;  %11037 = vmatprep.mubr.msk.f32.mxu1 %vm11968_vm0, %v11967_v0 }
 0x90a   :  { %11035 = vmatprep.subr.mxu1 %v11967_v0  ;;  %11042 = vmatprep.mubr.msk.f32.mxu0 %vm11968_vm0, %v11967_v0 }
 0x90b   :  { %11036 = vmatpush3.msra.mxu1 %v12169_v13 }
 0x90c   :  { %11038 = vmatmul.mubr.msk.f32.vlgmr.msra.gmra.mxu1 %vm157_vm1, %v12368_v29  ;;  %11045 = vmatprep.subr.mxu1 %v11967_v0 }
 0x90d   :  { %11047 = vmatprep.mubr.msk.f32.mxu1 %vm11968_vm0, %v11967_v0 }
 0x9c8   :  { %v2021_v31 = vpop.f32.mrf.mxu1  ;;  %v2091_v12 = vpop.f32.mrf.mxu0 }
 0x9c9   :  { %2331 = vrot.lane.b32.xlu1 %v2091_v12, %s11970_s0  ;;  %11041 = vmatpush3.xpose.msk.msra.mxu0 %vm371_vm2, %v2091_v12  ;;  %v2847_v35 = vrot.slane %v2091_v12, 3  ;;  %v2846_v30 = vrot.slane %v2021_v31, 3 }
 0x9ca   :  { %2329 = vrot.lane.b32.xlu0 %v2021_v31, %s11970_s0  ;;  %v11025_v32 = vpop.f32.mrf.mxu1  ;;  %v11032_v33 = vpop.f32.mrf.mxu0  ;;  %11050 = vmatprep.subr.mxu0 %v11967_v0 }
 0x9cc   :  { %v12390_v13 = vpop.f32.mrf.mxu1  ;;  %11043 = vmatmul.mubr.msk.f32.vlgmr.msra.gmra.mxu0 %vm371_vm2, %v2021_v31 }
 0x9cd   :  { %2498 = vrot.lane.b32.xlu1 %v2091_v12, %s11969_s4  ;;  %11046 = vmatpush3.msk.msra.mxu1 %vm465_vm4, %v12390_v13 }
 0x9ce   :  { %2665 = vrot.lane.b32.xlu0 %v2091_v12, %s11971_s21  ;;  %v11039_v34 = vpop.f32.mrf.mxu1  ;;  %11052 = vmatprep.mubr.msk.f32.mxu0 %vm11968_vm0, %v11967_v0 }
 0x9cf   :  { %11055 = vmatprep.subr.mxu1 %v11967_v0 }
 0x9d1   :  { %2496 = vrot.lane.b32.xlu1 %v2021_v31, %s11969_s4 }
 0x9d2   :  { %3012 = vrot.lane.b32.xlu0 %v2847_v35, %s11970_s0 }
 0x9d5   :  { %2663 = vrot.lane.b32.xlu1 %v2021_v31, %s11971_s21 }
 0x9d6   :  { %3179 = vrot.lane.b32.xlu0 %v2847_v35, %s11969_s4 }
 0x9d9   :  { %3010 = vrot.lane.b32.xlu1 %v2846_v30, %s11970_s0 }
 0x9da   :  { %3346 = vrot.lane.b32.xlu0 %v2847_v35, %s11971_s21 }
 0x9dd   :  { %3177 = vrot.lane.b32.xlu1 %v2846_v30, %s11969_s4 }
 0x9e1   :  { %3344 = vrot.lane.b32.xlu1 %v2846_v30, %s11971_s21 }
 0xa3b   :  { %v2332_v36 = vpop.permute.xlu1 %2331 }
 0xa3c   :  { %v2330_v37 = vpop.permute.xlu0 %2329  ;;  %11051 = vmatpush3.xpose.msk.msra.mxu0 %vm371_vm2, %v2332_v36  ;;  %v12462_v36 = vrot.slane %v12390_v13, 3 }
 0xa3d   :  { %11060 = vmatprep.subr.mxu0 %v11967_v0 }
 0xa3f   :  { %v2499_v38 = vpop.permute.xlu1 %2498  ;;  %11053 = vmatmul.mubr.msk.f32.vlgmr.msra.gmra.mxu0 %vm371_vm2, %v2330_v37 }
 0xa40   :  { %11061 = vmatpush3.xpose.msk.msra.mxu0 %vm371_vm2, %v2499_v38  ;;  %11062 = vmatprep.mubr.msk.f32.mxu0 %vm11968_vm0, %v11967_v0  ;;  %v2666_v39 = vpop.permute.xlu0 %2665 }
 0xa41   :  { %11070 = vmatprep.subr.mxu0 %v11967_v0 }
 0xa43   :  { %v2497_v40 = vpop.permute.xlu1 %2496 }
 0xa44   :  { %11063 = vmatmul.mubr.msk.f32.vlgmr.msra.gmra.mxu0 %vm371_vm2, %v2497_v40  ;;  %v3013_v42 = vpop.permute.xlu0 %3012 }
 0xa45   :  { %11071 = vmatpush3.xpose.msk.msra.mxu0 %vm371_vm2, %v2666_v39  ;;  %11072 = vmatprep.mubr.msk.f32.mxu0 %vm11968_vm0, %v11967_v0 }
 0xa46   :  { %11080 = vmatprep.subr.mxu0 %v11967_v0 }
 0xa47   :  { %v2664_v41 = vpop.permute.xlu1 %2663 }
 0xa48   :  { %11073 = vmatmul.mubr.msk.f32.vlgmr.msra.gmra.mxu0 %vm371_vm2, %v2664_v41  ;;  %v3180_v44 = vpop.permute.xlu0 %3179 }
 0xa49   :  { %11081 = vmatpush3.xpose.msk.msra.mxu0 %vm371_vm2, %v2847_v35  ;;  %11082 = vmatprep.mubr.msk.f32.mxu0 %vm11968_vm0, %v11967_v0 }
 0xa4a   :  { %11090 = vmatprep.subr.mxu0 %v11967_v0 }
 0xa4b   :  { %v3011_v43 = vpop.permute.xlu1 %3010 }
 0xa4c   :  { %11083 = vmatmul.mubr.msk.f32.vlgmr.msra.gmra.mxu0 %vm371_vm2, %v2846_v30  ;;  %v3347_v46 = vpop.permute.xlu0 %3346 }
 0xa4d   :  { %11091 = vmatpush3.xpose.msk.msra.mxu0 %vm371_vm2, %v3013_v42  ;;  %11092 = vmatprep.mubr.msk.f32.mxu0 %vm11968_vm0, %v11967_v0 }
 0xa4e   :  { %11100 = vmatprep.subr.mxu0 %v11967_v0 }
 0xa4f   :  { %v3178_v45 = vpop.permute.xlu1 %3177 }
 0xa50   :  { %11093 = vmatmul.mubr.msk.f32.vlgmr.msra.gmra.mxu0 %vm371_vm2, %v3011_v43 }
 0xa51   :  { %11101 = vmatpush3.xpose.msk.msra.mxu0 %vm371_vm2, %v3180_v44  ;;  %11102 = vmatprep.mubr.msk.f32.mxu0 %vm11968_vm0, %v11967_v0 }
 0xa52   :  { %11110 = vmatprep.subr.mxu0 %v11967_v0 }
 0xa53   :  { %v3345_v47 = vpop.permute.xlu1 %3344 }
 0xa54   :  { %11103 = vmatmul.mubr.msk.f32.vlgmr.msra.gmra.mxu0 %vm371_vm2, %v3178_v45 }
 0xa55   :  { %11111 = vmatpush3.xpose.msk.msra.mxu0 %vm371_vm2, %v3347_v46  ;;  %11112 = vmatprep.mubr.msk.f32.mxu0 %vm11968_vm0, %v11967_v0 }
 0xa56   :  { %11120 = vmatprep.subr.mxu0 %v11967_v0 }
 0xa58   :  { %11113 = vmatmul.mubr.msk.f32.vlgmr.msra.gmra.mxu0 %vm371_vm2, %v3345_v47 }
 0xa59   :  { %11124 = vmatprep.mubr.msk.f32.mxu0 %vm11968_vm0, %v11967_v0 }
 0xa8c   :  { %v2237_v48 = vpop.f32.mrf.mxu0 }
 0xa8d   :  { %v2241_v49 = vmul.f32 0.5, %v2237_v48 }
 0xa8e   :  { %v11044_v50 = vpop.f32.mrf.mxu0 }
 0xa8f   :  { %v2242_v51 = vsel %vm449_vm3, %v2241_v49, -inf }
 0xa90   :  { %2243 = vmax.xlane.f32.xlu0 %v2242_v51 }
 0xaff   :  { %v2403_v52 = vpop.f32.mrf.mxu0 }
 0xb00   :  { %v2407_v53 = vmul.f32 0.5, %v2403_v52 }
 0xb01   :  { %v11054_v54 = vpop.f32.mrf.mxu0 }
 0xb02   :  { %v2408_v55 = vsel %vm449_vm3, %v2407_v53, -inf }
 0xb03   :  { %2409 = vmax.xlane.f32.xlu1 %v2408_v55 }
 0xb04   :  { %v2570_v56 = vpop.f32.mrf.mxu0 }
 0xb05   :  { %v2574_v4 = vmul.f32 0.5, %v2570_v56 }
 0xb06   :  { %v11064_v57 = vpop.f32.mrf.mxu0 }
 0xb07   :  { %v2575_v58 = vsel %vm449_vm3, %v2574_v4, -inf }
 0xb08   :  { %2576 = vmax.xlane.f32.xlu0 %v2575_v58  ;;  %v2737_v59 = vpop.f32.mrf.mxu0 }
 0xb09   :  { %v2741_v61 = vmul.f32 0.5, %v2737_v59 }
 0xb0a   :  { %v11074_v63 = vpop.f32.mrf.mxu0 }
 0xb0b   :  { %v2742_v6 = vsel %vm449_vm3, %v2741_v61, -inf }
 0xb0c   :  { %2743 = vmax.xlane.f32.xlu0 %v2742_v6  ;;  %v2918_v7 = vpop.f32.mrf.mxu0 }
 0xb0d   :  { %v2922_v8 = vmul.f32 0.5, %v2918_v7 }
 0xb0e   :  { %v11084_v2 = vpop.f32.mrf.mxu0 }
 0xb0f   :  { %v2923_v5 = vsel %vm449_vm3, %v2922_v8, -inf }
 0xb10   :  { %2924 = vmax.xlane.f32.xlu1 %v2923_v5  ;;  %v3084_v9 = vpop.f32.mrf.mxu0 }
 0xb11   :  { %v3088_v10 = vmul.f32 0.5, %v3084_v9 }
 0xb12   :  { %v11094_v11 = vpop.f32.mrf.mxu0 }
 0xb13   :  { %v3089_v14 = vsel %vm449_vm3, %v3088_v10, -inf }
 0xb14   :  { %3090 = vmax.xlane.f32.xlu0 %v3089_v14  ;;  %v3251_v15 = vpop.f32.mrf.mxu0 }
 0xb15   :  { %v3255_v16 = vmul.f32 0.5, %v3251_v15 }
 0xb16   :  { %v11104_v17 = vpop.f32.mrf.mxu0 }
 0xb17   :  { %v3256_v18 = vsel %vm449_vm3, %v3255_v16, -inf }
 0xb18   :  { %3257 = vmax.xlane.f32.xlu1 %v3256_v18  ;;  %v3418_v19 = vpop.f32.mrf.mxu0 }
 0xb19   :  { %v3422_v20 = vmul.f32 0.5, %v3418_v19  ;;  %v2244_v22 = vpop.xlane.xlu0 %2243 }
 0xb1a   :  { %v11114_v21 = vpop.f32.mrf.mxu0  ;;  %v2245_v23 = vsub.f32 %v2241_v49, %v2244_v22 }
 0xb1b   :  { %v3423_v1 = vsel %vm449_vm3, %v3422_v20, -inf }
 0xb1c   :  { %3424 = vmax.xlane.f32.xlu0 %v3423_v1  ;;  %v2246_v24 = vmul.f32 1.442695, %v2245_v23 }
 0xb1e   :  { %11613 = vpow2.f32 %v2246_v24 }
 0xb29   :  { %2419 = vrot.lane.b32.xlu1 %v12390_v13, %s11970_s0 }
 0xb2b   :  { %v11614_v25 = vpop.eup %11613 }
 0xb2c   :  { %v2248_v3 = vsel %vm449_vm3, %v11614_v25, 0.0 }
 0xb4d   :  { %2249 = vadd.xlane.f32.xlu1 %v2248_v3 }
 0xb5e   :  { %2753 = vrot.lane.b32.xlu1 %v12390_v13, %s11971_s21 }
 0xb8c   :  { %v2410_v26 = vpop.xlane.xlu1 %2409 }
 0xb8d   :  { %v2411_v27 = vsub.f32 %v2407_v53, %v2410_v26 }
 0xb8f   :  { %v2412_v28 = vmul.f32 1.442695, %v2411_v27 }
 0xb91   :  { %11615 = vpow2.f32 %v2412_v28  ;;  %v2577_v31 = vpop.xlane.xlu0 %2576 }
 0xb92   :  { %v2578_v12 = vsub.f32 %v2574_v4, %v2577_v31 }
 0xb94   :  { %v2579_v32 = vmul.f32 1.442695, %v2578_v12 }
 0xb95   :  { %v2744_v37 = vpop.xlane.xlu0 %2743 }
 0xb96   :  { %11617 = vpow2.f32 %v2579_v32  ;;  %v2745_v38 = vsub.f32 %v2741_v61, %v2744_v37 }
 0xb98   :  { %v2746_v41 = vmul.f32 1.442695, %v2745_v38 }
 0xb99   :  { %v2925_v40 = vpop.xlane.xlu1 %2924 }
 0xb9a   :  { %v2926_v43 = vsub.f32 %v2922_v8, %v2925_v40  ;;  %11619 = vpow2.f32 %v2746_v41 }
 0xb9c   :  { %v2927_v48 = vmul.f32 1.442695, %v2926_v43 }
 0xb9d   :  { %v3091_v39 = vpop.xlane.xlu0 %3090 }
 0xb9e   :  { %v11616_v33 = vpop.eup %11615  ;;  %v3092_v42 = vsub.f32 %v3088_v10, %v3091_v39 }
 0xb9f   :  { %v2414_v34 = vsel %vm449_vm3, %v11616_v33, 0.0 }
 0xba0   :  { %2415 = vadd.xlane.f32.xlu0 %v2414_v34  ;;  %v3093_v46 = vmul.f32 1.442695, %v3092_v42 }
 0xba1   :  { %v3258_v45 = vpop.xlane.xlu1 %3257 }
 0xba2   :  { %v3259_v49 = vsub.f32 %v3255_v16, %v3258_v45  ;;  %11621 = vpow2.f32 %v3093_v46 }
 0xba3   :  { %v12457_v35 = vpop.eup %11617  ;;  %11623 = vpow2.f32 %v2927_v48 }
 0xba4   :  { %v2581_v30 = vsel %vm449_vm3, %v12457_v35, 0.0 }
 0xba5   :  { %2582 = vadd.xlane.f32.xlu1 %v2581_v30  ;;  %v3425_v44 = vpop.xlane.xlu0 %3424  ;;  %v2420_v52 = vpop.permute.xlu1 %2419 }
 0xba6   :  { %v3426_v47 = vsub.f32 %v3422_v20, %v3425_v44 }
 0xba7   :  { %v11620_v51 = vpop.eup %11619 }
 0xba8   :  { %v3427_v50 = vmul.f32 1.442695, %v3426_v47  ;;  %v2748_v53 = vsel %vm449_vm3, %v11620_v51, 0.0 }
 0xbaa   :  { %11625 = vpow2.f32 %v3427_v50 }
 0xbaf   :  { %v12469_v54 = vpop.eup %11621 }
 0xbb0   :  { %v11624_v55 = vpop.eup %11623  ;;  %v3095_v4 = vsel %vm449_vm3, %v12469_v54, 0.0 }
 0xbb1   :  { %v2929_v58 = vsel %vm449_vm3, %v11624_v55, 0.0 }
 0xbb6   :  { %2586 = vrot.lane.b32.xlu0 %v12390_v13, %s11969_s4  ;;  %3100 = vrot.lane.b32.xlu1 %v12462_v36, %s11970_s0  ;;  %v3260_v13 = vmul.f32 1.442695, %v3259_v49 }
 0xbb7   :  { %v12473_v57 = vpop.eup %11625 }
 0xbb8   :  { %11627 = vpow2.f32 %v3260_v13  ;;  %v3429_v61 = vsel %vm449_vm3, %v12473_v57, 0.0 }
 0xbc5   :  { %v12476_v59 = vpop.eup %11627 }
 0xbc6   :  { %v3262_v63 = vsel %vm449_vm3, %v12476_v59, 0.0 }
 0xbd5   :  { %2749 = vadd.xlane.f32.xlu0 %v2748_v53 }
 0xbd6   :  { %v2250_v56 = vpop.xlane.xlu1 %2249 }
 0xbd7   :  { %11629 = vrcp.f32 %v2250_v56 }
 0xbd9   :  { %3096 = vadd.xlane.f32.xlu0 %v3095_v4 }
 0xbda   :  { %2930 = vadd.xlane.f32.xlu1 %v2929_v58  ;;  %v2754_v2 = vpop.permute.xlu1 %2753 }
 0xbdd   :  { %3430 = vadd.xlane.f32.xlu0 %v3429_v61 }
 0xbde   :  { %3263 = vadd.xlane.f32.xlu1 %v3262_v63 }
 0xbe4   :  { %v11630_v6 = vpop.eup %11629 }
 0xbe5   :  { %v2252_v7 = vmul.f32 %v11630_v6, %v11614_v25 }
 0xbe7   :  { %11048 = vmatmul.mubr.msk.f32.vlgmr.msra.gmra.mxu1 %vm461_vm5, %v2252_v7 }
 0xbe8   :  { %11056 = vmatpush3.msk.msra.mxu1 %vm465_vm4, %v2420_v52  ;;  %11057 = vmatprep.mubr.msk.f32.mxu1 %vm11968_vm0, %v11967_v0 }
 0xbe9   :  { %11065 = vmatprep.subr.mxu1 %v11967_v0 }
 0xbef   :  { %3434 = vrot.lane.b32.xlu1 %v12462_v36, %s11971_s21 }
 0xbf3   :  { %3267 = vrot.lane.b32.xlu0 %v12462_v36, %s11969_s4 }
 0xc29   :  { %v2416_v8 = vpop.xlane.xlu0 %2415 }
 0xc2a   :  { %11631 = vrcp.f32 %v2416_v8 }
 0xc2d   :  { %v2587_v11 = vpop.permute.xlu0 %2586 }
 0xc2e   :  { %v2583_v5 = vpop.xlane.xlu1 %2582 }
 0xc2f   :  { %11633 = vrcp.f32 %v2583_v5  ;;  %v10475_v5 = vld [vmem:[%s13464_s8 + $0x18] sm:$0xff] }
 0xc30   :  { %11121 = vmatpush3.msra.mxu0 %v10475_v5 }
 0xc31   :  { %11122 = vmatprep.subr.mxu0 %v11967_v0 }
 0xc32   :  { %v3101_v17 = vpop.permute.xlu1 %3100 }
 0xc37   :  { %v11632_v9 = vpop.eup %11631 }
 0xc38   :  { %v2418_v10 = vmul.f32 %v11632_v9, %v11616_v33  ;;  %v10474_v9 = vld [vmem:[%s13464_s8 + $0x10] sm:$0xff] }
 0xc39   :  { %11123 = vmatpush3.msra.mxu0 %v10474_v9 }
 0xc3a   :  { %11058 = vmatmul.mubr.msk.f32.vlgmr.msra.gmra.mxu1 %vm461_vm5, %v2418_v10  ;;  %11134 = vmatprep.subr.mxu0 %v11967_v0 }
 0xc3b   :  { %11066 = vmatpush3.msk.msra.mxu1 %vm465_vm4, %v2587_v11  ;;  %11067 = vmatprep.mubr.msk.f32.mxu1 %vm11968_vm0, %v11967_v0 }
 0xc3c   :  { %v11634_v14 = vpop.eup %11633  ;;  %11075 = vmatprep.subr.mxu1 %v11967_v0 }
 0xc3d   :  { %v2585_v15 = vmul.f32 %v11634_v14, %v12457_v35 }
 0xc3f   :  { %11068 = vmatmul.mubr.msk.f32.vlgmr.msra.gmra.mxu1 %vm461_vm5, %v2585_v15 }
 0xc40   :  { %11076 = vmatpush3.msk.msra.mxu1 %vm465_vm4, %v2754_v2  ;;  %11077 = vmatprep.mubr.msk.f32.mxu1 %vm11968_vm0, %v11967_v0 }
 0xc41   :  { %11085 = vmatprep.subr.mxu1 %v11967_v0 }
 0xc5e   :  { %v2750_v16 = vpop.xlane.xlu0 %2749 }
 0xc5f   :  { %11635 = vrcp.f32 %v2750_v16 }
 0xc62   :  { %v3097_v18 = vpop.xlane.xlu0 %3096 }
 0xc63   :  { %v2931_v19 = vpop.xlane.xlu1 %2930 }
 0xc64   :  { %11637 = vrcp.f32 %v2931_v19  ;;  %v12568_v19 = vld [vmem:[%s13461_s5] sm:$0xff] }
 0xc65   :  { %11639 = vrcp.f32 %v3097_v18  ;;  %v12561_v18 = vld [vmem:[%s13461_s5 + $0x8] sm:$0xff] }
 0xc66   :  { %v3431_v21 = vpop.xlane.xlu0 %3430 }
 0xc67   :  { %v3264_v20 = vpop.xlane.xlu1 %3263 }
 0xc68   :  { %11641 = vrcp.f32 %v3264_v20  ;;  %v10479_v20 = vld [vmem:[%s13466_s10 + $0x10] sm:$0xff] }
 0xc69   :  { %11643 = vrcp.f32 %v3431_v21  ;;  %v10477_v21 = vld [vmem:[%s13465_s9 + $0x1] ss:$0 sm:$0xff] }
 0xc6a   :  { %v3268_v27 = vpop.permute.xlu0 %3267 }
 0xc6b   :  { %v3435_v12 = vpop.permute.xlu1 %3434 }
 0xc6c   :  { %v11636_v1 = vpop.eup %11635 }
 0xc6d   :  { %v2752_v22 = vmul.f32 %v11636_v1, %v11620_v51 }
 0xc6f   :  { %11078 = vmatmul.mubr.msk.f32.vlgmr.msra.gmra.mxu1 %vm461_vm5, %v2752_v22 }
 0xc70   :  { %11086 = vmatpush3.msk.msra.mxu1 %vm465_vm4, %v12462_v36  ;;  %11087 = vmatprep.mubr.msk.f32.mxu1 %vm11968_vm0, %v11967_v0 }
 0xc71   :  { %v11638_v23 = vpop.eup %11637  ;;  %11095 = vmatprep.subr.mxu1 %v11967_v0 }
 0xc72   :  { %v2933_v24 = vmul.f32 %v11638_v23, %v11624_v55  ;;  %v11640_v25 = vpop.eup %11639 }
 0xc73   :  { %v3099_v3 = vmul.f32 %v11640_v25, %v12469_v54  ;;  %v12599_v25 = vld [vmem:[%s13462_s6 + $0x8] sm:$0xff] }
 0xc74   :  { %11088 = vmatmul.mubr.msk.f32.vlgmr.msra.gmra.mxu1 %vm461_vm5, %v2933_v24 }
 0xc75   :  { %11096 = vmatpush3.msk.msra.mxu1 %vm465_vm4, %v3101_v17  ;;  %11097 = vmatprep.mubr.msk.f32.mxu1 %vm11968_vm0, %v11967_v0  ;;  %v11642_v26 = vpop.eup %11641 }
 0xc76   :  { %11105 = vmatprep.subr.mxu1 %v11967_v0  ;;  %v3266_v28 = vmul.f32 %v11642_v26, %v12476_v59  ;;  %v11644_v31 = vpop.eup %11643  ;;  %v12605_v26 = vld [vmem:[%s13462_s6] sm:$0xff] }
 0xc77   :  { %v3433_v32 = vmul.f32 %v11644_v31, %v12473_v57 }
 0xc78   :  { %11098 = vmatmul.mubr.msk.f32.vlgmr.msra.gmra.mxu1 %vm461_vm5, %v3099_v3 }
 0xc79   :  { %11106 = vmatpush3.msk.msra.mxu1 %vm465_vm4, %v3268_v27  ;;  %11107 = vmatprep.mubr.msk.f32.mxu1 %vm11968_vm0, %v11967_v0 }
 0xc7a   :  { %11115 = vmatprep.subr.mxu1 %v11967_v0 }
 0xc7c   :  { %11108 = vmatmul.mubr.msk.f32.vlgmr.msra.gmra.mxu1 %vm461_vm5, %v3266_v28 }
 0xc7d   :  { %11116 = vmatpush3.msk.msra.mxu1 %vm465_vm4, %v3435_v12  ;;  %11117 = vmatprep.mubr.msk.f32.mxu1 %vm11968_vm0, %v11967_v0 }
 0xc7e   :  { %11127 = vmatprep.subr.mxu1 %v11967_v0 }
 0xc80   :  { %11118 = vmatmul.mubr.msk.f32.vlgmr.msra.gmra.mxu1 %vm461_vm5, %v3433_v32 }
 0xc81   :  { %11131 = vmatprep.mubr.msk.f32.mxu1 %vm11968_vm0, %v11967_v0 }
 0xca7   :  { %v2325_v33 = vpop.f32.mrf.mxu1 }
 0xca9   :  { %v11049_v34 = vpop.f32.mrf.mxu1 }
 0xcfa   :  { %v2492_v35 = vpop.f32.mrf.mxu1 }
 0xcfb   :  { %2831 = vrot.lane.b32.xlu0 %v2492_v35, %s11972_s19  ;;  %v12634_v35 = vld [vmem:[#allocation4 + $0x8] sm:$0xff] }
 0xcfc   :  { %v11059_v30 = vpop.f32.mrf.mxu1 }
 0xcfd   :  { %v12636_v30 = vld [vmem:[#allocation4] sm:$0xff] }
 0xcff   :  { %v2659_v36 = vpop.f32.mrf.mxu1 }
 0xd00   :  { %2835 = vrot.lane.b32.xlu0 %v2659_v36, %s11963_s22 }
 0xd01   :  { %v11069_v37 = vpop.f32.mrf.mxu1 }
 0xd2f   :  { %v2826_v38 = vpop.f32.mrf.mxu1 }
 0xd30   :  { %2839 = vrot.lane.b32.xlu0 %v2826_v38, %s11973_s11 }
 0xd31   :  { %v11079_v39 = vpop.f32.mrf.mxu1 }
 0xd34   :  { %v3006_v40 = vpop.f32.mrf.mxu1 }
 0xd36   :  { %v11089_v41 = vpop.f32.mrf.mxu1 }
 0xd38   :  { %v3173_v42 = vpop.f32.mrf.mxu1 }
 0xd39   :  { %3512 = vrot.lane.b32.xlu1 %v3173_v42, %s11972_s19 }
 0xd3a   :  { %v11099_v43 = vpop.f32.mrf.mxu1 }
 0xd3c   :  { %v3340_v44 = vpop.f32.mrf.mxu1 }
 0xd3d   :  { %3516 = vrot.lane.b32.xlu1 %v3340_v44, %s11963_s22 }
 0xd3e   :  { %v11109_v45 = vpop.f32.mrf.mxu1 }
 0xd40   :  { %v3507_v46 = vpop.f32.mrf.mxu1 }
 0xd41   :  { %3520 = vrot.lane.b32.xlu1 %v3507_v46, %s11973_s11 }
 0xd42   :  { %v11119_v47 = vpop.f32.mrf.mxu1 }
 0xd6d   :  { %v2832_v48 = vpop.permute.xlu0 %2831 }
 0xd6e   :  { %v2842_v50 = vsel %vm371_vm2, %v2325_v33, %v2832_v48 }
 0xd72   :  { %v2836_v49 = vpop.permute.xlu0 %2835 }
 0xd73   :  { %v2843_v13 = vsel %vm1053_vm6, %v2842_v50, %v2836_v49 }
 0xda2   :  { %v2840_v51 = vpop.permute.xlu0 %2839 }
 0xda3   :  { %v2844_v52 = vsel %vm1055_vm7, %v2843_v13, %v2840_v51 }
 0xda4   :  { %2845 = vst.msk [vmem:[#allocation2] sm:$0x7] %vm1057_vm8, %v2844_v52 }
 0xdab   :  { %v3513_v53 = vpop.permute.xlu1 %3512 }
 0xdac   :  { %v3523_v55 = vsel %vm371_vm2, %v3006_v40, %v3513_v53 }
 0xdaf   :  { %v3517_v54 = vpop.permute.xlu1 %3516 }
 0xdb0   :  { %v3524_v56 = vsel %vm1053_vm6, %v3523_v55, %v3517_v54 }
 0xdb3   :  { %v3521_v4 = vpop.permute.xlu1 %3520 }
 0xdb4   :  { %v3525_v57 = vsel %vm1055_vm7, %v3524_v56, %v3521_v4 }
 0xdb5   :  { %3526 = vst.msk [vmem:[#allocation2 + $0x3] sm:$0x7] %vm1057_vm8, %v3525_v57 }
 0xdbc   :  { %v3527_v58 = vld [vmem:[#allocation2] sm:$0x3f] }
 0xdbd   :  { %v3528_v59 = vadd.f32 %v3527_v58, %v12368_v29 }
 0xdbf   :  { %v3529_v61 = vsel %vm1742_vm9, %v3528_v59, 0.0 }
 0xdc0   :  { %3530 = vadd.xlane.f32.xlu0 %v3529_v61 }
 0xe49   :  { %v3531_v63 = vpop.xlane.xlu0 %3530 }
 0xe4a   :  { %v3532_v6 = vmul.f32 0.0625, %v3531_v63 }
 0xe4c   :  { %v3533_v7 = vsub.f32 %v3528_v59, %v3532_v6 }
 0xe4e   :  { %v3534_v8 = vmul.f32 %v3533_v7, %v3533_v7 }
 0xe50   :  { %v3535_v2 = vsel %vm1742_vm9, %v3534_v8, 0.0 }
 0xe51   :  { %3536 = vadd.xlane.f32.xlu1 %v3535_v2 }
 0xeda   :  { %v3537_v29 = vpop.xlane.xlu1 %3536 }
 0xedb   :  { %v3538_v10 = vmul.f32 0.0625, %v3537_v29 }
 0xedd   :  { %v3539_v11 = vadd.f32 1e-05, %v3538_v10 }
 0xedf   :  { %11645 = vrsqrt.f32 %v3539_v11 }
 0xeec   :  { %v11646_v14 = vpop.eup %11645 }
 0xeed   :  { %v3541_v15 = vmul.f32 %v11646_v14, %v3533_v7 }
 0xeef   :  { %v3542_v16 = vmul.f32 %v12333_v60, %v3541_v15  ;;  %v12576_v60 = vld [vmem:[%s13489_s26] sm:$0xff] }
 0xef1   :  { %v12556_v17 = vadd.f32 %v12335_v62, %v3542_v16  ;;  %v10480_v62 = vld [vmem:[%s13466_s10 + $0x18] sm:$0xff] }
 0xef2   :  { %11128 = vmatpush3.msra.mxu1 %v10480_v62 }
 0xef3   :  { %11125 = vmatmul.mubr.msk.f32.vlgmr.msra.gmra.mxu0 %vm157_vm1, %v12556_v17  ;;  %11129 = vmatprep.subr.mxu1 %v11967_v0 }
 0xef4   :  { %11135 = vmatpush3.msra.mxu0 %v12561_v18  ;;  %11138 = vmatprep.mubr.msk.f32.mxu0 %vm11968_vm0, %v11967_v0 }
 0xef5   :  { %11136 = vmatprep.subr.mxu0 %v11967_v0  ;;  %11130 = vmatpush3.msra.mxu1 %v10479_v20 }
 0xef6   :  { %11137 = vmatpush3.msra.mxu0 %v12568_v19  ;;  %11141 = vmatprep.subr.mxu1 %v11967_v0 }
 0xef7   :  { %11139 = vmatmul.mubr.msk.f32.vlgmr.msra.gmra.mxu0 %vm157_vm1, %v12576_v60  ;;  %11148 = vmatprep.subr.mxu0 %v11967_v0 }
 0xef8   :  { %11152 = vmatprep.mubr.msk.f32.mxu0 %vm11968_vm0, %v11967_v0  ;;  %11149 = vmatpush3.msra.mxu0 %v12634_v35 }
 0xef9   :  { %11150 = vmatprep.subr.mxu0 %v11967_v0 }
 0xefa   :  { %11151 = vmatpush3.msra.mxu0 %v12636_v30 }
 0xefb   :  { %11153 = vmatmul.mubr.msk.f32.vlgmr.msra.gmra.mxu0 %vm157_vm1, %v12576_v60  ;;  %11160 = vmatprep.subr.mxu0 %v11967_v0 }
 0xefc   :  { %11162 = vmatprep.mubr.msk.f32.mxu0 %vm11968_vm0, %v11967_v0 }
 0xfb3   :  { %v3624_v1 = vpop.f32.mrf.mxu0 }
 0xfb4   :  { %v3625_v22 = vadd.f32 %v10477_v21, %v3624_v1 }
 0xfb5   :  { %v11126_v23 = vpop.f32.mrf.mxu0 }
 0xfb6   :  { %v3628_v24 = vmax.f32 %v3625_v22, 0.0 }
 0xfb7   :  { %v3799_v3 = vpop.f32.mrf.mxu0 }
 0xfb8   :  { %11132 = vmatmul.mubr.msk.f32.vlgmr.msra.gmra.mxu1 %vm157_vm1, %v3628_v24  ;;  %4109 = vrot.lane.b32.xlu1 %v3799_v3, %s11970_s0  ;;  %v4627_v28 = vrot.slane %v3799_v3, 4 }
 0xfb9   :  { %11142 = vmatpush3.msra.mxu1 %v12599_v25  ;;  %11145 = vmatprep.mubr.msk.f32.mxu1 %vm11968_vm0, %v11967_v0  ;;  %v11140_v27 = vpop.f32.mrf.mxu0 }
 0xfba   :  { %11143 = vmatprep.subr.mxu1 %v11967_v0 }
 0xfbb   :  { %11144 = vmatpush3.msra.mxu1 %v12605_v26  ;;  %v12688_v51 = vpop.f32.mrf.mxu0 }
 0xfbc   :  { %11146 = vmatmul.mubr.msk.f32.vlgmr.msra.gmra.mxu1 %vm157_vm1, %v12576_v60  ;;  %4276 = vrot.lane.b32.xlu1 %v3799_v3, %s11969_s4 }
 0xfbd   :  { %11155 = vmatprep.subr.mxu1 %v11967_v0  ;;  %11157 = vmatprep.mubr.msk.f32.mxu1 %vm11968_vm0, %v11967_v0  ;;  %v11154_v52 = vpop.f32.mrf.mxu0 }
 0xfbe   :  { %11161 = vmatpush3.msk.msra.mxu0 %vm4035_vm11, %v12688_v51 }
 0xfbf   :  { %11170 = vmatprep.subr.mxu0 %v11967_v0 }
 0xfc0   :  { %4443 = vrot.lane.b32.xlu1 %v3799_v3, %s11971_s21 }
 0xfc4   :  { %4791 = vrot.lane.b32.xlu1 %v4627_v28, %s11970_s0 }
 0xfc8   :  { %4958 = vrot.lane.b32.xlu1 %v4627_v28, %s11969_s4 }
 0xfcc   :  { %5125 = vrot.lane.b32.xlu1 %v4627_v28, %s11971_s21 }
0x102a   :  { %v4110_v36 = vpop.permute.xlu1 %4109 }
0x102e   :  { %v4277_v38 = vpop.permute.xlu1 %4276 }
0x1032   :  { %v4444_v41 = vpop.permute.xlu1 %4443 }
0x1036   :  { %v4792_v43 = vpop.permute.xlu1 %4791 }
0x103a   :  { %v4959_v45 = vpop.permute.xlu1 %4958 }
0x103e   :  { %v5126_v47 = vpop.permute.xlu1 %5125 }
0x1078   :  { %v12623_v31 = vpop.f32.mrf.mxu1 }
0x107a   :  { %v11133_v12 = vpop.f32.mrf.mxu1 }
0x107c   :  { %v3869_v32 = vpop.f32.mrf.mxu1 }
0x107d   :  { %4111 = vrot.lane.b32.xlu0 %v3869_v32, %s11970_s0  ;;  %11156 = vmatpush3.xpose.msk.msra.mxu1 %vm371_vm2, %v3869_v32  ;;  %v4628_v34 = vrot.slane %v3869_v32, 4 }
0x107e   :  { %v11147_v33 = vpop.f32.mrf.mxu1  ;;  %11165 = vmatprep.subr.mxu1 %v11967_v0 }
0x1080   :  { %11158 = vmatmul.mubr.msk.f32.vlgmr.msra.gmra.mxu1 %vm371_vm2, %v3799_v3 }
0x1081   :  { %4278 = vrot.lane.b32.xlu0 %v3869_v32, %s11969_s4  ;;  %11167 = vmatprep.mubr.msk.f32.mxu1 %vm11968_vm0, %v11967_v0 }
0x1085   :  { %4445 = vrot.lane.b32.xlu0 %v3869_v32, %s11971_s21 }
0x1089   :  { %4793 = vrot.lane.b32.xlu0 %v4628_v34, %s11970_s0 }
0x108d   :  { %4960 = vrot.lane.b32.xlu0 %v4628_v34, %s11969_s4 }
0x1091   :  { %5127 = vrot.lane.b32.xlu0 %v4628_v34, %s11971_s21 }
0x10ef   :  { %v4112_v37 = vpop.permute.xlu0 %4111 }
0x10f0   :  { %11166 = vmatpush3.xpose.msk.msra.mxu1 %vm371_vm2, %v4112_v37 }
0x10f1   :  { %11175 = vmatprep.subr.mxu1 %v11967_v0 }
0x10f3   :  { %v4279_v39 = vpop.permute.xlu0 %4278  ;;  %11168 = vmatmul.mubr.msk.f32.vlgmr.msra.gmra.mxu1 %vm371_vm2, %v4110_v36 }
0x10f4   :  { %11176 = vmatpush3.xpose.msk.msra.mxu1 %vm371_vm2, %v4279_v39  ;;  %11177 = vmatprep.mubr.msk.f32.mxu1 %vm11968_vm0, %v11967_v0 }
0x10f5   :  { %11185 = vmatprep.subr.mxu1 %v11967_v0 }
0x10f7   :  { %v4446_v40 = vpop.permute.xlu0 %4445  ;;  %11178 = vmatmul.mubr.msk.f32.vlgmr.msra.gmra.mxu1 %vm371_vm2, %v4277_v38 }
0x10f8   :  { %11186 = vmatpush3.xpose.msk.msra.mxu1 %vm371_vm2, %v4446_v40  ;;  %11187 = vmatprep.mubr.msk.f32.mxu1 %vm11968_vm0, %v11967_v0 }
0x10f9   :  { %11195 = vmatprep.subr.mxu1 %v11967_v0 }
0x10fb   :  { %v4794_v42 = vpop.permute.xlu0 %4793  ;;  %11188 = vmatmul.mubr.msk.f32.vlgmr.msra.gmra.mxu1 %vm371_vm2, %v4444_v41  ;;  %v12711_v41 = vrot.slane %v12688_v51, 4 }
0x10fc   :  { %11196 = vmatpush3.xpose.msk.msra.mxu1 %vm371_vm2, %v4628_v34  ;;  %11197 = vmatprep.mubr.msk.f32.mxu1 %vm11968_vm0, %v11967_v0 }
0x10fd   :  { %11205 = vmatprep.subr.mxu1 %v11967_v0 }
0x10ff   :  { %11198 = vmatmul.mubr.msk.f32.vlgmr.msra.gmra.mxu1 %vm371_vm2, %v4627_v28  ;;  %v4961_v44 = vpop.permute.xlu0 %4960 }
0x1100   :  { %11206 = vmatpush3.xpose.msk.msra.mxu1 %vm371_vm2, %v4794_v42  ;;  %11207 = vmatprep.mubr.msk.f32.mxu1 %vm11968_vm0, %v11967_v0 }
0x1101   :  { %11215 = vmatprep.subr.mxu1 %v11967_v0 }
0x1103   :  { %11208 = vmatmul.mubr.msk.f32.vlgmr.msra.gmra.mxu1 %vm371_vm2, %v4792_v43  ;;  %v5128_v46 = vpop.permute.xlu0 %5127 }
0x1104   :  { %11216 = vmatpush3.xpose.msk.msra.mxu1 %vm371_vm2, %v4961_v44  ;;  %11217 = vmatprep.mubr.msk.f32.mxu1 %vm11968_vm0, %v11967_v0 }
0x1105   :  { %11225 = vmatprep.subr.mxu1 %v11967_v0 }
0x1107   :  { %11218 = vmatmul.mubr.msk.f32.vlgmr.msra.gmra.mxu1 %vm371_vm2, %v4959_v45 }
0x1108   :  { %11226 = vmatpush3.xpose.msk.msra.mxu1 %vm371_vm2, %v5128_v46  ;;  %11227 = vmatprep.mubr.msk.f32.mxu1 %vm11968_vm0, %v11967_v0 }
0x1109   :  { %11235 = vmatprep.subr.mxu1 %v11967_v0 }
0x110b   :  { %11228 = vmatmul.mubr.msk.f32.vlgmr.msra.gmra.mxu1 %vm371_vm2, %v5126_v47 }
0x110c   :  { %11236 = vmatpush3.msra.mxu1 %v12599_v25  ;;  %11239 = vmatprep.mubr.msk.f32.mxu1 %vm11968_vm0, %v11967_v0 }
0x110d   :  { %11237 = vmatprep.subr.mxu1 %v11967_v0 }
0x110e   :  { %11238 = vmatpush3.msra.mxu1 %v12605_v26 }
0x110f   :  { %11249 = vmatprep.subr.mxu1 %v11967_v0 }
0x1140   :  { %v4015_v48 = vpop.f32.mrf.mxu1 }
0x1141   :  { %v4019_v49 = vmul.f32 0.5, %v4015_v48 }
0x1142   :  { %v11159_v50 = vpop.f32.mrf.mxu1 }
0x1143   :  { %v4021_v13 = vsel %vm4020_vm10, %v4019_v49, -inf }
0x1144   :  { %4022 = vmax.xlane.f32.xlu0 %v4021_v13 }
0x11b3   :  { %v4183_v53 = vpop.f32.mrf.mxu1 }
0x11b4   :  { %v4187_v54 = vmul.f32 0.5, %v4183_v53 }
0x11b5   :  { %v11169_v55 = vpop.f32.mrf.mxu1 }
0x11b6   :  { %v4188_v56 = vsel %vm4020_vm10, %v4187_v54, -inf }
0x11b7   :  { %4189 = vmax.xlane.f32.xlu1 %v4188_v56  ;;  %v4350_v4 = vpop.f32.mrf.mxu1 }
0x11b8   :  { %v4354_v57 = vmul.f32 0.5, %v4350_v4 }
0x11b9   :  { %v11179_v58 = vpop.f32.mrf.mxu1 }
0x11ba   :  { %v4355_v59 = vsel %vm4020_vm10, %v4354_v57, -inf }
0x11bb   :  { %4356 = vmax.xlane.f32.xlu0 %v4355_v59  ;;  %v4517_v61 = vpop.f32.mrf.mxu1 }
0x11bc   :  { %v4521_v63 = vmul.f32 0.5, %v4517_v61 }
0x11bd   :  { %v11189_v6 = vpop.f32.mrf.mxu1 }
0x11be   :  { %v4522_v7 = vsel %vm4020_vm10, %v4521_v63, -inf }
0x11bf   :  { %4523 = vmax.xlane.f32.xlu0 %v4522_v7  ;;  %v4699_v8 = vpop.f32.mrf.mxu1 }
0x11c0   :  { %v4703_v2 = vmul.f32 0.5, %v4699_v8 }
0x11c1   :  { %v11199_v5 = vpop.f32.mrf.mxu1 }
0x11c2   :  { %v4704_v9 = vsel %vm4020_vm10, %v4703_v2, -inf }
0x11c3   :  { %4705 = vmax.xlane.f32.xlu1 %v4704_v9  ;;  %v4865_v29 = vpop.f32.mrf.mxu1 }
0x11c4   :  { %v4869_v10 = vmul.f32 0.5, %v4865_v29 }
0x11c5   :  { %v11209_v11 = vpop.f32.mrf.mxu1 }
0x11c6   :  { %v4870_v14 = vsel %vm4020_vm10, %v4869_v10, -inf }
0x11c7   :  { %4871 = vmax.xlane.f32.xlu0 %v4870_v14  ;;  %v5032_v15 = vpop.f32.mrf.mxu1 }
0x11c8   :  { %v5036_v16 = vmul.f32 0.5, %v5032_v15 }
0x11c9   :  { %v11219_v62 = vpop.f32.mrf.mxu1 }
0x11ca   :  { %v5037_v20 = vsel %vm4020_vm10, %v5036_v16, -inf }
0x11cb   :  { %5038 = vmax.xlane.f32.xlu1 %v5037_v20  ;;  %v5199_v21 = vpop.f32.mrf.mxu1 }
0x11cc   :  { %v5203_v1 = vmul.f32 0.5, %v5199_v21 }
0x11cd   :  { %v11229_v22 = vpop.f32.mrf.mxu1  ;;  %v4023_v24 = vpop.xlane.xlu0 %4022 }
0x11ce   :  { %v5204_v23 = vsel %vm4020_vm10, %v5203_v1, -inf  ;;  %v4024_v25 = vsub.f32 %v4019_v49, %v4023_v24 }
0x11cf   :  { %5205 = vmax.xlane.f32.xlu0 %v5204_v23 }
0x11d0   :  { %v4025_v3 = vmul.f32 1.442695, %v4024_v25 }
0x11d2   :  { %11647 = vpow2.f32 %v4025_v3 }
0x11dc   :  { %4199 = vrot.lane.b32.xlu1 %v12688_v51, %s11970_s0 }
0x11df   :  { %v11648_v26 = vpop.eup %11647 }
0x11e0   :  { %v4027_v27 = vsel %vm4020_vm10, %v11648_v26, 0.0 }
0x1200   :  { %4028 = vadd.xlane.f32.xlu1 %v4027_v27 }
0x1211   :  { %4533 = vrot.lane.b32.xlu1 %v12688_v51, %s11971_s21 }
0x1240   :  { %v4190_v28 = vpop.xlane.xlu1 %4189 }
0x1241   :  { %v4191_v12 = vsub.f32 %v4187_v54, %v4190_v28 }
0x1243   :  { %v4192_v32 = vmul.f32 1.442695, %v4191_v12 }
0x1244   :  { %v4357_v33 = vpop.xlane.xlu0 %4356 }
0x1245   :  { %11649 = vpow2.f32 %v4192_v32  ;;  %v4358_v34 = vsub.f32 %v4354_v57, %v4357_v33 }
0x1247   :  { %v4359_v36 = vmul.f32 1.442695, %v4358_v34 }
0x1248   :  { %v4524_v42 = vpop.xlane.xlu0 %4523 }
0x1249   :  { %11651 = vpow2.f32 %v4359_v36  ;;  %v4525_v43 = vsub.f32 %v4521_v63, %v4524_v42 }
0x124b   :  { %v4526_v47 = vmul.f32 1.442695, %v4525_v43 }
0x124c   :  { %v4706_v44 = vpop.xlane.xlu1 %4705 }
0x124d   :  { %v4707_v46 = vsub.f32 %v4703_v2, %v4706_v44  ;;  %11653 = vpow2.f32 %v4526_v47 }
0x124f   :  { %v4708_v13 = vmul.f32 1.442695, %v4707_v46 }
0x1250   :  { %v4872_v45 = vpop.xlane.xlu0 %4871 }
0x1251   :  { %v4873_v48 = vsub.f32 %v4869_v10, %v4872_v45  ;;  %11655 = vpow2.f32 %v4708_v13 }
0x1252   :  { %v11650_v37 = vpop.eup %11649 }
0x1253   :  { %v4194_v38 = vsel %vm4020_vm10, %v11650_v37, 0.0  ;;  %v4874_v53 = vmul.f32 1.442695, %v4873_v48 }
0x1254   :  { %4195 = vadd.xlane.f32.xlu0 %v4194_v38  ;;  %v5039_v49 = vpop.xlane.xlu1 %5038 }
0x1255   :  { %v5040_v52 = vsub.f32 %v5036_v16, %v5039_v49  ;;  %11657 = vpow2.f32 %v4874_v53 }
0x1256   :  { %v12706_v39 = vpop.eup %11651 }
0x1257   :  { %v4361_v40 = vsel %vm4020_vm10, %v12706_v39, 0.0  ;;  %v5041_v55 = vmul.f32 1.442695, %v5040_v52 }
0x1258   :  { %4362 = vadd.xlane.f32.xlu1 %v4361_v40  ;;  %v5206_v50 = vpop.xlane.xlu0 %5205  ;;  %v4200_v4 = vpop.permute.xlu1 %4199 }
0x1259   :  { %v5207_v54 = vsub.f32 %v5203_v1, %v5206_v50  ;;  %11659 = vpow2.f32 %v5041_v55  ;;  %v10481_v55 = vld [vmem:[#allocation7 + $0x1] ss:$0 sm:$0xff] }
0x125b   :  { %v5208_v56 = vmul.f32 1.442695, %v5207_v54 }
0x125d   :  { %11661 = vpow2.f32 %v5208_v56  ;;  %v3710_v56 = vadd.f32 %v10481_v55, %v12623_v31 }
0x1269   :  { %4881 = vrot.lane.b32.xlu1 %v12711_v41, %s11970_s0 }
0x126a   :  { %4366 = vrot.lane.b32.xlu0 %v12688_v51, %s11969_s4  ;;  %v11654_v51 = vpop.eup %11653 }
0x126b   :  { %v11656_v57 = vpop.eup %11655  ;;  %v4528_v58 = vsel %vm4020_vm10, %v11654_v51, 0.0 }
0x126c   :  { %v12718_v59 = vpop.eup %11657  ;;  %v4710_v6 = vsel %vm4020_vm10, %v11656_v57, 0.0 }
0x126d   :  { %v12720_v63 = vpop.eup %11659  ;;  %v4876_v7 = vsel %vm4020_vm10, %v12718_v59, 0.0 }
0x126e   :  { %v12725_v8 = vpop.eup %11661  ;;  %v5043_v2 = vsel %vm4020_vm10, %v12720_v63, 0.0 }
0x126f   :  { %v5210_v5 = vsel %vm4020_vm10, %v12725_v8, 0.0 }
0x1289   :  { %v4029_v61 = vpop.xlane.xlu1 %4028  ;;  %4529 = vadd.xlane.f32.xlu0 %v4528_v58 }
0x128a   :  { %11663 = vrcp.f32 %v4029_v61 }
0x128d   :  { %4711 = vadd.xlane.f32.xlu1 %v4710_v6  ;;  %4877 = vadd.xlane.f32.xlu0 %v4876_v7  ;;  %v4534_v10 = vpop.permute.xlu1 %4533 }
0x1291   :  { %5044 = vadd.xlane.f32.xlu1 %v5043_v2  ;;  %5211 = vadd.xlane.f32.xlu0 %v5210_v5 }
0x1297   :  { %v11664_v9 = vpop.eup %11663 }
0x1298   :  { %v4031_v29 = vmul.f32 %v11664_v9, %v11648_v26 }
0x129a   :  { %11163 = vmatmul.mubr.msk.f32.vlgmr.msra.gmra.mxu0 %vm371_vm2, %v4031_v29 }
0x129b   :  { %11171 = vmatpush3.msk.msra.mxu0 %vm4035_vm11, %v4200_v4  ;;  %11172 = vmatprep.mubr.msk.f32.mxu0 %vm11968_vm0, %v11967_v0 }
0x129c   :  { %11180 = vmatprep.subr.mxu0 %v11967_v0 }
0x12a2   :  { %5215 = vrot.lane.b32.xlu1 %v12711_v41, %s11971_s21 }
0x12a7   :  { %5048 = vrot.lane.b32.xlu0 %v12711_v41, %s11969_s4 }
0x12dd   :  { %v4196_v11 = vpop.xlane.xlu0 %4195 }
0x12de   :  { %11665 = vrcp.f32 %v4196_v11 }
0x12e1   :  { %v4363_v14 = vpop.xlane.xlu1 %4362  ;;  %v4367_v62 = vpop.permute.xlu0 %4366 }
0x12e2   :  { %11667 = vrcp.f32 %v4363_v14 }
0x12e5   :  { %v4882_v1 = vpop.permute.xlu1 %4881 }
0x12eb   :  { %v11666_v15 = vpop.eup %11665 }
0x12ec   :  { %v4198_v16 = vmul.f32 %v11666_v15, %v11650_v37 }
0x12ee   :  { %11173 = vmatmul.mubr.msk.f32.vlgmr.msra.gmra.mxu0 %vm371_vm2, %v4198_v16 }
0x12ef   :  { %v11668_v20 = vpop.eup %11667  ;;  %11181 = vmatpush3.msk.msra.mxu0 %vm4035_vm11, %v4367_v62  ;;  %11182 = vmatprep.mubr.msk.f32.mxu0 %vm11968_vm0, %v11967_v0 }
0x12f0   :  { %11190 = vmatprep.subr.mxu0 %v11967_v0  ;;  %v4365_v21 = vmul.f32 %v11668_v20, %v12706_v39 }
0x12f2   :  { %11183 = vmatmul.mubr.msk.f32.vlgmr.msra.gmra.mxu0 %vm371_vm2, %v4365_v21 }
0x12f3   :  { %11191 = vmatpush3.msk.msra.mxu0 %vm4035_vm11, %v4534_v10  ;;  %11192 = vmatprep.mubr.msk.f32.mxu0 %vm11968_vm0, %v11967_v0 }
0x12f4   :  { %11200 = vmatprep.subr.mxu0 %v11967_v0 }
0x1312   :  { %v4530_v22 = vpop.xlane.xlu0 %4529 }
0x1313   :  { %11669 = vrcp.f32 %v4530_v22 }
0x1316   :  { %v4712_v23 = vpop.xlane.xlu1 %4711  ;;  %v4878_v24 = vpop.xlane.xlu0 %4877 }
0x1317   :  { %11671 = vrcp.f32 %v4712_v23 }
0x1318   :  { %11673 = vrcp.f32 %v4878_v24 }
0x131a   :  { %v5045_v25 = vpop.xlane.xlu1 %5044  ;;  %v5212_v3 = vpop.xlane.xlu0 %5211 }
0x131b   :  { %11675 = vrcp.f32 %v5045_v25 }
0x131c   :  { %11677 = vrcp.f32 %v5212_v3 }
0x131e   :  { %v5049_v36 = vpop.permute.xlu0 %5048  ;;  %v5216_v39 = vpop.permute.xlu1 %5215 }
0x1320   :  { %v11670_v26 = vpop.eup %11669 }
0x1321   :  { %v4532_v27 = vmul.f32 %v11670_v26, %v11654_v51  ;;  %v3713_v51 = vadd.f32 %v3710_v56, %v12556_v17 }
0x1323   :  { %11193 = vmatmul.mubr.msk.f32.vlgmr.msra.gmra.mxu0 %vm371_vm2, %v4532_v27  ;;  %v3714_v4 = vsel %vm1742_vm9, %v3713_v51, 0.0  ;;  %v12803_v27 = vld [vmem:[#allocation9] ss:$0 sm:$0xff] }
0x1324   :  { %v11672_v28 = vpop.eup %11671  ;;  %11201 = vmatpush3.msk.msra.mxu0 %vm4035_vm11, %v12711_v41  ;;  %11202 = vmatprep.mubr.msk.f32.mxu0 %vm11968_vm0, %v11967_v0 }
0x1325   :  { %11210 = vmatprep.subr.mxu0 %v11967_v0  ;;  %v4714_v12 = vmul.f32 %v11672_v28, %v11656_v57  ;;  %v11674_v32 = vpop.eup %11673 }
0x1326   :  { %v4880_v33 = vmul.f32 %v11674_v32, %v12718_v59 }
0x1327   :  { %11203 = vmatmul.mubr.msk.f32.vlgmr.msra.gmra.mxu0 %vm371_vm2, %v4714_v12  ;;  %v12806_v12 = vld [vmem:[#allocation10] ss:$0 sm:$0xff] }
0x1328   :  { %11211 = vmatpush3.msk.msra.mxu0 %vm4035_vm11, %v4882_v1  ;;  %11212 = vmatprep.mubr.msk.f32.mxu0 %vm11968_vm0, %v11967_v0  ;;  %v11676_v34 = vpop.eup %11675 }
0x1329   :  { %11220 = vmatprep.subr.mxu0 %v11967_v0  ;;  %v5047_v37 = vmul.f32 %v11676_v34, %v12720_v63  ;;  %v11678_v38 = vpop.eup %11677 }
0x132a   :  { %v5214_v40 = vmul.f32 %v11678_v38, %v12725_v8 }
0x132b   :  { %11213 = vmatmul.mubr.msk.f32.vlgmr.msra.gmra.mxu0 %vm371_vm2, %v4880_v33 }
0x132c   :  { %11221 = vmatpush3.msk.msra.mxu0 %vm4035_vm11, %v5049_v36  ;;  %11222 = vmatprep.mubr.msk.f32.mxu0 %vm11968_vm0, %v11967_v0 }
0x132d   :  { %11230 = vmatprep.subr.mxu0 %v11967_v0 }
0x132f   :  { %11223 = vmatmul.mubr.msk.f32.vlgmr.msra.gmra.mxu0 %vm371_vm2, %v5047_v37 }
0x1330   :  { %11231 = vmatpush3.msk.msra.mxu0 %vm4035_vm11, %v5216_v39  ;;  %11232 = vmatprep.mubr.msk.f32.mxu0 %vm11968_vm0, %v11967_v0 }
0x1331   :  { %11242 = vmatprep.subr.mxu0 %v11967_v0 }
0x1333   :  { %11233 = vmatmul.mubr.msk.f32.vlgmr.msra.gmra.mxu0 %vm371_vm2, %v5214_v40 }
0x1334   :  { %11243 = vmatpush3.msra.mxu0 %v12561_v18  ;;  %11246 = vmatprep.mubr.msk.f32.mxu0 %vm11968_vm0, %v11967_v0 }
0x1335   :  { %11244 = vmatprep.subr.mxu0 %v11967_v0 }
0x1336   :  { %11245 = vmatpush3.msra.mxu0 %v12568_v19 }
0x1337   :  { %11256 = vmatprep.subr.mxu0 %v11967_v0 }
0x135a   :  { %v4105_v41 = vpop.f32.mrf.mxu0 }
0x135c   :  { %v11164_v42 = vpop.f32.mrf.mxu0 }
0x13ae   :  { %v4272_v43 = vpop.f32.mrf.mxu0 }
0x13af   :  { %4611 = vrot.lane.b32.xlu0 %v4272_v43, %s11972_s19 }
0x13b0   :  { %v11174_v44 = vpop.f32.mrf.mxu0 }
0x13b2   :  { %v4439_v45 = vpop.f32.mrf.mxu0 }
0x13b3   :  { %4615 = vrot.lane.b32.xlu0 %v4439_v45, %s11963_s22 }
0x13b4   :  { %v11184_v46 = vpop.f32.mrf.mxu0 }
0x13e3   :  { %v4606_v18 = vpop.f32.mrf.mxu0 }
0x13e4   :  { %4619 = vrot.lane.b32.xlu0 %v4606_v18, %s11973_s11 }
0x13e5   :  { %v11194_v47 = vpop.f32.mrf.mxu0 }
0x13e7   :  { %v4787_v48 = vpop.f32.mrf.mxu0 }
0x13e9   :  { %v11204_v49 = vpop.f32.mrf.mxu0 }
0x13eb   :  { %v4954_v50 = vpop.f32.mrf.mxu0 }
0x13ec   :  { %5293 = vrot.lane.b32.xlu1 %v4954_v50, %s11972_s19 }
0x13ed   :  { %v11214_v19 = vpop.f32.mrf.mxu0 }
0x13ef   :  { %v5121_v13 = vpop.f32.mrf.mxu0 }
0x13f0   :  { %5297 = vrot.lane.b32.xlu1 %v5121_v13, %s11963_s22 }
0x13f1   :  { %v11224_v52 = vpop.f32.mrf.mxu0 }
0x13f3   :  { %v5288_v53 = vpop.f32.mrf.mxu0 }
0x13f4   :  { %5301 = vrot.lane.b32.xlu1 %v5288_v53, %s11973_s11 }
0x13f5   :  { %v11234_v54 = vpop.f32.mrf.mxu0 }
0x1403   :  { %3715 = vadd.xlane.f32.xlu0 %v3714_v4 }
0x1421   :  { %v4612_v57 = vpop.permute.xlu0 %4611 }
0x1422   :  { %v4622_v59 = vsel %vm371_vm2, %v4105_v41, %v4612_v57 }
0x1425   :  { %v4616_v58 = vpop.permute.xlu0 %4615 }
0x1426   :  { %v4623_v61 = vsel %vm1053_vm6, %v4622_v59, %v4616_v58 }
0x1456   :  { %v4620_v63 = vpop.permute.xlu0 %4619 }
0x1457   :  { %v4624_v6 = vsel %vm1055_vm7, %v4623_v61, %v4620_v63 }
0x1458   :  { %4626 = vst.msk [vmem:[#allocation3] sm:$0xf] %vm4625_vm12, %v4624_v6 }
0x145e   :  { %v5294_v7 = vpop.permute.xlu1 %5293 }
0x145f   :  { %v5304_v31 = vsel %vm371_vm2, %v4787_v48, %v5294_v7 }
0x1462   :  { %v5298_v8 = vpop.permute.xlu1 %5297 }
0x1463   :  { %v5305_v17 = vsel %vm1053_vm6, %v5304_v31, %v5298_v8 }
0x1466   :  { %v5302_v2 = vpop.permute.xlu1 %5301 }
0x1467   :  { %v5306_v5 = vsel %vm1055_vm7, %v5305_v17, %v5302_v2 }
0x1468   :  { %5307 = vst.msk [vmem:[#allocation3 + $0x4] sm:$0xf] %vm4625_vm12, %v5306_v5 }
0x146f   :  { %v5308_v9 = vld [vmem:[#allocation3] sm:$0xff] }
0x1470   :  { %v5309_v29 = vadd.f32 %v5308_v9, %v12576_v60 }
0x1472   :  { %v5310_v10 = vsel %vm157_vm1, %v5309_v29, 0.0 }
0x1473   :  { %5311 = vadd.xlane.f32.xlu1 %v5310_v10 }
0x148c   :  { %v3716_v11 = vpop.xlane.xlu0 %3715 }
0x148d   :  { %v3717_v14 = vmul.f32 0.0625, %v3716_v11 }
0x148f   :  { %v3718_v15 = vsub.f32 %v3713_v51, %v3717_v14 }
0x1491   :  { %v3719_v16 = vmul.f32 %v3718_v15, %v3718_v15 }
0x1493   :  { %v3720_v62 = vsel %vm1742_vm9, %v3719_v16, 0.0 }
0x1494   :  { %3721 = vadd.xlane.f32.xlu0 %v3720_v62 }
0x14fc   :  { %v5312_v20 = vpop.xlane.xlu1 %5311 }
0x14fd   :  { %v5313_v21 = vmul.f32 0.0625, %v5312_v20 }
0x14ff   :  { %v5314_v1 = vsub.f32 %v5309_v29, %v5313_v21 }
0x1501   :  { %v5315_v22 = vmul.f32 %v5314_v1, %v5314_v1 }
0x1503   :  { %v5316_v23 = vsel %vm157_vm1, %v5315_v22, 0.0 }
0x1504   :  { %5317 = vadd.xlane.f32.xlu0 %v5316_v23 }
0x151d   :  { %v3722_v24 = vpop.xlane.xlu0 %3721 }
0x151e   :  { %v3723_v25 = vmul.f32 0.0625, %v3722_v24 }
0x1520   :  { %v3724_v60 = vadd.f32 1e-05, %v3723_v25 }
0x1522   :  { %11679 = vrsqrt.f32 %v3724_v60 }
0x152f   :  { %v11680_v3 = vpop.eup %11679 }
0x1530   :  { %v3726_v26 = vmul.f32 %v11680_v3, %v3718_v15 }
0x1532   :  { %v3727_v28 = vmul.f32 %v12803_v27, %v3726_v26 }
0x1534   :  { %v3728_v32 = vadd.f32 %v12806_v12, %v3727_v28 }
0x1536   :  { %11247 = vmatmul.mubr.msk.f32.vlgmr.msra.gmra.mxu0 %vm157_vm1, %v3728_v32 }
0x1537   :  { %11258 = vmatprep.mubr.msk.f32.mxu0 %vm11968_vm0, %v11967_v0 }
0x158d   :  { %v5318_v33 = vpop.xlane.xlu0 %5317 }
0x158e   :  { %v5319_v34 = vmul.f32 0.0625, %v5318_v33 }
0x1590   :  { %v5320_v36 = vadd.f32 1e-05, %v5319_v34 }
0x1592   :  { %11681 = vrsqrt.f32 %v5320_v36 }
0x159f   :  { %v11682_v37 = vpop.eup %11681 }
0x15a0   :  { %v5322_v38 = vmul.f32 %v11682_v37, %v5314_v1 }
0x15a2   :  { %v5323_v39 = vmul.f32 %v12803_v27, %v5322_v38 }
0x15a4   :  { %v12814_v40 = vadd.f32 %v12806_v12, %v5323_v39 }
0x15a6   :  { %11240 = vmatmul.mubr.msk.f32.vlgmr.msra.gmra.mxu1 %vm157_vm1, %v12814_v40 }
0x15a7   :  { %11250 = vmatpush3.msra.mxu1 %v12634_v35  ;;  %11253 = vmatprep.mubr.msk.f32.mxu1 %vm11968_vm0, %v11967_v0 }
0x15a8   :  { %11251 = vmatprep.subr.mxu1 %v11967_v0 }
0x15a9   :  { %11252 = vmatpush3.msra.mxu1 %v12636_v30 }
0x15aa   :  { %11254 = vmatmul.mubr.msk.f32.vlgmr.msra.gmra.mxu1 %vm157_vm1, %v3728_v32  ;;  %11261 = vmatprep.subr.mxu1 %v11967_v0 }
0x15ab   :  { %11263 = vmatprep.mubr.msk.f32.mxu1 %vm11968_vm0, %v11967_v0 }
0x15f6   :  { %v12827_v41 = vpop.f32.mrf.mxu0 }
0x15f7   :  { %5708 = vrot.lane.b32.xlu1 %v12827_v41, %s11970_s0  ;;  %11257 = vmatpush3.xpose.msk.msra.mxu0 %vm371_vm2, %v12827_v41  ;;  %v12854_v46 = vrot.slane %v12827_v41, 3 }
0x15f8   :  { %v11248_v35 = vpop.f32.mrf.mxu0  ;;  %11266 = vmatprep.subr.mxu0 %v11967_v0 }
0x15fb   :  { %5875 = vrot.lane.b32.xlu1 %v12827_v41, %s11969_s4 }
0x1666   :  { %v5394_v30 = vpop.f32.mrf.mxu1 }
0x1667   :  { %5873 = vrot.lane.b32.xlu1 %v5394_v30, %s11969_s4  ;;  %5706 = vrot.lane.b32.xlu0 %v5394_v30, %s11970_s0  ;;  %v6223_v18 = vrot.slane %v5394_v30, 4 }
0x1668   :  { %11259 = vmatmul.mubr.msk.f32.vlgmr.msra.gmra.mxu0 %vm371_vm2, %v5394_v30  ;;  %v11241_v42 = vpop.f32.mrf.mxu1 }
0x1669   :  { %v12839_v43 = vpop.permute.xlu1 %5708  ;;  %11268 = vmatprep.mubr.msk.f32.mxu0 %vm11968_vm0, %v11967_v0 }
0x166a   :  { %v12843_v44 = vpop.f32.mrf.mxu1  ;;  %11267 = vmatpush3.xpose.msk.msra.mxu0 %vm371_vm2, %v12839_v43 }
0x166b   :  { %6040 = vrot.lane.b32.xlu1 %v5394_v30, %s11971_s21  ;;  %6042 = vrot.lane.b32.xlu0 %v12827_v41, %s11971_s21 }
0x166c   :  { %11262 = vmatpush3.msk.msra.mxu1 %vm465_vm4, %v12843_v44  ;;  %v11255_v45 = vpop.f32.mrf.mxu1  ;;  %11276 = vmatprep.subr.mxu0 %v11967_v0 }
0x166d   :  { %11271 = vmatprep.subr.mxu1 %v11967_v0  ;;  %v12866_v47 = vpop.permute.xlu1 %5875 }
0x166f   :  { %6389 = vrot.lane.b32.xlu0 %v12854_v46, %s11970_s0  ;;  %6387 = vrot.lane.b32.xlu1 %v6223_v18, %s11970_s0 }
0x1673   :  { %6556 = vrot.lane.b32.xlu0 %v12854_v46, %s11969_s4  ;;  %6554 = vrot.lane.b32.xlu1 %v6223_v18, %s11969_s4 }
0x1677   :  { %6723 = vrot.lane.b32.xlu0 %v12854_v46, %s11971_s21  ;;  %6721 = vrot.lane.b32.xlu1 %v6223_v18, %s11971_s21 }
0x16d9   :  { %v5874_v48 = vpop.permute.xlu1 %5873  ;;  %v5707_v49 = vpop.permute.xlu0 %5706 }
0x16da   :  { %11269 = vmatmul.mubr.msk.f32.vlgmr.msra.gmra.mxu0 %vm371_vm2, %v5707_v49 }
0x16db   :  { %11277 = vmatpush3.xpose.msk.msra.mxu0 %vm371_vm2, %v12866_v47  ;;  %11278 = vmatprep.mubr.msk.f32.mxu0 %vm11968_vm0, %v11967_v0 }
0x16dc   :  { %11286 = vmatprep.subr.mxu0 %v11967_v0 }
0x16dd   :  { %v12874_v50 = vpop.permute.xlu0 %6042  ;;  %v6041_v19 = vpop.permute.xlu1 %6040 }
0x16de   :  { %11279 = vmatmul.mubr.msk.f32.vlgmr.msra.gmra.mxu0 %vm371_vm2, %v5874_v48 }
0x16df   :  { %11287 = vmatpush3.xpose.msk.msra.mxu0 %vm371_vm2, %v12874_v50  ;;  %11288 = vmatprep.mubr.msk.f32.mxu0 %vm11968_vm0, %v11967_v0 }
0x16e0   :  { %11296 = vmatprep.subr.mxu0 %v11967_v0 }
0x16e1   :  { %v12882_v13 = vpop.permute.xlu0 %6389  ;;  %v6388_v52 = vpop.permute.xlu1 %6387 }
0x16e2   :  { %11289 = vmatmul.mubr.msk.f32.vlgmr.msra.gmra.mxu0 %vm371_vm2, %v6041_v19  ;;  %v12934_v19 = vrot.slane %v12843_v44, 3 }
0x16e3   :  { %11297 = vmatpush3.xpose.msk.msra.mxu0 %vm371_vm2, %v12854_v46  ;;  %11298 = vmatprep.mubr.msk.f32.mxu0 %vm11968_vm0, %v11967_v0 }
0x16e4   :  { %11306 = vmatprep.subr.mxu0 %v11967_v0 }
0x16e5   :  { %v12895_v53 = vpop.permute.xlu0 %6556  ;;  %v6555_v54 = vpop.permute.xlu1 %6554 }
0x16e6   :  { %11299 = vmatmul.mubr.msk.f32.vlgmr.msra.gmra.mxu0 %vm371_vm2, %v6223_v18 }
0x16e7   :  { %11307 = vmatpush3.xpose.msk.msra.mxu0 %vm371_vm2, %v12882_v13  ;;  %11308 = vmatprep.mubr.msk.f32.mxu0 %vm11968_vm0, %v11967_v0 }
0x16e8   :  { %11316 = vmatprep.subr.mxu0 %v11967_v0 }
0x16e9   :  { %v12904_v55 = vpop.permute.xlu0 %6723  ;;  %v6722_v56 = vpop.permute.xlu1 %6721 }
0x16ea   :  { %11309 = vmatmul.mubr.msk.f32.vlgmr.msra.gmra.mxu0 %vm371_vm2, %v6388_v52 }
0x16eb   :  { %11317 = vmatpush3.xpose.msk.msra.mxu0 %vm371_vm2, %v12895_v53  ;;  %11318 = vmatprep.mubr.msk.f32.mxu0 %vm11968_vm0, %v11967_v0 }
0x16ec   :  { %11326 = vmatprep.subr.mxu0 %v11967_v0 }
0x16ee   :  { %11319 = vmatmul.mubr.msk.f32.vlgmr.msra.gmra.mxu0 %vm371_vm2, %v6555_v54 }
0x16ef   :  { %11327 = vmatpush3.xpose.msk.msra.mxu0 %vm371_vm2, %v12904_v55  ;;  %11328 = vmatprep.mubr.msk.f32.mxu0 %vm11968_vm0, %v11967_v0 }
0x16f0   :  { %11336 = vmatprep.subr.mxu0 %v11967_v0 }
0x16f2   :  { %11329 = vmatmul.mubr.msk.f32.vlgmr.msra.gmra.mxu0 %vm371_vm2, %v6722_v56 }
0x16f3   :  { %11340 = vmatprep.mubr.msk.f32.mxu0 %vm11968_vm0, %v11967_v0 }
0x1728   :  { %v5613_v51 = vpop.f32.mrf.mxu0 }
0x1729   :  { %v5617_v4 = vmul.f32 0.5, %v5613_v51 }
0x172a   :  { %v11260_v57 = vpop.f32.mrf.mxu0 }
0x172b   :  { %v5619_v58 = vsel %vm5618_vm13, %v5617_v4, -inf }
0x172c   :  { %5620 = vmax.xlane.f32.xlu0 %v5619_v58 }
0x179a   :  { %v5780_v59 = vpop.f32.mrf.mxu0 }
0x179b   :  { %v5784_v61 = vmul.f32 0.5, %v5780_v59 }
0x179c   :  { %v11270_v63 = vpop.f32.mrf.mxu0 }
0x179d   :  { %v5785_v6 = vsel %vm5618_vm13, %v5784_v61, -inf }
0x179e   :  { %5786 = vmax.xlane.f32.xlu1 %v5785_v6  ;;  %v5947_v7 = vpop.f32.mrf.mxu0 }
0x179f   :  { %v5951_v8 = vmul.f32 0.5, %v5947_v7 }
0x17a0   :  { %v11280_v31 = vpop.f32.mrf.mxu0 }
0x17a1   :  { %v5952_v17 = vsel %vm5618_vm13, %v5951_v8, -inf }
0x17a2   :  { %5953 = vmax.xlane.f32.xlu0 %v5952_v17  ;;  %v6114_v2 = vpop.f32.mrf.mxu0 }
0x17a3   :  { %v6118_v5 = vmul.f32 0.5, %v6114_v2 }
0x17a4   :  { %v11290_v9 = vpop.f32.mrf.mxu0 }
0x17a5   :  { %v6119_v29 = vsel %vm5618_vm13, %v6118_v5, -inf }
0x17a6   :  { %6120 = vmax.xlane.f32.xlu0 %v6119_v29  ;;  %v6295_v10 = vpop.f32.mrf.mxu0 }
0x17a7   :  { %v6299_v11 = vmul.f32 0.5, %v6295_v10 }
0x17a8   :  { %v11300_v14 = vpop.f32.mrf.mxu0 }
0x17a9   :  { %v6300_v15 = vsel %vm5618_vm13, %v6299_v11, -inf }
0x17aa   :  { %6301 = vmax.xlane.f32.xlu1 %v6300_v15  ;;  %v6461_v16 = vpop.f32.mrf.mxu0 }
0x17ab   :  { %v6465_v62 = vmul.f32 0.5, %v6461_v16 }
0x17ac   :  { %v11310_v20 = vpop.f32.mrf.mxu0 }
0x17ad   :  { %v6466_v21 = vsel %vm5618_vm13, %v6465_v62, -inf }
0x17ae   :  { %6467 = vmax.xlane.f32.xlu0 %v6466_v21  ;;  %v6628_v1 = vpop.f32.mrf.mxu0 }
0x17af   :  { %v6632_v22 = vmul.f32 0.5, %v6628_v1 }
0x17b0   :  { %v11320_v23 = vpop.f32.mrf.mxu0 }
0x17b1   :  { %v6633_v24 = vsel %vm5618_vm13, %v6632_v22, -inf }
0x17b2   :  { %6634 = vmax.xlane.f32.xlu1 %v6633_v24  ;;  %v6795_v25 = vpop.f32.mrf.mxu0 }
0x17b3   :  { %v6799_v60 = vmul.f32 0.5, %v6795_v25 }
0x17b4   :  { %v11330_v3 = vpop.f32.mrf.mxu0 }
0x17b5   :  { %v6800_v26 = vsel %vm5618_vm13, %v6799_v60, -inf  ;;  %v5621_v28 = vpop.xlane.xlu0 %5620 }
0x17b6   :  { %6801 = vmax.xlane.f32.xlu0 %v6800_v26  ;;  %v5622_v32 = vsub.f32 %v5617_v4, %v5621_v28 }
0x17b8   :  { %v5623_v33 = vmul.f32 1.442695, %v5622_v32 }
0x17ba   :  { %11683 = vpow2.f32 %v5623_v33 }
0x17c3   :  { %5796 = vrot.lane.b32.xlu1 %v12843_v44, %s11970_s0 }
0x17c7   :  { %v11684_v34 = vpop.eup %11683 }
0x17c8   :  { %v5625_v36 = vsel %vm5618_vm13, %v11684_v34, 0.0 }
0x17e7   :  { %5626 = vadd.xlane.f32.xlu1 %v5625_v36 }
0x17f8   :  { %6130 = vrot.lane.b32.xlu1 %v12843_v44, %s11971_s21 }
0x1827   :  { %v5787_v37 = vpop.xlane.xlu1 %5786 }
0x1828   :  { %v5788_v38 = vsub.f32 %v5784_v61, %v5787_v37 }
0x182a   :  { %v5789_v39 = vmul.f32 1.442695, %v5788_v38 }
0x182b   :  { %v5954_v35 = vpop.xlane.xlu0 %5953 }
0x182c   :  { %11685 = vpow2.f32 %v5789_v39  ;;  %v5955_v30 = vsub.f32 %v5951_v8, %v5954_v35 }
0x182e   :  { %v5956_v42 = vmul.f32 1.442695, %v5955_v30 }
0x182f   :  { %v6121_v52 = vpop.xlane.xlu0 %6120 }
0x1830   :  { %11687 = vpow2.f32 %v5956_v42  ;;  %v6122_v54 = vsub.f32 %v6118_v5, %v6121_v52 }
0x1832   :  { %v6123_v57 = vmul.f32 1.442695, %v6122_v54 }
0x1833   :  { %v6302_v56 = vpop.xlane.xlu1 %6301 }
0x1834   :  { %v6303_v4 = vsub.f32 %v6299_v11, %v6302_v56  ;;  %11689 = vpow2.f32 %v6123_v57 }
0x1836   :  { %v6304_v63 = vmul.f32 1.442695, %v6303_v4 }
0x1837   :  { %v6468_v51 = vpop.xlane.xlu0 %6467 }
0x1838   :  { %v6469_v58 = vsub.f32 %v6465_v62, %v6468_v51  ;;  %11691 = vpow2.f32 %v6304_v63 }
0x1839   :  { %v11686_v45 = vpop.eup %11685 }
0x183a   :  { %v5791_v18 = vsel %vm5618_vm13, %v11686_v45, 0.0  ;;  %v6470_v7 = vmul.f32 1.442695, %v6469_v58 }
0x183b   :  { %5792 = vadd.xlane.f32.xlu0 %v5791_v18  ;;  %v6635_v59 = vpop.xlane.xlu1 %6634 }
0x183c   :  { %v6636_v6 = vsub.f32 %v6632_v22, %v6635_v59  ;;  %11693 = vpow2.f32 %v6470_v7 }
0x183d   :  { %v12929_v48 = vpop.eup %11687 }
0x183e   :  { %v5958_v49 = vsel %vm5618_vm13, %v12929_v48, 0.0  ;;  %v6637_v31 = vmul.f32 1.442695, %v6636_v6 }
0x183f   :  { %5959 = vadd.xlane.f32.xlu1 %v5958_v49  ;;  %v6802_v61 = vpop.xlane.xlu0 %6801  ;;  %v12940_v5 = vpop.permute.xlu1 %5796 }
0x1840   :  { %v6803_v8 = vsub.f32 %v6799_v60, %v6802_v61  ;;  %11695 = vpow2.f32 %v6637_v31 }
0x1841   :  { %v11690_v2 = vpop.eup %11689 }
0x1842   :  { %v6804_v17 = vmul.f32 1.442695, %v6803_v8  ;;  %v6125_v29 = vsel %vm5618_vm13, %v11690_v2, 0.0 }
0x1844   :  { %11697 = vpow2.f32 %v6804_v17 }
0x1845   :  { %v11692_v9 = vpop.eup %11691 }
0x1846   :  { %v6306_v16 = vsel %vm5618_vm13, %v11692_v9, 0.0 }
0x1849   :  { %v12943_v10 = vpop.eup %11693 }
0x184a   :  { %v6472_v15 = vsel %vm5618_vm13, %v12943_v10, 0.0 }
0x184d   :  { %v12945_v14 = vpop.eup %11695 }
0x184e   :  { %v6639_v21 = vsel %vm5618_vm13, %v12945_v14, 0.0 }
0x1850   :  { %6477 = vrot.lane.b32.xlu1 %v12934_v19, %s11970_s0 }
0x1851   :  { %5963 = vrot.lane.b32.xlu0 %v12843_v44, %s11969_s4  ;;  %v12950_v62 = vpop.eup %11697 }
0x1852   :  { %v6806_v20 = vsel %vm5618_vm13, %v12950_v62, 0.0 }
0x1870   :  { %6126 = vadd.xlane.f32.xlu0 %v6125_v29  ;;  %v5627_v11 = vpop.xlane.xlu1 %5626 }
0x1871   :  { %11699 = vrcp.f32 %v5627_v11 }
0x1874   :  { %6473 = vadd.xlane.f32.xlu0 %v6472_v15  ;;  %6307 = vadd.xlane.f32.xlu1 %v6306_v16  ;;  %v12966_v23 = vpop.permute.xlu1 %6130 }
0x1878   :  { %6807 = vadd.xlane.f32.xlu0 %v6806_v20  ;;  %6640 = vadd.xlane.f32.xlu1 %v6639_v21 }
0x187e   :  { %v11700_v1 = vpop.eup %11699 }
0x187f   :  { %v5629_v22 = vmul.f32 %v11700_v1, %v11684_v34 }
0x1881   :  { %11264 = vmatmul.mubr.msk.f32.vlgmr.msra.gmra.mxu1 %vm461_vm5, %v5629_v22 }
0x1882   :  { %11272 = vmatpush3.msk.msra.mxu1 %vm465_vm4, %v12940_v5  ;;  %11273 = vmatprep.mubr.msk.f32.mxu1 %vm11968_vm0, %v11967_v0 }
0x1883   :  { %11281 = vmatprep.subr.mxu1 %v11967_v0 }
0x1889   :  { %6811 = vrot.lane.b32.xlu1 %v12934_v19, %s11971_s21 }
0x188e   :  { %6644 = vrot.lane.b32.xlu0 %v12934_v19, %s11969_s4 }
0x18c4   :  { %v5793_v24 = vpop.xlane.xlu0 %5792 }
0x18c5   :  { %11701 = vrcp.f32 %v5793_v24 }
0x18c8   :  { %v5960_v25 = vpop.xlane.xlu1 %5959  ;;  %v12968_v26 = vpop.permute.xlu0 %5963 }
0x18c9   :  { %11703 = vrcp.f32 %v5960_v25 }
0x18cc   :  { %v12983_v33 = vpop.permute.xlu1 %6477 }
0x18d2   :  { %v11702_v60 = vpop.eup %11701 }
0x18d3   :  { %v5795_v3 = vmul.f32 %v11702_v60, %v11686_v45 }
0x18d5   :  { %11274 = vmatmul.mubr.msk.f32.vlgmr.msra.gmra.mxu1 %vm461_vm5, %v5795_v3 }
0x18d6   :  { %v11704_v28 = vpop.eup %11703  ;;  %11282 = vmatpush3.msk.msra.mxu1 %vm465_vm4, %v12968_v26  ;;  %11283 = vmatprep.mubr.msk.f32.mxu1 %vm11968_vm0, %v11967_v0 }
0x18d7   :  { %11291 = vmatprep.subr.mxu1 %v11967_v0  ;;  %v5962_v32 = vmul.f32 %v11704_v28, %v12929_v48 }
0x18d9   :  { %11284 = vmatmul.mubr.msk.f32.vlgmr.msra.gmra.mxu1 %vm461_vm5, %v5962_v32 }
0x18da   :  { %11292 = vmatpush3.msk.msra.mxu1 %vm465_vm4, %v12966_v23  ;;  %11293 = vmatprep.mubr.msk.f32.mxu1 %vm11968_vm0, %v11967_v0 }
0x18db   :  { %11301 = vmatprep.subr.mxu1 %v11967_v0 }
0x18f9   :  { %v6127_v34 = vpop.xlane.xlu0 %6126 }
0x18fa   :  { %11705 = vrcp.f32 %v6127_v34 }
0x18fd   :  { %v6308_v36 = vpop.xlane.xlu1 %6307  ;;  %v6474_v37 = vpop.xlane.xlu0 %6473 }
0x18fe   :  { %11707 = vrcp.f32 %v6308_v36 }
0x18ff   :  { %11709 = vrcp.f32 %v6474_v37 }
0x1901   :  { %v6641_v38 = vpop.xlane.xlu1 %6640  ;;  %v6808_v39 = vpop.xlane.xlu0 %6807 }
0x1902   :  { %11711 = vrcp.f32 %v6641_v38 }
0x1903   :  { %11713 = vrcp.f32 %v6808_v39 }
0x1905   :  { %v12998_v52 = vpop.permute.xlu0 %6644  ;;  %v13007_v51 = vpop.permute.xlu1 %6811 }
0x1907   :  { %v11706_v35 = vpop.eup %11705 }
0x1908   :  { %v6129_v30 = vmul.f32 %v11706_v35, %v11690_v2 }
0x190a   :  { %11294 = vmatmul.mubr.msk.f32.vlgmr.msra.gmra.mxu1 %vm461_vm5, %v6129_v30 }
0x190b   :  { %11302 = vmatpush3.msk.msra.mxu1 %vm465_vm4, %v12934_v19  ;;  %11303 = vmatprep.mubr.msk.f32.mxu1 %vm11968_vm0, %v11967_v0  ;;  %v11708_v42 = vpop.eup %11707 }
0x190c   :  { %11311 = vmatprep.subr.mxu1 %v11967_v0  ;;  %v6310_v45 = vmul.f32 %v11708_v42, %v11692_v9  ;;  %v11710_v18 = vpop.eup %11709  ;;  %v6922_v42 = vld [vmem:[%s13468_s12 + $0x8] sm:$0xff] }
0x190d   :  { %v6476_v48 = vmul.f32 %v11710_v18, %v12943_v10  ;;  %11337 = vmatpush3.msra.mxu0 %v6922_v42 }
0x190e   :  { %11304 = vmatmul.mubr.msk.f32.vlgmr.msra.gmra.mxu1 %vm461_vm5, %v6310_v45  ;;  %v6921_v45 = vld [vmem:[%s13468_s12] sm:$0xff]  ;;  %11338 = vmatprep.subr.mxu0 %v11967_v0 }
0x190f   :  { %11312 = vmatpush3.msk.msra.mxu1 %vm465_vm4, %v12983_v33  ;;  %11313 = vmatprep.mubr.msk.f32.mxu1 %vm11968_vm0, %v11967_v0  ;;  %v11712_v49 = vpop.eup %11711 }
0x1910   :  { %11321 = vmatprep.subr.mxu1 %v11967_v0  ;;  %v6643_v54 = vmul.f32 %v11712_v49, %v12945_v14  ;;  %v11714_v56 = vpop.eup %11713  ;;  %11339 = vmatpush3.msra.mxu0 %v6921_v45 }
0x1911   :  { %v6810_v4 = vmul.f32 %v11714_v56, %v12950_v62  ;;  %11350 = vmatprep.subr.mxu0 %v11967_v0 }
0x1912   :  { %11314 = vmatmul.mubr.msk.f32.vlgmr.msra.gmra.mxu1 %vm461_vm5, %v6476_v48 }
0x1913   :  { %11322 = vmatpush3.msk.msra.mxu1 %vm465_vm4, %v12998_v52  ;;  %11323 = vmatprep.mubr.msk.f32.mxu1 %vm11968_vm0, %v11967_v0 }
0x1914   :  { %11331 = vmatprep.subr.mxu1 %v11967_v0 }
0x1916   :  { %11324 = vmatmul.mubr.msk.f32.vlgmr.msra.gmra.mxu1 %vm461_vm5, %v6643_v54 }
0x1917   :  { %11332 = vmatpush3.msk.msra.mxu1 %vm465_vm4, %v13007_v51  ;;  %11333 = vmatprep.mubr.msk.f32.mxu1 %vm11968_vm0, %v11967_v0 }
0x1918   :  { %11343 = vmatprep.subr.mxu1 %v11967_v0 }
0x191a   :  { %11334 = vmatmul.mubr.msk.f32.vlgmr.msra.gmra.mxu1 %vm461_vm5, %v6810_v4 }
0x191b   :  { %11347 = vmatprep.mubr.msk.f32.mxu1 %vm11968_vm0, %v11967_v0 }
0x1941   :  { %v5702_v57 = vpop.f32.mrf.mxu1 }
0x1943   :  { %v11265_v58 = vpop.f32.mrf.mxu1 }
0x1944   :  { %v11800_v58 = vld [vmem:[%s13461_s5] sm:$0xff] }
0x1995   :  { %v5869_v59 = vpop.f32.mrf.mxu1 }
0x1996   :  { %6208 = vrot.lane.b32.xlu0 %v5869_v59, %s11972_s19  ;;  %v7005_v59 = vld [vmem:[%s13470_s14 + $0x8] sm:$0xff] }
0x1997   :  { %v11275_v61 = vpop.f32.mrf.mxu1  ;;  %11344 = vmatpush3.msra.mxu1 %v7005_v59 }
0x1998   :  { %v7004_v61 = vld [vmem:[%s13470_s14] sm:$0xff]  ;;  %11345 = vmatprep.subr.mxu1 %v11967_v0 }
0x1999   :  { %v6036_v63 = vpop.f32.mrf.mxu1  ;;  %11346 = vmatpush3.msra.mxu1 %v7004_v61 }
0x199a   :  { %6212 = vrot.lane.b32.xlu0 %v6036_v63, %s11963_s22  ;;  %11357 = vmatprep.subr.mxu1 %v11967_v0  ;;  %v10553_v63 = vld [vmem:[%s13469_s13] ss:$0 sm:$0xff] }
0x199b   :  { %v11285_v6 = vpop.f32.mrf.mxu1 }
0x19ca   :  { %v6203_v7 = vpop.f32.mrf.mxu1 }
0x19cb   :  { %6216 = vrot.lane.b32.xlu0 %v6203_v7, %s11973_s11 }
0x19cc   :  { %v11295_v8 = vpop.f32.mrf.mxu1 }
0x19ce   :  { %v6383_v31 = vpop.f32.mrf.mxu1 }
0x19d0   :  { %v11305_v17 = vpop.f32.mrf.mxu1 }
0x19d1   :  { %v13072_v17 = vld [vmem:[%s13462_s6 + $0x8] sm:$0xff] }
0x19d2   :  { %v6550_v2 = vpop.f32.mrf.mxu1 }
0x19d3   :  { %6889 = vrot.lane.b32.xlu1 %v6550_v2, %s11972_s19  ;;  %v13081_v2 = vld [vmem:[%s13462_s6] sm:$0xff] }
0x19d4   :  { %v11315_v9 = vpop.f32.mrf.mxu1 }
0x19d5   :  { %v10555_v9 = vld [vmem:[%s13471_s15] ss:$0 sm:$0xff] }
0x19d6   :  { %v6717_v29 = vpop.f32.mrf.mxu1 }
0x19d7   :  { %6893 = vrot.lane.b32.xlu1 %v6717_v29, %s11963_s22 }
0x19d8   :  { %v11325_v10 = vpop.f32.mrf.mxu1 }
0x19da   :  { %v6884_v11 = vpop.f32.mrf.mxu1 }
0x19db   :  { %6897 = vrot.lane.b32.xlu1 %v6884_v11, %s11973_s11 }
0x19dc   :  { %v11335_v14 = vpop.f32.mrf.mxu1 }
0x1a08   :  { %v6209_v15 = vpop.permute.xlu0 %6208 }
0x1a09   :  { %v6219_v62 = vsel %vm371_vm2, %v5702_v57, %v6209_v15  ;;  %v11799_v57 = vld [vmem:[%s13461_s5 + $0x8] sm:$0xff] }
0x1a0c   :  { %v6213_v16 = vpop.permute.xlu0 %6212 }
0x1a0d   :  { %v6220_v20 = vsel %vm1053_vm6, %v6219_v62, %v6213_v16 }
0x1a3d   :  { %v6217_v21 = vpop.permute.xlu0 %6216 }
0x1a3e   :  { %v6221_v1 = vsel %vm1055_vm7, %v6220_v20, %v6217_v21 }
0x1a3f   :  { %6222 = vst.msk [vmem:[#allocation3] sm:$0xf] %vm4625_vm12, %v6221_v1 }
0x1a45   :  { %v6890_v22 = vpop.permute.xlu1 %6889 }
0x1a46   :  { %v6900_v25 = vsel %vm371_vm2, %v6383_v31, %v6890_v22 }
0x1a49   :  { %v6894_v24 = vpop.permute.xlu1 %6893 }
0x1a4a   :  { %v6901_v60 = vsel %vm1053_vm6, %v6900_v25, %v6894_v24 }
0x1a4d   :  { %v6898_v3 = vpop.permute.xlu1 %6897 }
0x1a4e   :  { %v6902_v28 = vsel %vm1055_vm7, %v6901_v60, %v6898_v3 }
0x1a4f   :  { %6903 = vst.msk [vmem:[#allocation3 + $0x4] sm:$0xf] %vm4625_vm12, %v6902_v28 }
0x1a56   :  { %v6904_v32 = vld [vmem:[#allocation3] sm:$0xff] }
0x1a57   :  { %v6905_v34 = vadd.f32 %v6904_v32, %v12814_v40 }
0x1a59   :  { %v6906_v36 = vsel %vm157_vm1, %v6905_v34, 0.0 }
0x1a5a   :  { %6907 = vadd.xlane.f32.xlu0 %v6906_v36 }
0x1ae3   :  { %v6908_v37 = vpop.xlane.xlu0 %6907 }
0x1ae4   :  { %v6909_v38 = vmul.f32 0.0625, %v6908_v37 }
0x1ae6   :  { %v6910_v39 = vsub.f32 %v6905_v34, %v6909_v38  ;;  %v11803_v34 = vld [vmem:[#allocation4 + $0x8] sm:$0xff] }
0x1ae8   :  { %v6911_v35 = vmul.f32 %v6910_v39, %v6910_v39 }
0x1aea   :  { %v6912_v30 = vsel %vm157_vm1, %v6911_v35, 0.0 }
0x1aeb   :  { %6913 = vadd.xlane.f32.xlu1 %v6912_v30 }
0x1b74   :  { %v6914_v40 = vpop.xlane.xlu1 %6913 }
0x1b75   :  { %v6915_v18 = vmul.f32 0.0625, %v6914_v40 }
0x1b77   :  { %v6916_v48 = vadd.f32 1e-05, %v6915_v18 }
0x1b79   :  { %11715 = vrsqrt.f32 %v6916_v48 }
0x1b86   :  { %v11716_v49 = vpop.eup %11715 }
0x1b87   :  { %v6918_v54 = vmul.f32 %v11716_v49, %v6910_v39 }
0x1b89   :  { %v6919_v56 = vmul.f32 %v12803_v27, %v6918_v54 }
0x1b8b   :  { %v6920_v4 = vadd.f32 %v12806_v12, %v6919_v56 }
0x1b8d   :  { %11341 = vmatmul.mubr.msk.f32.vlgmr.msra.gmra.mxu0 %vm157_vm1, %v6920_v4 }
0x1b8e   :  { %11351 = vmatpush3.msra.mxu0 %v11799_v57  ;;  %11354 = vmatprep.mubr.msk.f32.mxu0 %vm11968_vm0, %v11967_v0 }
0x1b8f   :  { %11352 = vmatprep.subr.mxu0 %v11967_v0 }
0x1b90   :  { %11353 = vmatpush3.msra.mxu0 %v11800_v58 }
0x1b91   :  { %11364 = vmatprep.subr.mxu0 %v11967_v0 }
0x1c4d   :  { %v6999_v6 = vpop.f32.mrf.mxu0 }
0x1c4e   :  { %v7000_v7 = vadd.f32 %v10553_v63, %v6999_v6 }
0x1c4f   :  { %v11342_v8 = vpop.f32.mrf.mxu0 }
0x1c50   :  { %v7003_v31 = vmax.f32 %v7000_v7, 0.0 }
0x1c52   :  { %11348 = vmatmul.mubr.msk.f32.vlgmr.msra.gmra.mxu1 %vm157_vm1, %v7003_v31 }
0x1c53   :  { %11358 = vmatpush3.msra.mxu1 %v13072_v17  ;;  %11361 = vmatprep.mubr.msk.f32.mxu1 %vm11968_vm0, %v11967_v0 }
0x1c54   :  { %11359 = vmatprep.subr.mxu1 %v11967_v0 }
0x1c55   :  { %11360 = vmatpush3.msra.mxu1 %v13081_v2 }
0x1c56   :  { %11371 = vmatprep.subr.mxu1 %v11967_v0 }
0x1d12   :  { %v7082_v29 = vpop.f32.mrf.mxu1 }
0x1d13   :  { %v7083_v10 = vadd.f32 %v10555_v9, %v7082_v29 }
0x1d14   :  { %v11349_v11 = vpop.f32.mrf.mxu1 }
0x1d15   :  { %v7086_v14 = vadd.f32 %v7083_v10, %v6920_v4 }
0x1d17   :  { %v7087_v15 = vsel %vm157_vm1, %v7086_v14, 0.0 }
0x1d18   :  { %7088 = vadd.xlane.f32.xlu0 %v7087_v15 }
0x1da1   :  { %v7089_v16 = vpop.xlane.xlu0 %7088 }
0x1da2   :  { %v7090_v62 = vmul.f32 0.0625, %v7089_v16 }
0x1da4   :  { %v7091_v20 = vsub.f32 %v7086_v14, %v7090_v62 }
0x1da6   :  { %v7092_v21 = vmul.f32 %v7091_v20, %v7091_v20 }
0x1da8   :  { %v7093_v1 = vsel %vm157_vm1, %v7092_v21, 0.0 }
0x1da9   :  { %7094 = vadd.xlane.f32.xlu0 %v7093_v1 }
0x1e32   :  { %v7095_v22 = vpop.xlane.xlu0 %7094 }
0x1e33   :  { %v7096_v24 = vmul.f32 0.0625, %v7095_v22 }
0x1e35   :  { %v7097_v25 = vadd.f32 1e-05, %v7096_v24 }
0x1e37   :  { %11717 = vrsqrt.f32 %v7097_v25 }
0x1e44   :  { %v11718_v60 = vpop.eup %11717 }
0x1e45   :  { %v7099_v3 = vmul.f32 %v11718_v60, %v7091_v20 }
0x1e47   :  { %v7100_v28 = vmul.f32 %v12803_v27, %v7099_v3  ;;  %v11804_v27 = vld [vmem:[#allocation4] sm:$0xff] }
0x1e49   :  { %v13092_v32 = vadd.f32 %v12806_v12, %v7100_v28 }
0x1e4b   :  { %11355 = vmatmul.mubr.msk.f32.vlgmr.msra.gmra.mxu0 %vm157_vm1, %v13092_v32  ;;  %11362 = vmatmul.mubr.msk.f32.vlgmr.msra.gmra.mxu1 %vm157_vm1, %v13092_v32 }
0x1e4c   :  { %11365 = vmatpush3.msra.mxu0 %v11803_v34  ;;  %11368 = vmatprep.mubr.msk.f32.mxu0 %vm11968_vm0, %v11967_v0 }
0x1e4d   :  { %11366 = vmatprep.subr.mxu0 %v11967_v0  ;;  %11373 = vmatprep.mubr.msk.f32.mxu1 %vm11968_vm0, %v11967_v0 }
0x1e4e   :  { %11367 = vmatpush3.msra.mxu0 %v11804_v27 }
0x1e4f   :  { %11369 = vmatmul.mubr.msk.f32.vlgmr.msra.gmra.mxu0 %vm157_vm1, %v13092_v32  ;;  %11376 = vmatprep.subr.mxu0 %v11967_v0 }
0x1e50   :  { %11378 = vmatprep.mubr.msk.f32.mxu0 %vm11968_vm0, %v11967_v0 }
0x1f0b   :  { %v7171_v12 = vpop.f32.mrf.mxu0  ;;  %v7241_v36 = vpop.f32.mrf.mxu1 }
0x1f0c   :  { %7479 = vrot.lane.b32.xlu0 %v7171_v12, %s11970_s0  ;;  %7481 = vrot.lane.b32.xlu1 %v7241_v36, %s11970_s0  ;;  %v7997_v30 = vrot.slane %v7241_v36, 4  ;;  %v7996_v42 = vrot.slane %v7171_v12, 4 }
0x1f0d   :  { %11372 = vmatpush3.xpose.msk.msra.mxu1 %vm371_vm2, %v7241_v36  ;;  %v11356_v37 = vpop.f32.mrf.mxu0  ;;  %v11363_v38 = vpop.f32.mrf.mxu1 }
0x1f0e   :  { %11381 = vmatprep.subr.mxu1 %v11967_v0 }
0x1f0f   :  { %v13112_v39 = vpop.f32.mrf.mxu0 }
0x1f10   :  { %11374 = vmatmul.mubr.msk.f32.vlgmr.msra.gmra.mxu1 %vm371_vm2, %v7171_v12  ;;  %11377 = vmatpush3.msk.msra.mxu0 %vm4035_vm11, %v13112_v39 }
0x1f11   :  { %7815 = vrot.lane.b32.xlu0 %v7241_v36, %s11971_s21  ;;  %7648 = vrot.lane.b32.xlu1 %v7241_v36, %s11969_s4  ;;  %v11370_v35 = vpop.f32.mrf.mxu0 }
0x1f12   :  { %11383 = vmatprep.mubr.msk.f32.mxu1 %vm11968_vm0, %v11967_v0  ;;  %11386 = vmatprep.subr.mxu0 %v11967_v0 }
0x1f15   :  { %7646 = vrot.lane.b32.xlu1 %v7171_v12, %s11969_s4  ;;  %8162 = vrot.lane.b32.xlu0 %v7997_v30, %s11970_s0 }
0x1f19   :  { %7813 = vrot.lane.b32.xlu1 %v7171_v12, %s11971_s21  ;;  %8329 = vrot.lane.b32.xlu0 %v7997_v30, %s11969_s4 }
0x1f1d   :  { %8160 = vrot.lane.b32.xlu1 %v7996_v42, %s11970_s0  ;;  %8496 = vrot.lane.b32.xlu0 %v7997_v30, %s11971_s21 }
0x1f21   :  { %8327 = vrot.lane.b32.xlu1 %v7996_v42, %s11969_s4 }
0x1f25   :  { %8494 = vrot.lane.b32.xlu1 %v7996_v42, %s11971_s21 }
0x1f7e   :  { %v7482_v45 = vpop.permute.xlu1 %7481  ;;  %v7480_v40 = vpop.permute.xlu0 %7479 }
0x1f7f   :  { %11382 = vmatpush3.xpose.msk.msra.mxu1 %vm371_vm2, %v7482_v45 }
0x1f80   :  { %11391 = vmatprep.subr.mxu1 %v11967_v0 }
0x1f82   :  { %11384 = vmatmul.mubr.msk.f32.vlgmr.msra.gmra.mxu1 %vm371_vm2, %v7480_v40 }
0x1f83   :  { %v7649_v18 = vpop.permute.xlu1 %7648  ;;  %11393 = vmatprep.mubr.msk.f32.mxu1 %vm11968_vm0, %v11967_v0  ;;  %v7816_v48 = vpop.permute.xlu0 %7815 }
0x1f84   :  { %11392 = vmatpush3.xpose.msk.msra.mxu1 %vm371_vm2, %v7649_v18 }
0x1f85   :  { %11401 = vmatprep.subr.mxu1 %v11967_v0 }
0x1f87   :  { %v7647_v49 = vpop.permute.xlu1 %7646  ;;  %v8163_v56 = vpop.permute.xlu0 %8162 }
0x1f88   :  { %11394 = vmatmul.mubr.msk.f32.vlgmr.msra.gmra.mxu1 %vm371_vm2, %v7647_v49 }
0x1f89   :  { %11402 = vmatpush3.xpose.msk.msra.mxu1 %vm371_vm2, %v7816_v48  ;;  %11403 = vmatprep.mubr.msk.f32.mxu1 %vm11968_vm0, %v11967_v0 }
0x1f8a   :  { %11411 = vmatprep.subr.mxu1 %v11967_v0 }
0x1f8b   :  { %v7814_v54 = vpop.permute.xlu1 %7813  ;;  %v8330_v57 = vpop.permute.xlu0 %8329 }
0x1f8c   :  { %11404 = vmatmul.mubr.msk.f32.vlgmr.msra.gmra.mxu1 %vm371_vm2, %v7814_v54 }
0x1f8d   :  { %11412 = vmatpush3.xpose.msk.msra.mxu1 %vm371_vm2, %v7997_v30  ;;  %11413 = vmatprep.mubr.msk.f32.mxu1 %vm11968_vm0, %v11967_v0 }
0x1f8e   :  { %11421 = vmatprep.subr.mxu1 %v11967_v0 }
0x1f8f   :  { %v8161_v4 = vpop.permute.xlu1 %8160  ;;  %v8497_v59 = vpop.permute.xlu0 %8496 }
0x1f90   :  { %11414 = vmatmul.mubr.msk.f32.vlgmr.msra.gmra.mxu1 %vm371_vm2, %v7996_v42 }
0x1f91   :  { %11422 = vmatpush3.xpose.msk.msra.mxu1 %vm371_vm2, %v8163_v56  ;;  %11423 = vmatprep.mubr.msk.f32.mxu1 %vm11968_vm0, %v11967_v0 }
0x1f92   :  { %11431 = vmatprep.subr.mxu1 %v11967_v0 }
0x1f93   :  { %v8328_v58 = vpop.permute.xlu1 %8327 }
0x1f94   :  { %11424 = vmatmul.mubr.msk.f32.vlgmr.msra.gmra.mxu1 %vm371_vm2, %v8161_v4 }
0x1f95   :  { %11432 = vmatpush3.xpose.msk.msra.mxu1 %vm371_vm2, %v8330_v57  ;;  %11433 = vmatprep.mubr.msk.f32.mxu1 %vm11968_vm0, %v11967_v0 }
0x1f96   :  { %11441 = vmatprep.subr.mxu1 %v11967_v0 }
0x1f97   :  { %v8495_v61 = vpop.permute.xlu1 %8494 }
0x1f98   :  { %11434 = vmatmul.mubr.msk.f32.vlgmr.msra.gmra.mxu1 %vm371_vm2, %v8328_v58 }
0x1f99   :  { %11442 = vmatpush3.xpose.msk.msra.mxu1 %vm371_vm2, %v8497_v59  ;;  %11443 = vmatprep.mubr.msk.f32.mxu1 %vm11968_vm0, %v11967_v0 }
0x1f9a   :  { %11451 = vmatprep.subr.mxu1 %v11967_v0 }
0x1f9c   :  { %11444 = vmatmul.mubr.msk.f32.vlgmr.msra.gmra.mxu1 %vm371_vm2, %v8495_v61 }
0x1f9d   :  { %11452 = vmatpush3.msra.mxu1 %v13072_v17  ;;  %11455 = vmatprep.mubr.msk.f32.mxu1 %vm11968_vm0, %v11967_v0 }
0x1f9e   :  { %11453 = vmatprep.subr.mxu1 %v11967_v0 }
0x1f9f   :  { %11454 = vmatpush3.msra.mxu1 %v13081_v2 }
0x1fa0   :  { %11463 = vmatprep.subr.mxu1 %v11967_v0 }
0x1fd0   :  { %v7387_v63 = vpop.f32.mrf.mxu1 }
0x1fd1   :  { %v7391_v6 = vmul.f32 0.5, %v7387_v63 }
0x1fd2   :  { %v11375_v7 = vpop.f32.mrf.mxu1 }
0x1fd3   :  { %v7392_v8 = vsel %vm4020_vm10, %v7391_v6, -inf  ;;  %v13188_v7 = vrot.slane %v13112_v39, 4 }
0x1fd4   :  { %7393 = vmax.xlane.f32.xlu0 %v7392_v8 }
0x2042   :  { %v7553_v31 = vpop.f32.mrf.mxu1 }
0x2043   :  { %v7557_v9 = vmul.f32 0.5, %v7553_v31 }
0x2044   :  { %v11385_v29 = vpop.f32.mrf.mxu1 }
0x2045   :  { %v7558_v17 = vsel %vm4020_vm10, %v7557_v9, -inf }
0x2046   :  { %7559 = vmax.xlane.f32.xlu1 %v7558_v17 }
0x2048   :  { %v7720_v10 = vpop.f32.mrf.mxu1 }
0x2049   :  { %v7724_v11 = vmul.f32 0.5, %v7720_v10 }
0x204a   :  { %v11395_v14 = vpop.f32.mrf.mxu1 }
0x204b   :  { %v7725_v15 = vsel %vm4020_vm10, %v7724_v11, -inf }
0x204c   :  { %7726 = vmax.xlane.f32.xlu0 %v7725_v15  ;;  %v7887_v2 = vpop.f32.mrf.mxu1 }
0x204d   :  { %v7891_v16 = vmul.f32 0.5, %v7887_v2 }
0x204e   :  { %v11405_v62 = vpop.f32.mrf.mxu1 }
0x204f   :  { %v7892_v20 = vsel %vm4020_vm10, %v7891_v16, -inf }
0x2050   :  { %7893 = vmax.xlane.f32.xlu0 %v7892_v20  ;;  %v8068_v21 = vpop.f32.mrf.mxu1 }
0x2051   :  { %v8072_v1 = vmul.f32 0.5, %v8068_v21 }
0x2052   :  { %v11415_v22 = vpop.f32.mrf.mxu1 }
0x2053   :  { %v8073_v24 = vsel %vm4020_vm10, %v8072_v1, -inf }
0x2054   :  { %8074 = vmax.xlane.f32.xlu1 %v8073_v24  ;;  %v8234_v25 = vpop.f32.mrf.mxu1 }
0x2055   :  { %v8238_v60 = vmul.f32 0.5, %v8234_v25 }
0x2056   :  { %v11425_v3 = vpop.f32.mrf.mxu1 }
0x2057   :  { %v8239_v28 = vsel %vm4020_vm10, %v8238_v60, -inf }
0x2058   :  { %8240 = vmax.xlane.f32.xlu0 %v8239_v28  ;;  %v8401_v34 = vpop.f32.mrf.mxu1 }
0x2059   :  { %v8405_v27 = vmul.f32 0.5, %v8401_v34 }
0x205a   :  { %v11435_v12 = vpop.f32.mrf.mxu1 }
0x205b   :  { %v8406_v36 = vsel %vm4020_vm10, %v8405_v27, -inf }
0x205c   :  { %8407 = vmax.xlane.f32.xlu1 %v8406_v36  ;;  %v8568_v37 = vpop.f32.mrf.mxu1 }
0x205d   :  { %v8572_v38 = vmul.f32 0.5, %v8568_v37  ;;  %v7394_v42 = vpop.xlane.xlu0 %7393 }
0x205e   :  { %v11445_v35 = vpop.f32.mrf.mxu1  ;;  %v7395_v45 = vsub.f32 %v7391_v6, %v7394_v42 }
0x205f   :  { %v8573_v30 = vsel %vm4020_vm10, %v8572_v38, -inf }
0x2060   :  { %8574 = vmax.xlane.f32.xlu0 %v8573_v30  ;;  %v7396_v40 = vmul.f32 1.442695, %v7395_v45 }
0x2062   :  { %11719 = vpow2.f32 %v7396_v40 }
0x206d   :  { %7569 = vrot.lane.b32.xlu1 %v13112_v39, %s11970_s0 }
0x206f   :  { %v11720_v18 = vpop.eup %11719 }
0x2070   :  { %v7398_v48 = vsel %vm4020_vm10, %v11720_v18, 0.0 }
0x2091   :  { %7399 = vadd.xlane.f32.xlu1 %v7398_v48 }
0x20a2   :  { %7903 = vrot.lane.b32.xlu1 %v13112_v39, %s11971_s21 }
0x20cf   :  { %v7560_v49 = vpop.xlane.xlu1 %7559 }
0x20d0   :  { %v7561_v54 = vsub.f32 %v7557_v9, %v7560_v49 }
0x20d2   :  { %v7562_v56 = vmul.f32 1.442695, %v7561_v54 }
0x20d4   :  { %11721 = vpow2.f32 %v7562_v56 }
0x20d5   :  { %v7727_v4 = vpop.xlane.xlu0 %7726 }
0x20d6   :  { %v7728_v57 = vsub.f32 %v7724_v11, %v7727_v4 }
0x20d8   :  { %v7729_v58 = vmul.f32 1.442695, %v7728_v57 }
0x20d9   :  { %v7894_v8 = vpop.xlane.xlu0 %7893 }
0x20da   :  { %11723 = vpow2.f32 %v7729_v58  ;;  %v7895_v31 = vsub.f32 %v7891_v16, %v7894_v8 }
0x20dc   :  { %v7896_v17 = vmul.f32 1.442695, %v7895_v31 }
0x20dd   :  { %v8075_v29 = vpop.xlane.xlu1 %8074 }
0x20de   :  { %v8076_v14 = vsub.f32 %v8072_v1, %v8075_v29  ;;  %11725 = vpow2.f32 %v7896_v17 }
0x20e0   :  { %v8077_v20 = vmul.f32 1.442695, %v8076_v14 }
0x20e1   :  { %v11722_v59 = vpop.eup %11721  ;;  %v8241_v9 = vpop.xlane.xlu0 %8240 }
0x20e2   :  { %v7564_v61 = vsel %vm4020_vm10, %v11722_v59, 0.0  ;;  %v8242_v10 = vsub.f32 %v8238_v60, %v8241_v9 }
0x20e3   :  { %7565 = vadd.xlane.f32.xlu0 %v7564_v61 }
0x20e4   :  { %v8243_v2 = vmul.f32 1.442695, %v8242_v10 }
0x20e5   :  { %v8408_v15 = vpop.xlane.xlu1 %8407 }
0x20e6   :  { %v8409_v21 = vsub.f32 %v8405_v27, %v8408_v15  ;;  %11727 = vpow2.f32 %v8243_v2 }
0x20e7   :  { %v13183_v63 = vpop.eup %11723  ;;  %11729 = vpow2.f32 %v8077_v20 }
0x20e8   :  { %v7731_v6 = vsel %vm4020_vm10, %v13183_v63, 0.0 }
0x20e9   :  { %7732 = vadd.xlane.f32.xlu1 %v7731_v6  ;;  %v8575_v11 = vpop.xlane.xlu0 %8574  ;;  %v7570_v16 = vpop.permute.xlu1 %7569 }
0x20ea   :  { %v8576_v62 = vsub.f32 %v8572_v38, %v8575_v11 }
0x20eb   :  { %v11726_v24 = vpop.eup %11725 }
0x20ec   :  { %v8577_v22 = vmul.f32 1.442695, %v8576_v62  ;;  %v7898_v25 = vsel %vm4020_vm10, %v11726_v24, 0.0 }
0x20ee   :  { %11731 = vpow2.f32 %v8577_v22 }
0x20f3   :  { %v13195_v3 = vpop.eup %11727 }
0x20f4   :  { %v11730_v1 = vpop.eup %11729  ;;  %v8245_v28 = vsel %vm4020_vm10, %v13195_v3, 0.0 }
0x20f5   :  { %v8079_v27 = vsel %vm4020_vm10, %v11730_v1, 0.0 }
0x20f9   :  { %7736 = vrot.lane.b32.xlu0 %v13112_v39, %s11969_s4  ;;  %v8410_v39 = vmul.f32 1.442695, %v8409_v21 }
0x20fa   :  { %8250 = vrot.lane.b32.xlu1 %v13188_v7, %s11970_s0 }
0x20fb   :  { %11733 = vpow2.f32 %v8410_v39  ;;  %v13199_v34 = vpop.eup %11731 }
0x20fc   :  { %v8579_v36 = vsel %vm4020_vm10, %v13199_v34, 0.0 }
0x2108   :  { %v13202_v12 = vpop.eup %11733 }
0x2109   :  { %v8412_v37 = vsel %vm4020_vm10, %v13202_v12, 0.0 }
0x2118   :  { %7899 = vadd.xlane.f32.xlu0 %v7898_v25 }
0x211a   :  { %v7400_v60 = vpop.xlane.xlu1 %7399 }
0x211b   :  { %11735 = vrcp.f32 %v7400_v60 }
0x211c   :  { %8246 = vadd.xlane.f32.xlu0 %v8245_v28 }
0x211e   :  { %8080 = vadd.xlane.f32.xlu1 %v8079_v27  ;;  %v7904_v42 = vpop.permute.xlu1 %7903 }
0x2120   :  { %8580 = vadd.xlane.f32.xlu0 %v8579_v36 }
0x2122   :  { %8413 = vadd.xlane.f32.xlu1 %v8412_v37 }
0x2128   :  { %v11736_v38 = vpop.eup %11735 }
0x2129   :  { %v7402_v35 = vmul.f32 %v11736_v38, %v11720_v18 }
0x212b   :  { %11379 = vmatmul.mubr.msk.f32.vlgmr.msra.gmra.mxu0 %vm371_vm2, %v7402_v35 }
0x212c   :  { %11387 = vmatpush3.msk.msra.mxu0 %vm4035_vm11, %v7570_v16  ;;  %11388 = vmatprep.mubr.msk.f32.mxu0 %vm11968_vm0, %v11967_v0 }
0x212d   :  { %11396 = vmatprep.subr.mxu0 %v11967_v0 }
0x2133   :  { %8584 = vrot.lane.b32.xlu1 %v13188_v7, %s11971_s21 }
0x2136   :  { %8417 = vrot.lane.b32.xlu0 %v13188_v7, %s11969_s4 }
0x216c   :  { %v7566_v30 = vpop.xlane.xlu0 %7565 }
0x216d   :  { %11737 = vrcp.f32 %v7566_v30 }
0x2170   :  { %v7737_v48 = vpop.permute.xlu0 %7736 }
0x2172   :  { %v7733_v45 = vpop.xlane.xlu1 %7732 }
0x2173   :  { %11739 = vrcp.f32 %v7733_v45 }
0x2176   :  { %v8251_v4 = vpop.permute.xlu1 %8250 }
0x217a   :  { %v11738_v40 = vpop.eup %11737 }
0x217b   :  { %v7568_v18 = vmul.f32 %v11738_v40, %v11722_v59 }
0x217d   :  { %11389 = vmatmul.mubr.msk.f32.vlgmr.msra.gmra.mxu0 %vm371_vm2, %v7568_v18 }
0x217e   :  { %11397 = vmatpush3.msk.msra.mxu0 %vm4035_vm11, %v7737_v48  ;;  %11398 = vmatprep.mubr.msk.f32.mxu0 %vm11968_vm0, %v11967_v0 }
0x217f   :  { %11406 = vmatprep.subr.mxu0 %v11967_v0 }
0x2180   :  { %v11740_v49 = vpop.eup %11739 }
0x2181   :  { %v7735_v54 = vmul.f32 %v11740_v49, %v13183_v63 }
0x2183   :  { %11399 = vmatmul.mubr.msk.f32.vlgmr.msra.gmra.mxu0 %vm371_vm2, %v7735_v54 }
0x2184   :  { %11407 = vmatpush3.msk.msra.mxu0 %vm4035_vm11, %v7904_v42  ;;  %11408 = vmatprep.mubr.msk.f32.mxu0 %vm11968_vm0, %v11967_v0 }
0x2185   :  { %11416 = vmatprep.subr.mxu0 %v11967_v0 }
0x21a1   :  { %v7900_v56 = vpop.xlane.xlu0 %7899 }
0x21a2   :  { %11741 = vrcp.f32 %v7900_v56 }
0x21a5   :  { %v8247_v57 = vpop.xlane.xlu0 %8246 }
0x21a7   :  { %v8081_v58 = vpop.xlane.xlu1 %8080 }
0x21a8   :  { %11743 = vrcp.f32 %v8081_v58 }
0x21a9   :  { %11745 = vrcp.f32 %v8247_v57  ;;  %v8581_v63 = vpop.xlane.xlu0 %8580 }
0x21ab   :  { %v8414_v59 = vpop.xlane.xlu1 %8413 }
0x21ac   :  { %11747 = vrcp.f32 %v8414_v59 }
0x21ad   :  { %11749 = vrcp.f32 %v8581_v63  ;;  %v8418_v17 = vpop.permute.xlu0 %8417 }
0x21af   :  { %v11742_v61 = vpop.eup %11741  ;;  %v8585_v14 = vpop.permute.xlu1 %8584 }
0x21b0   :  { %v7902_v6 = vmul.f32 %v11742_v61, %v11726_v24 }
0x21b2   :  { %11409 = vmatmul.mubr.msk.f32.vlgmr.msra.gmra.mxu0 %vm371_vm2, %v7902_v6 }
0x21b3   :  { %11417 = vmatpush3.msk.msra.mxu0 %vm4035_vm11, %v13188_v7  ;;  %11418 = vmatprep.mubr.msk.f32.mxu0 %vm11968_vm0, %v11967_v0 }
0x21b4   :  { %11426 = vmatprep.subr.mxu0 %v11967_v0 }
0x21b5   :  { %v11744_v8 = vpop.eup %11743 }
0x21b6   :  { %v8083_v31 = vmul.f32 %v11744_v8, %v11730_v1  ;;  %v11746_v9 = vpop.eup %11745 }
0x21b7   :  { %v8249_v29 = vmul.f32 %v11746_v9, %v13195_v3 }
0x21b8   :  { %11419 = vmatmul.mubr.msk.f32.vlgmr.msra.gmra.mxu0 %vm371_vm2, %v8083_v31 }
0x21b9   :  { %11427 = vmatpush3.msk.msra.mxu0 %vm4035_vm11, %v8251_v4  ;;  %11428 = vmatprep.mubr.msk.f32.mxu0 %vm11968_vm0, %v11967_v0  ;;  %v11748_v7 = vpop.eup %11747 }
0x21ba   :  { %11436 = vmatprep.subr.mxu0 %v11967_v0  ;;  %v8416_v10 = vmul.f32 %v11748_v7, %v13202_v12  ;;  %v11750_v11 = vpop.eup %11749  ;;  %v13275_v7 = vld [vmem:[#allocation9] ss:$0 sm:$0xff] }
0x21bb   :  { %v8583_v15 = vmul.f32 %v11750_v11, %v13199_v34 }
0x21bc   :  { %11429 = vmatmul.mubr.msk.f32.vlgmr.msra.gmra.mxu0 %vm371_vm2, %v8249_v29 }
0x21bd   :  { %11437 = vmatpush3.msk.msra.mxu0 %vm4035_vm11, %v8418_v17  ;;  %11438 = vmatprep.mubr.msk.f32.mxu0 %vm11968_vm0, %v11967_v0  ;;  %v13278_v17 = vld [vmem:[#allocation10] ss:$0 sm:$0xff] }
0x21be   :  { %11446 = vmatprep.subr.mxu0 %v11967_v0 }
0x21c0   :  { %11439 = vmatmul.mubr.msk.f32.vlgmr.msra.gmra.mxu0 %vm371_vm2, %v8416_v10 }
0x21c1   :  { %11447 = vmatpush3.msk.msra.mxu0 %vm4035_vm11, %v8585_v14  ;;  %11448 = vmatprep.mubr.msk.f32.mxu0 %vm11968_vm0, %v11967_v0 }
0x21c2   :  { %11458 = vmatprep.subr.mxu0 %v11967_v0 }
0x21c4   :  { %11449 = vmatmul.mubr.msk.f32.vlgmr.msra.gmra.mxu0 %vm371_vm2, %v8583_v15 }
0x21c5   :  { %11459 = vmatpush3.xpose.msk.msra.mxu0 %vm371_vm2, %v12827_v41  ;;  %11460 = vmatprep.mubr.msk.f32.mxu0 %vm11968_vm0, %v11967_v0 }
0x21c6   :  { %11468 = vmatprep.subr.mxu0 %v11967_v0 }
0x21eb   :  { %v7475_v2 = vpop.f32.mrf.mxu0 }
0x21ed   :  { %v11380_v62 = vpop.f32.mrf.mxu0 }
0x223d   :  { %v7642_v20 = vpop.f32.mrf.mxu0 }
0x223e   :  { %7981 = vrot.lane.b32.xlu0 %v7642_v20, %s11972_s19 }
0x223f   :  { %v11390_v21 = vpop.f32.mrf.mxu0 }
0x2243   :  { %v7809_v22 = vpop.f32.mrf.mxu0 }
0x2244   :  { %7985 = vrot.lane.b32.xlu0 %v7809_v22, %s11963_s22 }
0x2245   :  { %v11400_v39 = vpop.f32.mrf.mxu0 }
0x2272   :  { %v7976_v24 = vpop.f32.mrf.mxu0 }
0x2273   :  { %7989 = vrot.lane.b32.xlu0 %v7976_v24, %s11973_s11 }
0x2274   :  { %v11410_v16 = vpop.f32.mrf.mxu0 }
0x2278   :  { %v8156_v41 = vpop.f32.mrf.mxu0 }
0x227a   :  { %v11420_v25 = vpop.f32.mrf.mxu0 }
0x227c   :  { %v8323_v3 = vpop.f32.mrf.mxu0 }
0x227d   :  { %8662 = vrot.lane.b32.xlu1 %v8323_v3, %s11972_s19 }
0x227e   :  { %v11430_v1 = vpop.f32.mrf.mxu0 }
0x2280   :  { %v8490_v60 = vpop.f32.mrf.mxu0 }
0x2281   :  { %8666 = vrot.lane.b32.xlu1 %v8490_v60, %s11963_s22 }
0x2282   :  { %v11440_v28 = vpop.f32.mrf.mxu0 }
0x2284   :  { %v8657_v34 = vpop.f32.mrf.mxu0 }
0x2285   :  { %8670 = vrot.lane.b32.xlu1 %v8657_v34, %s11973_s11 }
0x2286   :  { %v11450_v27 = vpop.f32.mrf.mxu0 }
0x22b0   :  { %v7982_v12 = vpop.permute.xlu0 %7981 }
0x22b1   :  { %v7992_v37 = vsel %vm371_vm2, %v7475_v2, %v7982_v12 }
0x22b6   :  { %v7986_v36 = vpop.permute.xlu0 %7985 }
0x22b7   :  { %v7993_v38 = vsel %vm1053_vm6, %v7992_v37, %v7986_v36 }
0x22e5   :  { %v7990_v35 = vpop.permute.xlu0 %7989 }
0x22e6   :  { %v7994_v30 = vsel %vm1055_vm7, %v7993_v38, %v7990_v35 }
0x22e7   :  { %7995 = vst.msk [vmem:[#allocation3] sm:$0xf] %vm4625_vm12, %v7994_v30 }
0x22ef   :  { %v8663_v42 = vpop.permute.xlu1 %8662 }
0x22f0   :  { %v8673_v40 = vsel %vm371_vm2, %v8156_v41, %v8663_v42 }
0x22f3   :  { %v8667_v45 = vpop.permute.xlu1 %8666 }
0x22f4   :  { %v8674_v18 = vsel %vm1053_vm6, %v8673_v40, %v8667_v45 }
0x22f7   :  { %v8671_v48 = vpop.permute.xlu1 %8670 }
0x22f8   :  { %v8675_v49 = vsel %vm1055_vm7, %v8674_v18, %v8671_v48 }
0x22f9   :  { %8676 = vst.msk [vmem:[#allocation3 + $0x4] sm:$0xf] %vm4625_vm12, %v8675_v49 }
0x2300   :  { %v8677_v54 = vld [vmem:[#allocation3] sm:$0xff] }
0x2301   :  { %v8678_v56 = vadd.f32 %v8677_v54, %v13092_v32 }
0x2303   :  { %v8679_v4 = vsel %vm157_vm1, %v8678_v56, 0.0 }
0x2304   :  { %8680 = vadd.xlane.f32.xlu0 %v8679_v4 }
0x238d   :  { %v8681_v57 = vpop.xlane.xlu0 %8680 }
0x238e   :  { %v8682_v58 = vmul.f32 0.0625, %v8681_v57 }
0x2390   :  { %v8683_v59 = vsub.f32 %v8678_v56, %v8682_v58 }
0x2392   :  { %v8684_v61 = vmul.f32 %v8683_v59, %v8683_v59 }
0x2394   :  { %v8685_v63 = vsel %vm157_vm1, %v8684_v61, 0.0 }
0x2395   :  { %8686 = vadd.xlane.f32.xlu1 %v8685_v63 }
0x241e   :  { %v8687_v6 = vpop.xlane.xlu1 %8686 }
0x241f   :  { %v8688_v8 = vmul.f32 0.0625, %v8687_v6 }
0x2421   :  { %v8689_v31 = vadd.f32 1e-05, %v8688_v8 }
0x2423   :  { %11751 = vrsqrt.f32 %v8689_v31 }
0x2430   :  { %v11752_v9 = vpop.eup %11751 }
0x2431   :  { %v8691_v29 = vmul.f32 %v11752_v9, %v8683_v59 }
0x2433   :  { %v8692_v32 = vmul.f32 %v13275_v7, %v8691_v29 }
0x2435   :  { %v13281_v10 = vadd.f32 %v13278_v17, %v8692_v32 }
0x2437   :  { %11456 = vmatmul.mubr.msk.f32.vlgmr.msra.gmra.mxu1 %vm157_vm1, %v13281_v10 }
0x2438   :  { %11464 = vmatpush3.msk.msra.mxu1 %vm465_vm4, %v12843_v44  ;;  %11465 = vmatprep.mubr.msk.f32.mxu1 %vm11968_vm0, %v11967_v0 }
0x2439   :  { %11473 = vmatprep.subr.mxu1 %v11967_v0 }
0x24f7   :  { %v8763_v11 = vpop.f32.mrf.mxu1 }
0x24f8   :  { %9084 = vrot.lane.b32.xlu1 %v8763_v11, %s11969_s4  ;;  %8925 = vrot.lane.b32.xlu0 %v8763_v11, %s11970_s0  ;;  %v9418_v15 = vrot.slane %v8763_v11, 4 }
0x24f9   :  { %11461 = vmatmul.mubr.msk.f32.vlgmr.msra.gmra.mxu0 %vm371_vm2, %v8763_v11  ;;  %v11457_v14 = vpop.f32.mrf.mxu1 }
0x24fa   :  { %11469 = vmatpush3.xpose.msk.msra.mxu0 %vm371_vm2, %v12839_v43  ;;  %11470 = vmatprep.mubr.msk.f32.mxu0 %vm11968_vm0, %v11967_v0 }
0x24fb   :  { %11478 = vmatprep.subr.mxu0 %v11967_v0 }
0x24fc   :  { %9243 = vrot.lane.b32.xlu0 %v8763_v11, %s11971_s21  ;;  %9576 = vrot.lane.b32.xlu1 %v9418_v15, %s11970_s0 }
0x2500   :  { %9735 = vrot.lane.b32.xlu0 %v9418_v15, %s11969_s4  ;;  %9894 = vrot.lane.b32.xlu1 %v9418_v15, %s11971_s21 }
0x256a   :  { %v8926_v44 = vpop.permute.xlu0 %8925  ;;  %v9085_v43 = vpop.permute.xlu1 %9084 }
0x256b   :  { %11471 = vmatmul.mubr.msk.f32.vlgmr.msra.gmra.mxu0 %vm371_vm2, %v8926_v44 }
0x256c   :  { %11479 = vmatpush3.xpose.msk.msra.mxu0 %vm371_vm2, %v12866_v47  ;;  %11480 = vmatprep.mubr.msk.f32.mxu0 %vm11968_vm0, %v11967_v0 }
0x256d   :  { %11488 = vmatprep.subr.mxu0 %v11967_v0 }
0x256e   :  { %v9244_v2 = vpop.permute.xlu0 %9243  ;;  %v9577_v47 = vpop.permute.xlu1 %9576 }
0x256f   :  { %11481 = vmatmul.mubr.msk.f32.vlgmr.msra.gmra.mxu0 %vm371_vm2, %v9085_v43 }
0x2570   :  { %11489 = vmatpush3.xpose.msk.msra.mxu0 %vm371_vm2, %v12874_v50  ;;  %11490 = vmatprep.mubr.msk.f32.mxu0 %vm11968_vm0, %v11967_v0 }
0x2571   :  { %11498 = vmatprep.subr.mxu0 %v11967_v0 }
0x2572   :  { %v9895_v50 = vpop.permute.xlu1 %9894 }
0x2573   :  { %11491 = vmatmul.mubr.msk.f32.vlgmr.msra.gmra.mxu0 %vm371_vm2, %v9244_v2 }
0x2574   :  { %11499 = vmatpush3.xpose.msk.msra.mxu0 %vm371_vm2, %v12854_v46  ;;  %11500 = vmatprep.mubr.msk.f32.mxu0 %vm11968_vm0, %v11967_v0  ;;  %v9736_v46 = vpop.permute.xlu0 %9735 }
0x2575   :  { %11508 = vmatprep.subr.mxu0 %v11967_v0 }
0x2577   :  { %11501 = vmatmul.mubr.msk.f32.vlgmr.msra.gmra.mxu0 %vm371_vm2, %v9418_v15 }
0x2578   :  { %11509 = vmatpush3.xpose.msk.msra.mxu0 %vm371_vm2, %v12882_v13  ;;  %11510 = vmatprep.mubr.msk.f32.mxu0 %vm11968_vm0, %v11967_v0 }
0x2579   :  { %11518 = vmatprep.subr.mxu0 %v11967_v0 }
0x257b   :  { %11511 = vmatmul.mubr.msk.f32.vlgmr.msra.gmra.mxu0 %vm371_vm2, %v9577_v47 }
0x257c   :  { %11519 = vmatpush3.xpose.msk.msra.mxu0 %vm371_vm2, %v12895_v53  ;;  %11520 = vmatprep.mubr.msk.f32.mxu0 %vm11968_vm0, %v11967_v0 }
0x257d   :  { %11528 = vmatprep.subr.mxu0 %v11967_v0 }
0x257f   :  { %11521 = vmatmul.mubr.msk.f32.vlgmr.msra.gmra.mxu0 %vm371_vm2, %v9736_v46 }
0x2580   :  { %11529 = vmatpush3.xpose.msk.msra.mxu0 %vm371_vm2, %v12904_v55  ;;  %11530 = vmatprep.mubr.msk.f32.mxu0 %vm11968_vm0, %v11967_v0 }
0x2581   :  { %11538 = vmatprep.subr.mxu0 %v11967_v0 }
0x2583   :  { %11531 = vmatmul.mubr.msk.f32.vlgmr.msra.gmra.mxu0 %vm371_vm2, %v9895_v50 }
0x2584   :  { %11542 = vmatprep.mubr.msk.f32.mxu0 %vm11968_vm0, %v11967_v0 }
0x25b9   :  { %v8836_v13 = vpop.f32.mrf.mxu0 }
0x25ba   :  { %v8840_v53 = vmul.f32 0.5, %v8836_v13 }
0x25bb   :  { %v11462_v62 = vpop.f32.mrf.mxu0 }
0x25bc   :  { %v8841_v20 = vsel %vm5618_vm13, %v8840_v53, -inf }
0x25bd   :  { %8842 = vmax.xlane.f32.xlu0 %v8841_v20 }
0x262b   :  { %v8995_v21 = vpop.f32.mrf.mxu0 }
0x262c   :  { %v8999_v22 = vmul.f32 0.5, %v8995_v21 }
0x262d   :  { %v11472_v55 = vpop.f32.mrf.mxu0 }
0x262e   :  { %v9000_v39 = vsel %vm5618_vm13, %v8999_v22, -inf }
0x262f   :  { %9001 = vmax.xlane.f32.xlu1 %v9000_v39  ;;  %v9154_v24 = vpop.f32.mrf.mxu0 }
0x2630   :  { %v9158_v16 = vmul.f32 0.5, %v9154_v24 }
0x2631   :  { %v11482_v41 = vpop.f32.mrf.mxu0 }
0x2632   :  { %v9159_v25 = vsel %vm5618_vm13, %v9158_v16, -inf }
0x2633   :  { %9160 = vmax.xlane.f32.xlu0 %v9159_v25  ;;  %v9313_v3 = vpop.f32.mrf.mxu0 }
0x2634   :  { %v9317_v1 = vmul.f32 0.5, %v9313_v3 }
0x2635   :  { %v11492_v60 = vpop.f32.mrf.mxu0 }
0x2636   :  { %v9318_v28 = vsel %vm5618_vm13, %v9317_v1, -inf }
0x2637   :  { %9319 = vmax.xlane.f32.xlu0 %v9318_v28  ;;  %v9487_v34 = vpop.f32.mrf.mxu0 }
0x2638   :  { %v9491_v27 = vmul.f32 0.5, %v9487_v34 }
0x2639   :  { %v11502_v12 = vpop.f32.mrf.mxu0 }
0x263a   :  { %v9492_v36 = vsel %vm5618_vm13, %v9491_v27, -inf }
0x263b   :  { %9493 = vmax.xlane.f32.xlu1 %v9492_v36  ;;  %v9646_v37 = vpop.f32.mrf.mxu0 }
0x263c   :  { %v9650_v38 = vmul.f32 0.5, %v9646_v37 }
0x263d   :  { %v11512_v35 = vpop.f32.mrf.mxu0 }
0x263e   :  { %v9651_v30 = vsel %vm5618_vm13, %v9650_v38, -inf }
0x263f   :  { %9652 = vmax.xlane.f32.xlu0 %v9651_v30  ;;  %v9805_v42 = vpop.f32.mrf.mxu0 }
0x2640   :  { %v9809_v45 = vmul.f32 0.5, %v9805_v42 }
0x2641   :  { %v11522_v40 = vpop.f32.mrf.mxu0 }
0x2642   :  { %v9810_v18 = vsel %vm5618_vm13, %v9809_v45, -inf }
0x2643   :  { %9811 = vmax.xlane.f32.xlu1 %v9810_v18  ;;  %v9964_v48 = vpop.f32.mrf.mxu0 }
0x2644   :  { %v9968_v49 = vmul.f32 0.5, %v9964_v48 }
0x2645   :  { %v11532_v54 = vpop.f32.mrf.mxu0 }
0x2646   :  { %v8843_v56 = vpop.xlane.xlu0 %8842  ;;  %v9969_v4 = vsel %vm5618_vm13, %v9968_v49, -inf }
0x2647   :  { %v8844_v57 = vsub.f32 %v8840_v53, %v8843_v56  ;;  %9970 = vmax.xlane.f32.xlu0 %v9969_v4 }
0x2649   :  { %v8845_v58 = vmul.f32 1.442695, %v8844_v57 }
0x264b   :  { %11753 = vpow2.f32 %v8845_v58 }
0x2658   :  { %v11754_v59 = vpop.eup %11753 }
0x2659   :  { %v8847_v61 = vsel %vm5618_vm13, %v11754_v59, 0.0 }
0x265a   :  { %8848 = vadd.xlane.f32.xlu1 %v8847_v61 }
0x26b8   :  { %v9002_v63 = vpop.xlane.xlu1 %9001 }
0x26b9   :  { %v9003_v6 = vsub.f32 %v8999_v22, %v9002_v63 }
0x26bb   :  { %v9004_v8 = vmul.f32 1.442695, %v9003_v6 }
0x26bc   :  { %v9161_v31 = vpop.xlane.xlu0 %9160 }
0x26bd   :  { %11755 = vpow2.f32 %v9004_v8  ;;  %v9162_v9 = vsub.f32 %v9158_v16, %v9161_v31 }
0x26bf   :  { %v9163_v29 = vmul.f32 1.442695, %v9162_v9 }
0x26c0   :  { %v9320_v32 = vpop.xlane.xlu0 %9319 }
0x26c1   :  { %11757 = vpow2.f32 %v9163_v29  ;;  %v9321_v11 = vsub.f32 %v9317_v1, %v9320_v32 }
0x26c3   :  { %v9322_v14 = vmul.f32 1.442695, %v9321_v11 }
0x26c4   :  { %v9494_v15 = vpop.xlane.xlu1 %9493 }
0x26c5   :  { %11759 = vpow2.f32 %v9322_v14  ;;  %v9495_v44 = vsub.f32 %v9491_v27, %v9494_v15 }
0x26c7   :  { %v9496_v43 = vmul.f32 1.442695, %v9495_v44 }
0x26c8   :  { %v9653_v2 = vpop.xlane.xlu0 %9652 }
0x26c9   :  { %11761 = vpow2.f32 %v9496_v43  ;;  %v9654_v47 = vsub.f32 %v9650_v38, %v9653_v2 }
0x26ca   :  { %v11756_v46 = vpop.eup %11755 }
0x26cb   :  { %v9655_v50 = vmul.f32 1.442695, %v9654_v47  ;;  %v9006_v13 = vsel %vm5618_vm13, %v11756_v46, 0.0 }
0x26cc   :  { %v9812_v53 = vpop.xlane.xlu1 %9811  ;;  %9007 = vadd.xlane.f32.xlu0 %v9006_v13 }
0x26cd   :  { %11763 = vpow2.f32 %v9655_v50  ;;  %v9813_v62 = vsub.f32 %v9809_v45, %v9812_v53 }
0x26ce   :  { %v11758_v20 = vpop.eup %11757 }
0x26cf   :  { %v9814_v21 = vmul.f32 1.442695, %v9813_v62  ;;  %v9165_v22 = vsel %vm5618_vm13, %v11758_v20, 0.0 }
0x26d0   :  { %9166 = vadd.xlane.f32.xlu1 %v9165_v22  ;;  %v9971_v55 = vpop.xlane.xlu0 %9970 }
0x26d1   :  { %11765 = vpow2.f32 %v9814_v21  ;;  %v9972_v39 = vsub.f32 %v9968_v49, %v9971_v55 }
0x26d2   :  { %v11760_v24 = vpop.eup %11759 }
0x26d3   :  { %v9973_v16 = vmul.f32 1.442695, %v9972_v39  ;;  %v9324_v41 = vsel %vm5618_vm13, %v11760_v24, 0.0 }
0x26d4   :  { %9325 = vadd.xlane.f32.xlu0 %v9324_v41 }
0x26d5   :  { %11767 = vpow2.f32 %v9973_v16 }
0x26d6   :  { %v11762_v25 = vpop.eup %11761 }
0x26d7   :  { %v9498_v3 = vsel %vm5618_vm13, %v11762_v25, 0.0 }
0x26d8   :  { %9499 = vadd.xlane.f32.xlu1 %v9498_v3 }
0x26da   :  { %v11764_v1 = vpop.eup %11763 }
0x26db   :  { %v9657_v60 = vsel %vm5618_vm13, %v11764_v1, 0.0 }
0x26dc   :  { %9658 = vadd.xlane.f32.xlu0 %v9657_v60 }
0x26de   :  { %v11766_v28 = vpop.eup %11765 }
0x26df   :  { %v9816_v34 = vsel %vm5618_vm13, %v11766_v28, 0.0 }
0x26e0   :  { %9817 = vadd.xlane.f32.xlu1 %v9816_v34 }
0x26e2   :  { %v11768_v27 = vpop.eup %11767 }
0x26e3   :  { %v8849_v12 = vpop.xlane.xlu1 %8848  ;;  %v9975_v36 = vsel %vm5618_vm13, %v11768_v27, 0.0 }
0x26e4   :  { %11769 = vrcp.f32 %v8849_v12  ;;  %9976 = vadd.xlane.f32.xlu0 %v9975_v36  ;;  %v10626_v36 = vld [vmem:[%s13468_s12 + $0x18] sm:$0xff] }
0x26e5   :  { %11539 = vmatpush3.msra.mxu0 %v10626_v36 }
0x26e6   :  { %11540 = vmatprep.subr.mxu0 %v11967_v0 }
0x26f1   :  { %v11770_v37 = vpop.eup %11769 }
0x26f2   :  { %v8851_v38 = vmul.f32 %v11770_v37, %v11754_v59  ;;  %v10625_v37 = vld [vmem:[%s13468_s12 + $0x10] sm:$0xff] }
0x26f3   :  { %11541 = vmatpush3.msra.mxu0 %v10625_v37 }
0x26f4   :  { %11466 = vmatmul.mubr.msk.f32.vlgmr.msra.gmra.mxu1 %vm461_vm5, %v8851_v38  ;;  %11552 = vmatprep.subr.mxu0 %v11967_v0 }
0x26f5   :  { %11474 = vmatpush3.msk.msra.mxu1 %vm465_vm4, %v12940_v5  ;;  %11475 = vmatprep.mubr.msk.f32.mxu1 %vm11968_vm0, %v11967_v0 }
0x26f6   :  { %11483 = vmatprep.subr.mxu1 %v11967_v0 }
0x2755   :  { %v9008_v35 = vpop.xlane.xlu0 %9007 }
0x2756   :  { %11771 = vrcp.f32 %v9008_v35 }
0x2759   :  { %v9167_v30 = vpop.xlane.xlu1 %9166 }
0x275a   :  { %11773 = vrcp.f32 %v9167_v30 }
0x275d   :  { %v9326_v42 = vpop.xlane.xlu0 %9325 }
0x275e   :  { %11775 = vrcp.f32 %v9326_v42 }
0x2761   :  { %v9500_v45 = vpop.xlane.xlu1 %9499 }
0x2762   :  { %11777 = vrcp.f32 %v9500_v45 }
0x2763   :  { %v11772_v40 = vpop.eup %11771 }
0x2764   :  { %v9010_v18 = vmul.f32 %v11772_v40, %v11756_v46 }
0x2765   :  { %v9659_v48 = vpop.xlane.xlu0 %9658 }
0x2766   :  { %11779 = vrcp.f32 %v9659_v48  ;;  %11476 = vmatmul.mubr.msk.f32.vlgmr.msra.gmra.mxu1 %vm461_vm5, %v9010_v18  ;;  %v10631_v18 = vld [vmem:[%s13470_s14 + $0x18] sm:$0xff]  ;;  %v10630_v48 = vld [vmem:[%s13470_s14 + $0x10] sm:$0xff] }
0x2767   :  { %v11774_v5 = vpop.eup %11773  ;;  %11484 = vmatpush3.msk.msra.mxu1 %vm465_vm4, %v12968_v26  ;;  %11485 = vmatprep.mubr.msk.f32.mxu1 %vm11968_vm0, %v11967_v0 }
0x2768   :  { %11493 = vmatprep.subr.mxu1 %v11967_v0  ;;  %v9169_v49 = vmul.f32 %v11774_v5, %v11758_v20  ;;  %v10628_v5 = vld [vmem:[%s13469_s13 + $0x1] ss:$0 sm:$0xff]  ;;  %s11974_s13 = smov [#allocation15]  }
0x2769   :  { %v9818_v54 = vpop.xlane.xlu1 %9817  ;;  %s10386_s14 = sshll.u32 %s11974_s13, 4  ;;  %s10387_s14 = int_to_ptr.vmem [resolvable:$true] %s10386_s14 }
0x276a   :  { %11781 = vrcp.f32 %v9818_v54  ;;  %11486 = vmatmul.mubr.msk.f32.vlgmr.msra.gmra.mxu1 %vm461_vm5, %v9169_v49  ;;  %p11932_p3 = scmp.lt.s32.totalorder %s10387_s14, %s10387_s14 }
0x276b   :  { %v11776_v56 = vpop.eup %11775  ;;  %11494 = vmatpush3.msk.msra.mxu1 %vm465_vm4, %v12966_v23  ;;  %11495 = vmatprep.mubr.msk.f32.mxu1 %vm11968_vm0, %v11967_v0 }
0x276c   :  { %11503 = vmatprep.subr.mxu1 %v11967_v0  ;;  %v9328_v26 = vmul.f32 %v11776_v56, %v11760_v24 }
0x276d   :  { %v9977_v4 = vpop.xlane.xlu0 %9976 }
0x276e   :  { %11783 = vrcp.f32 %v9977_v4  ;;  %11496 = vmatmul.mubr.msk.f32.vlgmr.msra.gmra.mxu1 %vm461_vm5, %v9328_v26  ;;  %v10633_v4 = vld [vmem:[%s13471_s15 + $0x1] ss:$0 sm:$0xff]  ;;  %s11927_s15 = scalar_lea.vmem %s10387_s14, 128 }
0x276f   :  { %v11778_v57 = vpop.eup %11777  ;;  %11504 = vmatpush3.msk.msra.mxu1 %vm465_vm4, %v12934_v19  ;;  %11505 = vmatprep.mubr.msk.f32.mxu1 %vm11968_vm0, %v11967_v0  ;;  %p11928_p2 = scmp.ne.s32.totalorder %s10387_s14, %s11927_s15  ;;  %p11933_p4 = scmp.lt.s32.totalorder %s11927_s15, %s11927_s15 }
0x2770   :  { %11513 = vmatprep.subr.mxu1 %v11967_v0  ;;  %v9502_v23 = vmul.f32 %v11778_v57, %v11762_v25 }
0x2771   :  { %p11934_p5 = por %p11933_p4, %p11932_p3 }
0x2772   :  { %11506 = vmatmul.mubr.msk.f32.vlgmr.msra.gmra.mxu1 %vm461_vm5, %v9502_v23 }
0x2773   :  { %v11780_v58 = vpop.eup %11779  ;;  %11514 = vmatpush3.msk.msra.mxu1 %vm465_vm4, %v12983_v33  ;;  %11515 = vmatprep.mubr.msk.f32.mxu1 %vm11968_vm0, %v11967_v0  ;;  %p11935_p6 = pnand %p11934_p5, %p11928_p2 }
0x2774   :  { %v9661_v59 = vmul.f32 %v11780_v58, %v11764_v1  ;;  %11523 = vmatprep.subr.mxu1 %v11967_v0 }
0x2776   :  { %11516 = vmatmul.mubr.msk.f32.vlgmr.msra.gmra.mxu1 %vm461_vm5, %v9661_v59 }
0x2777   :  { %v11782_v19 = vpop.eup %11781  ;;  %11524 = vmatpush3.msk.msra.mxu1 %vm465_vm4, %v12998_v52  ;;  %11525 = vmatprep.mubr.msk.f32.mxu1 %vm11968_vm0, %v11967_v0 }
0x2778   :  { %v9820_v61 = vmul.f32 %v11782_v19, %v11766_v28  ;;  %11533 = vmatprep.subr.mxu1 %v11967_v0 }
0x277a   :  { %11526 = vmatmul.mubr.msk.f32.vlgmr.msra.gmra.mxu1 %vm461_vm5, %v9820_v61 }
0x277b   :  { %v11784_v33 = vpop.eup %11783  ;;  %11534 = vmatpush3.msk.msra.mxu1 %vm465_vm4, %v13007_v51  ;;  %11535 = vmatprep.mubr.msk.f32.mxu1 %vm11968_vm0, %v11967_v0 }
0x277c   :  { %v9979_v63 = vmul.f32 %v11784_v33, %v11768_v27  ;;  %11545 = vmatprep.subr.mxu1 %v11967_v0 }
0x277e   :  { %11536 = vmatmul.mubr.msk.f32.vlgmr.msra.gmra.mxu1 %vm461_vm5, %v9979_v63 }
0x277f   :  { %11549 = vmatprep.mubr.msk.f32.mxu1 %vm11968_vm0, %v11967_v0  ;;  %11546 = vmatpush3.msra.mxu1 %v10631_v18 }
0x2780   :  { %11547 = vmatprep.subr.mxu1 %v11967_v0 }
0x2781   :  { %11548 = vmatpush3.msra.mxu1 %v10630_v48 }
0x27b4   :  { %v8921_v52 = vpop.f32.mrf.mxu1 }
0x27b6   :  { %v11467_v6 = vpop.f32.mrf.mxu1 }
0x2826   :  { %v9080_v8 = vpop.f32.mrf.mxu1 }
0x2827   :  { %9403 = vrot.lane.b32.xlu1 %v9080_v8, %s11972_s19  ;;  %v10272_v8 = vld [vmem:[#allocation12 + $0x8] sm:$0xff] }
0x2828   :  { %v11477_v31 = vpop.f32.mrf.mxu1 }
0x2829   :  { %v10271_v31 = vld [vmem:[#allocation12] sm:$0xff] }
0x282a   :  { %v9239_v9 = vpop.f32.mrf.mxu1 }
0x282b   :  { %9407 = vrot.lane.b32.xlu1 %v9239_v9, %s11963_s22 }
0x282c   :  { %v11487_v51 = vpop.f32.mrf.mxu1 }
0x282e   :  { %v9398_v29 = vpop.f32.mrf.mxu1 }
0x2830   :  { %v11497_v32 = vpop.f32.mrf.mxu1 }
0x2832   :  { %v9572_v11 = vpop.f32.mrf.mxu1 }
0x2834   :  { %v11507_v14 = vpop.f32.mrf.mxu1 }
0x2836   :  { %v9731_v15 = vpop.f32.mrf.mxu1 }
0x2837   :  { %10054 = vrot.lane.b32.xlu0 %v9731_v15, %s11972_s19 }
0x2838   :  { %v11517_v44 = vpop.f32.mrf.mxu1 }
0x2839   :  { %v10635_v44 = vld [vmem:[#allocation13] ss:$0 sm:$0xff] }
0x283a   :  { %v9890_v43 = vpop.f32.mrf.mxu1 }
0x283b   :  { %9411 = vrot.lane.b32.xlu0 %v9398_v29, %s11973_s11  ;;  %10058 = vrot.lane.b32.xlu1 %v9890_v43, %s11963_s22 }
0x283c   :  { %v11527_v2 = vpop.f32.mrf.mxu1 }
0x283e   :  { %v10049_v47 = vpop.f32.mrf.mxu1 }
0x283f   :  { %10062 = vrot.lane.b32.xlu1 %v10049_v47, %s11973_s11 }
0x2840   :  { %v11537_v46 = vpop.f32.mrf.mxu1 }
0x2899   :  { %v9404_v50 = vpop.permute.xlu1 %9403 }
0x289a   :  { %v9414_v62 = vsel %vm371_vm2, %v8921_v52, %v9404_v50 }
0x289d   :  { %v9408_v13 = vpop.permute.xlu1 %9407 }
0x289e   :  { %v9415_v20 = vsel %vm1053_vm6, %v9414_v62, %v9408_v13 }
0x28a9   :  { %v10055_v53 = vpop.permute.xlu0 %10054 }
0x28aa   :  { %v10065_v39 = vsel %vm371_vm2, %v9572_v11, %v10055_v53 }
0x28ad   :  { %v9412_v21 = vpop.permute.xlu0 %9411  ;;  %v10059_v22 = vpop.permute.xlu1 %10058 }
0x28ae   :  { %v9416_v55 = vsel %vm1055_vm7, %v9415_v20, %v9412_v21  ;;  %v10066_v24 = vsel %vm1053_vm6, %v10065_v39, %v10059_v22 }
0x28af   :  { %9417 = vst.msk [vmem:[#allocation3] sm:$0xf] %vm4625_vm12, %v9416_v55 }
0x28b1   :  { %v10063_v16 = vpop.permute.xlu1 %10062 }
0x28b2   :  { %v10067_v41 = vsel %vm1055_vm7, %v10066_v24, %v10063_v16 }
0x28b3   :  { %10068 = vst.msk [vmem:[#allocation3 + $0x4] sm:$0xf] %vm4625_vm12, %v10067_v41 }
0x28ba   :  { %v10069_v25 = vld [vmem:[#allocation3] sm:$0xff] }
0x28bb   :  { %v10070_v3 = vadd.f32 %v10069_v25, %v13281_v10 }
0x28bd   :  { %v10071_v1 = vsel %vm157_vm1, %v10070_v3, 0.0 }
0x28be   :  { %10072 = vadd.xlane.f32.xlu0 %v10071_v1 }
0x2947   :  { %v10073_v60 = vpop.xlane.xlu0 %10072 }
0x2948   :  { %v10074_v28 = vmul.f32 0.0625, %v10073_v60 }
0x294a   :  { %v10075_v34 = vsub.f32 %v10070_v3, %v10074_v28 }
0x294c   :  { %v10076_v27 = vmul.f32 %v10075_v34, %v10075_v34 }
0x294e   :  { %v10077_v12 = vsel %vm157_vm1, %v10076_v27, 0.0 }
0x294f   :  { %10078 = vadd.xlane.f32.xlu1 %v10077_v12 }
0x29d8   :  { %v10079_v10 = vpop.xlane.xlu1 %10078 }
0x29d9   :  { %v10080_v38 = vmul.f32 0.0625, %v10079_v10 }
0x29db   :  { %v10081_v35 = vadd.f32 1e-05, %v10080_v38 }
0x29dd   :  { %11785 = vrsqrt.f32 %v10081_v35 }
0x29ea   :  { %v11786_v30 = vpop.eup %11785 }
0x29eb   :  { %v10083_v42 = vmul.f32 %v11786_v30, %v10075_v34 }
0x29ed   :  { %v10084_v45 = vmul.f32 %v13275_v7, %v10083_v42 }
0x29ef   :  { %v10085_v40 = vadd.f32 %v13278_v17, %v10084_v45 }
0x29f1   :  { %11543 = vmatmul.mubr.msk.f32.vlgmr.msra.gmra.mxu0 %vm157_vm1, %v10085_v40 }
0x29f2   :  { %11556 = vmatprep.mubr.msk.f32.mxu0 %vm11968_vm0, %v11967_v0  ;;  %11553 = vmatpush3.msra.mxu0 %v10272_v8 }
0x29f3   :  { %11554 = vmatprep.subr.mxu0 %v11967_v0 }
0x29f4   :  { %11555 = vmatpush3.msra.mxu0 %v10271_v31 }
0x2ab1   :  { %v10166_v49 = vpop.f32.mrf.mxu0 }
0x2ab2   :  { %v10167_v54 = vadd.f32 %v10628_v5, %v10166_v49 }
0x2ab3   :  { %v11544_v56 = vpop.f32.mrf.mxu0 }
0x2ab4   :  { %v10170_v26 = vmax.f32 %v10167_v54, 0.0 }
0x2ab6   :  { %11550 = vmatmul.mubr.msk.f32.vlgmr.msra.gmra.mxu1 %vm157_vm1, %v10170_v26 }
0x2b76   :  { %v10251_v57 = vpop.f32.mrf.mxu1 }
0x2b77   :  { %v10252_v23 = vadd.f32 %v10633_v4, %v10251_v57 }
0x2b78   :  { %v11551_v58 = vpop.f32.mrf.mxu1 }
0x2b79   :  { %v10255_v59 = vadd.f32 %v10252_v23, %v10085_v40 }
0x2b7b   :  { %v10256_v19 = vsel %vm157_vm1, %v10255_v59, 0.0 }
0x2b7c   :  { %10257 = vadd.xlane.f32.xlu0 %v10256_v19 }
0x2c05   :  { %v10258_v61 = vpop.xlane.xlu0 %10257 }
0x2c06   :  { %v10259_v33 = vmul.f32 0.0625, %v10258_v61 }
0x2c08   :  { %v10260_v63 = vsub.f32 %v10255_v59, %v10259_v33 }
0x2c0a   :  { %v10261_v52 = vmul.f32 %v10260_v63, %v10260_v63 }
0x2c0c   :  { %v10262_v6 = vsel %vm157_vm1, %v10261_v52, 0.0 }
0x2c0d   :  { %10263 = vadd.xlane.f32.xlu0 %v10262_v6 }
0x2c96   :  { %v10264_v9 = vpop.xlane.xlu0 %10263 }
0x2c97   :  { %v10265_v51 = vmul.f32 0.0625, %v10264_v9 }
0x2c99   :  { %v10266_v29 = vadd.f32 1e-05, %v10265_v51 }
0x2c9b   :  { %11787 = vrsqrt.f32 %v10266_v29 }
0x2ca8   :  { %v11788_v32 = vpop.eup %11787 }
0x2ca9   :  { %v10268_v11 = vmul.f32 %v11788_v32, %v10260_v63 }
0x2cab   :  { %v10269_v14 = vmul.f32 %v13275_v7, %v10268_v11 }
0x2cad   :  { %v10270_v15 = vadd.f32 %v13278_v17, %v10269_v14 }
0x2caf   :  { %11557 = vmatmul.mubr.msk.f32.vlgmr.msra.gmra.mxu0 %vm157_vm1, %v10270_v15 }
0x2d6f   :  { %v10349_v43 = vpop.f32.mrf.mxu0 }
0x2d70   :  { %v10350_v2 = vadd.f32 %v10635_v44, %v10349_v43 }
0x2d71   :  { %v11558_v47 = vpop.f32.mrf.mxu0 }
0x2d72   :  { %v10354_v46 = vrot.slane %v10350_v2, 4 }
0x2d74   :  { %v10356_v50 = vmax.f32 %v10350_v2, %v10354_v46 }
0x2d76   :  { %v10357_v0 = vsub.f32 %v10350_v2, %v10356_v50  ;;  %v10361_v13 = vrot.slane %v10356_v50, 4 }
0x2d78   :  { %v10363_v53 = vsub.f32 %v10350_v2, %v10361_v13  ;;  %v10358_v62 = vmul.f32 1.442695, %v10357_v0 }
0x2d7a   :  { %v10364_v20 = vmul.f32 1.442695, %v10363_v53 }
0x2d7c   :  { %11789 = vpow2.f32 %v10364_v20 }
0x2d7d   :  { %11791 = vpow2.f32 %v10358_v62 }
0x2d89   :  { %v11790_v21 = vpop.eup %11789 }
0x2d8a   :  { %v10367_v22 = vrot.slane %v11790_v21, 4  ;;  %v11792_v7 = vpop.eup %11791 }
0x2d8c   :  { %v10369_v55 = vadd.f32 %v11792_v7, %v10367_v22 }
0x2d8e   :  { %11793 = vrcp.f32 %v10369_v55  ;;  %v10374_v17 = vrot.slane %v10369_v55, 4 }
0x2d90   :  { %11795 = vrcp.f32 %v10374_v17 }
0x2d9b   :  { %v11794_v39 = vpop.eup %11793 }
0x2d9c   :  { %v10371_v24 = vmul.f32 %v11794_v39, %v11792_v7 }
0x2d9d   :  { %v11796_v16 = vpop.eup %11795 }
0x2d9e   :  { %10372 = vst.msk [vmem:[#allocation15] sm:$0xf] %vm4625_vm12, %v10371_v24  ;;  %v10377_v41 = vmul.f32 %v11796_v16, %v11790_v21 }
0x2da0   :  { %10379 = vst.msk [vmem:[#allocation15] sm:$0xf0] %vm10378_vm14, %v10377_v41 }
0x2da1   :  { %11938 = shalt.err (!%p11935_p6)
}
0x2da2   :  { %10389 = dma.vmem_to_hbm [thread:$0]  %s10387_s14, 128, %s13476_s20, [#allocation6]  }
0x2da3   :  { %11955 = dma.done.wait [#allocation6], 128  }
0x2da4   :  { %11956 = vsyncadd [#allocation6], 4294967168 }
0x2da5   :  { %10393 = vsyncpa [#allocation5], 1 }
0x2da6   :  { %10394 = vsyncpa [#allocation8], 1 }
0x2da7   :  { %10395 = vsyncpa [#allocation11], 1 }
0x2da8   :  { %10396 = vsyncpa [#allocation14], 1 }
0x2da9   :  { %10397 = vsyncpa [#allocation6], 1 }

</bundles_post_ra>
